<compile_context>
chip_gen: v7x
topology: tpu7x:2x2x1
jax: 0.10.0
libtpu: 0.0.40
codegen_flags: <defaults>
</compile_context>

<pallas_src>
import functools

import jax
import jax.numpy as jnp
from jax import lax
from jax.experimental import pallas as pl
from jax.experimental.pallas import tpu as pltpu

BN_EPS = 1e-5
VMEM_LIMIT_BYTES = 32 * 1024 * 1024   # safe on v5e/v6e/v7x


# -----------------------------------------------------------------------------
# Pallas kernels
# -----------------------------------------------------------------------------
def _sa_tail_kernel(x_ref, w2_ref, t2_ref, w3_ref, t3_ref, out_ref, *, ns, gc):
    """(Conv1x1 -> folded-BN -> ReLU) x 2 + max over `ns` samples.

    Chunked over `gc` groups at a time so the per-chunk intermediates
    ((gc*ns, C) tiles) stay small instead of keeping the whole
    (tm*ns, C) activation chain live (vreg-spill relief).

    x_ref:  (tm*ns, C1) bf16  layer-1 activations, channels last, group-major
    w*_ref: bf16 weights with the BN scale already folded in
    t*_ref: (1, C)  f32 folded BN shift
    out_ref:(tm, C3) f32 per-group max-pooled features
    """
    tm = out_ref.shape[0]
    nchunks = tm // gc

    @pl.loop(0, nchunks)
    def _(c):
        r0 = pl.multiple_of(c * (gc * ns), gc * ns)
        h = x_ref[pl.ds(r0, gc * ns), :]                         # (gc*ns, C1) bf16
        h = jnp.dot(h, w2_ref[...], preferred_element_type=jnp.float32)
        h = jnp.maximum(h + t2_ref[...], 0.0).astype(jnp.bfloat16)
        h = jnp.dot(h, w3_ref[...], preferred_element_type=jnp.float32)
        h = jnp.maximum(h + t3_ref[...], 0.0)                    # (gc*ns, C3) f32
        g0 = pl.multiple_of(c * gc, gc)
        out_ref[pl.ds(g0, gc), :] = jnp.max(
            h.reshape(gc, ns, h.shape[-1]), axis=1)


def sa_tail_maxpool(x_flat, w2, t2, w3, t3, *, ns, tm, gc):
    """x_flat: (M*ns, C1) bf16 -> (M, C3) f32 (per-group max-pooled)."""
    m_rows, c1 = x_flat.shape
    m = m_rows // ns
    c3 = w3.shape[1]
    assert m % tm == 0 and tm % gc == 0

    kernel = functools.partial(_sa_tail_kernel, ns=ns, gc=gc)
    return pl.pallas_call(
        kernel,
        out_shape=jax.ShapeDtypeStruct((m, c3), jnp.float32),
        grid=(m // tm,),
        in_specs=[
            pl.BlockSpec((tm * ns, c1), lambda i: (i, 0)),
            pl.BlockSpec(w2.shape, lambda i: (0, 0)),
            pl.BlockSpec(t2.shape, lambda i: (0, 0)),
            pl.BlockSpec(w3.shape, lambda i: (0, 0)),
            pl.BlockSpec(t3.shape, lambda i: (0, 0)),
        ],
        out_specs=pl.BlockSpec((tm, c3), lambda i: (i, 0)),
        compiler_params=pltpu.CompilerParams(
            dimension_semantics=("parallel",),
            vmem_limit_bytes=VMEM_LIMIT_BYTES),
    )(x_flat, w2, t2, w3, t3)


def _sa3_head_kernel(x_ref, w2_ref, t2_ref, w3_ref, t3_ref,
                     wf1_ref, tf1_ref, wf2_ref, tf2_ref, wf3_ref, bf3_ref,
                     out_ref, *, b, ns):
    """Fused sa3 MLP tail (256->512->1024) + max over samples + FC head.

    x_ref: (B*ns, 256) bf16 layer-1 activations of sa3
    out_ref: (B, num_classes) f32 logits
    """
    h = x_ref[...]                                               # (B*ns, 256) bf16
    h = jnp.dot(h, w2_ref[...], preferred_element_type=jnp.float32)
    h = jnp.maximum(h + t2_ref[...], 0.0).astype(jnp.bfloat16)
    h = jnp.dot(h, w3_ref[...], preferred_element_type=jnp.float32)
    h = jnp.maximum(h + t3_ref[...], 0.0)                        # (B*ns, 1024) f32
    g = jnp.max(h.reshape(b, ns, h.shape[-1]), axis=1)           # (B, 1024)
    g = g.astype(jnp.bfloat16)
    g = jnp.dot(g, wf1_ref[...], preferred_element_type=jnp.float32)
    g = jnp.maximum(g + tf1_ref[...], 0.0).astype(jnp.bfloat16)
    # TODO(synk): Dropout(p=0.4) is identity in eval mode (no RNG dropout).
    g = jnp.dot(g, wf2_ref[...], preferred_element_type=jnp.float32)
    g = jnp.maximum(g + tf2_ref[...], 0.0).astype(jnp.bfloat16)
    g = jnp.dot(g, wf3_ref[...], preferred_element_type=jnp.float32)
    out_ref[...] = g + bf3_ref[...]


def sa3_plus_head(x3, sa3_p, head_p, *, b, ns, num_classes):
    kernel = functools.partial(_sa3_head_kernel, b=b, ns=ns)
    # Grid-less call: every operand is a full-array VMEM ref (total < 6 MiB).
    return pl.pallas_call(
        kernel,
        out_shape=jax.ShapeDtypeStruct((b, num_classes), jnp.float32),
        compiler_params=pltpu.CompilerParams(
            vmem_limit_bytes=VMEM_LIMIT_BYTES),
    )(x3, sa3_p["w2"], sa3_p["t2"], sa3_p["w3"], sa3_p["t3"],
      head_p["wf1"], head_p["tf1"], head_p["wf2"], head_p["tf2"],
      head_p["wf3"], head_p["bf3"])


# -----------------------------------------------------------------------------
# Plain-JAX glue (data-dependent grouping: FPS, ball query, gather, layer 1)
# -----------------------------------------------------------------------------
def farthest_point_sample(xyz, npoint, key):
    B, N, _ = xyz.shape
    farthest = jax.random.randint(key, (B,), 0, N, dtype=jnp.int32)
    distance = jnp.full((B, N), 1e10, dtype=jnp.float32)
    centroids = jnp.zeros((B, npoint), dtype=jnp.int32)
    batch_idx = jnp.arange(B)

    def body(i, carry):
        cents, dist_acc, far = carry
        cents = cents.at[:, i].set(far)
        centroid = xyz[batch_idx, far][:, None, :]               # (B, 1, 3)
        dist = jnp.sum((xyz - centroid) ** 2, axis=-1)           # (B, N)
        dist_acc = jnp.minimum(dist_acc, dist)
        far = jnp.argmax(dist_acc, axis=-1).astype(jnp.int32)
        return cents, dist_acc, far

    centroids, _, _ = lax.fori_loop(0, npoint, body,
                                    (centroids, distance, farthest))
    return centroids


def ball_query(centroids, xyz, radius, max_samples):
    # Matches the reference: strict `dist < radius`, first (ascending) valid
    # indices, and empty slots left at index 0.
    N = xyz.shape[1]
    diff = centroids[:, :, None, :] - xyz[:, None, :, :]
    dist = jnp.sqrt(jnp.sum(diff * diff, axis=-1))               # torch.cdist
    mask = dist < radius
    cand = jnp.where(mask, jnp.arange(N, dtype=jnp.int32)[None, None, :], N)
    cand = jnp.sort(cand, axis=-1)[:, :, :max_samples]
    return jnp.where(cand < N, cand, 0)


def group_and_layer1(xyz, points, w1, t1, *, npoint, radius, max_samples, key):
    """FPS + ball query + gather + centered group + first Conv1x1/BN/ReLU.

    The first conv has a skinny / ragged channel count (3 or 131); doing it in
    plain JAX (fused with the gather by XLA) avoids lane-padded (rows, 3)
    DMA into the Pallas kernel and the K=131 MXU padding.
    """
    B, N, _ = xyz.shape
    cent_idx = farthest_point_sample(xyz, npoint, key)           # (B, npoint)
    b1 = jnp.arange(B)[:, None]
    centroids = xyz[b1, cent_idx]                                # (B, npoint, 3)
    grouped_idx = ball_query(centroids, xyz, radius, max_samples)
    b2 = jnp.arange(B)[:, None, None]
    grouped_xyz = xyz[b2, grouped_idx] - centroids[:, :, None, :]
    if points is not None:
        grouped_points = points[b2, grouped_idx]
        grouped = jnp.concatenate([grouped_xyz, grouped_points], axis=-1)
    else:
        grouped = grouped_xyz
    h1 = jnp.maximum(jnp.einsum("bpsc,cd->bpsd", grouped, w1) + t1, 0.0)
    return centroids, h1                                          # h1: f32


# -----------------------------------------------------------------------------
# Deterministic parameter construction (Conv2d/Linear + folded eval-mode BN,
# BN scale folded INTO the weights, bf16 for all Pallas matmul operands)
# -----------------------------------------------------------------------------
def _fold_bn(w, b, gamma, beta, mean, var):
    s = gamma / jnp.sqrt(var + BN_EPS)
    w_eff = w * s[None, :]
    t = (b - mean) * s + beta
    return w_eff, t[None, :]                                      # (Cin,Cout), (1,Cout)


def init_sa_params(key, in_channels, mlp_channels, scale=0.1):
    params = {}
    c_in = in_channels
    for i, c_out in enumerate(mlp_channels, start=1):
        key, kw, kb, kg, kbe, km, kv = jax.random.split(key, 7)
        w = jax.random.normal(kw, (c_in, c_out), jnp.float32) * scale
        b = jax.random.normal(kb, (c_out,), jnp.float32) * scale
        gamma = jax.random.uniform(kg, (c_out,), jnp.float32, 0.5, 1.5)
        beta = jax.random.normal(kbe, (c_out,), jnp.float32) * scale
        mean = jax.random.normal(km, (c_out,), jnp.float32) * scale
        var = jax.random.uniform(kv, (c_out,), jnp.float32, 0.5, 1.5)
        w_eff, t = _fold_bn(w, b, gamma, beta, mean, var)
        if i > 1:  # layers 2..n are Pallas MXU operands -> bf16
            w_eff = w_eff.astype(jnp.bfloat16)
        params[f"w{i}"] = w_eff
        params[f"t{i}"] = t
        c_in = c_out
    return params


def init_head_params(key, num_classes=40, scale=0.05):
    def linear_bn(k, cin, cout):
        kw, kb, kg, kbe, km, kv = jax.random.split(k, 6)
        w = jax.random.normal(kw, (cin, cout), jnp.float32) * scale
        b = jax.random.normal(kb, (cout,), jnp.float32) * scale
        gamma = jax.random.uniform(kg, (cout,), jnp.float32, 0.5, 1.5)
        beta = jax.random.normal(kbe, (cout,), jnp.float32) * scale
        mean = jax.random.normal(km, (cout,), jnp.float32) * scale
        var = jax.random.uniform(kv, (cout,), jnp.float32, 0.5, 1.5)
        w_eff, t = _fold_bn(w, b, gamma, beta, mean, var)
        return w_eff.astype(jnp.bfloat16), t

    k1, k2, k3 = jax.random.split(key, 3)
    wf1, tf1 = linear_bn(k1, 1024, 512)
    wf2, tf2 = linear_bn(k2, 512, 256)
    kw, kb = jax.random.split(k3)
    wf3 = (jax.random.normal(kw, (256, num_classes), jnp.float32)
           * scale).astype(jnp.bfloat16)
    bf3 = (jax.random.normal(kb, (num_classes,), jnp.float32) * scale)[None, :]
    return {"wf1": wf1, "tf1": tf1, "wf2": wf2, "tf2": tf2,
            "wf3": wf3, "bf3": bf3}


# -----------------------------------------------------------------------------
# Full forward pass (matches PointNet2Classification.forward, eval mode)
# -----------------------------------------------------------------------------
def pointnet2_forward(x, params, fps_key):
    B = x.shape[0]
    k1, k3 = jax.random.split(fps_key)

    # --- sa1: npoint=512, radius=0.2, max_samples=32, mlp=[64, 64, 128] -----
    p1 = params["sa1"]
    ns1, np1 = 32, 512
    centroids1, h1 = group_and_layer1(
        x, None, p1["w1"], p1["t1"],
        npoint=np1, radius=0.2, max_samples=ns1, key=k1)
    m1 = B * np1
    tm = 256 if m1 % 256 == 0 else m1          # grid >= 4 for B >= 2 (2 v7x TCs)
    gc = 32 if tm % 32 == 0 else tm
    x_flat = h1.reshape(m1 * ns1, -1).astype(jnp.bfloat16)
    points1 = sa_tail_maxpool(
        x_flat, p1["w2"], p1["t2"], p1["w3"], p1["t3"],
        ns=ns1, tm=tm, gc=gc).reshape(B, np1, -1)                # (B, 512, 128)

    # --- sa3 (npoint=1, radius=0.8, 128 samples, mlp=[256,512,1024]) + head -
    p3 = params["sa3"]
    ns3 = 128
    _, h3 = group_and_layer1(
        centroids1, points1, p3["w1"], p3["t1"],
        npoint=1, radius=0.8, max_samples=ns3, key=k3)           # (B,1,128,256)
    x3 = h3.reshape(B * ns3, -1).astype(jnp.bfloat16)
    head = params["head"]
    num_classes = head["wf3"].shape[1]
    return sa3_plus_head(x3, p3, head, b=B, ns=ns3, num_classes=num_classes)


if __name__ == "__main__":
    key = jax.random.PRNGKey(0)
    k_x, k_p1, k_p3, k_ph, k_fps = jax.random.split(key, 5)

    B, N = 2, 1024
    x = jax.random.uniform(k_x, (B, N, 3), jnp.float32, -1.0, 1.0)

    params = {
        "sa1": init_sa_params(k_p1, 3, [64, 64, 128]),
        "sa3": init_sa_params(k_p3, 128 + 3, [256, 512, 1024]),
        "head": init_head_params(k_ph, num_classes=40),
    }

    fwd = jax.jit(pointnet2_forward)
    logits = jax.block_until_ready(fwd(x, params, k_fps))
    assert logits.shape == (B, 40) and logits.dtype == jnp.float32
    assert bool(jnp.all(jnp.isfinite(logits)))
    print("KERNEL_OK")
</pallas_src>

<mosaic_0001>
module attributes {stable_mosaic.version = 11 : i64} {
  func.func @_sa_tail_kernel(%arg0: i32, %arg1: memref<8192x64xbf16, #tpu.memory_space<vmem>>, %arg2: memref<64x64xbf16, #tpu.memory_space<vmem>>, %arg3: memref<1x64xf32, #tpu.memory_space<vmem>>, %arg4: memref<64x128xbf16, #tpu.memory_space<vmem>>, %arg5: memref<1x128xf32, #tpu.memory_space<vmem>>, %arg6: memref<256x128xf32, #tpu.memory_space<vmem>>) attributes {dimension_semantics = [#tpu.dimension_semantics<parallel>], iteration_bounds = array<i64: 4>, scalar_prefetch = 0 : i64, scratch_operands = 0 : i64, tpu.core_type = #tpu.core_type<tc>, window_params = [{transform_indices = @transform_0, window_bounds = array<i64: 8192, 64>}, {pipeline_mode = #tpu.pipeline_mode<synchronous>, transform_indices = @transform_1, window_bounds = array<i64: 64, 64>}, {pipeline_mode = #tpu.pipeline_mode<synchronous>, transform_indices = @transform_2, window_bounds = array<i64: 1, 64>}, {pipeline_mode = #tpu.pipeline_mode<synchronous>, transform_indices = @transform_3, window_bounds = array<i64: 64, 128>}, {pipeline_mode = #tpu.pipeline_mode<synchronous>, transform_indices = @transform_4, window_bounds = array<i64: 1, 128>}, {transform_indices = @transform_5, window_bounds = array<i64: 256, 128>}]} {
    %c0_i32 = arith.constant 0 : i32
    %c8_i32 = arith.constant 8 : i32
    %0 = arith.addi %c0_i32, %c8_i32 : i32
    %c1_i32 = arith.constant 1 : i32
    scf.for %arg7 = %c0_i32 to %0 step %c1_i32  : i32 {
      %c1_i32_1 = arith.constant 1 : i32
      %1 = arith.muli %arg7, %c1_i32_1 : i32
      %c0_i32_2 = arith.constant 0 : i32
      %2 = arith.addi %c0_i32_2, %1 : i32
      %c1024_i32 = arith.constant 1024 : i32
      %3 = arith.muli %2, %c1024_i32 : i32
      %4 = tpu.assume_multiple %3, 1024 : i32
      %5 = arith.index_cast %4 : i32 to index
      %c0 = arith.constant 0 : index
      %6 = vector.load %arg1[%5, %c0] : memref<8192x64xbf16, #tpu.memory_space<vmem>>, vector<1024x64xbf16>
      %c0_3 = arith.constant 0 : index
      %c0_4 = arith.constant 0 : index
      %7 = vector.load %arg2[%c0_3, %c0_4] : memref<64x64xbf16, #tpu.memory_space<vmem>>, vector<64x64xbf16>
      %cst = arith.constant dense<0.000000e+00> : vector<1024x64xf32>
      %8 = tpu.matmul %6, %7, %cst {dimension_numbers = #tpu.dot_dimension_numbers<[1], [0], [0], [1], [0, 0, 1, 1], [], []>} : vector<1024x64xbf16>, vector<64x64xbf16>, vector<1024x64xf32> -> vector<1024x64xf32>
      %c0_5 = arith.constant 0 : index
      %c0_6 = arith.constant 0 : index
      %9 = vector.load %arg3[%c0_5, %c0_6] : memref<1x64xf32, #tpu.memory_space<vmem>>, vector<1x64xf32>
      %10 = vector.broadcast %9 : vector<1x64xf32> to vector<1024x64xf32>
      %11 = arith.addf %8, %10 : vector<1024x64xf32>
      %cst_7 = arith.constant 0.000000e+00 : f32
      %12 = vector.broadcast %cst_7 : f32 to vector<1024x64xf32>
      %13 = arith.maximumf %11, %12 : vector<1024x64xf32>
      %14 = arith.truncf %13 : vector<1024x64xf32> to vector<1024x64xbf16>
      %c0_8 = arith.constant 0 : index
      %c0_9 = arith.constant 0 : index
      %15 = vector.load %arg4[%c0_8, %c0_9] : memref<64x128xbf16, #tpu.memory_space<vmem>>, vector<64x128xbf16>
      %cst_10 = arith.constant dense<0.000000e+00> : vector<1024x128xf32>
      %16 = tpu.matmul %14, %15, %cst_10 {dimension_numbers = #tpu.dot_dimension_numbers<[1], [0], [0], [1], [0, 0, 1, 1], [], []>} : vector<1024x64xbf16>, vector<64x128xbf16>, vector<1024x128xf32> -> vector<1024x128xf32>
      %c0_11 = arith.constant 0 : index
      %c0_12 = arith.constant 0 : index
      %17 = vector.load %arg5[%c0_11, %c0_12] : memref<1x128xf32, #tpu.memory_space<vmem>>, vector<1x128xf32>
      %18 = vector.broadcast %17 : vector<1x128xf32> to vector<1024x128xf32>
      %19 = arith.addf %16, %18 : vector<1024x128xf32>
      %cst_13 = arith.constant 0.000000e+00 : f32
      %20 = vector.broadcast %cst_13 : f32 to vector<1024x128xf32>
      %21 = arith.maximumf %19, %20 : vector<1024x128xf32>
      %c32_i32 = arith.constant 32 : i32
      %22 = arith.muli %2, %c32_i32 : i32
      %23 = tpu.assume_multiple %22, 32 : i32
      %24 = vector.shape_cast %21 : vector<1024x128xf32> to vector<32x32x128xf32>
      %cst_14 = arith.constant dense<0xFF800000> : vector<32x128xf32>
      %25 = vector.multi_reduction <maximumf>, %24, %cst_14 [1] : vector<32x32x128xf32> to vector<32x128xf32>
      %26 = arith.index_cast %23 : i32 to index
      %c0_15 = arith.constant 0 : index
      %27 = vector.load %arg6[%26, %c0_15] : memref<256x128xf32, #tpu.memory_space<vmem>>, vector<32x128xf32>
      tpu.vector_store %arg6[%26, %c0_15], %25 {strides = array<i32>} : memref<256x128xf32, #tpu.memory_space<vmem>>, vector<32x128xf32>,
    }
    %c8_i32_0 = arith.constant 8 : i32
    return
  }
  func.func @transform_0(%arg0: i32) -> (i32, i32) {
    %c0_i32 = arith.constant 0 : i32
    %c0_i32_0 = arith.constant 0 : i32
    return %arg0, %c0_i32 : i32, i32
  }
  func.func @transform_1(%arg0: i32) -> (i32, i32) {
    %c0_i32 = arith.constant 0 : i32
    %c0_i32_0 = arith.constant 0 : i32
    %c0_i32_1 = arith.constant 0 : i32
    return %c0_i32, %c0_i32_0 : i32, i32
  }
  func.func @transform_2(%arg0: i32) -> (i32, i32) {
    %c0_i32 = arith.constant 0 : i32
    %c0_i32_0 = arith.constant 0 : i32
    %c0_i32_1 = arith.constant 0 : i32
    return %c0_i32, %c0_i32_0 : i32, i32
  }
  func.func @transform_3(%arg0: i32) -> (i32, i32) {
    %c0_i32 = arith.constant 0 : i32
    %c0_i32_0 = arith.constant 0 : i32
    %c0_i32_1 = arith.constant 0 : i32
    return %c0_i32, %c0_i32_0 : i32, i32
  }
  func.func @transform_4(%arg0: i32) -> (i32, i32) {
    %c0_i32 = arith.constant 0 : i32
    %c0_i32_0 = arith.constant 0 : i32
    %c0_i32_1 = arith.constant 0 : i32
    return %c0_i32, %c0_i32_0 : i32, i32
  }
  func.func @transform_5(%arg0: i32) -> (i32, i32) {
    %c0_i32 = arith.constant 0 : i32
    %c0_i32_0 = arith.constant 0 : i32
    return %arg0, %c0_i32 : i32, i32
  }
}

module attributes {stable_mosaic.version = 11 : i64} {
  func.func @_sa3_head_kernel(%arg0: memref<256x256xbf16, #tpu.memory_space<vmem>>, %arg1: memref<256x512xbf16, #tpu.memory_space<vmem>>, %arg2: memref<1x512xf32, #tpu.memory_space<vmem>>, %arg3: memref<512x1024xbf16, #tpu.memory_space<vmem>>, %arg4: memref<1x1024xf32, #tpu.memory_space<vmem>>, %arg5: memref<1024x512xbf16, #tpu.memory_space<vmem>>, %arg6: memref<1x512xf32, #tpu.memory_space<vmem>>, %arg7: memref<512x256xbf16, #tpu.memory_space<vmem>>, %arg8: memref<1x256xf32, #tpu.memory_space<vmem>>, %arg9: memref<256x40xbf16, #tpu.memory_space<vmem>>, %arg10: memref<1x40xf32, #tpu.memory_space<vmem>>, %arg11: memref<2x40xf32, #tpu.memory_space<vmem>>) attributes {dimension_semantics = [], scalar_prefetch = 0 : i64, scratch_operands = 0 : i64, tpu.core_type = #tpu.core_type<tc>} {
    %c0 = arith.constant 0 : index
    %c0_0 = arith.constant 0 : index
    %0 = vector.load %arg0[%c0, %c0_0] : memref<256x256xbf16, #tpu.memory_space<vmem>>, vector<256x256xbf16>
    %c0_1 = arith.constant 0 : index
    %c0_2 = arith.constant 0 : index
    %1 = vector.load %arg1[%c0_1, %c0_2] : memref<256x512xbf16, #tpu.memory_space<vmem>>, vector<256x512xbf16>
    %cst = arith.constant dense<0.000000e+00> : vector<256x512xf32>
    %2 = tpu.matmul %0, %1, %cst {dimension_numbers = #tpu.dot_dimension_numbers<[1], [0], [0], [1], [0, 0, 1, 1], [], []>} : vector<256x256xbf16>, vector<256x512xbf16>, vector<256x512xf32> -> vector<256x512xf32>
    %c0_3 = arith.constant 0 : index
    %c0_4 = arith.constant 0 : index
    %3 = vector.load %arg2[%c0_3, %c0_4] : memref<1x512xf32, #tpu.memory_space<vmem>>, vector<1x512xf32>
    %4 = vector.broadcast %3 : vector<1x512xf32> to vector<256x512xf32>
    %5 = arith.addf %2, %4 : vector<256x512xf32>
    %cst_5 = arith.constant 0.000000e+00 : f32
    %6 = vector.broadcast %cst_5 : f32 to vector<256x512xf32>
    %7 = arith.maximumf %5, %6 : vector<256x512xf32>
    %8 = arith.truncf %7 : vector<256x512xf32> to vector<256x512xbf16>
    %c0_6 = arith.constant 0 : index
    %c0_7 = arith.constant 0 : index
    %9 = vector.load %arg3[%c0_6, %c0_7] : memref<512x1024xbf16, #tpu.memory_space<vmem>>, vector<512x1024xbf16>
    %cst_8 = arith.constant dense<0.000000e+00> : vector<256x1024xf32>
    %10 = tpu.matmul %8, %9, %cst_8 {dimension_numbers = #tpu.dot_dimension_numbers<[1], [0], [0], [1], [0, 0, 1, 1], [], []>} : vector<256x512xbf16>, vector<512x1024xbf16>, vector<256x1024xf32> -> vector<256x1024xf32>
    %c0_9 = arith.constant 0 : index
    %c0_10 = arith.constant 0 : index
    %11 = vector.load %arg4[%c0_9, %c0_10] : memref<1x1024xf32, #tpu.memory_space<vmem>>, vector<1x1024xf32>
    %12 = vector.broadcast %11 : vector<1x1024xf32> to vector<256x1024xf32>
    %13 = arith.addf %10, %12 : vector<256x1024xf32>
    %cst_11 = arith.constant 0.000000e+00 : f32
    %14 = vector.broadcast %cst_11 : f32 to vector<256x1024xf32>
    %15 = arith.maximumf %13, %14 : vector<256x1024xf32>
    %16 = vector.shape_cast %15 : vector<256x1024xf32> to vector<2x128x1024xf32>
    %cst_12 = arith.constant dense<0xFF800000> : vector<2x1024xf32>
    %17 = vector.multi_reduction <maximumf>, %16, %cst_12 [1] : vector<2x128x1024xf32> to vector<2x1024xf32>
    %18 = arith.truncf %17 : vector<2x1024xf32> to vector<2x1024xbf16>
    %c0_13 = arith.constant 0 : index
    %c0_14 = arith.constant 0 : index
    %19 = vector.load %arg5[%c0_13, %c0_14] : memref<1024x512xbf16, #tpu.memory_space<vmem>>, vector<1024x512xbf16>
    %cst_15 = arith.constant dense<0.000000e+00> : vector<2x512xf32>
    %20 = tpu.matmul %18, %19, %cst_15 {dimension_numbers = #tpu.dot_dimension_numbers<[1], [0], [0], [1], [0, 0, 1, 1], [], []>} : vector<2x1024xbf16>, vector<1024x512xbf16>, vector<2x512xf32> -> vector<2x512xf32>
    %c0_16 = arith.constant 0 : index
    %c0_17 = arith.constant 0 : index
    %21 = vector.load %arg6[%c0_16, %c0_17] : memref<1x512xf32, #tpu.memory_space<vmem>>, vector<1x512xf32>
    %22 = vector.broadcast %21 : vector<1x512xf32> to vector<2x512xf32>
    %23 = arith.addf %20, %22 : vector<2x512xf32>
    %cst_18 = arith.constant 0.000000e+00 : f32
    %24 = vector.broadcast %cst_18 : f32 to vector<2x512xf32>
    %25 = arith.maximumf %23, %24 : vector<2x512xf32>
    %26 = arith.truncf %25 : vector<2x512xf32> to vector<2x512xbf16>
    %c0_19 = arith.constant 0 : index
    %c0_20 = arith.constant 0 : index
    %27 = vector.load %arg7[%c0_19, %c0_20] : memref<512x256xbf16, #tpu.memory_space<vmem>>, vector<512x256xbf16>
    %cst_21 = arith.constant dense<0.000000e+00> : vector<2x256xf32>
    %28 = tpu.matmul %26, %27, %cst_21 {dimension_numbers = #tpu.dot_dimension_numbers<[1], [0], [0], [1], [0, 0, 1, 1], [], []>} : vector<2x512xbf16>, vector<512x256xbf16>, vector<2x256xf32> -> vector<2x256xf32>
    %c0_22 = arith.constant 0 : index
    %c0_23 = arith.constant 0 : index
    %29 = vector.load %arg8[%c0_22, %c0_23] : memref<1x256xf32, #tpu.memory_space<vmem>>, vector<1x256xf32>
    %30 = vector.broadcast %29 : vector<1x256xf32> to vector<2x256xf32>
    %31 = arith.addf %28, %30 : vector<2x256xf32>
    %cst_24 = arith.constant 0.000000e+00 : f32
    %32 = vector.broadcast %cst_24 : f32 to vector<2x256xf32>
    %33 = arith.maximumf %31, %32 : vector<2x256xf32>
    %34 = arith.truncf %33 : vector<2x256xf32> to vector<2x256xbf16>
    %c0_25 = arith.constant 0 : index
    %c0_26 = arith.constant 0 : index
    %35 = vector.load %arg9[%c0_25, %c0_26] : memref<256x40xbf16, #tpu.memory_space<vmem>>, vector<256x40xbf16>
    %cst_27 = arith.constant dense<0.000000e+00> : vector<2x40xf32>
    %36 = tpu.matmul %34, %35, %cst_27 {dimension_numbers = #tpu.dot_dimension_numbers<[1], [0], [0], [1], [0, 0, 1, 1], [], []>} : vector<2x256xbf16>, vector<256x40xbf16>, vector<2x40xf32> -> vector<2x40xf32>
    %c0_28 = arith.constant 0 : index
    %c0_29 = arith.constant 0 : index
    %37 = vector.load %arg10[%c0_28, %c0_29] : memref<1x40xf32, #tpu.memory_space<vmem>>, vector<1x40xf32>
    %38 = vector.broadcast %37 : vector<1x40xf32> to vector<2x40xf32>
    %39 = arith.addf %36, %38 : vector<2x40xf32>
    %c0_30 = arith.constant 0 : index
    %c0_31 = arith.constant 0 : index
    %40 = vector.load %arg11[%c0_30, %c0_31] : memref<2x40xf32, #tpu.memory_space<vmem>>, vector<2x40xf32>
    tpu.vector_store %arg11[%c0_30, %c0_31], %39 {strides = array<i32>} : memref<2x40xf32, #tpu.memory_space<vmem>>, vector<2x40xf32>,
    return
  }
}

</mosaic_0001>

<bundles_post_ra>
// kernel: custom-call.12
= control target key start
LH: loop header
LB: loop body
LE: loop exit
PB: predicated region body
PF: predicated region fallthrough
CT: control target
= control target key end

     0   :  { %s6_s0 = inlined_call_operand.vmem [shape: f32[2,1024], index: 0, kind: output, shape index: {}]  }

// kernel: pointnet2_forward.40
= control target key start
LH: loop header
LB: loop body
LE: loop exit
PB: predicated region body
PF: predicated region fallthrough
CT: control target
= control target key end

     0   :  { %s3751_s18 = smov 0   ;;  %s4312_s0 = inlined_call_operand.vmem [shape: bf16[32768,64], index: 0, kind: input, shape index: {}]   ;;  %s4313_s1 = inlined_call_operand.vmem [shape: bf16[64,64], index: 1, kind: input, shape index: {}]   ;;  %s4314_s2 = inlined_call_operand.vmem [shape: f32[1,64], index: 2, kind: input, shape index: {}]   ;;  %s4315_s3 = inlined_call_operand.vmem [shape: bf16[64,128], index: 3, kind: input, shape index: {}]   ;;  %s4316_s4 = inlined_call_operand.vmem [shape: f32[1,128], index: 4, kind: input, shape index: {}]   ;;  %s4317_s5 = inlined_call_operand.vmem [shape: f32[1024,128], index: 5, kind: output, shape index: {}]  }
   0x1 LB: > { %s2991_s19 = sadd.s32 4294967295, %s3715_s18   ;;  %p2995_p0 = scmp.ge.s32.totalorder %s3715_s18, 1  ;;  %s3715_s18 = sphi %s3751_s18, %s15_s18  }
   0x2   : > { %p188_p1 = scmp.lt.s32.totalorder %s3715_s18, 5 }
   0x4   : > { %p189_p2 = pnand %p2995_p0, %p188_p1 }
   0x5   : > { %s2996_s20 = sshll.u32 (!%p189_p2), %s2991_s19, 10  ;;  %s2998_s21 = sshll.u32 (!%p189_p2), %s2991_s19, 5 }
   0x6   : > { %192 = sbr.rel (%p189_p2) target bundleno = 742 (0x2e6), region = 40  ;;  %p217_p3 = scmp.lt.s32.totalorder (!%p189_p2), %s2996_s20, 4095 }
   0x7   : > { %p223_p4 = scmp.lt.s32.totalorder (!%p189_p2), %s2998_s21, 127  ;;  %s3769_s30 = smov (!%p189_p2), 0  }
   0xd   : > { %s4319_s20 = smov (!%p217_p3, %s2996_s20), 4095  ;;  %s4321_s21 = smov (!%p223_p4, %s2998_s21), 127 }
   0xe   : > { %s2997_s22 = sshll.u32 %s4319_s20, 2  ;;  %s2999_s26 = sshll.u32 %s4321_s21, 3 }
   0xf   : > { %s3762_s25 = scalar_lea.vmem %s4312_s0, %s2997_s22  ;;  %s3767_s29 = scalar_lea.vmem %s4317_s5, %s2999_s26 }
  0x10 LB: >> { %v3631_v0 = vld [vmem:[%s4313_s1] sm:$0xff]   ;;  %v3632_v1 = vld [vmem:[%s4313_s1 + $0x8] sm:$0xff]   ;;  %s3000_s10 = sshll.u32 %s3719_s30, 10  ;;  %vm727_vm0 = vcmask 523264   ;;  %v3633_v2 = vld [vmem:[%s4313_s1 + $0x10] sm:$0xff]   ;;  %vm2882_vm1 = vcmask 1041409   ;;  %s3719_s30 = sphi %s3769_s30, %s234_s30  }
  0x11   : >> { %3343 = vmatprep.subr.bf16.mxu0 %v3631_v0  ;;  %s236_s11 = sshra.s32 %s3000_s10, 3  ;;  %v3634_v4 = vld [vmem:[%s4313_s1 + $0x18] sm:$0xff]   ;;  %v3687_v25 = vld [vmem:[%s4315_s3] sm:$0xff]   ;;  %v3690_v28 = vld [vmem:[%s4315_s3 + $0x8] sm:$0xff]   ;;  %vm2884_vm2 = vcmask 1042434   ;;  %vm2886_vm3 = vcmask 1043459  }
  0x12   : >> { %3344 = vmatpush3.bf16.msra.mxu0 %v3631_v0  ;;  %s3001_s14 = sshll.u32 %s236_s11, 2  ;;  %3479 = vmatprep.subr.bf16.mxu1 %v3687_v25  ;;  %v3691_v30 = vld [vmem:[%s4315_s3 + $0x10] sm:$0xff]   ;;  %v3694_v32 = vld [vmem:[%s4315_s3 + $0x18] sm:$0xff]   ;;  %v3914_v63 = vld [vmem:[%s4314_s2] ss:$0 sm:$0xff]  ;;  %vm2888_vm4 = vcmask 1044484  }
  0x13   : >> { %3345 = vmatprep.subr.bf16.mxu0 %v3632_v1  ;;  %s3785_s15 = scalar_lea.vmem %s3762_s25, %s3001_s14  ;;  %3480 = vmatpush3.bf16.msra.mxu1 %v3687_v25  ;;  %vm2890_vm5 = vcmask 1045509   ;;  %vm2892_vm6 = vcmask 1046534   ;;  %s3204_s11 = sshll.u32 %s3719_s30, 5  ;;  %vm2894_vm7 = vcmask 1047559  }
  0x14   : >> { %v3635_v3 = vld [vmem:[%s3785_s15] sm:$0xff]   ;;  %v3636_v5 = vld [vmem:[%s3785_s15 + $0x8] sm:$0xff]   ;;  %v3637_v6 = vld [vmem:[%s3785_s15 + $0x10] sm:$0xff]   ;;  %3481 = vmatprep.subr.bf16.mxu1 %v3690_v28  ;;  %s4185_s12 = scalar_lea.vmem %s3767_s29, %s3204_s11  ;;  %s234_s30 = sadd.s32 1, %s3719_s30  }
  0x15   : >> { %3351 = vmatprep.mubr.msk.bf16.mxu0 %vm727_vm0, %v3635_v3  ;;  %v3638_v7 = vld [vmem:[%s3785_s15 + $0x18] sm:$0xff]   ;;  %v3639_v8 = vld [vmem:[%s3785_s15 + $0x20] sm:$0xff]   ;;  %v3640_v9 = vld [vmem:[%s3785_s15 + $0x28] sm:$0xff]   ;;  %p231_p5 = scmp.ge.s32.totalorder %s234_s30, 8  }
  0x16   : >> { %3346 = vmatpush3.bf16.msra.mxu0 %v3632_v1  ;;  %v3641_v10 = vld [vmem:[%s3785_s15 + $0x30] sm:$0xff]   ;;  %v3642_v11 = vld [vmem:[%s3785_s15 + $0x38] sm:$0xff]   ;;  %v3643_v12 = vld [vmem:[%s3785_s15 + $0x40] sm:$0xff]  }
  0x17   : >> { %3347 = vmatprep.subr.bf16.mxu0 %v3633_v2  ;;  %v3644_v13 = vld [vmem:[%s3785_s15 + $0x48] sm:$0xff]   ;;  %v3645_v14 = vld [vmem:[%s3785_s15 + $0x50] sm:$0xff]   ;;  %v3646_v15 = vld [vmem:[%s3785_s15 + $0x58] sm:$0xff]   ;;  %3482 = vmatpush3.bf16.msra.mxu1 %v3690_v28 }
  0x18   : >> { %v3647_v16 = vld [vmem:[%s3785_s15 + $0x60] sm:$0xff]   ;;  %v3648_v17 = vld [vmem:[%s3785_s15 + $0x68] sm:$0xff]   ;;  %v3649_v18 = vld [vmem:[%s3785_s15 + $0x70] sm:$0xff]   ;;  %3483 = vmatprep.subr.bf16.mxu1 %v3691_v30 }
  0x19   : >> { %v3650_v19 = vld [vmem:[%s3785_s15 + $0x78] sm:$0xff]   ;;  %v3651_v20 = vld [vmem:[%s3785_s15 + $0x80] sm:$0xff]   ;;  %v3652_v21 = vld [vmem:[%s3785_s15 + $0x88] sm:$0xff]  }
  0x1a   : >> { %3348 = vmatpush3.bf16.msra.mxu0 %v3633_v2  ;;  %v3653_v22 = vld [vmem:[%s3785_s15 + $0x90] sm:$0xff]   ;;  %v3654_v23 = vld [vmem:[%s3785_s15 + $0x98] sm:$0xff]   ;;  %v3655_v24 = vld [vmem:[%s3785_s15 + $0xa0] sm:$0xff]  }
  0x1b   : >> { %3349 = vmatprep.subr.bf16.mxu0 %v3634_v4  ;;  %v3656_v26 = vld [vmem:[%s3785_s15 + $0xa8] sm:$0xff]   ;;  %v3657_v27 = vld [vmem:[%s3785_s15 + $0xb0] sm:$0xff]   ;;  %v3658_v29 = vld [vmem:[%s3785_s15 + $0xb8] sm:$0xff]   ;;  %3484 = vmatpush3.bf16.msra.mxu1 %v3691_v30 }
  0x1c   : >> { %v3659_v31 = vld [vmem:[%s3785_s15 + $0xc0] sm:$0xff]   ;;  %3485 = vmatprep.subr.bf16.mxu1 %v3694_v32  ;;  %v3660_v33 = vld [vmem:[%s3785_s15 + $0xc8] sm:$0xff]   ;;  %v3661_v34 = vld [vmem:[%s3785_s15 + $0xd0] sm:$0xff]  }
  0x1d   : >> { %v3662_v35 = vld [vmem:[%s3785_s15 + $0xd8] sm:$0xff]   ;;  %v3663_v36 = vld [vmem:[%s3785_s15 + $0xe0] sm:$0xff]   ;;  %v3664_v37 = vld [vmem:[%s3785_s15 + $0xe8] sm:$0xff]  }
  0x1e   : >> { %3350 = vmatpush3.bf16.msra.mxu0 %v3634_v4  ;;  %v3665_v38 = vld [vmem:[%s3785_s15 + $0xf0] sm:$0xff]   ;;  %v3666_v39 = vld [vmem:[%s3785_s15 + $0xf8] sm:$0xff]   ;;  %v3667_v40 = vld [vmem:[%s3785_s15 + $0x100] sm:$0xff]  }
  0x1f   : >> { %3486 = vmatpush3.bf16.msra.mxu1 %v3694_v32  ;;  %v3668_v41 = vld [vmem:[%s3785_s15 + $0x108] sm:$0xff]   ;;  %v3669_v42 = vld [vmem:[%s3785_s15 + $0x110] sm:$0xff]   ;;  %v3670_v43 = vld [vmem:[%s3785_s15 + $0x118] sm:$0xff]  }
  0x20   : >> { %v3671_v44 = vld [vmem:[%s3785_s15 + $0x120] sm:$0xff]   ;;  %v3672_v45 = vld [vmem:[%s3785_s15 + $0x128] sm:$0xff]   ;;  %v3673_v46 = vld [vmem:[%s3785_s15 + $0x130] sm:$0xff]  }
  0x21   : >> { %3352 = vmatmul.mubr.msk.bf16.vlgmr.msra.gmra.mrb[0].mxu0 %vm727_vm0, %v3636_v5  ;;  %v3674_v47 = vld [vmem:[%s3785_s15 + $0x138] sm:$0xff]   ;;  %v3675_v48 = vld [vmem:[%s3785_s15 + $0x140] sm:$0xff]   ;;  %v3676_v49 = vld [vmem:[%s3785_s15 + $0x148] sm:$0xff]  }
  0x22   : >> { %3355 = vmatprep.mubr.msk.bf16.mxu0 %vm727_vm0, %v3637_v6  ;;  %v3677_v50 = vld [vmem:[%s3785_s15 + $0x150] sm:$0xff]   ;;  %v3678_v51 = vld [vmem:[%s3785_s15 + $0x158] sm:$0xff]   ;;  %v3679_v52 = vld [vmem:[%s3785_s15 + $0x160] sm:$0xff]  }
  0x23   : >> { %v3680_v53 = vld [vmem:[%s3785_s15 + $0x168] sm:$0xff]   ;;  %v3681_v54 = vld [vmem:[%s3785_s15 + $0x170] sm:$0xff]   ;;  %v3682_v55 = vld [vmem:[%s3785_s15 + $0x178] sm:$0xff]  }
  0x24   : >> { %v3683_v56 = vld [vmem:[%s3785_s15 + $0x180] sm:$0xff]   ;;  %v3684_v57 = vld [vmem:[%s3785_s15 + $0x188] sm:$0xff]   ;;  %v3685_v58 = vld [vmem:[%s3785_s15 + $0x190] sm:$0xff]  }
  0x25   : >> { %v3686_v59 = vld [vmem:[%s3785_s15 + $0x198] sm:$0xff]   ;;  %v3688_v60 = vld [vmem:[%s3785_s15 + $0x1a0] sm:$0xff]   ;;  %v3689_v61 = vld [vmem:[%s3785_s15 + $0x1a8] sm:$0xff]  }
  0x26   : >> { %v3692_v62 = vld [vmem:[%s3785_s15 + $0x1b0] sm:$0xff]   ;;  %v3693_v3 = vld [vmem:[%s3785_s15 + $0x1b8] sm:$0xff]   ;;  %v3695_v6 = vld [vmem:[%s3785_s15 + $0x1c0] sm:$0xff]  }
  0x29   : >> { %3356 = vmatmul.mubr.msk.bf16.gmra.mrb[4].mxu0 %vm727_vm0, %v3638_v7 }
  0x2a   : >> { %3359 = vmatprep.mubr.msk.bf16.mxu0 %vm727_vm0, %v3639_v8 }
  0x31   : >> { %3360 = vmatmul.mubr.msk.bf16.gmra.mrb[8].mxu0 %vm727_vm0, %v3640_v9 }
  0x32   : >> { %3363 = vmatprep.mubr.msk.bf16.mxu0 %vm727_vm0, %v3641_v10 }
  0x39   : >> { %3364 = vmatmul.mubr.msk.bf16.gmra.mrb[12].mxu0 %vm727_vm0, %v3642_v11 }
  0x3a   : >> { %3367 = vmatprep.mubr.msk.bf16.mxu0 %vm727_vm0, %v3643_v12 }
  0x41   : >> { %3368 = vmatmul.mubr.msk.bf16.gmra.mrb[16].mxu0 %vm727_vm0, %v3644_v13 }
  0x42   : >> { %3371 = vmatprep.mubr.msk.bf16.mxu0 %vm727_vm0, %v3645_v14 }
  0x49   : >> { %3372 = vmatmul.mubr.msk.bf16.gmra.mrb[20].mxu0 %vm727_vm0, %v3646_v15 }
  0x4a   : >> { %3375 = vmatprep.mubr.msk.bf16.mxu0 %vm727_vm0, %v3647_v16 }
  0x51   : >> { %3376 = vmatmul.mubr.msk.bf16.gmra.mrb[24].mxu0 %vm727_vm0, %v3648_v17 }
  0x52   : >> { %3379 = vmatprep.mubr.msk.bf16.mxu0 %vm727_vm0, %v3649_v18 }
  0x59   : >> { %3380 = vmatmul.mubr.msk.bf16.gmra.mrb[28].mxu0 %vm727_vm0, %v3650_v19  ;;  %v3696_v19 = vld [vmem:[%s3785_s15 + $0x1c8] sm:$0xff]  }
  0x5a   : >> { %3383 = vmatprep.mubr.msk.bf16.mxu0 %vm727_vm0, %v3651_v20 }
  0x61   : >> { %3384 = vmatmul.mubr.msk.bf16.gmra.mrb[32].mxu0 %vm727_vm0, %v3652_v21 }
  0x62   : >> { %3387 = vmatprep.mubr.msk.bf16.mxu0 %vm727_vm0, %v3653_v22  ;;  %v3697_v22 = vld [vmem:[%s3785_s15 + $0x1d0] sm:$0xff]  }
  0x69   : >> { %3388 = vmatmul.mubr.msk.bf16.gmra.mrb[36].mxu0 %vm727_vm0, %v3654_v23 }
  0x6a   : >> { %3391 = vmatprep.mubr.msk.bf16.mxu0 %vm727_vm0, %v3655_v24 }
  0x71   : >> { %3392 = vmatmul.mubr.msk.bf16.gmra.mrb[40].mxu0 %vm727_vm0, %v3656_v26 }
  0x72   : >> { %3395 = vmatprep.mubr.msk.bf16.mxu0 %vm727_vm0, %v3657_v27 }
  0x79   : >> { %3396 = vmatmul.mubr.msk.bf16.gmra.mrb[44].mxu0 %vm727_vm0, %v3658_v29 }
  0x7a   : >> { %3399 = vmatprep.mubr.msk.bf16.mxu0 %vm727_vm0, %v3659_v31 }
  0x81   : >> { %3400 = vmatmul.mubr.msk.bf16.gmra.mrb[48].mxu0 %vm727_vm0, %v3660_v33 }
  0x82   : >> { %3403 = vmatprep.mubr.msk.bf16.mxu0 %vm727_vm0, %v3661_v34 }
  0x89   : >> { %3404 = vmatmul.mubr.msk.bf16.gmra.mrb[52].mxu0 %vm727_vm0, %v3662_v35  ;;  %v3698_v35 = vld [vmem:[%s3785_s15 + $0x1d8] sm:$0xff]  }
  0x8a   : >> { %3407 = vmatprep.mubr.msk.bf16.mxu0 %vm727_vm0, %v3663_v36 }
  0x91   : >> { %3408 = vmatmul.mubr.msk.bf16.gmra.mrb[56].mxu0 %vm727_vm0, %v3664_v37 }
  0x92   : >> { %3411 = vmatprep.mubr.msk.bf16.mxu0 %vm727_vm0, %v3665_v38  ;;  %v3699_v38 = vld [vmem:[%s3785_s15 + $0x1e0] sm:$0xff]  }
  0x99   : >> { %3412 = vmatmul.mubr.msk.bf16.gmra.mrb[60].mxu0 %vm727_vm0, %v3666_v39 }
  0x9a   : >> { %3415 = vmatprep.mubr.msk.bf16.mxu0 %vm727_vm0, %v3667_v40 }
  0xa1   : >> { %3416 = vmatmul.mubr.msk.bf16.gmra.mrb[64].mxu0 %vm727_vm0, %v3668_v41 }
  0xa2   : >> { %3419 = vmatprep.mubr.msk.bf16.mxu0 %vm727_vm0, %v3669_v42 }
  0xa9   : >> { %3420 = vmatmul.mubr.msk.bf16.gmra.mrb[68].mxu0 %vm727_vm0, %v3670_v43 }
  0xaa   : >> { %3423 = vmatprep.mubr.msk.bf16.mxu0 %vm727_vm0, %v3671_v44 }
  0xb1   : >> { %3424 = vmatmul.mubr.msk.bf16.gmra.mrb[72].mxu0 %vm727_vm0, %v3672_v45 }
  0xb2   : >> { %3427 = vmatprep.mubr.msk.bf16.mxu0 %vm727_vm0, %v3673_v46 }
  0xb9   : >> { %3428 = vmatmul.mubr.msk.bf16.gmra.mrb[76].mxu0 %vm727_vm0, %v3674_v47 }
  0xba   : >> { %3431 = vmatprep.mubr.msk.bf16.mxu0 %vm727_vm0, %v3675_v48 }
  0xc1   : >> { %3432 = vmatmul.mubr.msk.bf16.gmra.mrb[80].mxu0 %vm727_vm0, %v3676_v49 }
  0xc2   : >> { %3435 = vmatprep.mubr.msk.bf16.mxu0 %vm727_vm0, %v3677_v50 }
  0xc9   : >> { %3436 = vmatmul.mubr.msk.bf16.gmra.mrb[84].mxu0 %vm727_vm0, %v3678_v51  ;;  %v3700_v51 = vld [vmem:[%s3785_s15 + $0x1e8] sm:$0xff]  }
  0xca   : >> { %3439 = vmatprep.mubr.msk.bf16.mxu0 %vm727_vm0, %v3679_v52 }
  0xd1   : >> { %3440 = vmatmul.mubr.msk.bf16.gmra.mrb[88].mxu0 %vm727_vm0, %v3680_v53 }
  0xd2   : >> { %3443 = vmatprep.mubr.msk.bf16.mxu0 %vm727_vm0, %v3681_v54  ;;  %v3701_v54 = vld [vmem:[%s3785_s15 + $0x1f0] sm:$0xff]  }
  0xd9   : >> { %3444 = vmatmul.mubr.msk.bf16.gmra.mrb[92].mxu0 %vm727_vm0, %v3682_v55 }
  0xda   : >> { %3447 = vmatprep.mubr.msk.bf16.mxu0 %vm727_vm0, %v3683_v56 }
  0xe1   : >> { %3448 = vmatmul.mubr.msk.bf16.gmra.mrb[96].mxu0 %vm727_vm0, %v3684_v57 }
  0xe2   : >> { %3451 = vmatprep.mubr.msk.bf16.mxu0 %vm727_vm0, %v3685_v58 }
  0xe9   : >> { %3452 = vmatmul.mubr.msk.bf16.gmra.mrb[100].mxu0 %vm727_vm0, %v3686_v59 }
  0xea   : >> { %3455 = vmatprep.mubr.msk.bf16.mxu0 %vm727_vm0, %v3688_v60 }
  0xf1   : >> { %3456 = vmatmul.mubr.msk.bf16.gmra.mrb[104].mxu0 %vm727_vm0, %v3689_v61 }
  0xf2   : >> { %3459 = vmatprep.mubr.msk.bf16.mxu0 %vm727_vm0, %v3692_v62 }
  0xf4   : >> { %v3353_v0 = vpop.f32.mrb[0].mxu0 }
  0xf5   : >> { %v963_v1 = vadd.f32 %v3353_v0, %v3914_v63  ;;  %v954_v2 = vpop.f32.mrb[1].mxu0 }
  0xf6   : >> { %v955_v4 = vadd.f32 %v3914_v63, %v954_v2  ;;  %v3354_v5 = vpop.f32.mrb[2].mxu0 }
  0xf7   : >> { %v966_v7 = vadd.f32 %v3354_v5, %v3914_v63  ;;  %v957_v8 = vpop.f32.mrb[3].mxu0  ;;  %v1467_v10 = vmax.f32 %v963_v1, 0.0 }
  0xf8   : >> { %v958_v9 = vadd.f32 %v3914_v63, %v957_v8  ;;  %v1465_v12 = vmax.f32 %v955_v4, 0.0  ;;  %v3702_v4 = vld [vmem:[%s3785_s15 + $0x1f8] sm:$0xff]  }
  0xf9   : >> { %v1468_v11 = vmax.f32 %v966_v7, 0.0  ;;  %3460 = vmatmul.mubr.msk.bf16.gmra.mrb[108].mxu0 %vm727_vm0, %v3693_v3 }
  0xfa   : >> { %v1466_v13 = vmax.f32 %v958_v9, 0.0  ;;  %3463 = vmatprep.mubr.msk.bf16.mxu0 %vm727_vm0, %v3695_v6 }
  0xfb   : >> { %v1594_v14 = vpack.c.bf16 %v1468_v11, %v1467_v10 }
  0xfc   : >> { %v3357_v15 = vpop.f32.mrb[4].mxu0  ;;  %v1593_v16 = vpack.c.bf16 %v1466_v13, %v1465_v12 }
  0xfd   : >> { %v979_v17 = vadd.f32 %v3357_v15, %v3914_v63  ;;  %v970_v18 = vpop.f32.mrb[5].mxu0 }
  0xfe   : >> { %v971_v20 = vadd.f32 %v3914_v63, %v970_v18  ;;  %v3358_v21 = vpop.f32.mrb[6].mxu0  ;;  %3487 = vmatprep.mubr.msk.bf16.mxu1 %vm727_vm0, %v1593_v16 }
  0xff   : >> { %v982_v23 = vadd.f32 %v3358_v21, %v3914_v63  ;;  %v973_v24 = vpop.f32.mrb[7].mxu0  ;;  %3488 = vmatmul.mubr.msk.bf16.vlgmr.msra.gmra.mrb[0].mxu1 %vm727_vm0, %v1594_v14  ;;  %v1471_v26 = vmax.f32 %v979_v17, 0.0 }
 0x100   : >> { %v974_v25 = vadd.f32 %v3914_v63, %v973_v24  ;;  %v1469_v28 = vmax.f32 %v971_v20, 0.0 }
 0x101   : >> { %v1472_v27 = vmax.f32 %v982_v23, 0.0  ;;  %3464 = vmatmul.mubr.msk.bf16.gmra.mrb[112].mxu0 %vm727_vm0, %v3696_v19 }
 0x102   : >> { %v1470_v29 = vmax.f32 %v974_v25, 0.0  ;;  %3467 = vmatprep.mubr.msk.bf16.mxu0 %vm727_vm0, %v3697_v22 }
 0x103   : >> { %v1596_v30 = vpack.c.bf16 %v1472_v27, %v1471_v26 }
 0x104   : >> { %v1595_v31 = vpack.c.bf16 %v1470_v29, %v1469_v28  ;;  %v3361_v32 = vpop.f32.mrb[8].mxu0 }
 0x105   : >> { %v995_v33 = vadd.f32 %v3361_v32, %v3914_v63  ;;  %v986_v34 = vpop.f32.mrb[9].mxu0 }
 0x106   : >> { %v987_v36 = vadd.f32 %v3914_v63, %v986_v34  ;;  %v3362_v37 = vpop.f32.mrb[10].mxu0  ;;  %3491 = vmatprep.mubr.msk.bf16.mxu1 %vm727_vm0, %v1595_v31 }
 0x107   : >> { %v998_v39 = vadd.f32 %v3362_v37, %v3914_v63  ;;  %v989_v40 = vpop.f32.mrb[11].mxu0  ;;  %3492 = vmatmul.mubr.msk.bf16.gmra.mrb[4].mxu1 %vm727_vm0, %v1596_v30  ;;  %v1475_v42 = vmax.f32 %v995_v33, 0.0 }
 0x108   : >> { %v990_v41 = vadd.f32 %v3914_v63, %v989_v40  ;;  %v1473_v44 = vmax.f32 %v987_v36, 0.0 }
 0x109   : >> { %v1476_v43 = vmax.f32 %v998_v39, 0.0  ;;  %3468 = vmatmul.mubr.msk.bf16.gmra.mrb[116].mxu0 %vm727_vm0, %v3698_v35 }
 0x10a   : >> { %v1474_v45 = vmax.f32 %v990_v41, 0.0  ;;  %3471 = vmatprep.mubr.msk.bf16.mxu0 %vm727_vm0, %v3699_v38 }
 0x10b   : >> { %v1598_v46 = vpack.c.bf16 %v1476_v43, %v1475_v42 }
 0x10c   : >> { %v1597_v47 = vpack.c.bf16 %v1474_v45, %v1473_v44  ;;  %v3365_v48 = vpop.f32.mrb[12].mxu0 }
 0x10d   : >> { %v1011_v49 = vadd.f32 %v3365_v48, %v3914_v63  ;;  %v1002_v50 = vpop.f32.mrb[13].mxu0 }
 0x10e   : >> { %v1003_v52 = vadd.f32 %v3914_v63, %v1002_v50  ;;  %v3366_v53 = vpop.f32.mrb[14].mxu0  ;;  %3495 = vmatprep.mubr.msk.bf16.mxu1 %vm727_vm0, %v1597_v47 }
 0x10f   : >> { %v1014_v55 = vadd.f32 %v3366_v53, %v3914_v63  ;;  %v1005_v56 = vpop.f32.mrb[15].mxu0  ;;  %3496 = vmatmul.mubr.msk.bf16.gmra.mrb[8].mxu1 %vm727_vm0, %v1598_v46  ;;  %v1479_v58 = vmax.f32 %v1011_v49, 0.0 }
 0x110   : >> { %v1006_v57 = vadd.f32 %v3914_v63, %v1005_v56  ;;  %v1477_v60 = vmax.f32 %v1003_v52, 0.0 }
 0x111   : >> { %v1480_v59 = vmax.f32 %v1014_v55, 0.0  ;;  %3472 = vmatmul.mubr.msk.bf16.gmra.mrb[120].mxu0 %vm727_vm0, %v3700_v51 }
 0x112   : >> { %v1478_v61 = vmax.f32 %v1006_v57, 0.0  ;;  %3475 = vmatprep.mubr.msk.bf16.mxu0 %vm727_vm0, %v3701_v54 }
 0x113   : >> { %v1600_v62 = vpack.c.bf16 %v1480_v59, %v1479_v58 }
 0x114   : >> { %v1599_v0 = vpack.c.bf16 %v1478_v61, %v1477_v60  ;;  %v3369_v1 = vpop.f32.mrb[16].mxu0 }
 0x115   : >> { %v1027_v2 = vadd.f32 %v3369_v1, %v3914_v63  ;;  %v1018_v3 = vpop.f32.mrb[17].mxu0 }
 0x116   : >> { %v1019_v5 = vadd.f32 %v3914_v63, %v1018_v3  ;;  %v3370_v6 = vpop.f32.mrb[18].mxu0  ;;  %3499 = vmatprep.mubr.msk.bf16.mxu1 %vm727_vm0, %v1599_v0 }
 0x117   : >> { %v1030_v7 = vadd.f32 %v3370_v6, %v3914_v63  ;;  %v1021_v8 = vpop.f32.mrb[19].mxu0  ;;  %3500 = vmatmul.mubr.msk.bf16.gmra.mrb[12].mxu1 %vm727_vm0, %v1600_v62  ;;  %v1483_v10 = vmax.f32 %v1027_v2, 0.0 }
 0x118   : >> { %v1022_v9 = vadd.f32 %v3914_v63, %v1021_v8  ;;  %v1481_v12 = vmax.f32 %v1019_v5, 0.0 }
 0x119   : >> { %v1484_v11 = vmax.f32 %v1030_v7, 0.0  ;;  %3476 = vmatmul.mubr.msk.bf16.gmra.mrb[124].mxu0 %vm727_vm0, %v3702_v4 }
 0x11a   : >> { %v1482_v13 = vmax.f32 %v1022_v9, 0.0 }
 0x11b   : >> { %v1602_v14 = vpack.c.bf16 %v1484_v11, %v1483_v10 }
 0x11c   : >> { %v1601_v15 = vpack.c.bf16 %v1482_v13, %v1481_v12  ;;  %v3373_v16 = vpop.f32.mrb[20].mxu0 }
 0x11d   : >> { %v1043_v17 = vadd.f32 %v3373_v16, %v3914_v63  ;;  %v1034_v18 = vpop.f32.mrb[21].mxu0 }
 0x11e   : >> { %v1035_v19 = vadd.f32 %v3914_v63, %v1034_v18  ;;  %v3374_v20 = vpop.f32.mrb[22].mxu0  ;;  %3503 = vmatprep.mubr.msk.bf16.mxu1 %vm727_vm0, %v1601_v15 }
 0x11f   : >> { %v1046_v21 = vadd.f32 %v3374_v20, %v3914_v63  ;;  %v1037_v22 = vpop.f32.mrb[23].mxu0  ;;  %3504 = vmatmul.mubr.msk.bf16.gmra.mrb[16].mxu1 %vm727_vm0, %v1602_v14  ;;  %v1487_v24 = vmax.f32 %v1043_v17, 0.0 }
 0x120   : >> { %v1038_v23 = vadd.f32 %v3914_v63, %v1037_v22  ;;  %v1485_v26 = vmax.f32 %v1035_v19, 0.0 }
 0x121   : >> { %v1488_v25 = vmax.f32 %v1046_v21, 0.0 }
 0x122   : >> { %v1486_v27 = vmax.f32 %v1038_v23, 0.0 }
 0x123   : >> { %v1604_v28 = vpack.c.bf16 %v1488_v25, %v1487_v24 }
 0x124   : >> { %v1603_v29 = vpack.c.bf16 %v1486_v27, %v1485_v26  ;;  %v3377_v30 = vpop.f32.mrb[24].mxu0 }
 0x125   : >> { %v1059_v31 = vadd.f32 %v3377_v30, %v3914_v63  ;;  %v1050_v32 = vpop.f32.mrb[25].mxu0 }
 0x126   : >> { %v1051_v33 = vadd.f32 %v3914_v63, %v1050_v32  ;;  %v3378_v34 = vpop.f32.mrb[26].mxu0  ;;  %3507 = vmatprep.mubr.msk.bf16.mxu1 %vm727_vm0, %v1603_v29 }
 0x127   : >> { %v1062_v35 = vadd.f32 %v3378_v34, %v3914_v63  ;;  %v1053_v36 = vpop.f32.mrb[27].mxu0  ;;  %3508 = vmatmul.mubr.msk.bf16.gmra.mrb[20].mxu1 %vm727_vm0, %v1604_v28  ;;  %v1491_v38 = vmax.f32 %v1059_v31, 0.0 }
 0x128   : >> { %v1054_v37 = vadd.f32 %v3914_v63, %v1053_v36  ;;  %v1489_v40 = vmax.f32 %v1051_v33, 0.0 }
 0x129   : >> { %v1492_v39 = vmax.f32 %v1062_v35, 0.0 }
 0x12a   : >> { %v1490_v41 = vmax.f32 %v1054_v37, 0.0 }
 0x12b   : >> { %v1606_v42 = vpack.c.bf16 %v1492_v39, %v1491_v38 }
 0x12c   : >> { %v1605_v43 = vpack.c.bf16 %v1490_v41, %v1489_v40  ;;  %v3381_v44 = vpop.f32.mrb[28].mxu0 }
 0x12d   : >> { %v1075_v45 = vadd.f32 %v3381_v44, %v3914_v63  ;;  %v1066_v46 = vpop.f32.mrb[29].mxu0 }
 0x12e   : >> { %v1067_v47 = vadd.f32 %v3914_v63, %v1066_v46  ;;  %v3382_v48 = vpop.f32.mrb[30].mxu0  ;;  %3511 = vmatprep.mubr.msk.bf16.mxu1 %vm727_vm0, %v1605_v43 }
 0x12f   : >> { %v1078_v49 = vadd.f32 %v3382_v48, %v3914_v63  ;;  %v1069_v50 = vpop.f32.mrb[31].mxu0  ;;  %3512 = vmatmul.mubr.msk.bf16.gmra.mrb[24].mxu1 %vm727_vm0, %v1606_v42  ;;  %v1495_v52 = vmax.f32 %v1075_v45, 0.0 }
 0x130   : >> { %v1070_v51 = vadd.f32 %v3914_v63, %v1069_v50  ;;  %v1493_v54 = vmax.f32 %v1067_v47, 0.0 }
 0x131   : >> { %v1496_v53 = vmax.f32 %v1078_v49, 0.0 }
 0x132   : >> { %v1494_v55 = vmax.f32 %v1070_v51, 0.0 }
 0x133   : >> { %v1608_v56 = vpack.c.bf16 %v1496_v53, %v1495_v52 }
 0x134   : >> { %v1607_v57 = vpack.c.bf16 %v1494_v55, %v1493_v54  ;;  %v3385_v58 = vpop.f32.mrb[32].mxu0 }
 0x135   : >> { %v1091_v59 = vadd.f32 %v3385_v58, %v3914_v63  ;;  %v1082_v60 = vpop.f32.mrb[33].mxu0 }
 0x136   : >> { %v1083_v61 = vadd.f32 %v3914_v63, %v1082_v60  ;;  %v3386_v62 = vpop.f32.mrb[34].mxu0  ;;  %3515 = vmatprep.mubr.msk.bf16.mxu1 %vm727_vm0, %v1607_v57 }
 0x137   : >> { %v1094_v0 = vadd.f32 %v3386_v62, %v3914_v63  ;;  %v1085_v1 = vpop.f32.mrb[35].mxu0  ;;  %3516 = vmatmul.mubr.msk.bf16.gmra.mrb[28].mxu1 %vm727_vm0, %v1608_v56  ;;  %v1499_v3 = vmax.f32 %v1091_v59, 0.0 }
 0x138   : >> { %v1086_v2 = vadd.f32 %v3914_v63, %v1085_v1  ;;  %v1497_v5 = vmax.f32 %v1083_v61, 0.0 }
 0x139   : >> { %v1500_v4 = vmax.f32 %v1094_v0, 0.0 }
 0x13a   : >> { %v1498_v6 = vmax.f32 %v1086_v2, 0.0 }
 0x13b   : >> { %v1610_v7 = vpack.c.bf16 %v1500_v4, %v1499_v3 }
 0x13c   : >> { %v1609_v8 = vpack.c.bf16 %v1498_v6, %v1497_v5  ;;  %v3389_v9 = vpop.f32.mrb[36].mxu0 }
 0x13d   : >> { %v1107_v10 = vadd.f32 %v3389_v9, %v3914_v63  ;;  %v1098_v11 = vpop.f32.mrb[37].mxu0 }
 0x13e   : >> { %v1099_v12 = vadd.f32 %v3914_v63, %v1098_v11  ;;  %v3390_v13 = vpop.f32.mrb[38].mxu0  ;;  %3519 = vmatprep.mubr.msk.bf16.mxu1 %vm727_vm0, %v1609_v8 }
 0x13f   : >> { %v1110_v14 = vadd.f32 %v3390_v13, %v3914_v63  ;;  %v1101_v15 = vpop.f32.mrb[39].mxu0  ;;  %3520 = vmatmul.mubr.msk.bf16.gmra.mrb[32].mxu1 %vm727_vm0, %v1610_v7  ;;  %v1503_v17 = vmax.f32 %v1107_v10, 0.0 }
 0x140   : >> { %v1102_v16 = vadd.f32 %v3914_v63, %v1101_v15  ;;  %v1501_v19 = vmax.f32 %v1099_v12, 0.0 }
 0x141   : >> { %v1504_v18 = vmax.f32 %v1110_v14, 0.0 }
 0x142   : >> { %v1502_v20 = vmax.f32 %v1102_v16, 0.0 }
 0x143   : >> { %v1612_v21 = vpack.c.bf16 %v1504_v18, %v1503_v17 }
 0x144   : >> { %v1611_v22 = vpack.c.bf16 %v1502_v20, %v1501_v19  ;;  %v3393_v23 = vpop.f32.mrb[40].mxu0 }
 0x145   : >> { %v1123_v24 = vadd.f32 %v3393_v23, %v3914_v63  ;;  %v1114_v25 = vpop.f32.mrb[41].mxu0 }
 0x146   : >> { %v1115_v26 = vadd.f32 %v3914_v63, %v1114_v25  ;;  %v3394_v27 = vpop.f32.mrb[42].mxu0  ;;  %3523 = vmatprep.mubr.msk.bf16.mxu1 %vm727_vm0, %v1611_v22 }
 0x147   : >> { %v1126_v28 = vadd.f32 %v3394_v27, %v3914_v63  ;;  %v1117_v29 = vpop.f32.mrb[43].mxu0  ;;  %3524 = vmatmul.mubr.msk.bf16.gmra.mrb[36].mxu1 %vm727_vm0, %v1612_v21  ;;  %v1507_v31 = vmax.f32 %v1123_v24, 0.0 }
 0x148   : >> { %v1118_v30 = vadd.f32 %v3914_v63, %v1117_v29  ;;  %v1505_v33 = vmax.f32 %v1115_v26, 0.0 }
 0x149   : >> { %v1508_v32 = vmax.f32 %v1126_v28, 0.0 }
 0x14a   : >> { %v1506_v34 = vmax.f32 %v1118_v30, 0.0 }
 0x14b   : >> { %v1614_v35 = vpack.c.bf16 %v1508_v32, %v1507_v31 }
 0x14c   : >> { %v1613_v36 = vpack.c.bf16 %v1506_v34, %v1505_v33  ;;  %v3397_v37 = vpop.f32.mrb[44].mxu0 }
 0x14d   : >> { %v1139_v38 = vadd.f32 %v3397_v37, %v3914_v63  ;;  %v1130_v39 = vpop.f32.mrb[45].mxu0 }
 0x14e   : >> { %v1131_v40 = vadd.f32 %v3914_v63, %v1130_v39  ;;  %v3398_v41 = vpop.f32.mrb[46].mxu0  ;;  %3527 = vmatprep.mubr.msk.bf16.mxu1 %vm727_vm0, %v1613_v36 }
 0x14f   : >> { %v1142_v42 = vadd.f32 %v3398_v41, %v3914_v63  ;;  %v1133_v43 = vpop.f32.mrb[47].mxu0  ;;  %3528 = vmatmul.mubr.msk.bf16.gmra.mrb[40].mxu1 %vm727_vm0, %v1614_v35  ;;  %v1511_v45 = vmax.f32 %v1139_v38, 0.0 }
 0x150   : >> { %v1134_v44 = vadd.f32 %v3914_v63, %v1133_v43  ;;  %v1509_v47 = vmax.f32 %v1131_v40, 0.0 }
 0x151   : >> { %v1512_v46 = vmax.f32 %v1142_v42, 0.0 }
 0x152   : >> { %v1510_v48 = vmax.f32 %v1134_v44, 0.0 }
 0x153   : >> { %v1616_v49 = vpack.c.bf16 %v1512_v46, %v1511_v45 }
 0x154   : >> { %v1615_v50 = vpack.c.bf16 %v1510_v48, %v1509_v47  ;;  %v3401_v51 = vpop.f32.mrb[48].mxu0 }
 0x155   : >> { %v1155_v52 = vadd.f32 %v3401_v51, %v3914_v63  ;;  %v1146_v53 = vpop.f32.mrb[49].mxu0 }
 0x156   : >> { %v1147_v54 = vadd.f32 %v3914_v63, %v1146_v53  ;;  %v3402_v55 = vpop.f32.mrb[50].mxu0  ;;  %3531 = vmatprep.mubr.msk.bf16.mxu1 %vm727_vm0, %v1615_v50 }
 0x157   : >> { %v1158_v56 = vadd.f32 %v3402_v55, %v3914_v63  ;;  %v1149_v57 = vpop.f32.mrb[51].mxu0  ;;  %3532 = vmatmul.mubr.msk.bf16.gmra.mrb[44].mxu1 %vm727_vm0, %v1616_v49  ;;  %v1515_v59 = vmax.f32 %v1155_v52, 0.0 }
 0x158   : >> { %v1150_v58 = vadd.f32 %v3914_v63, %v1149_v57  ;;  %v1513_v61 = vmax.f32 %v1147_v54, 0.0 }
 0x159   : >> { %v1516_v60 = vmax.f32 %v1158_v56, 0.0 }
 0x15a   : >> { %v1514_v62 = vmax.f32 %v1150_v58, 0.0 }
 0x15b   : >> { %v1618_v0 = vpack.c.bf16 %v1516_v60, %v1515_v59 }
 0x15c   : >> { %v1617_v1 = vpack.c.bf16 %v1514_v62, %v1513_v61  ;;  %v3405_v2 = vpop.f32.mrb[52].mxu0 }
 0x15d   : >> { %v1171_v3 = vadd.f32 %v3405_v2, %v3914_v63  ;;  %v1162_v4 = vpop.f32.mrb[53].mxu0 }
 0x15e   : >> { %v1163_v5 = vadd.f32 %v3914_v63, %v1162_v4  ;;  %v3406_v6 = vpop.f32.mrb[54].mxu0  ;;  %3535 = vmatprep.mubr.msk.bf16.mxu1 %vm727_vm0, %v1617_v1 }
 0x15f   : >> { %v1174_v7 = vadd.f32 %v3406_v6, %v3914_v63  ;;  %v1165_v8 = vpop.f32.mrb[55].mxu0  ;;  %3536 = vmatmul.mubr.msk.bf16.gmra.mrb[48].mxu1 %vm727_vm0, %v1618_v0  ;;  %v1519_v10 = vmax.f32 %v1171_v3, 0.0 }
 0x160   : >> { %v1166_v9 = vadd.f32 %v3914_v63, %v1165_v8  ;;  %v1517_v12 = vmax.f32 %v1163_v5, 0.0 }
 0x161   : >> { %v1520_v11 = vmax.f32 %v1174_v7, 0.0 }
 0x162   : >> { %v1518_v13 = vmax.f32 %v1166_v9, 0.0 }
 0x163   : >> { %v1620_v14 = vpack.c.bf16 %v1520_v11, %v1519_v10 }
 0x164   : >> { %v1619_v15 = vpack.c.bf16 %v1518_v13, %v1517_v12  ;;  %v3409_v16 = vpop.f32.mrb[56].mxu0 }
 0x165   : >> { %v1187_v17 = vadd.f32 %v3409_v16, %v3914_v63  ;;  %v1178_v18 = vpop.f32.mrb[57].mxu0 }
 0x166   : >> { %v1179_v19 = vadd.f32 %v3914_v63, %v1178_v18  ;;  %v3410_v20 = vpop.f32.mrb[58].mxu0  ;;  %3539 = vmatprep.mubr.msk.bf16.mxu1 %vm727_vm0, %v1619_v15 }
 0x167   : >> { %v1190_v21 = vadd.f32 %v3410_v20, %v3914_v63  ;;  %v1181_v22 = vpop.f32.mrb[59].mxu0  ;;  %3540 = vmatmul.mubr.msk.bf16.gmra.mrb[52].mxu1 %vm727_vm0, %v1620_v14  ;;  %v1523_v24 = vmax.f32 %v1187_v17, 0.0 }
 0x168   : >> { %v1182_v23 = vadd.f32 %v3914_v63, %v1181_v22  ;;  %v1521_v26 = vmax.f32 %v1179_v19, 0.0 }
 0x169   : >> { %v1524_v25 = vmax.f32 %v1190_v21, 0.0 }
 0x16a   : >> { %v1522_v27 = vmax.f32 %v1182_v23, 0.0 }
 0x16b   : >> { %v1622_v28 = vpack.c.bf16 %v1524_v25, %v1523_v24 }
 0x16c   : >> { %v1621_v29 = vpack.c.bf16 %v1522_v27, %v1521_v26  ;;  %v3413_v30 = vpop.f32.mrb[60].mxu0 }
 0x16d   : >> { %v1203_v31 = vadd.f32 %v3413_v30, %v3914_v63  ;;  %v1194_v32 = vpop.f32.mrb[61].mxu0 }
 0x16e   : >> { %v1195_v33 = vadd.f32 %v3914_v63, %v1194_v32  ;;  %v3414_v34 = vpop.f32.mrb[62].mxu0  ;;  %3543 = vmatprep.mubr.msk.bf16.mxu1 %vm727_vm0, %v1621_v29 }
 0x16f   : >> { %v1206_v35 = vadd.f32 %v3414_v34, %v3914_v63  ;;  %v1197_v36 = vpop.f32.mrb[63].mxu0  ;;  %3544 = vmatmul.mubr.msk.bf16.gmra.mrb[56].mxu1 %vm727_vm0, %v1622_v28  ;;  %v1527_v38 = vmax.f32 %v1203_v31, 0.0 }
 0x170   : >> { %v1198_v37 = vadd.f32 %v3914_v63, %v1197_v36  ;;  %v1525_v40 = vmax.f32 %v1195_v33, 0.0 }
 0x171   : >> { %v1528_v39 = vmax.f32 %v1206_v35, 0.0 }
 0x172   : >> { %v1526_v41 = vmax.f32 %v1198_v37, 0.0 }
 0x173   : >> { %v1624_v42 = vpack.c.bf16 %v1528_v39, %v1527_v38 }
 0x174   : >> { %v1623_v43 = vpack.c.bf16 %v1526_v41, %v1525_v40  ;;  %v3417_v44 = vpop.f32.mrb[64].mxu0 }
 0x175   : >> { %v1219_v45 = vadd.f32 %v3417_v44, %v3914_v63  ;;  %v1210_v46 = vpop.f32.mrb[65].mxu0 }
 0x176   : >> { %v1211_v47 = vadd.f32 %v3914_v63, %v1210_v46  ;;  %v3418_v48 = vpop.f32.mrb[66].mxu0  ;;  %3547 = vmatprep.mubr.msk.bf16.mxu1 %vm727_vm0, %v1623_v43 }
 0x177   : >> { %v1222_v49 = vadd.f32 %v3418_v48, %v3914_v63  ;;  %v1213_v50 = vpop.f32.mrb[67].mxu0  ;;  %3548 = vmatmul.mubr.msk.bf16.gmra.mrb[60].mxu1 %vm727_vm0, %v1624_v42  ;;  %v1531_v52 = vmax.f32 %v1219_v45, 0.0 }
 0x178   : >> { %v1214_v51 = vadd.f32 %v3914_v63, %v1213_v50  ;;  %v1529_v54 = vmax.f32 %v1211_v47, 0.0 }
 0x179   : >> { %v1532_v53 = vmax.f32 %v1222_v49, 0.0 }
 0x17a   : >> { %v1530_v55 = vmax.f32 %v1214_v51, 0.0 }
 0x17b   : >> { %v1626_v56 = vpack.c.bf16 %v1532_v53, %v1531_v52 }
 0x17c   : >> { %v1625_v57 = vpack.c.bf16 %v1530_v55, %v1529_v54  ;;  %v3421_v58 = vpop.f32.mrb[68].mxu0 }
 0x17d   : >> { %v1235_v59 = vadd.f32 %v3421_v58, %v3914_v63  ;;  %v1226_v60 = vpop.f32.mrb[69].mxu0 }
 0x17e   : >> { %v1227_v61 = vadd.f32 %v3914_v63, %v1226_v60  ;;  %v3422_v62 = vpop.f32.mrb[70].mxu0  ;;  %3551 = vmatprep.mubr.msk.bf16.mxu1 %vm727_vm0, %v1625_v57 }
 0x17f   : >> { %v1238_v0 = vadd.f32 %v3422_v62, %v3914_v63  ;;  %v1229_v1 = vpop.f32.mrb[71].mxu0  ;;  %3552 = vmatmul.mubr.msk.bf16.gmra.mrb[64].mxu1 %vm727_vm0, %v1626_v56  ;;  %v1535_v3 = vmax.f32 %v1235_v59, 0.0 }
 0x180   : >> { %v1230_v2 = vadd.f32 %v3914_v63, %v1229_v1  ;;  %v1533_v5 = vmax.f32 %v1227_v61, 0.0 }
 0x181   : >> { %v1536_v4 = vmax.f32 %v1238_v0, 0.0 }
 0x182   : >> { %v1534_v6 = vmax.f32 %v1230_v2, 0.0 }
 0x183   : >> { %v1628_v7 = vpack.c.bf16 %v1536_v4, %v1535_v3 }
 0x184   : >> { %v1627_v8 = vpack.c.bf16 %v1534_v6, %v1533_v5  ;;  %v3425_v9 = vpop.f32.mrb[72].mxu0 }
 0x185   : >> { %v1251_v10 = vadd.f32 %v3425_v9, %v3914_v63  ;;  %v1242_v11 = vpop.f32.mrb[73].mxu0 }
 0x186   : >> { %v1243_v12 = vadd.f32 %v3914_v63, %v1242_v11  ;;  %v3426_v13 = vpop.f32.mrb[74].mxu0  ;;  %3555 = vmatprep.mubr.msk.bf16.mxu1 %vm727_vm0, %v1627_v8 }
 0x187   : >> { %v1254_v14 = vadd.f32 %v3426_v13, %v3914_v63  ;;  %v1245_v15 = vpop.f32.mrb[75].mxu0  ;;  %3556 = vmatmul.mubr.msk.bf16.gmra.mrb[68].mxu1 %vm727_vm0, %v1628_v7  ;;  %v1539_v17 = vmax.f32 %v1251_v10, 0.0 }
 0x188   : >> { %v1246_v16 = vadd.f32 %v3914_v63, %v1245_v15  ;;  %v1537_v19 = vmax.f32 %v1243_v12, 0.0 }
 0x189   : >> { %v1540_v18 = vmax.f32 %v1254_v14, 0.0 }
 0x18a   : >> { %v1538_v20 = vmax.f32 %v1246_v16, 0.0 }
 0x18b   : >> { %v1630_v21 = vpack.c.bf16 %v1540_v18, %v1539_v17 }
 0x18c   : >> { %v1629_v22 = vpack.c.bf16 %v1538_v20, %v1537_v19  ;;  %v3429_v23 = vpop.f32.mrb[76].mxu0 }
 0x18d   : >> { %v1267_v24 = vadd.f32 %v3429_v23, %v3914_v63  ;;  %v1258_v25 = vpop.f32.mrb[77].mxu0 }
 0x18e   : >> { %v1259_v26 = vadd.f32 %v3914_v63, %v1258_v25  ;;  %v3430_v27 = vpop.f32.mrb[78].mxu0  ;;  %3559 = vmatprep.mubr.msk.bf16.mxu1 %vm727_vm0, %v1629_v22 }
 0x18f   : >> { %v1270_v28 = vadd.f32 %v3430_v27, %v3914_v63  ;;  %v1261_v29 = vpop.f32.mrb[79].mxu0  ;;  %3560 = vmatmul.mubr.msk.bf16.gmra.mrb[72].mxu1 %vm727_vm0, %v1630_v21  ;;  %v1543_v31 = vmax.f32 %v1267_v24, 0.0 }
 0x190   : >> { %v1262_v30 = vadd.f32 %v3914_v63, %v1261_v29  ;;  %v1541_v33 = vmax.f32 %v1259_v26, 0.0 }
 0x191   : >> { %v1544_v32 = vmax.f32 %v1270_v28, 0.0 }
 0x192   : >> { %v1542_v34 = vmax.f32 %v1262_v30, 0.0 }
 0x193   : >> { %v1632_v35 = vpack.c.bf16 %v1544_v32, %v1543_v31 }
 0x194   : >> { %v1631_v36 = vpack.c.bf16 %v1542_v34, %v1541_v33  ;;  %v3433_v37 = vpop.f32.mrb[80].mxu0 }
 0x195   : >> { %v1283_v38 = vadd.f32 %v3433_v37, %v3914_v63  ;;  %v1274_v39 = vpop.f32.mrb[81].mxu0 }
 0x196   : >> { %v1275_v40 = vadd.f32 %v3914_v63, %v1274_v39  ;;  %v3434_v41 = vpop.f32.mrb[82].mxu0  ;;  %3563 = vmatprep.mubr.msk.bf16.mxu1 %vm727_vm0, %v1631_v36 }
 0x197   : >> { %v1286_v42 = vadd.f32 %v3434_v41, %v3914_v63  ;;  %v1277_v43 = vpop.f32.mrb[83].mxu0  ;;  %3564 = vmatmul.mubr.msk.bf16.gmra.mrb[76].mxu1 %vm727_vm0, %v1632_v35  ;;  %v1547_v45 = vmax.f32 %v1283_v38, 0.0 }
 0x198   : >> { %v1278_v44 = vadd.f32 %v3914_v63, %v1277_v43  ;;  %v1545_v47 = vmax.f32 %v1275_v40, 0.0 }
 0x199   : >> { %v1548_v46 = vmax.f32 %v1286_v42, 0.0 }
 0x19a   : >> { %v1546_v48 = vmax.f32 %v1278_v44, 0.0 }
 0x19b   : >> { %v1634_v49 = vpack.c.bf16 %v1548_v46, %v1547_v45 }
 0x19c   : >> { %v1633_v50 = vpack.c.bf16 %v1546_v48, %v1545_v47  ;;  %v3437_v51 = vpop.f32.mrb[84].mxu0 }
 0x19d   : >> { %v1299_v52 = vadd.f32 %v3437_v51, %v3914_v63  ;;  %v1290_v53 = vpop.f32.mrb[85].mxu0 }
 0x19e   : >> { %v1291_v54 = vadd.f32 %v3914_v63, %v1290_v53  ;;  %v3438_v55 = vpop.f32.mrb[86].mxu0  ;;  %3567 = vmatprep.mubr.msk.bf16.mxu1 %vm727_vm0, %v1633_v50 }
 0x19f   : >> { %v1302_v56 = vadd.f32 %v3438_v55, %v3914_v63  ;;  %v1293_v57 = vpop.f32.mrb[87].mxu0  ;;  %3568 = vmatmul.mubr.msk.bf16.gmra.mrb[80].mxu1 %vm727_vm0, %v1634_v49  ;;  %v1551_v59 = vmax.f32 %v1299_v52, 0.0 }
 0x1a0   : >> { %v1294_v58 = vadd.f32 %v3914_v63, %v1293_v57  ;;  %v1549_v61 = vmax.f32 %v1291_v54, 0.0 }
 0x1a1   : >> { %v1552_v60 = vmax.f32 %v1302_v56, 0.0 }
 0x1a2   : >> { %v1550_v62 = vmax.f32 %v1294_v58, 0.0 }
 0x1a3   : >> { %v1636_v0 = vpack.c.bf16 %v1552_v60, %v1551_v59 }
 0x1a4   : >> { %v1635_v1 = vpack.c.bf16 %v1550_v62, %v1549_v61  ;;  %v3441_v2 = vpop.f32.mrb[88].mxu0 }
 0x1a5   : >> { %v1315_v3 = vadd.f32 %v3441_v2, %v3914_v63  ;;  %v1306_v4 = vpop.f32.mrb[89].mxu0 }
 0x1a6   : >> { %v1307_v5 = vadd.f32 %v3914_v63, %v1306_v4  ;;  %v3442_v6 = vpop.f32.mrb[90].mxu0  ;;  %3571 = vmatprep.mubr.msk.bf16.mxu1 %vm727_vm0, %v1635_v1 }
 0x1a7   : >> { %v1318_v7 = vadd.f32 %v3442_v6, %v3914_v63  ;;  %v1309_v8 = vpop.f32.mrb[91].mxu0  ;;  %3572 = vmatmul.mubr.msk.bf16.gmra.mrb[84].mxu1 %vm727_vm0, %v1636_v0  ;;  %v1555_v10 = vmax.f32 %v1315_v3, 0.0 }
 0x1a8   : >> { %v1310_v9 = vadd.f32 %v3914_v63, %v1309_v8  ;;  %v1553_v12 = vmax.f32 %v1307_v5, 0.0 }
 0x1a9   : >> { %v1556_v11 = vmax.f32 %v1318_v7, 0.0 }
 0x1aa   : >> { %v1554_v13 = vmax.f32 %v1310_v9, 0.0 }
 0x1ab   : >> { %v1638_v14 = vpack.c.bf16 %v1556_v11, %v1555_v10 }
 0x1ac   : >> { %v1637_v15 = vpack.c.bf16 %v1554_v13, %v1553_v12  ;;  %v3445_v16 = vpop.f32.mrb[92].mxu0 }
 0x1ad   : >> { %v1331_v17 = vadd.f32 %v3445_v16, %v3914_v63  ;;  %v1322_v18 = vpop.f32.mrb[93].mxu0 }
 0x1ae   : >> { %v1323_v19 = vadd.f32 %v3914_v63, %v1322_v18  ;;  %v3446_v20 = vpop.f32.mrb[94].mxu0  ;;  %3575 = vmatprep.mubr.msk.bf16.mxu1 %vm727_vm0, %v1637_v15 }
 0x1af   : >> { %v1334_v21 = vadd.f32 %v3446_v20, %v3914_v63  ;;  %v1325_v22 = vpop.f32.mrb[95].mxu0  ;;  %3576 = vmatmul.mubr.msk.bf16.gmra.mrb[88].mxu1 %vm727_vm0, %v1638_v14  ;;  %v1559_v24 = vmax.f32 %v1331_v17, 0.0 }
 0x1b0   : >> { %v1326_v23 = vadd.f32 %v3914_v63, %v1325_v22  ;;  %v1557_v26 = vmax.f32 %v1323_v19, 0.0  ;;  %v4104_v19 = vld [vmem:[%s4316_s4] ss:$0 sm:$0xff] }
 0x1b1   : >> { %v1560_v25 = vmax.f32 %v1334_v21, 0.0 }
 0x1b2   : >> { %v1558_v27 = vmax.f32 %v1326_v23, 0.0 }
 0x1b3   : >> { %v1640_v28 = vpack.c.bf16 %v1560_v25, %v1559_v24 }
 0x1b4   : >> { %v1639_v29 = vpack.c.bf16 %v1558_v27, %v1557_v26  ;;  %v3449_v30 = vpop.f32.mrb[96].mxu0 }
 0x1b5   : >> { %v1347_v31 = vadd.f32 %v3449_v30, %v3914_v63  ;;  %v1338_v32 = vpop.f32.mrb[97].mxu0 }
 0x1b6   : >> { %v1339_v33 = vadd.f32 %v3914_v63, %v1338_v32  ;;  %v3450_v34 = vpop.f32.mrb[98].mxu0  ;;  %3579 = vmatprep.mubr.msk.bf16.mxu1 %vm727_vm0, %v1639_v29 }
 0x1b7   : >> { %v1350_v35 = vadd.f32 %v3450_v34, %v3914_v63  ;;  %v1341_v36 = vpop.f32.mrb[99].mxu0  ;;  %3580 = vmatmul.mubr.msk.bf16.gmra.mrb[92].mxu1 %vm727_vm0, %v1640_v28  ;;  %v1563_v38 = vmax.f32 %v1347_v31, 0.0 }
 0x1b8   : >> { %v1342_v37 = vadd.f32 %v3914_v63, %v1341_v36  ;;  %v1561_v40 = vmax.f32 %v1339_v33, 0.0 }
 0x1b9   : >> { %v1564_v39 = vmax.f32 %v1350_v35, 0.0 }
 0x1ba   : >> { %v1562_v41 = vmax.f32 %v1342_v37, 0.0 }
 0x1bb   : >> { %v1642_v42 = vpack.c.bf16 %v1564_v39, %v1563_v38 }
 0x1bc   : >> { %v1641_v43 = vpack.c.bf16 %v1562_v41, %v1561_v40  ;;  %v3453_v44 = vpop.f32.mrb[100].mxu0 }
 0x1bd   : >> { %v1363_v45 = vadd.f32 %v3453_v44, %v3914_v63  ;;  %v1354_v46 = vpop.f32.mrb[101].mxu0 }
 0x1be   : >> { %v1355_v47 = vadd.f32 %v3914_v63, %v1354_v46  ;;  %v3454_v48 = vpop.f32.mrb[102].mxu0  ;;  %3583 = vmatprep.mubr.msk.bf16.mxu1 %vm727_vm0, %v1641_v43 }
 0x1bf   : >> { %v1366_v49 = vadd.f32 %v3454_v48, %v3914_v63  ;;  %v1357_v50 = vpop.f32.mrb[103].mxu0  ;;  %3584 = vmatmul.mubr.msk.bf16.gmra.mrb[96].mxu1 %vm727_vm0, %v1642_v42  ;;  %v1567_v52 = vmax.f32 %v1363_v45, 0.0 }
 0x1c0   : >> { %v1358_v51 = vadd.f32 %v3914_v63, %v1357_v50  ;;  %v1565_v54 = vmax.f32 %v1355_v47, 0.0 }
 0x1c1   : >> { %v1568_v53 = vmax.f32 %v1366_v49, 0.0 }
 0x1c2   : >> { %v1566_v55 = vmax.f32 %v1358_v51, 0.0 }
 0x1c3   : >> { %v1644_v56 = vpack.c.bf16 %v1568_v53, %v1567_v52 }
 0x1c4   : >> { %v1643_v57 = vpack.c.bf16 %v1566_v55, %v1565_v54  ;;  %v3457_v58 = vpop.f32.mrb[104].mxu0 }
 0x1c5   : >> { %v1379_v59 = vadd.f32 %v3457_v58, %v3914_v63  ;;  %v1370_v60 = vpop.f32.mrb[105].mxu0 }
 0x1c6   : >> { %v1371_v61 = vadd.f32 %v3914_v63, %v1370_v60  ;;  %v3458_v62 = vpop.f32.mrb[106].mxu0  ;;  %3587 = vmatprep.mubr.msk.bf16.mxu1 %vm727_vm0, %v1643_v57 }
 0x1c7   : >> { %v1382_v0 = vadd.f32 %v3458_v62, %v3914_v63  ;;  %v1373_v1 = vpop.f32.mrb[107].mxu0  ;;  %3588 = vmatmul.mubr.msk.bf16.gmra.mrb[100].mxu1 %vm727_vm0, %v1644_v56  ;;  %v1571_v3 = vmax.f32 %v1379_v59, 0.0 }
 0x1c8   : >> { %v1374_v2 = vadd.f32 %v3914_v63, %v1373_v1  ;;  %v1569_v5 = vmax.f32 %v1371_v61, 0.0 }
 0x1c9   : >> { %v1572_v4 = vmax.f32 %v1382_v0, 0.0 }
 0x1ca   : >> { %v1570_v6 = vmax.f32 %v1374_v2, 0.0 }
 0x1cb   : >> { %v1646_v7 = vpack.c.bf16 %v1572_v4, %v1571_v3  ;;  %v4126_v3 = vld [vmem:[%s4314_s2] ss:$0 sm:$0xff] }
 0x1cc   : >> { %v1645_v8 = vpack.c.bf16 %v1570_v6, %v1569_v5  ;;  %v3461_v9 = vpop.f32.mrb[108].mxu0 }
 0x1cd   : >> { %v1395_v10 = vadd.f32 %v3461_v9, %v3914_v63  ;;  %v1386_v11 = vpop.f32.mrb[109].mxu0 }
 0x1ce   : >> { %v1387_v12 = vadd.f32 %v3914_v63, %v1386_v11  ;;  %v3462_v13 = vpop.f32.mrb[110].mxu0  ;;  %3591 = vmatprep.mubr.msk.bf16.mxu1 %vm727_vm0, %v1645_v8 }
 0x1cf   : >> { %v1398_v14 = vadd.f32 %v3462_v13, %v3914_v63  ;;  %v1389_v15 = vpop.f32.mrb[111].mxu0  ;;  %3592 = vmatmul.mubr.msk.bf16.gmra.mrb[104].mxu1 %vm727_vm0, %v1646_v7  ;;  %v1575_v17 = vmax.f32 %v1395_v10, 0.0 }
 0x1d0   : >> { %v1390_v16 = vadd.f32 %v3914_v63, %v1389_v15  ;;  %v1573_v20 = vmax.f32 %v1387_v12, 0.0 }
 0x1d1   : >> { %v1576_v18 = vmax.f32 %v1398_v14, 0.0 }
 0x1d2   : >> { %v1574_v21 = vmax.f32 %v1390_v16, 0.0  ;;  %v3489_v22 = vpop.f32.mrb[0].mxu1 }
 0x1d3   : >> { %v1648_v23 = vpack.c.bf16 %v1576_v18, %v1575_v17  ;;  %v1922_v24 = vpop.f32.mrb[1].mxu1  ;;  %v1931_v32 = vadd.f32 %v3489_v22, %v4104_v19 }
 0x1d4   : >> { %v1647_v25 = vpack.c.bf16 %v1574_v21, %v1573_v20  ;;  %v1923_v26 = vadd.f32 %v4104_v19, %v1922_v24  ;;  %v3465_v27 = vpop.f32.mrb[112].mxu0  ;;  %v3490_v28 = vpop.f32.mrb[2].mxu1 }
 0x1d5   : >> { %v1411_v29 = vadd.f32 %v3465_v27, %v3914_v63  ;;  %v1402_v30 = vpop.f32.mrb[113].mxu0  ;;  %v1925_v31 = vpop.f32.mrb[3].mxu1  ;;  %v1934_v39 = vadd.f32 %v3490_v28, %v4104_v19  ;;  %v2435_v44 = vmax.f32 %v1931_v32, 0.0 }
 0x1d6   : >> { %v1403_v33 = vadd.f32 %v3914_v63, %v1402_v30  ;;  %v1926_v34 = vadd.f32 %v4104_v19, %v1925_v31  ;;  %v3466_v35 = vpop.f32.mrb[114].mxu0  ;;  %3595 = vmatprep.mubr.msk.bf16.mxu1 %vm727_vm0, %v1647_v25  ;;  %v2433_v38 = vmax.f32 %v1923_v26, 0.0 }
 0x1d7   : >> { %v1414_v36 = vadd.f32 %v3466_v35, %v3914_v63  ;;  %v1405_v37 = vpop.f32.mrb[115].mxu0  ;;  %3596 = vmatmul.mubr.msk.bf16.gmra.mrb[108].mxu1 %vm727_vm0, %v1648_v23  ;;  %v1579_v42 = vmax.f32 %v1411_v29, 0.0  ;;  %v2436_v51 = vmax.f32 %v1934_v39, 0.0 }
 0x1d8   : >> { %v2434_v40 = vmax.f32 %v1926_v34, 0.0  ;;  %v1406_v41 = vadd.f32 %v3914_v63, %v1405_v37  ;;  %v1577_v45 = vmax.f32 %v1403_v33, 0.0 }
 0x1d9   : >> { %v1580_v43 = vmax.f32 %v1414_v36, 0.0 }
 0x1da   : >> { %v2562_v46 = vmax.f32 %v2433_v38, %v2434_v40  ;;  %v1578_v47 = vmax.f32 %v1406_v41, 0.0  ;;  %v3493_v48 = vpop.f32.mrb[4].mxu1 }
 0x1db   : >> { %v1650_v49 = vpack.c.bf16 %v1580_v43, %v1579_v42  ;;  %v1938_v50 = vpop.f32.mrb[5].mxu1  ;;  %v1947_v57 = vadd.f32 %v3493_v48, %v4104_v19 }
 0x1dc   : >> { %v2563_v52 = vmax.f32 %v2562_v46, %v2435_v44  ;;  %v1649_v53 = vpack.c.bf16 %v1578_v47, %v1577_v45  ;;  %v1939_v54 = vadd.f32 %v4104_v19, %v1938_v50  ;;  %v3469_v55 = vpop.f32.mrb[116].mxu0  ;;  %v3494_v56 = vpop.f32.mrb[6].mxu1 }
 0x1dd   : >> { %v1427_v58 = vadd.f32 %v3469_v55, %v3914_v63  ;;  %v1418_v59 = vpop.f32.mrb[117].mxu0  ;;  %v1941_v60 = vpop.f32.mrb[7].mxu1  ;;  %v1950_v2 = vadd.f32 %v3494_v56, %v4104_v19  ;;  %v2439_v9 = vmax.f32 %v1947_v57, 0.0 }
 0x1de   : >> { %v2564_v61 = vmax.f32 %v2563_v52, %v2436_v51  ;;  %v1419_v62 = vadd.f32 %v3914_v63, %v1418_v59  ;;  %v1942_v0 = vadd.f32 %v4104_v19, %v1941_v60  ;;  %v3470_v1 = vpop.f32.mrb[118].mxu0  ;;  %3599 = vmatprep.mubr.msk.bf16.mxu1 %vm727_vm0, %v1649_v53  ;;  %v2437_v7 = vmax.f32 %v1939_v54, 0.0 }
 0x1df   : >> { %v1430_v4 = vadd.f32 %v4126_v3, %v3470_v1  ;;  %v1421_v5 = vpop.f32.mrb[119].mxu0  ;;  %3600 = vmatmul.mubr.msk.bf16.gmra.mrb[112].mxu1 %vm727_vm0, %v1650_v49  ;;  %v1583_v10 = vmax.f32 %v1427_v58, 0.0  ;;  %v2440_v21 = vmax.f32 %v1950_v2, 0.0 }
 0x1e0   : >> { %v2565_v6 = vrot.slane %v2564_v61, 4  ;;  %v2438_v63 = vmax.f32 %v1942_v0, 0.0  ;;  %v1422_v8 = vadd.f32 %v4126_v3, %v1421_v5  ;;  %v1581_v13 = vmax.f32 %v1419_v62, 0.0 }
 0x1e1   : >> { %v1584_v11 = vmax.f32 %v1430_v4, 0.0 }
 0x1e2   : >> { %v2566_v12 = vmax.f32 %v2564_v61, %v2565_v6  ;;  %v2571_v14 = vmax.f32 %v2437_v7, %v2438_v63  ;;  %v1582_v15 = vmax.f32 %v1422_v8, 0.0  ;;  %v3497_v16 = vpop.f32.mrb[8].mxu1 }
 0x1e3   : >> { %v1652_v17 = vpack.c.bf16 %v1584_v11, %v1583_v10  ;;  %v1954_v18 = vpop.f32.mrb[9].mxu1  ;;  %v1963_v34 = vadd.f32 %v3497_v16, %v4104_v19 }
 0x1e4   : >> { %v2567_v20 = vrot.slane %v2566_v12, 2  ;;  %v2572_v22 = vmax.f32 %v2571_v14, %v2439_v9  ;;  %v1651_v23 = vpack.c.bf16 %v1582_v15, %v1581_v13  ;;  %v3473_v24 = vpop.f32.mrb[120].mxu0  ;;  %v3498_v25 = vpop.f32.mrb[10].mxu1  ;;  %v1955_v26 = vadd.f32 %v4104_v19, %v1954_v18 }
 0x1e5   : >> { %v1443_v27 = vadd.f32 %v4126_v3, %v3473_v24  ;;  %v1434_v28 = vpop.f32.mrb[121].mxu0  ;;  %v1957_v29 = vpop.f32.mrb[11].mxu1  ;;  %v1966_v39 = vadd.f32 %v3498_v25, %v4104_v19  ;;  %v2443_v50 = vmax.f32 %v1963_v34, 0.0 }
 0x1e6   : >> { %v2573_v30 = vmax.f32 %v2572_v22, %v2440_v21  ;;  %v1435_v31 = vadd.f32 %v4126_v3, %v1434_v28  ;;  %v3474_v32 = vpop.f32.mrb[122].mxu0  ;;  %3603 = vmatprep.mubr.msk.bf16.mxu1 %vm727_vm0, %v1651_v23  ;;  %v2568_v33 = vmax.f32 %v2566_v12, %v2567_v20  ;;  %v1958_v35 = vadd.f32 %v4104_v19, %v1957_v29 }
 0x1e7   : >> { %v1446_v36 = vadd.f32 %v4126_v3, %v3474_v32  ;;  %v1437_v37 = vpop.f32.mrb[123].mxu0  ;;  %3604 = vmatmul.mubr.msk.bf16.gmra.mrb[116].mxu1 %vm727_vm0, %v1652_v17  ;;  %v2441_v41 = vmax.f32 %v1955_v26, 0.0  ;;  %v1587_v42 = vmax.f32 %v1443_v27, 0.0  ;;  %v2444_v59 = vmax.f32 %v1966_v39, 0.0 }
 0x1e8   : >> { %v2574_v38 = vrot.slane %v2573_v30, 4  ;;  %v1438_v40 = vadd.f32 %v4126_v3, %v1437_v37  ;;  %v2442_v43 = vmax.f32 %v1958_v35, 0.0  ;;  %v1585_v46 = vmax.f32 %v1435_v31, 0.0 }
 0x1e9   : >> { %v1588_v44 = vmax.f32 %v1446_v36, 0.0  ;;  %v2569_v49 = vrot.slane %v2568_v33, 1 }
 0x1ea   : >> { %v2575_v45 = vmax.f32 %v2573_v30, %v2574_v38  ;;  %v1586_v47 = vmax.f32 %v1438_v40, 0.0  ;;  %v3501_v48 = vpop.f32.mrb[12].mxu1  ;;  %v2580_v51 = vmax.f32 %v2441_v41, %v2442_v43 }
 0x1eb   : >> { %v1654_v52 = vpack.c.bf16 %v1588_v44, %v1587_v42  ;;  %v1970_v53 = vpop.f32.mrb[13].mxu1  ;;  %v1979_v61 = vadd.f32 %v3501_v48, %v4104_v19  ;;  %v2570_v7 = vmax.f32 %v2568_v33, %v2569_v49 }
 0x1ec   : >> { %v2576_v54 = vrot.slane %v2575_v45, 2  ;;  %v1653_v55 = vpack.c.bf16 %v1586_v47, %v1585_v46  ;;  %v1971_v56 = vadd.f32 %v4104_v19, %v1970_v53  ;;  %v3477_v57 = vpop.f32.mrb[124].mxu0  ;;  %v3502_v58 = vpop.f32.mrb[14].mxu1  ;;  %v2581_v60 = vmax.f32 %v2580_v51, %v2443_v50 }
 0x1ed   : >> { %v1459_v62 = vadd.f32 %v4126_v3, %v3477_v57  ;;  %v1450_v0 = vpop.f32.mrb[125].mxu0  ;;  %v1973_v1 = vpop.f32.mrb[15].mxu1  ;;  %v1982_v8 = vadd.f32 %v3502_v58, %v4104_v19  ;;  %v2447_v16 = vmax.f32 %v1979_v61, 0.0 }
 0x1ee   : >> { %v2577_v2 = vmax.f32 %v2575_v45, %v2576_v54  ;;  %v1451_v4 = vadd.f32 %v4126_v3, %v1450_v0  ;;  %v1974_v5 = vadd.f32 %v4104_v19, %v1973_v1  ;;  %v3478_v6 = vpop.f32.mrb[126].mxu0  ;;  %3607 = vmatprep.mubr.msk.bf16.mxu1 %vm727_vm0, %v1653_v55  ;;  %v2582_v63 = vmax.f32 %v2581_v60, %v2444_v59 }
 0x1ef   : >> { %v1462_v9 = vadd.f32 %v4126_v3, %v3478_v6  ;;  %v1453_v10 = vpop.f32.mrb[127].mxu0  ;;  %3608 = vmatmul.mubr.msk.bf16.gmra.mrb[120].mxu1 %vm727_vm0, %v1654_v52  ;;  %v2445_v12 = vmax.f32 %v1971_v56, 0.0  ;;  %v1591_v17 = vmax.f32 %v1459_v62, 0.0  ;;  %v2448_v26 = vmax.f32 %v1982_v8, 0.0 }
 0x1f0   : >> { %v2578_v11 = vrot.slane %v2577_v2, 1  ;;  %v2446_v13 = vmax.f32 %v1974_v5, 0.0  ;;  %v1454_v14 = vadd.f32 %v4126_v3, %v1453_v10  ;;  %v2583_v15 = vrot.slane %v2582_v63, 4 }
 0x1f1   : >> { %v1592_v18 = vmax.f32 %v1462_v9, 0.0  ;;  %v1589_v21 = vmax.f32 %v1451_v4, 0.0 }
 0x1f2   : >> { %v2579_v20 = vmax.f32 %v2577_v2, %v2578_v11  ;;  %v2589_v22 = vmax.f32 %v2445_v12, %v2446_v13  ;;  %v1590_v23 = vmax.f32 %v1454_v14, 0.0  ;;  %v3505_v24 = vpop.f32.mrb[16].mxu1  ;;  %v2584_v25 = vmax.f32 %v2582_v63, %v2583_v15 }
 0x1f3   : >> { %v1656_v27 = vpack.c.bf16 %v1592_v18, %v1591_v17  ;;  %v1986_v28 = vpop.f32.mrb[17].mxu1  ;;  %v1995_v36 = vadd.f32 %v3505_v24, %v4104_v19 }
 0x1f4   : >> { %v2883_v29 = vsel %vm2882_vm1, %v2579_v20, %v2570_v7  ;;  %v2590_v30 = vmax.f32 %v2589_v22, %v2447_v16  ;;  %v1655_v31 = vpack.c.bf16 %v1590_v23, %v1589_v21  ;;  %v1987_v32 = vadd.f32 %v4104_v19, %v1986_v28  ;;  %v3506_v3 = vpop.f32.mrb[18].mxu1 }
 0x1f5   : >> { %v2585_v33 = vrot.slane %v2584_v25, 2  ;;  %v1989_v34 = vpop.f32.mrb[19].mxu1  ;;  %v1998_v41 = vadd.f32 %v3506_v3, %v4104_v19  ;;  %v2451_v45 = vmax.f32 %v1995_v36, 0.0 }
 0x1f6   : >> { %v2591_v35 = vmax.f32 %v2590_v30, %v2448_v26  ;;  %v1990_v37 = vadd.f32 %v4104_v19, %v1989_v34  ;;  %3611 = vmatprep.mubr.msk.bf16.mxu1 %vm727_vm0, %v1655_v31  ;;  %v2449_v40 = vmax.f32 %v1987_v32, 0.0 }
 0x1f7   : >> { %v2586_v38 = vmax.f32 %v2584_v25, %v2585_v33  ;;  %3612 = vmatmul.mubr.msk.bf16.gmra.mrb[124].mxu1 %vm727_vm0, %v1656_v27  ;;  %v2452_v51 = vmax.f32 %v1998_v41, 0.0 }
 0x1f8   : >> { %v2592_v39 = vrot.slane %v2591_v35, 4  ;;  %v2450_v42 = vmax.f32 %v1990_v37, 0.0 }
 0x1f9   : >> { %v2587_v43 = vrot.slane %v2586_v38, 1 }
 0x1fa   : >> { %v2593_v44 = vmax.f32 %v2591_v35, %v2592_v39  ;;  %v2598_v46 = vmax.f32 %v2449_v40, %v2450_v42  ;;  %v3509_v47 = vpop.f32.mrb[20].mxu1 }
 0x1fb   : >> { %v2588_v48 = vmax.f32 %v2586_v38, %v2587_v43  ;;  %v2002_v49 = vpop.f32.mrb[21].mxu1  ;;  %v2011_v59 = vadd.f32 %v3509_v47, %v4104_v19 }
 0x1fc   : >> { %v2594_v50 = vrot.slane %v2593_v44, 2  ;;  %v2599_v52 = vmax.f32 %v2598_v46, %v2451_v45  ;;  %v2003_v53 = vadd.f32 %v4104_v19, %v2002_v49  ;;  %v3510_v54 = vpop.f32.mrb[22].mxu1 }
 0x1fd   : >> { %v2885_v55 = vsel %vm2884_vm2, %v2588_v48, %v2883_v29  ;;  %v2005_v56 = vpop.f32.mrb[23].mxu1  ;;  %v2014_v61 = vadd.f32 %v3510_v54, %v4104_v19  ;;  %v2455_v6 = vmax.f32 %v2011_v59, 0.0 }
 0x1fe   : >> { %v2595_v57 = vmax.f32 %v2593_v44, %v2594_v50  ;;  %v2600_v58 = vmax.f32 %v2599_v52, %v2452_v51  ;;  %v2006_v60 = vadd.f32 %v4104_v19, %v2005_v56  ;;  %v2453_v1 = vmax.f32 %v2003_v53, 0.0 }
 0x1ff   : >> { %v2456_v8 = vmax.f32 %v2014_v61, 0.0 }
 0x200   : >> { %v2596_v62 = vrot.slane %v2595_v57, 1  ;;  %v2601_v0 = vrot.slane %v2600_v58, 4  ;;  %v2454_v2 = vmax.f32 %v2006_v60, 0.0 }
 0x202   : >> { %v2597_v4 = vmax.f32 %v2595_v57, %v2596_v62  ;;  %v2602_v5 = vmax.f32 %v2600_v58, %v2601_v0  ;;  %v2607_v7 = vmax.f32 %v2453_v1, %v2454_v2  ;;  %v3513_v63 = vpop.f32.mrb[24].mxu1 }
 0x203   : >> { %v2018_v9 = vpop.f32.mrb[25].mxu1  ;;  %v2027_v18 = vadd.f32 %v3513_v63, %v4104_v19 }
 0x204   : >> { %v2887_v10 = vsel %vm2886_vm3, %v2597_v4, %v2885_v55  ;;  %v2603_v11 = vrot.slane %v2602_v5, 2  ;;  %v2608_v12 = vmax.f32 %v2607_v7, %v2455_v6  ;;  %v2019_v13 = vadd.f32 %v4104_v19, %v2018_v9  ;;  %v3514_v14 = vpop.f32.mrb[26].mxu1 }
 0x205   : >> { %v2021_v15 = vpop.f32.mrb[27].mxu1  ;;  %v2030_v21 = vadd.f32 %v3514_v14, %v4104_v19  ;;  %v2459_v28 = vmax.f32 %v2027_v18, 0.0 }
 0x206   : >> { %v2604_v16 = vmax.f32 %v2602_v5, %v2603_v11  ;;  %v2609_v17 = vmax.f32 %v2608_v12, %v2456_v8  ;;  %v2022_v20 = vadd.f32 %v4104_v19, %v2021_v15  ;;  %v2457_v24 = vmax.f32 %v2019_v13, 0.0 }
 0x207   : >> { %v2460_v31 = vmax.f32 %v2030_v21, 0.0 }
 0x208   : >> { %v2605_v22 = vrot.slane %v2604_v16, 1  ;;  %v2610_v23 = vrot.slane %v2609_v17, 4  ;;  %v2458_v25 = vmax.f32 %v2022_v20, 0.0 }
 0x20a   : >> { %v2606_v26 = vmax.f32 %v2604_v16, %v2605_v22  ;;  %v2611_v27 = vmax.f32 %v2609_v17, %v2610_v23  ;;  %v2616_v29 = vmax.f32 %v2457_v24, %v2458_v25  ;;  %v3517_v30 = vpop.f32.mrb[28].mxu1 }
 0x20b   : >> { %v2034_v32 = vpop.f32.mrb[29].mxu1  ;;  %v2043_v40 = vadd.f32 %v3517_v30, %v4104_v19 }
 0x20c   : >> { %v2889_v3 = vsel %vm2888_vm4, %v2606_v26, %v2887_v10  ;;  %v2612_v33 = vrot.slane %v2611_v27, 2  ;;  %v2617_v34 = vmax.f32 %v2616_v29, %v2459_v28  ;;  %v2035_v35 = vadd.f32 %v4104_v19, %v2034_v32  ;;  %v3518_v36 = vpop.f32.mrb[30].mxu1 }
 0x20d   : >> { %v2037_v37 = vpop.f32.mrb[31].mxu1  ;;  %v2046_v42 = vadd.f32 %v3518_v36, %v4104_v19  ;;  %v2463_v49 = vmax.f32 %v2043_v40, 0.0 }
 0x20e   : >> { %v2613_v38 = vmax.f32 %v2611_v27, %v2612_v33  ;;  %v2618_v39 = vmax.f32 %v2617_v34, %v2460_v31  ;;  %v2038_v41 = vadd.f32 %v4104_v19, %v2037_v37  ;;  %v2461_v45 = vmax.f32 %v2035_v35, 0.0 }
 0x20f   : >> { %v2464_v52 = vmax.f32 %v2046_v42, 0.0 }
 0x210   : >> { %v2614_v43 = vrot.slane %v2613_v38, 1  ;;  %v2619_v44 = vrot.slane %v2618_v39, 4  ;;  %v2462_v46 = vmax.f32 %v2038_v41, 0.0 }
 0x212   : >> { %v2615_v47 = vmax.f32 %v2613_v38, %v2614_v43  ;;  %v2620_v48 = vmax.f32 %v2618_v39, %v2619_v44  ;;  %v2625_v50 = vmax.f32 %v2461_v45, %v2462_v46  ;;  %v3521_v51 = vpop.f32.mrb[32].mxu1 }
 0x213   : >> { %v2050_v53 = vpop.f32.mrb[33].mxu1  ;;  %v2059_v62 = vadd.f32 %v3521_v51, %v4104_v19 }
 0x214   : >> { %v2891_v54 = vsel %vm2890_vm5, %v2615_v47, %v2889_v3  ;;  %v2621_v55 = vrot.slane %v2620_v48, 2  ;;  %v2626_v56 = vmax.f32 %v2625_v50, %v2463_v49  ;;  %v2051_v57 = vadd.f32 %v4104_v19, %v2050_v53  ;;  %v3522_v58 = vpop.f32.mrb[34].mxu1 }
 0x215   : >> { %v2053_v59 = vpop.f32.mrb[35].mxu1  ;;  %v2062_v1 = vadd.f32 %v3522_v58, %v4104_v19  ;;  %v2467_v8 = vmax.f32 %v2059_v62, 0.0 }
 0x216   : >> { %v2622_v60 = vmax.f32 %v2620_v48, %v2621_v55  ;;  %v2627_v61 = vmax.f32 %v2626_v56, %v2464_v52  ;;  %v2054_v0 = vadd.f32 %v4104_v19, %v2053_v59  ;;  %v2465_v5 = vmax.f32 %v2051_v57, 0.0 }
 0x217   : >> { %v2468_v11 = vmax.f32 %v2062_v1, 0.0 }
 0x218   : >> { %v2623_v2 = vrot.slane %v2622_v60, 1  ;;  %v2628_v4 = vrot.slane %v2627_v61, 4  ;;  %v2466_v6 = vmax.f32 %v2054_v0, 0.0 }
 0x21a   : >> { %v2624_v7 = vmax.f32 %v2622_v60, %v2623_v2  ;;  %v2629_v63 = vmax.f32 %v2627_v61, %v2628_v4  ;;  %v2634_v9 = vmax.f32 %v2465_v5, %v2466_v6  ;;  %v3525_v10 = vpop.f32.mrb[36].mxu1 }
 0x21b   : >> { %v2066_v12 = vpop.f32.mrb[37].mxu1  ;;  %v2075_v22 = vadd.f32 %v3525_v10, %v4104_v19 }
 0x21c   : >> { %v2893_v13 = vsel %vm2892_vm6, %v2624_v7, %v2891_v54  ;;  %v2630_v14 = vrot.slane %v2629_v63, 2  ;;  %v2635_v15 = vmax.f32 %v2634_v9, %v2467_v8  ;;  %v2067_v16 = vadd.f32 %v4104_v19, %v2066_v12  ;;  %v3526_v17 = vpop.f32.mrb[38].mxu1 }
 0x21d   : >> { %v2069_v18 = vpop.f32.mrb[39].mxu1  ;;  %v2078_v24 = vadd.f32 %v3526_v17, %v4104_v19  ;;  %v2471_v31 = vmax.f32 %v2075_v22, 0.0 }
 0x21e   : >> { %v2631_v20 = vmax.f32 %v2629_v63, %v2630_v14  ;;  %v2636_v21 = vmax.f32 %v2635_v15, %v2468_v11  ;;  %v2070_v23 = vadd.f32 %v4104_v19, %v2069_v18  ;;  %v2469_v27 = vmax.f32 %v2067_v16, 0.0 }
 0x21f   : >> { %v2472_v35 = vmax.f32 %v2078_v24, 0.0 }
 0x220   : >> { %v2632_v25 = vrot.slane %v2631_v20, 1  ;;  %v2637_v26 = vrot.slane %v2636_v21, 4  ;;  %v2470_v28 = vmax.f32 %v2070_v23, 0.0 }
 0x222   : >> { %v2633_v29 = vmax.f32 %v2631_v20, %v2632_v25  ;;  %v2638_v30 = vmax.f32 %v2636_v21, %v2637_v26  ;;  %v2643_v32 = vmax.f32 %v2469_v27, %v2470_v28  ;;  %v3529_v3 = vpop.f32.mrb[40].mxu1 }
 0x223   : >> { %v2082_v33 = vpop.f32.mrb[41].mxu1  ;;  %v2091_v42 = vadd.f32 %v3529_v3, %v4104_v19 }
 0x224   : >> { %v2895_v34 = vsel %vm2894_vm7, %v2633_v29, %v2893_v13  ;;  %v2644_v36 = vmax.f32 %v2643_v32, %v2471_v31  ;;  %v2083_v37 = vadd.f32 %v4104_v19, %v2082_v33  ;;  %v3530_v38 = vpop.f32.mrb[42].mxu1  ;;  %v2639_v39 = vrot.slane %v2638_v30, 2 }
 0x225   : >> { %2922 = vst [vmem:[%s4185_s12] sm:$0xff] %v2895_v34  ;;  %v2085_v40 = vpop.f32.mrb[43].mxu1  ;;  %v2094_v46 = vadd.f32 %v3530_v38, %v4104_v19  ;;  %v2475_v50 = vmax.f32 %v2091_v42, 0.0 }
 0x226   : >> { %v2645_v41 = vmax.f32 %v2644_v36, %v2472_v35  ;;  %v2086_v43 = vadd.f32 %v4104_v19, %v2085_v40  ;;  %v2473_v45 = vmax.f32 %v2083_v37, 0.0  ;;  %v2640_v48 = vmax.f32 %v2638_v30, %v2639_v39 }
 0x227   : >> { %v2476_v55 = vmax.f32 %v2094_v46, 0.0 }
 0x228   : >> { %v2646_v44 = vrot.slane %v2645_v41, 4  ;;  %v2474_v47 = vmax.f32 %v2086_v43, 0.0  ;;  %v2641_v59 = vrot.slane %v2640_v48, 1 }
 0x22a   : >> { %v2647_v49 = vmax.f32 %v2645_v41, %v2646_v44  ;;  %v2652_v51 = vmax.f32 %v2473_v45, %v2474_v47  ;;  %v3533_v52 = vpop.f32.mrb[44].mxu1  ;;  %v2642_v63 = vmax.f32 %v2640_v48, %v2641_v59 }
 0x22b   : >> { %v2098_v53 = vpop.f32.mrb[45].mxu1  ;;  %v2107_v0 = vadd.f32 %v3533_v52, %v4104_v19 }
 0x22c   : >> { %v2648_v54 = vrot.slane %v2647_v49, 2  ;;  %v2653_v56 = vmax.f32 %v2652_v51, %v2475_v50  ;;  %v2099_v57 = vadd.f32 %v4104_v19, %v2098_v53  ;;  %v3534_v58 = vpop.f32.mrb[46].mxu1 }
 0x22d   : >> { %v2101_v60 = vpop.f32.mrb[47].mxu1  ;;  %v2110_v2 = vadd.f32 %v3534_v58, %v4104_v19  ;;  %v2479_v10 = vmax.f32 %v2107_v0, 0.0 }
 0x22e   : >> { %v2649_v61 = vmax.f32 %v2647_v49, %v2648_v54  ;;  %v2654_v62 = vmax.f32 %v2653_v56, %v2476_v55  ;;  %v2102_v1 = vadd.f32 %v4104_v19, %v2101_v60  ;;  %v2477_v6 = vmax.f32 %v2099_v57, 0.0 }
 0x22f   : >> { %v2480_v13 = vmax.f32 %v2110_v2, 0.0 }
 0x230   : >> { %v2650_v4 = vrot.slane %v2649_v61, 1  ;;  %v2655_v5 = vrot.slane %v2654_v62, 4  ;;  %v2478_v7 = vmax.f32 %v2102_v1, 0.0 }
 0x232   : >> { %v2651_v8 = vmax.f32 %v2649_v61, %v2650_v4  ;;  %v2656_v9 = vmax.f32 %v2654_v62, %v2655_v5  ;;  %v2661_v11 = vmax.f32 %v2477_v6, %v2478_v7  ;;  %v3537_v12 = vpop.f32.mrb[48].mxu1 }
 0x233   : >> { %v2114_v14 = vpop.f32.mrb[49].mxu1  ;;  %v2123_v24 = vadd.f32 %v3537_v12, %v4104_v19 }
 0x234   : >> { %v2896_v15 = vsel %vm2882_vm1, %v2651_v8, %v2642_v63  ;;  %v2657_v16 = vrot.slane %v2656_v9, 2  ;;  %v2662_v17 = vmax.f32 %v2661_v11, %v2479_v10  ;;  %v2115_v18 = vadd.f32 %v4104_v19, %v2114_v14  ;;  %v3538_v20 = vpop.f32.mrb[50].mxu1 }
 0x235   : >> { %v2117_v21 = vpop.f32.mrb[51].mxu1  ;;  %v2126_v26 = vadd.f32 %v3538_v20, %v4104_v19  ;;  %v2483_v3 = vmax.f32 %v2123_v24, 0.0 }
 0x236   : >> { %v2658_v22 = vmax.f32 %v2656_v9, %v2657_v16  ;;  %v2663_v23 = vmax.f32 %v2662_v17, %v2480_v13  ;;  %v2118_v25 = vadd.f32 %v4104_v19, %v2117_v21  ;;  %v2481_v29 = vmax.f32 %v2115_v18, 0.0 }
 0x237   : >> { %v2484_v35 = vmax.f32 %v2126_v26, 0.0 }
 0x238   : >> { %v2659_v27 = vrot.slane %v2658_v22, 1  ;;  %v2664_v28 = vrot.slane %v2663_v23, 4  ;;  %v2482_v30 = vmax.f32 %v2118_v25, 0.0 }
 0x23a   : >> { %v2660_v31 = vmax.f32 %v2658_v22, %v2659_v27  ;;  %v2665_v32 = vmax.f32 %v2663_v23, %v2664_v28  ;;  %v2670_v33 = vmax.f32 %v2481_v29, %v2482_v30  ;;  %v3541_v34 = vpop.f32.mrb[52].mxu1 }
 0x23b   : >> { %v2130_v36 = vpop.f32.mrb[53].mxu1  ;;  %v2139_v45 = vadd.f32 %v3541_v34, %v4104_v19 }
 0x23c   : >> { %v2897_v37 = vsel %vm2884_vm2, %v2660_v31, %v2896_v15  ;;  %v2666_v38 = vrot.slane %v2665_v32, 2  ;;  %v2671_v39 = vmax.f32 %v2670_v33, %v2483_v3  ;;  %v2131_v40 = vadd.f32 %v4104_v19, %v2130_v36  ;;  %v3542_v41 = vpop.f32.mrb[54].mxu1 }
 0x23d   : >> { %v2133_v42 = vpop.f32.mrb[55].mxu1  ;;  %v2142_v47 = vadd.f32 %v3542_v41, %v4104_v19  ;;  %v2487_v54 = vmax.f32 %v2139_v45, 0.0 }
 0x23e   : >> { %v2667_v43 = vmax.f32 %v2665_v32, %v2666_v38  ;;  %v2672_v44 = vmax.f32 %v2671_v39, %v2484_v35  ;;  %v2134_v46 = vadd.f32 %v4104_v19, %v2133_v42  ;;  %v2485_v50 = vmax.f32 %v2131_v40, 0.0 }
 0x23f   : >> { %v2488_v57 = vmax.f32 %v2142_v47, 0.0 }
 0x240   : >> { %v2668_v48 = vrot.slane %v2667_v43, 1  ;;  %v2673_v49 = vrot.slane %v2672_v44, 4  ;;  %v2486_v51 = vmax.f32 %v2134_v46, 0.0 }
 0x242   : >> { %v2669_v52 = vmax.f32 %v2667_v43, %v2668_v48  ;;  %v2674_v53 = vmax.f32 %v2672_v44, %v2673_v49  ;;  %v2679_v55 = vmax.f32 %v2485_v50, %v2486_v51  ;;  %v3545_v56 = vpop.f32.mrb[56].mxu1 }
 0x243   : >> { %v2146_v58 = vpop.f32.mrb[57].mxu1  ;;  %v2155_v5 = vadd.f32 %v3545_v56, %v4104_v19 }
 0x244   : >> { %v2898_v59 = vsel %vm2886_vm3, %v2669_v52, %v2897_v37  ;;  %v2675_v60 = vrot.slane %v2674_v53, 2  ;;  %v2680_v61 = vmax.f32 %v2679_v55, %v2487_v54  ;;  %v2147_v62 = vadd.f32 %v4104_v19, %v2146_v58  ;;  %v3546_v0 = vpop.f32.mrb[58].mxu1 }
 0x245   : >> { %v2149_v1 = vpop.f32.mrb[59].mxu1  ;;  %v2158_v7 = vadd.f32 %v3546_v0, %v4104_v19  ;;  %v2491_v13 = vmax.f32 %v2155_v5, 0.0 }
 0x246   : >> { %v2676_v2 = vmax.f32 %v2674_v53, %v2675_v60  ;;  %v2681_v4 = vmax.f32 %v2680_v61, %v2488_v57  ;;  %v2150_v6 = vadd.f32 %v4104_v19, %v2149_v1  ;;  %v2489_v9 = vmax.f32 %v2147_v62, 0.0 }
 0x247   : >> { %v2492_v16 = vmax.f32 %v2158_v7, 0.0 }
 0x248   : >> { %v2677_v63 = vrot.slane %v2676_v2, 1  ;;  %v2682_v8 = vrot.slane %v2681_v4, 4  ;;  %v2490_v10 = vmax.f32 %v2150_v6, 0.0 }
 0x24a   : >> { %v2678_v11 = vmax.f32 %v2676_v2, %v2677_v63  ;;  %v2683_v12 = vmax.f32 %v2681_v4, %v2682_v8  ;;  %v2688_v14 = vmax.f32 %v2489_v9, %v2490_v10  ;;  %v3549_v15 = vpop.f32.mrb[60].mxu1 }
 0x24b   : >> { %v2162_v17 = vpop.f32.mrb[61].mxu1  ;;  %v2171_v27 = vadd.f32 %v3549_v15, %v4104_v19 }
 0x24c   : >> { %v2899_v18 = vsel %vm2888_vm4, %v2678_v11, %v2898_v59  ;;  %v2684_v20 = vrot.slane %v2683_v12, 2  ;;  %v2689_v21 = vmax.f32 %v2688_v14, %v2491_v13  ;;  %v2163_v22 = vadd.f32 %v4104_v19, %v2162_v17  ;;  %v3550_v23 = vpop.f32.mrb[62].mxu1 }
 0x24d   : >> { %v2165_v24 = vpop.f32.mrb[63].mxu1  ;;  %v2174_v29 = vadd.f32 %v3550_v23, %v4104_v19  ;;  %v2495_v35 = vmax.f32 %v2171_v27, 0.0 }
 0x24e   : >> { %v2685_v25 = vmax.f32 %v2683_v12, %v2684_v20  ;;  %v2690_v26 = vmax.f32 %v2689_v21, %v2492_v16  ;;  %v2166_v28 = vadd.f32 %v4104_v19, %v2165_v24  ;;  %v2493_v32 = vmax.f32 %v2163_v22, 0.0 }
 0x24f   : >> { %v2496_v38 = vmax.f32 %v2174_v29, 0.0 }
 0x250   : >> { %v2686_v30 = vrot.slane %v2685_v25, 1  ;;  %v2691_v31 = vrot.slane %v2690_v26, 4  ;;  %v2494_v3 = vmax.f32 %v2166_v28, 0.0 }
 0x252   : >> { %v2687_v33 = vmax.f32 %v2685_v25, %v2686_v30  ;;  %v2692_v34 = vmax.f32 %v2690_v26, %v2691_v31  ;;  %v2697_v36 = vmax.f32 %v2493_v32, %v2494_v3  ;;  %v3553_v37 = vpop.f32.mrb[64].mxu1 }
 0x253   : >> { %v2178_v39 = vpop.f32.mrb[65].mxu1  ;;  %v2187_v48 = vadd.f32 %v3553_v37, %v4104_v19 }
 0x254   : >> { %v2900_v40 = vsel %vm2890_vm5, %v2687_v33, %v2899_v18  ;;  %v2693_v41 = vrot.slane %v2692_v34, 2  ;;  %v2698_v42 = vmax.f32 %v2697_v36, %v2495_v35  ;;  %v2179_v43 = vadd.f32 %v4104_v19, %v2178_v39  ;;  %v3554_v44 = vpop.f32.mrb[66].mxu1 }
 0x255   : >> { %v2181_v45 = vpop.f32.mrb[67].mxu1  ;;  %v2190_v50 = vadd.f32 %v3554_v44, %v4104_v19  ;;  %v2499_v57 = vmax.f32 %v2187_v48, 0.0 }
 0x256   : >> { %v2694_v46 = vmax.f32 %v2692_v34, %v2693_v41  ;;  %v2699_v47 = vmax.f32 %v2698_v42, %v2496_v38  ;;  %v2182_v49 = vadd.f32 %v4104_v19, %v2181_v45  ;;  %v2497_v53 = vmax.f32 %v2179_v43, 0.0 }
 0x257   : >> { %v2500_v60 = vmax.f32 %v2190_v50, 0.0 }
 0x258   : >> { %v2695_v51 = vrot.slane %v2694_v46, 1  ;;  %v2700_v52 = vrot.slane %v2699_v47, 4  ;;  %v2498_v54 = vmax.f32 %v2182_v49, 0.0 }
 0x25a   : >> { %v2696_v55 = vmax.f32 %v2694_v46, %v2695_v51  ;;  %v2701_v56 = vmax.f32 %v2699_v47, %v2700_v52  ;;  %v2706_v58 = vmax.f32 %v2497_v53, %v2498_v54  ;;  %v3557_v59 = vpop.f32.mrb[68].mxu1 }
 0x25b   : >> { %v2194_v61 = vpop.f32.mrb[69].mxu1  ;;  %v2203_v63 = vadd.f32 %v3557_v59, %v4104_v19 }
 0x25c   : >> { %v2901_v62 = vsel %vm2892_vm6, %v2696_v55, %v2900_v40  ;;  %v2702_v0 = vrot.slane %v2701_v56, 2  ;;  %v2707_v1 = vmax.f32 %v2706_v58, %v2499_v57  ;;  %v2195_v2 = vadd.f32 %v4104_v19, %v2194_v61  ;;  %v3558_v4 = vpop.f32.mrb[70].mxu1 }
 0x25d   : >> { %v2197_v5 = vpop.f32.mrb[71].mxu1  ;;  %v2206_v9 = vadd.f32 %v3558_v4, %v4104_v19  ;;  %v2503_v16 = vmax.f32 %v2203_v63, 0.0 }
 0x25e   : >> { %v2703_v6 = vmax.f32 %v2701_v56, %v2702_v0  ;;  %v2708_v7 = vmax.f32 %v2707_v1, %v2500_v60  ;;  %v2198_v8 = vadd.f32 %v4104_v19, %v2197_v5  ;;  %v2501_v12 = vmax.f32 %v2195_v2, 0.0 }
 0x25f   : >> { %v2504_v22 = vmax.f32 %v2206_v9, 0.0  ;;  %v4242_v9 = vld [vmem:[%s4316_s4] ss:$0 sm:$0xff] }
 0x260   : >> { %v2704_v10 = vrot.slane %v2703_v6, 1  ;;  %v2709_v11 = vrot.slane %v2708_v7, 4  ;;  %v2502_v13 = vmax.f32 %v2198_v8, 0.0 }
 0x262   : >> { %v2705_v14 = vmax.f32 %v2703_v6, %v2704_v10  ;;  %v2710_v15 = vmax.f32 %v2708_v7, %v2709_v11  ;;  %v2715_v17 = vmax.f32 %v2501_v12, %v2502_v13  ;;  %v3561_v18 = vpop.f32.mrb[72].mxu1 }
 0x263   : >> { %v2210_v20 = vpop.f32.mrb[73].mxu1  ;;  %v2219_v29 = vadd.f32 %v3561_v18, %v4104_v19 }
 0x264   : >> { %v2902_v21 = vsel %vm2894_vm7, %v2705_v14, %v2901_v62  ;;  %v2716_v23 = vmax.f32 %v2715_v17, %v2503_v16  ;;  %v2211_v24 = vadd.f32 %v4104_v19, %v2210_v20  ;;  %v3562_v25 = vpop.f32.mrb[74].mxu1  ;;  %v2711_v26 = vrot.slane %v2710_v15, 2 }
 0x265   : >> { %2923 = vst [vmem:[%s4185_s12 + $0x8] sm:$0xff] %v2902_v21  ;;  %v2213_v27 = vpop.f32.mrb[75].mxu1  ;;  %v2222_v3 = vadd.f32 %v3562_v25, %v4104_v19  ;;  %v2507_v36 = vmax.f32 %v2219_v29, 0.0 }
 0x266   : >> { %v2717_v28 = vmax.f32 %v2716_v23, %v2504_v22  ;;  %v2214_v30 = vadd.f32 %v4104_v19, %v2213_v27  ;;  %v2505_v32 = vmax.f32 %v2211_v24, 0.0  ;;  %v2712_v34 = vmax.f32 %v2710_v15, %v2711_v26 }
 0x267   : >> { %v2508_v41 = vmax.f32 %v2222_v3, 0.0 }
 0x268   : >> { %v2718_v31 = vrot.slane %v2717_v28, 4  ;;  %v2506_v33 = vmax.f32 %v2214_v30, 0.0  ;;  %v2713_v45 = vrot.slane %v2712_v34, 1 }
 0x26a   : >> { %v2719_v35 = vmax.f32 %v2717_v28, %v2718_v31  ;;  %v2724_v37 = vmax.f32 %v2505_v32, %v2506_v33  ;;  %v3565_v38 = vpop.f32.mrb[76].mxu1  ;;  %v2714_v56 = vmax.f32 %v2712_v34, %v2713_v45 }
 0x26b   : >> { %v2226_v39 = vpop.f32.mrb[77].mxu1  ;;  %v2235_v49 = vadd.f32 %v3565_v38, %v4104_v19 }
 0x26c   : >> { %v2720_v40 = vrot.slane %v2719_v35, 2  ;;  %v2725_v42 = vmax.f32 %v2724_v37, %v2507_v36  ;;  %v2227_v43 = vadd.f32 %v4104_v19, %v2226_v39  ;;  %v3566_v44 = vpop.f32.mrb[78].mxu1 }
 0x26d   : >> { %v2229_v46 = vpop.f32.mrb[79].mxu1  ;;  %v2238_v51 = vadd.f32 %v3566_v44, %v4104_v19  ;;  %v2511_v59 = vmax.f32 %v2235_v49, 0.0 }
 0x26e   : >> { %v2721_v47 = vmax.f32 %v2719_v35, %v2720_v40  ;;  %v2726_v48 = vmax.f32 %v2725_v42, %v2508_v41  ;;  %v2230_v50 = vadd.f32 %v4104_v19, %v2229_v46  ;;  %v2509_v54 = vmax.f32 %v2227_v43, 0.0 }
 0x26f   : >> { %v2512_v62 = vmax.f32 %v2238_v51, 0.0 }
 0x270   : >> { %v2722_v52 = vrot.slane %v2721_v47, 1  ;;  %v2727_v53 = vrot.slane %v2726_v48, 4  ;;  %v2510_v55 = vmax.f32 %v2230_v50, 0.0 }
 0x272   : >> { %v2723_v57 = vmax.f32 %v2721_v47, %v2722_v52  ;;  %v2728_v58 = vmax.f32 %v2726_v48, %v2727_v53  ;;  %v2733_v60 = vmax.f32 %v2509_v54, %v2510_v55  ;;  %v3569_v61 = vpop.f32.mrb[80].mxu1 }
 0x273   : >> { %v2242_v0 = vpop.f32.mrb[81].mxu1  ;;  %v2251_v10 = vadd.f32 %v4242_v9, %v3569_v61 }
 0x274   : >> { %v2903_v1 = vsel %vm2882_vm1, %v2723_v57, %v2714_v56  ;;  %v2729_v2 = vrot.slane %v2728_v58, 2  ;;  %v2734_v4 = vmax.f32 %v2733_v60, %v2511_v59  ;;  %v2243_v5 = vadd.f32 %v4104_v19, %v2242_v0  ;;  %v3570_v6 = vpop.f32.mrb[82].mxu1 }
 0x275   : >> { %v2245_v7 = vpop.f32.mrb[83].mxu1  ;;  %v2254_v12 = vadd.f32 %v4242_v9, %v3570_v6  ;;  %v2515_v18 = vmax.f32 %v2251_v10, 0.0 }
 0x276   : >> { %v2730_v63 = vmax.f32 %v2728_v58, %v2729_v2  ;;  %v2735_v8 = vmax.f32 %v2734_v4, %v2512_v62  ;;  %v2246_v11 = vadd.f32 %v4242_v9, %v2245_v7  ;;  %v2513_v15 = vmax.f32 %v2243_v5, 0.0 }
 0x277   : >> { %v2516_v22 = vmax.f32 %v2254_v12, 0.0 }
 0x278   : >> { %v2731_v13 = vrot.slane %v2730_v63, 1  ;;  %v2736_v14 = vrot.slane %v2735_v8, 4  ;;  %v2514_v16 = vmax.f32 %v2246_v11, 0.0 }
 0x27a   : >> { %v2732_v19 = vmax.f32 %v2730_v63, %v2731_v13  ;;  %v2737_v17 = vmax.f32 %v2735_v8, %v2736_v14  ;;  %v2742_v20 = vmax.f32 %v2513_v15, %v2514_v16  ;;  %v3573_v21 = vpop.f32.mrb[84].mxu1 }
 0x27b   : >> { %v2258_v23 = vpop.f32.mrb[85].mxu1  ;;  %v2267_v32 = vadd.f32 %v4242_v9, %v3573_v21 }
 0x27c   : >> { %v2904_v24 = vsel %vm2884_vm2, %v2732_v19, %v2903_v1  ;;  %v2738_v25 = vrot.slane %v2737_v17, 2  ;;  %v2743_v26 = vmax.f32 %v2742_v20, %v2515_v18  ;;  %v2259_v27 = vadd.f32 %v4242_v9, %v2258_v23  ;;  %v3574_v28 = vpop.f32.mrb[86].mxu1 }
 0x27d   : >> { %v2261_v29 = vpop.f32.mrb[87].mxu1  ;;  %v2270_v33 = vadd.f32 %v4242_v9, %v3574_v28  ;;  %v2519_v40 = vmax.f32 %v2267_v32, 0.0 }
 0x27e   : >> { %v2739_v30 = vmax.f32 %v2737_v17, %v2738_v25  ;;  %v2744_v31 = vmax.f32 %v2743_v26, %v2516_v22  ;;  %v2262_v3 = vadd.f32 %v4242_v9, %v2261_v29  ;;  %v2517_v36 = vmax.f32 %v2259_v27, 0.0 }
 0x27f   : >> { %v2520_v43 = vmax.f32 %v2270_v33, 0.0 }
 0x280   : >> { %v2740_v34 = vrot.slane %v2739_v30, 1  ;;  %v2745_v35 = vrot.slane %v2744_v31, 4  ;;  %v2518_v37 = vmax.f32 %v2262_v3, 0.0 }
 0x282   : >> { %v2741_v38 = vmax.f32 %v2739_v30, %v2740_v34  ;;  %v2746_v39 = vmax.f32 %v2744_v31, %v2745_v35  ;;  %v2751_v41 = vmax.f32 %v2517_v36, %v2518_v37  ;;  %v3577_v42 = vpop.f32.mrb[88].mxu1 }
 0x283   : >> { %v2274_v44 = vpop.f32.mrb[89].mxu1  ;;  %v2283_v53 = vadd.f32 %v4242_v9, %v3577_v42 }
 0x284   : >> { %v2905_v45 = vsel %vm2886_vm3, %v2741_v38, %v2904_v24  ;;  %v2747_v46 = vrot.slane %v2746_v39, 2  ;;  %v2752_v47 = vmax.f32 %v2751_v41, %v2519_v40  ;;  %v2275_v48 = vadd.f32 %v4242_v9, %v2274_v44  ;;  %v3578_v49 = vpop.f32.mrb[90].mxu1 }
 0x285   : >> { %v2277_v50 = vpop.f32.mrb[91].mxu1  ;;  %v2286_v55 = vadd.f32 %v4242_v9, %v3578_v49  ;;  %v2523_v62 = vmax.f32 %v2283_v53, 0.0 }
 0x286   : >> { %v2748_v51 = vmax.f32 %v2746_v39, %v2747_v46  ;;  %v2753_v52 = vmax.f32 %v2752_v47, %v2520_v43  ;;  %v2278_v54 = vadd.f32 %v4242_v9, %v2277_v50  ;;  %v2521_v58 = vmax.f32 %v2275_v48, 0.0 }
 0x287   : >> { %v2524_v2 = vmax.f32 %v2286_v55, 0.0 }
 0x288   : >> { %v2749_v56 = vrot.slane %v2748_v51, 1  ;;  %v2754_v57 = vrot.slane %v2753_v52, 4  ;;  %v2522_v59 = vmax.f32 %v2278_v54, 0.0 }
 0x28a   : >> { %v2750_v60 = vmax.f32 %v2748_v51, %v2749_v56  ;;  %v2755_v61 = vmax.f32 %v2753_v52, %v2754_v57  ;;  %v2760_v0 = vmax.f32 %v2521_v58, %v2522_v59  ;;  %v3581_v1 = vpop.f32.mrb[92].mxu1 }
 0x28b   : >> { %v2290_v4 = vpop.f32.mrb[93].mxu1  ;;  %v2299_v13 = vadd.f32 %v4242_v9, %v3581_v1 }
 0x28c   : >> { %v2906_v5 = vsel %vm2888_vm4, %v2750_v60, %v2905_v45  ;;  %v2756_v6 = vrot.slane %v2755_v61, 2  ;;  %v2761_v7 = vmax.f32 %v2760_v0, %v2523_v62  ;;  %v2291_v63 = vadd.f32 %v4242_v9, %v2290_v4  ;;  %v3582_v8 = vpop.f32.mrb[94].mxu1 }
 0x28d   : >> { %v2293_v10 = vpop.f32.mrb[95].mxu1  ;;  %v2302_v15 = vadd.f32 %v4242_v9, %v3582_v8  ;;  %v2527_v22 = vmax.f32 %v2299_v13, 0.0 }
 0x28e   : >> { %v2757_v11 = vmax.f32 %v2755_v61, %v2756_v6  ;;  %v2762_v12 = vmax.f32 %v2761_v7, %v2524_v2  ;;  %v2294_v14 = vadd.f32 %v4242_v9, %v2293_v10  ;;  %v2525_v17 = vmax.f32 %v2291_v63, 0.0 }
 0x28f   : >> { %v2528_v25 = vmax.f32 %v2302_v15, 0.0 }
 0x290   : >> { %v2758_v16 = vrot.slane %v2757_v11, 1  ;;  %v2763_v19 = vrot.slane %v2762_v12, 4  ;;  %v2526_v18 = vmax.f32 %v2294_v14, 0.0 }
 0x292   : >> { %v2759_v20 = vmax.f32 %v2757_v11, %v2758_v16  ;;  %v2764_v21 = vmax.f32 %v2762_v12, %v2763_v19  ;;  %v2769_v23 = vmax.f32 %v2525_v17, %v2526_v18  ;;  %v3585_v24 = vpop.f32.mrb[96].mxu1 }
 0x293   : >> { %v2306_v26 = vpop.f32.mrb[97].mxu1  ;;  %v2315_v34 = vadd.f32 %v4242_v9, %v3585_v24 }
 0x294   : >> { %v2907_v27 = vsel %vm2890_vm5, %v2759_v20, %v2906_v5  ;;  %v2765_v28 = vrot.slane %v2764_v21, 2  ;;  %v2770_v29 = vmax.f32 %v2769_v23, %v2527_v22  ;;  %v2307_v30 = vadd.f32 %v4242_v9, %v2306_v26  ;;  %v3586_v31 = vpop.f32.mrb[98].mxu1 }
 0x295   : >> { %v2309_v32 = vpop.f32.mrb[99].mxu1  ;;  %v2318_v36 = vadd.f32 %v4242_v9, %v3586_v31  ;;  %v2531_v43 = vmax.f32 %v2315_v34, 0.0 }
 0x296   : >> { %v2766_v3 = vmax.f32 %v2764_v21, %v2765_v28  ;;  %v2771_v33 = vmax.f32 %v2770_v29, %v2528_v25  ;;  %v2310_v35 = vadd.f32 %v4242_v9, %v2309_v32  ;;  %v2529_v39 = vmax.f32 %v2307_v30, 0.0 }
 0x297   : >> { %v2532_v46 = vmax.f32 %v2318_v36, 0.0 }
 0x298   : >> { %v2767_v37 = vrot.slane %v2766_v3, 1  ;;  %v2772_v38 = vrot.slane %v2771_v33, 4  ;;  %v2530_v40 = vmax.f32 %v2310_v35, 0.0 }
 0x29a   : >> { %v2768_v41 = vmax.f32 %v2766_v3, %v2767_v37  ;;  %v2773_v42 = vmax.f32 %v2771_v33, %v2772_v38  ;;  %v2778_v44 = vmax.f32 %v2529_v39, %v2530_v40  ;;  %v3589_v45 = vpop.f32.mrb[100].mxu1 }
 0x29b   : >> { %v2322_v47 = vpop.f32.mrb[101].mxu1  ;;  %v2331_v56 = vadd.f32 %v4242_v9, %v3589_v45 }
 0x29c   : >> { %v2908_v48 = vsel %vm2892_vm6, %v2768_v41, %v2907_v27  ;;  %v2774_v49 = vrot.slane %v2773_v42, 2  ;;  %v2779_v50 = vmax.f32 %v2778_v44, %v2531_v43  ;;  %v2323_v51 = vadd.f32 %v4242_v9, %v2322_v47  ;;  %v3590_v52 = vpop.f32.mrb[102].mxu1 }
 0x29d   : >> { %v2325_v53 = vpop.f32.mrb[103].mxu1  ;;  %v2334_v58 = vadd.f32 %v4242_v9, %v3590_v52  ;;  %v2535_v2 = vmax.f32 %v2331_v56, 0.0 }
 0x29e   : >> { %v2775_v54 = vmax.f32 %v2773_v42, %v2774_v49  ;;  %v2780_v55 = vmax.f32 %v2779_v50, %v2532_v46  ;;  %v2326_v57 = vadd.f32 %v4242_v9, %v2325_v53  ;;  %v2533_v61 = vmax.f32 %v2323_v51, 0.0 }
 0x29f   : >> { %v2536_v63 = vmax.f32 %v2334_v58, 0.0 }
 0x2a0   : >> { %v2776_v59 = vrot.slane %v2775_v54, 1  ;;  %v2781_v60 = vrot.slane %v2780_v55, 4  ;;  %v2534_v62 = vmax.f32 %v2326_v57, 0.0 }
 0x2a2   : >> { %v2777_v0 = vmax.f32 %v2775_v54, %v2776_v59  ;;  %v2782_v1 = vmax.f32 %v2780_v55, %v2781_v60  ;;  %v2787_v4 = vmax.f32 %v2533_v61, %v2534_v62  ;;  %v3593_v5 = vpop.f32.mrb[104].mxu1 }
 0x2a3   : >> { %v2338_v6 = vpop.f32.mrb[105].mxu1  ;;  %v2347_v15 = vadd.f32 %v4242_v9, %v3593_v5 }
 0x2a4   : >> { %v2909_v7 = vsel %vm2894_vm7, %v2777_v0, %v2908_v48  ;;  %v2788_v8 = vmax.f32 %v2787_v4, %v2535_v2  ;;  %v2339_v10 = vadd.f32 %v4242_v9, %v2338_v6  ;;  %v3594_v11 = vpop.f32.mrb[106].mxu1  ;;  %v2783_v12 = vrot.slane %v2782_v1, 2 }
 0x2a5   : >> { %2924 = vst [vmem:[%s4185_s12 + $0x10] sm:$0xff] %v2909_v7  ;;  %v2341_v13 = vpop.f32.mrb[107].mxu1  ;;  %v2350_v18 = vadd.f32 %v4242_v9, %v3594_v11  ;;  %v2539_v23 = vmax.f32 %v2347_v15, 0.0 }
 0x2a6   : >> { %v2789_v14 = vmax.f32 %v2788_v8, %v2536_v63  ;;  %v2342_v16 = vadd.f32 %v4242_v9, %v2341_v13  ;;  %v2537_v17 = vmax.f32 %v2339_v10, 0.0  ;;  %v2784_v21 = vmax.f32 %v2782_v1, %v2783_v12 }
 0x2a7   : >> { %v2540_v28 = vmax.f32 %v2350_v18, 0.0 }
 0x2a8   : >> { %v2790_v19 = vrot.slane %v2789_v14, 4  ;;  %v2538_v20 = vmax.f32 %v2342_v16, 0.0  ;;  %v2785_v32 = vrot.slane %v2784_v21, 1 }
 0x2aa   : >> { %v2791_v22 = vmax.f32 %v2789_v14, %v2790_v19  ;;  %v2796_v24 = vmax.f32 %v2537_v17, %v2538_v20  ;;  %v3597_v25 = vpop.f32.mrb[108].mxu1  ;;  %v2786_v42 = vmax.f32 %v2784_v21, %v2785_v32 }
 0x2ab   : >> { %v2354_v26 = vpop.f32.mrb[109].mxu1  ;;  %v2363_v35 = vadd.f32 %v4242_v9, %v3597_v25 }
 0x2ac   : >> { %v2792_v27 = vrot.slane %v2791_v22, 2  ;;  %v2797_v29 = vmax.f32 %v2796_v24, %v2539_v23  ;;  %v2355_v30 = vadd.f32 %v4242_v9, %v2354_v26  ;;  %v3598_v31 = vpop.f32.mrb[110].mxu1 }
 0x2ad   : >> { %v2357_v3 = vpop.f32.mrb[111].mxu1  ;;  %v2366_v37 = vadd.f32 %v4242_v9, %v3598_v31  ;;  %v2543_v45 = vmax.f32 %v2363_v35, 0.0 }
 0x2ae   : >> { %v2793_v33 = vmax.f32 %v2791_v22, %v2792_v27  ;;  %v2798_v34 = vmax.f32 %v2797_v29, %v2540_v28  ;;  %v2358_v36 = vadd.f32 %v4242_v9, %v2357_v3  ;;  %v2541_v40 = vmax.f32 %v2355_v30, 0.0 }
 0x2af   : >> { %v2544_v48 = vmax.f32 %v2366_v37, 0.0 }
 0x2b0   : >> { %v2794_v38 = vrot.slane %v2793_v33, 1  ;;  %v2799_v39 = vrot.slane %v2798_v34, 4  ;;  %v2542_v41 = vmax.f32 %v2358_v36, 0.0 }
 0x2b2   : >> { %v2795_v43 = vmax.f32 %v2793_v33, %v2794_v38  ;;  %v2800_v44 = vmax.f32 %v2798_v34, %v2799_v39  ;;  %v2805_v46 = vmax.f32 %v2541_v40, %v2542_v41  ;;  %v3601_v47 = vpop.f32.mrb[112].mxu1 }
 0x2b3   : >> { %v2370_v49 = vpop.f32.mrb[113].mxu1  ;;  %v2379_v58 = vadd.f32 %v4242_v9, %v3601_v47 }
 0x2b4   : >> { %v2910_v50 = vsel %vm2882_vm1, %v2795_v43, %v2786_v42  ;;  %v2801_v51 = vrot.slane %v2800_v44, 2  ;;  %v2806_v52 = vmax.f32 %v2805_v46, %v2543_v45  ;;  %v2371_v53 = vadd.f32 %v4242_v9, %v2370_v49  ;;  %v3602_v54 = vpop.f32.mrb[114].mxu1 }
 0x2b5   : >> { %v2373_v55 = vpop.f32.mrb[115].mxu1  ;;  %v2382_v60 = vadd.f32 %v4242_v9, %v3602_v54  ;;  %v2547_v5 = vmax.f32 %v2379_v58, 0.0 }
 0x2b6   : >> { %v2802_v56 = vmax.f32 %v2800_v44, %v2801_v51  ;;  %v2807_v57 = vmax.f32 %v2806_v52, %v2544_v48  ;;  %v2374_v59 = vadd.f32 %v4242_v9, %v2373_v55  ;;  %v2545_v0 = vmax.f32 %v2371_v53, 0.0 }
 0x2b7   : >> { %v2548_v63 = vmax.f32 %v2382_v60, 0.0 }
 0x2b8   : >> { %v2803_v61 = vrot.slane %v2802_v56, 1  ;;  %v2808_v62 = vrot.slane %v2807_v57, 4  ;;  %v2546_v1 = vmax.f32 %v2374_v59, 0.0 }
 0x2ba   : >> { %v2804_v2 = vmax.f32 %v2802_v56, %v2803_v61  ;;  %v2809_v4 = vmax.f32 %v2807_v57, %v2808_v62  ;;  %v2814_v6 = vmax.f32 %v2545_v0, %v2546_v1  ;;  %v3605_v7 = vpop.f32.mrb[116].mxu1 }
 0x2bb   : >> { %v2386_v8 = vpop.f32.mrb[117].mxu1  ;;  %v2395_v17 = vadd.f32 %v4242_v9, %v3605_v7 }
 0x2bc   : >> { %v2911_v10 = vsel %vm2884_vm2, %v2804_v2, %v2910_v50  ;;  %v2810_v11 = vrot.slane %v2809_v4, 2  ;;  %v2815_v12 = vmax.f32 %v2814_v6, %v2547_v5  ;;  %v2387_v13 = vadd.f32 %v4242_v9, %v2386_v8  ;;  %v3606_v14 = vpop.f32.mrb[118].mxu1 }
 0x2bd   : >> { %v2389_v15 = vpop.f32.mrb[119].mxu1  ;;  %v2398_v20 = vadd.f32 %v4242_v9, %v3606_v14  ;;  %v2551_v27 = vmax.f32 %v2395_v17, 0.0 }
 0x2be   : >> { %v2811_v16 = vmax.f32 %v2809_v4, %v2810_v11  ;;  %v2816_v19 = vmax.f32 %v2815_v12, %v2548_v63  ;;  %v2390_v18 = vadd.f32 %v4242_v9, %v2389_v15  ;;  %v2549_v23 = vmax.f32 %v2387_v13, 0.0 }
 0x2bf   : >> { %v2552_v30 = vmax.f32 %v2398_v20, 0.0 }
 0x2c0   : >> { %v2812_v21 = vrot.slane %v2811_v16, 1  ;;  %v2817_v22 = vrot.slane %v2816_v19, 4  ;;  %v2550_v24 = vmax.f32 %v2390_v18, 0.0 }
 0x2c2   : >> { %v2813_v25 = vmax.f32 %v2811_v16, %v2812_v21  ;;  %v2818_v26 = vmax.f32 %v2816_v19, %v2817_v22  ;;  %v2823_v28 = vmax.f32 %v2549_v23, %v2550_v24  ;;  %v3609_v29 = vpop.f32.mrb[120].mxu1 }
 0x2c3   : >> { %v2402_v31 = vpop.f32.mrb[121].mxu1  ;;  %v2411_v39 = vadd.f32 %v4242_v9, %v3609_v29 }
 0x2c4   : >> { %v2912_v32 = vsel %vm2886_vm3, %v2813_v25, %v2911_v10  ;;  %v2819_v3 = vrot.slane %v2818_v26, 2  ;;  %v2824_v33 = vmax.f32 %v2823_v28, %v2551_v27  ;;  %v2403_v34 = vadd.f32 %v4242_v9, %v2402_v31  ;;  %v3610_v35 = vpop.f32.mrb[122].mxu1 }
 0x2c5   : >> { %v2405_v36 = vpop.f32.mrb[123].mxu1  ;;  %v2414_v41 = vadd.f32 %v4242_v9, %v3610_v35  ;;  %v2555_v48 = vmax.f32 %v2411_v39, 0.0 }
 0x2c6   : >> { %v2820_v37 = vmax.f32 %v2818_v26, %v2819_v3  ;;  %v2825_v38 = vmax.f32 %v2824_v33, %v2552_v30  ;;  %v2406_v40 = vadd.f32 %v4242_v9, %v2405_v36  ;;  %v2553_v44 = vmax.f32 %v2403_v34, 0.0 }
 0x2c7   : >> { %v2556_v51 = vmax.f32 %v2414_v41, 0.0 }
 0x2c8   : >> { %v2821_v42 = vrot.slane %v2820_v37, 1  ;;  %v2826_v43 = vrot.slane %v2825_v38, 4  ;;  %v2554_v45 = vmax.f32 %v2406_v40, 0.0 }
 0x2ca   : >> { %v2822_v46 = vmax.f32 %v2820_v37, %v2821_v42  ;;  %v2827_v47 = vmax.f32 %v2825_v38, %v2826_v43  ;;  %v2832_v49 = vmax.f32 %v2553_v44, %v2554_v45  ;;  %v3613_v50 = vpop.f32.mrb[124].mxu1 }
 0x2cb   : >> { %v2418_v52 = vpop.f32.mrb[125].mxu1  ;;  %v2427_v61 = vadd.f32 %v4242_v9, %v3613_v50 }
 0x2cc   : >> { %v2913_v53 = vsel %vm2888_vm4, %v2822_v46, %v2912_v32  ;;  %v2828_v54 = vrot.slane %v2827_v47, 2  ;;  %v2833_v55 = vmax.f32 %v2832_v49, %v2555_v48  ;;  %v2419_v56 = vadd.f32 %v4242_v9, %v2418_v52  ;;  %v3614_v57 = vpop.f32.mrb[126].mxu1 }
 0x2cd   : >> { %v2421_v58 = vpop.f32.mrb[127].mxu1  ;;  %v2430_v0 = vadd.f32 %v4242_v9, %v3614_v57  ;;  %v2559_v63 = vmax.f32 %v2427_v61, 0.0 }
 0x2ce   : >> { %v2829_v59 = vmax.f32 %v2827_v47, %v2828_v54  ;;  %v2834_v60 = vmax.f32 %v2833_v55, %v2556_v51  ;;  %v2422_v62 = vadd.f32 %v4242_v9, %v2421_v58  ;;  %v2557_v4 = vmax.f32 %v2419_v56, 0.0 }
 0x2cf   : >> { %v2560_v12 = vmax.f32 %v2430_v0, 0.0 }
 0x2d0   : >> { %v2830_v1 = vrot.slane %v2829_v59, 1  ;;  %v2835_v2 = vrot.slane %v2834_v60, 4  ;;  %v2558_v5 = vmax.f32 %v2422_v62, 0.0 }
 0x2d2   : >> { %v2831_v6 = vmax.f32 %v2829_v59, %v2830_v1  ;;  %v2836_v7 = vmax.f32 %v2834_v60, %v2835_v2  ;;  %v2841_v8 = vmax.f32 %v2557_v4, %v2558_v5 }
 0x2d4   : >> { %v2914_v10 = vsel %vm2890_vm5, %v2831_v6, %v2913_v53  ;;  %v2837_v11 = vrot.slane %v2836_v7, 2  ;;  %v2842_v13 = vmax.f32 %v2841_v8, %v2559_v63 }
 0x2d6   : >> { %v2838_v14 = vmax.f32 %v2836_v7, %v2837_v11  ;;  %v2843_v15 = vmax.f32 %v2842_v13, %v2560_v12 }
 0x2d8   : >> { %v2839_v16 = vrot.slane %v2838_v14, 1  ;;  %v2844_v19 = vrot.slane %v2843_v15, 4 }
 0x2da   : >> { %v2840_v17 = vmax.f32 %v2838_v14, %v2839_v16  ;;  %v2845_v9 = vmax.f32 %v2843_v15, %v2844_v19 }
 0x2dc   : >> { %v2915_v18 = vsel %vm2892_vm6, %v2840_v17, %v2914_v10  ;;  %v2846_v20 = vrot.slane %v2845_v9, 2 }
 0x2de   : >> { %v2847_v21 = vmax.f32 %v2845_v9, %v2846_v20 }
 0x2df   : > { %233 = sbr.rel (!%p231_p5) target bundleno = 16 (0x10), region = 79 }
 0x2e0   : >> { %v2848_v22 = vrot.slane %v2847_v21, 1 }
 0x2e2   : >> { %v2849_v23 = vmax.f32 %v2847_v21, %v2848_v22 }
 0x2e4   : >> { %v2916_v24 = vsel %vm2894_vm7, %v2849_v23, %v2915_v18 }
 0x2e5   : >> { %2925 = vst [vmem:[%s4185_s12 + $0x18] sm:$0xff] %v2916_v24 }
 0x2e6 PF: > { %s15_s18 = sadd.s32 1, %s3715_s18  }
 0x2e7   : > { %p12_p6 = scmp.ge.s32.totalorder %s15_s18, 6  }
 0x2e9   :  { %14 = sbr.rel (!%p12_p6) target bundleno = 1 (0x1), region = 90 }

// kernel: pointnet2_forward.41
= control target key start
LH: loop header
LB: loop body
LE: loop exit
PB: predicated region body
PF: predicated region fallthrough
CT: control target
= control target key end

     0   :  { %s13007_s0 = inlined_call_operand.vmem [shape: bf16[256,256], index: 0, kind: input, shape index: {}]   ;;  %s13008_s1 = inlined_call_operand.vmem [shape: bf16[256,512], index: 1, kind: input, shape index: {}]   ;;  %s13009_s2 = inlined_call_operand.vmem [shape: f32[1,512], index: 2, kind: input, shape index: {}]   ;;  %s13010_s3 = inlined_call_operand.vmem [shape: bf16[512,1024], index: 3, kind: input, shape index: {}]   ;;  %s13011_s4 = inlined_call_operand.vmem [shape: f32[1,1024], index: 4, kind: input, shape index: {}]   ;;  %s13012_s5 = inlined_call_operand.vmem [shape: bf16[1024,512], index: 5, kind: input, shape index: {}]   ;;  %s13013_s6 = inlined_call_operand.vmem [shape: f32[1,512], index: 6, kind: input, shape index: {}]   ;;  %s13014_s7 = inlined_call_operand.vmem [shape: bf16[512,256], index: 7, kind: input, shape index: {}]   ;;  %s13015_s8 = inlined_call_operand.vmem [shape: f32[1,256], index: 8, kind: input, shape index: {}]   ;;  %s13016_s9 = inlined_call_operand.vmem [shape: bf16[256,40], index: 9, kind: input, shape index: {}]   ;;  %s13017_s10 = inlined_call_operand.vmem [shape: f32[1,40], index: 10, kind: input, shape index: {}]   ;;  %s13018_s11 = inlined_call_operand.hbm [shape: f32[2,40], index: 11, kind: output, shape index: {}]  }
   0x1   :  { %v8860_v0 = vld [vmem:[%s13008_s1 + $0x4] ss:$16 sps:$4 sm:$0xff]   ;;  %v8862_v1 = vld [vmem:[%s13008_s1] ss:$16 sps:$4 sm:$0xff]   ;;  %v8925_v34 = vld [vmem:[%s13008_s1 + $0xc] ss:$16 sps:$4 sm:$0xff]  }
   0x2   :  { %638 = vmatprep.subr.bf16.mxu0 %v8860_v0  ;;  %v8863_v2 = vld [vmem:[%s13008_s1 + $0x24] ss:$16 sps:$4 sm:$0xff]   ;;  %8281 = vmatprep.subr.bf16.mxu1 %v8860_v0  ;;  %v8865_v3 = vld [vmem:[%s13008_s1 + $0x20] ss:$16 sps:$4 sm:$0xff]   ;;  %v8923_v38 = vld [vmem:[%s13008_s1 + $0x8] ss:$16 sps:$4 sm:$0xff]  }
   0x3   :  { %639 = vmatpush1.bf16.msra.mxu0 %v8862_v1  ;;  %8297 = vmatpush1.bf16.msra.mxu1 %v8862_v1  ;;  %v8866_v4 = vld [vmem:[%s13008_s1 + $0x44] ss:$16 sps:$4 sm:$0xff]   ;;  %v8868_v5 = vld [vmem:[%s13008_s1 + $0x40] ss:$16 sps:$4 sm:$0xff]   ;;  %v8931_v39 = vld [vmem:[%s13008_s1 + $0x2c] ss:$16 sps:$4 sm:$0xff]  }
   0x4   :  { %640 = vmatprep.subr.bf16.mxu0 %v8863_v2  ;;  %8282 = vmatprep.subr.bf16.mxu1 %v8863_v2  ;;  %v8869_v6 = vld [vmem:[%s13008_s1 + $0x64] ss:$16 sps:$4 sm:$0xff]   ;;  %v8871_v7 = vld [vmem:[%s13008_s1 + $0x60] ss:$16 sps:$4 sm:$0xff]   ;;  %v8929_v47 = vld [vmem:[%s13008_s1 + $0x28] ss:$16 sps:$4 sm:$0xff]  }
   0x5   :  { %v8872_v8 = vld [vmem:[%s13008_s1 + $0x84] ss:$16 sps:$4 sm:$0xff]   ;;  %v8874_v9 = vld [vmem:[%s13008_s1 + $0x80] ss:$16 sps:$4 sm:$0xff]   ;;  %v8937_v48 = vld [vmem:[%s13008_s1 + $0x4c] ss:$16 sps:$4 sm:$0xff]  }
   0x6   :  { %v8875_v10 = vld [vmem:[%s13008_s1 + $0xa4] ss:$16 sps:$4 sm:$0xff]   ;;  %v8877_v11 = vld [vmem:[%s13008_s1 + $0xa0] ss:$16 sps:$4 sm:$0xff]   ;;  %v8935_v53 = vld [vmem:[%s13008_s1 + $0x48] ss:$16 sps:$4 sm:$0xff]  }
   0x7   :  { %641 = vmatpush1.bf16.msra.mxu0 %v8865_v3  ;;  %8298 = vmatpush1.bf16.msra.mxu1 %v8865_v3  ;;  %v8878_v12 = vld [vmem:[%s13008_s1 + $0xc4] ss:$16 sps:$4 sm:$0xff]   ;;  %v8880_v14 = vld [vmem:[%s13008_s1 + $0xc0] ss:$16 sps:$4 sm:$0xff]   ;;  %v8943_v56 = vld [vmem:[%s13008_s1 + $0x6c] ss:$16 sps:$4 sm:$0xff]  }
   0x8   :  { %642 = vmatprep.subr.bf16.mxu0 %v8866_v4  ;;  %8283 = vmatprep.subr.bf16.mxu1 %v8866_v4  ;;  %v9640_v13 = vld [vmem:[%s13007_s0 + $0x4] ss:$8 sps:$4 sm:$0xff]   ;;  %v8883_v16 = vld [vmem:[%s13008_s1 + $0xe0] ss:$16 sps:$4 sm:$0xff]   ;;  %v9717_v37 = vld [vmem:[%s13007_s0 + $0x14] ss:$8 sps:$4 sm:$0xff]  }
   0x9   :  { %v8881_v15 = vld [vmem:[%s13008_s1 + $0xe4] ss:$16 sps:$4 sm:$0xff]   ;;  %670 = vmatprep.mubr.bf16.mxu0 %v9640_v13  ;;  %v8886_v19 = vld [vmem:[%s13008_s1 + $0x100] ss:$16 sps:$4 sm:$0xff]   ;;  %v8941_v60 = vld [vmem:[%s13008_s1 + $0x68] ss:$16 sps:$4 sm:$0xff]  }
   0xa   :  { %v8922_v17 = vld [vmem:[%s13007_s0 + $0x84] ss:$8 sps:$4 sm:$0xff]   ;;  %v8889_v21 = vld [vmem:[%s13008_s1 + $0x120] ss:$16 sps:$4 sm:$0xff]   ;;  %v8932_v40 = vld [vmem:[%s13007_s0 + $0x94] ss:$8 sps:$4 sm:$0xff]  }
   0xb   :  { %643 = vmatpush1.bf16.msra.mxu0 %v8868_v5  ;;  %8299 = vmatpush1.bf16.msra.mxu1 %v8868_v5  ;;  %v8884_v18 = vld [vmem:[%s13008_s1 + $0x104] ss:$16 sps:$4 sm:$0xff]   ;;  %v8892_v23 = vld [vmem:[%s13008_s1 + $0x140] ss:$16 sps:$4 sm:$0xff]   ;;  %v8949_v61 = vld [vmem:[%s13008_s1 + $0x8c] ss:$16 sps:$4 sm:$0xff]  }
   0xc   :  { %644 = vmatprep.subr.bf16.mxu0 %v8869_v6  ;;  %8284 = vmatprep.subr.bf16.mxu1 %v8869_v6  ;;  %v8887_v20 = vld [vmem:[%s13008_s1 + $0x124] ss:$16 sps:$4 sm:$0xff]   ;;  %v8895_v25 = vld [vmem:[%s13008_s1 + $0x160] ss:$16 sps:$4 sm:$0xff]   ;;  %v8947_v3 = vld [vmem:[%s13008_s1 + $0x88] ss:$16 sps:$4 sm:$0xff]  }
   0xd   :  { %750 = vmatprep.mubr.bf16.mxu1 %v8922_v17  ;;  %v8890_v22 = vld [vmem:[%s13008_s1 + $0x144] ss:$16 sps:$4 sm:$0xff]   ;;  %v8898_v27 = vld [vmem:[%s13008_s1 + $0x180] ss:$16 sps:$4 sm:$0xff]   ;;  %v8955_v5 = vld [vmem:[%s13008_s1 + $0xac] ss:$16 sps:$4 sm:$0xff]  }
   0xe   :  { %v8893_v24 = vld [vmem:[%s13008_s1 + $0x164] ss:$16 sps:$4 sm:$0xff]   ;;  %v8901_v29 = vld [vmem:[%s13008_s1 + $0x1a0] ss:$16 sps:$4 sm:$0xff]  }
   0xf   :  { %645 = vmatpush1.bf16.msra.mxu0 %v8871_v7  ;;  %8300 = vmatpush1.bf16.msra.mxu1 %v8871_v7  ;;  %v8896_v26 = vld [vmem:[%s13008_s1 + $0x184] ss:$16 sps:$4 sm:$0xff]   ;;  %v8904_v31 = vld [vmem:[%s13008_s1 + $0x1c0] ss:$16 sps:$4 sm:$0xff]  }
  0x10   :  { %646 = vmatprep.subr.bf16.mxu0 %v8872_v8  ;;  %8285 = vmatprep.subr.bf16.mxu1 %v8872_v8  ;;  %v8899_v28 = vld [vmem:[%s13008_s1 + $0x1a4] ss:$16 sps:$4 sm:$0xff]   ;;  %v8907_v33 = vld [vmem:[%s13008_s1 + $0x1e0] ss:$16 sps:$4 sm:$0xff]  }
  0x11   :  { %v8902_v30 = vld [vmem:[%s13008_s1 + $0x1c4] ss:$16 sps:$4 sm:$0xff]   ;;  %v9709_v35 = vld [vmem:[%s13007_s0] ss:$8 sps:$4 sm:$0xff]   ;;  %v9751_v50 = vld [vmem:[%s13007_s0 + $0x10] ss:$8 sps:$4 sm:$0xff]  }
  0x12   :  { %v8905_v32 = vld [vmem:[%s13008_s1 + $0x1e4] ss:$16 sps:$4 sm:$0xff]   ;;  %v8920_v36 = vld [vmem:[%s13007_s0 + $0x80] ss:$8 sps:$4 sm:$0xff]   ;;  %v8934_v51 = vld [vmem:[%s13007_s0 + $0x90] ss:$8 sps:$4 sm:$0xff]  }
  0x13   :  { %647 = vmatpush1.bf16.msra.mxu0 %v8874_v9  ;;  %8301 = vmatpush1.bf16.msra.mxu1 %v8874_v9  ;;  %v1216_v41 = vld [vmem:[%s13010_s3] sm:$0xff]  ;;  %v9801_v2 = vld [vmem:[%s13007_s0 + $0x34] ss:$8 sps:$4 sm:$0xff]  }
  0x14   :  { %648 = vmatprep.subr.bf16.mxu0 %v8875_v10  ;;  %8286 = vmatprep.subr.bf16.mxu1 %v8875_v10  ;;  %v1220_v42 = vld [vmem:[%s13010_s3 + $0x20] sm:$0xff]  ;;  %v8956_v6 = vld [vmem:[%s13007_s0 + $0xb4] ss:$8 sps:$4 sm:$0xff]  }
  0x15   :  { %v7666_v43 = vcombine.low %v1216_v41, %v1220_v42  ;;  %v7667_v44 = vcombine.high %v1216_v41, %v1220_v42  ;;  %v1224_v45 = vld [vmem:[%s13010_s3 + $0x40] sm:$0xff]  ;;  %v8974_v42 = vld [vmem:[%s13008_s1 + $0x128] ss:$16 sps:$4 sm:$0xff]  }
  0x16   :  { %v1228_v46 = vld [vmem:[%s13010_s3 + $0x60] sm:$0xff] }
  0x17   :  { %649 = vmatpush1.bf16.msra.mxu0 %v8877_v11  ;;  %8302 = vmatpush1.bf16.msra.mxu1 %v8877_v11  ;;  %v7675_v49 = vcombine.high %v1224_v45, %v1228_v46  ;;  %v9759_v52 = vld [vmem:[%s13007_s0 + $0x24] ss:$8 sps:$4 sm:$0xff]   ;;  %v7674_v58 = vcombine.low %v1224_v45, %v1228_v46  ;;  %v9787_v62 = vld [vmem:[%s13007_s0 + $0x20] ss:$8 sps:$4 sm:$0xff]   ;;  %v8979_v45 = vld [vmem:[%s13007_s0 + $0xd0] ss:$8 sps:$4 sm:$0xff]  }
  0x18   :  { %650 = vmatprep.subr.bf16.mxu0 %v8878_v12  ;;  %8287 = vmatprep.subr.bf16.mxu1 %v8878_v12  ;;  %v1232_v54 = vld [vmem:[%s13010_s3 + $0x80] sm:$0xff]  ;;  %v8953_v11 = vld [vmem:[%s13008_s1 + $0xa8] ss:$16 sps:$4 sm:$0xff]   ;;  %v8982_v46 = vld [vmem:[%s13008_s1 + $0x14c] ss:$16 sps:$4 sm:$0xff]  }
  0x19   :  { %v1236_v55 = vld [vmem:[%s13010_s3 + $0xa0] sm:$0xff] }
  0x1a   :  { %v8944_v57 = vld [vmem:[%s13007_s0 + $0xa4] ss:$8 sps:$4 sm:$0xff]   ;;  %v7683_v59 = vcombine.high %v1232_v54, %v1236_v55  ;;  %v8946_v63 = vld [vmem:[%s13007_s0 + $0xa0] ss:$8 sps:$4 sm:$0xff]   ;;  %v7682_v4 = vcombine.low %v1232_v54, %v1236_v55 }
  0x1b   :  { %651 = vmatpush1.bf16.msra.mxu0 %v8880_v14  ;;  %8303 = vmatpush1.bf16.msra.mxu1 %v8880_v14  ;;  %v1240_v0 = vld [vmem:[%s13010_s3 + $0xc0] sm:$0xff]  ;;  %v9826_v14 = vld [vmem:[%s13007_s0 + $0x30] ss:$8 sps:$4 sm:$0xff]  }
  0x1c   :  { %652 = vmatprep.subr.bf16.mxu0 %v8881_v15  ;;  %8288 = vmatprep.subr.bf16.mxu1 %v8881_v15  ;;  %v1244_v1 = vld [vmem:[%s13010_s3 + $0xe0] sm:$0xff]  ;;  %v8958_v15 = vld [vmem:[%s13007_s0 + $0xb0] ss:$8 sps:$4 sm:$0xff]  }
  0x1d   :  { %v1248_v7 = vld [vmem:[%s13010_s3 + $0x100] sm:$0xff]  ;;  %v7691_v9 = vcombine.high %v1240_v0, %v1244_v1  ;;  %v7690_v10 = vcombine.low %v1240_v0, %v1244_v1  ;;  %v9962_v0 = vld [vmem:[%s13007_s0 + $0x74] ss:$8 sps:$4 sm:$0xff]   ;;  %v8989_v1 = vld [vmem:[%s13008_s1 + $0x188] ss:$16 sps:$4 sm:$0xff]  }
  0x1e   :  { %v1252_v8 = vld [vmem:[%s13010_s3 + $0x120] sm:$0xff] }
  0x1f   :  { %653 = vmatpush1.bf16.msra.mxu0 %v8883_v16  ;;  %8304 = vmatpush1.bf16.msra.mxu1 %v8883_v16  ;;  %v7699_v12 = vcombine.high %v1248_v7, %v1252_v8  ;;  %v8961_v16 = vld [vmem:[%s13008_s1 + $0xcc] ss:$16 sps:$4 sm:$0xff]  }
  0x20   :  { %654 = vmatprep.subr.bf16.mxu0 %v8884_v18  ;;  %8289 = vmatprep.subr.bf16.mxu1 %v8884_v18  ;;  %v9837_v17 = vld [vmem:[%s13007_s0 + $0x44] ss:$8 sps:$4 sm:$0xff]   ;;  %v8959_v18 = vld [vmem:[%s13008_s1 + $0xc8] ss:$16 sps:$4 sm:$0xff]  }
  0x21   :  { %v9932_v54 = vld [vmem:[%s13007_s0 + $0xe4] ss:$8 sps:$4 sm:$0xff]  }
  0x23   :  { %655 = vmatpush1.bf16.msra.mxu0 %v8886_v19  ;;  %8305 = vmatpush1.bf16.msra.mxu1 %v8886_v19  ;;  %v1256_v19 = vld [vmem:[%s13010_s3 + $0x140] sm:$0xff] }
  0x24   :  { %656 = vmatprep.subr.bf16.mxu0 %v8887_v20  ;;  %8290 = vmatprep.subr.bf16.mxu1 %v8887_v20  ;;  %v1260_v20 = vld [vmem:[%s13010_s3 + $0x160] sm:$0xff] }
  0x27   :  { %657 = vmatpush1.bf16.msra.mxu0 %v8889_v21  ;;  %8306 = vmatpush1.bf16.msra.mxu1 %v8889_v21  ;;  %v8967_v21 = vld [vmem:[%s13008_s1 + $0xec] ss:$16 sps:$4 sm:$0xff]  }
  0x28   :  { %658 = vmatprep.subr.bf16.mxu0 %v8890_v22  ;;  %8291 = vmatprep.subr.bf16.mxu1 %v8890_v22  ;;  %v8968_v22 = vld [vmem:[%s13007_s0 + $0xc4] ss:$8 sps:$4 sm:$0xff]  }
  0x2b   :  { %659 = vmatpush1.bf16.msra.mxu0 %v8892_v23  ;;  %8307 = vmatpush1.bf16.msra.mxu1 %v8892_v23  ;;  %v7698_v23 = vcombine.low %v1248_v7, %v1252_v8  ;;  %v1300_v7 = vld [vmem:[%s13010_s3 + $0x2a0] sm:$0xff] }
  0x2c   :  { %660 = vmatprep.subr.bf16.mxu0 %v8893_v24  ;;  %8292 = vmatprep.subr.bf16.mxu1 %v8893_v24  ;;  %v7707_v24 = vcombine.high %v1256_v19, %v1260_v20 }
  0x2f   :  { %661 = vmatpush1.bf16.msra.mxu0 %v8895_v25  ;;  %8308 = vmatpush1.bf16.msra.mxu1 %v8895_v25  ;;  %v8965_v25 = vld [vmem:[%s13008_s1 + $0xe8] ss:$16 sps:$4 sm:$0xff]  }
  0x30   :  { %662 = vmatprep.subr.bf16.mxu0 %v8896_v26  ;;  %8293 = vmatprep.subr.bf16.mxu1 %v8896_v26  ;;  %v8973_v26 = vld [vmem:[%s13008_s1 + $0x10c] ss:$16 sps:$4 sm:$0xff]  }
  0x33   :  { %663 = vmatpush1.bf16.msra.mxu0 %v8898_v27  ;;  %8309 = vmatpush1.bf16.msra.mxu1 %v8898_v27  ;;  %v9865_v27 = vld [vmem:[%s13007_s0 + $0x40] ss:$8 sps:$4 sm:$0xff]  }
  0x34   :  { %664 = vmatprep.subr.bf16.mxu0 %v8899_v28  ;;  %8294 = vmatprep.subr.bf16.mxu1 %v8899_v28  ;;  %v8970_v28 = vld [vmem:[%s13007_s0 + $0xc0] ss:$8 sps:$4 sm:$0xff]  }
  0x37   :  { %665 = vmatpush1.bf16.msra.mxu0 %v8901_v29  ;;  %8310 = vmatpush1.bf16.msra.mxu1 %v8901_v29  ;;  %v1264_v29 = vld [vmem:[%s13010_s3 + $0x180] sm:$0xff] }
  0x38   :  { %666 = vmatprep.subr.bf16.mxu0 %v8902_v30  ;;  %8295 = vmatprep.subr.bf16.mxu1 %v8902_v30  ;;  %v1268_v30 = vld [vmem:[%s13010_s3 + $0x1a0] sm:$0xff] }
  0x39   :  { %v7714_v41 = vcombine.low %v1264_v29, %v1268_v30 }
  0x3b   :  { %667 = vmatpush1.bf16.msra.mxu0 %v8904_v31  ;;  %8311 = vmatpush1.bf16.msra.mxu1 %v8904_v31  ;;  %v9879_v31 = vld [vmem:[%s13007_s0 + $0x54] ss:$8 sps:$4 sm:$0xff]  }
  0x3c   :  { %668 = vmatprep.subr.bf16.mxu0 %v8905_v32  ;;  %8296 = vmatprep.subr.bf16.mxu1 %v8905_v32  ;;  %v8971_v32 = vld [vmem:[%s13008_s1 + $0x108] ss:$16 sps:$4 sm:$0xff]  }
  0x3f   :  { %669 = vmatpush1.bf16.msra.mxu0 %v8907_v33  ;;  %8312 = vmatpush1.bf16.msra.mxu1 %v8907_v33  ;;  %v7706_v33 = vcombine.low %v1256_v19, %v1260_v20  ;;  %v1308_v19 = vld [vmem:[%s13010_s3 + $0x2e0] sm:$0xff]  ;;  %v8998_v20 = vld [vmem:[%s13008_s1 + $0x1c8] ss:$16 sps:$4 sm:$0xff]  }
  0x40   :  { %831 = vmatprep.subr.bf16.mxu1 %v8925_v34  ;;  %2794 = vmatprep.subr.bf16.mxu0 %v7667_v44  ;;  %v8976_v34 = vld [vmem:[%s13008_s1 + $0x12c] ss:$16 sps:$4 sm:$0xff]   ;;  %v9904_v44 = vld [vmem:[%s13007_s0 + $0x50] ss:$8 sps:$4 sm:$0xff]  }
  0x42   :  { %671 = vmatmul.mubr.bf16.vlgmr.msra.gmra.mrb[0].mxu0 %v9709_v35  ;;  %751 = vmatmul.mubr.bf16.vlgmr.msra.gmra.mrb[0].mxu1 %v8920_v36  ;;  %v8977_v36 = vld [vmem:[%s13007_s0 + $0xd4] ss:$8 sps:$4 sm:$0xff]  }
  0x43   :  { %680 = vmatprep.mubr.bf16.mxu0 %v9717_v37  ;;  %832 = vmatpush1.bf16.msra.mxu1 %v8923_v38  ;;  %v1272_v38 = vld [vmem:[%s13010_s3 + $0x1c0] sm:$0xff] }
  0x44   :  { %833 = vmatprep.subr.bf16.mxu1 %v8931_v39  ;;  %760 = vmatprep.mubr.bf16.mxu1 %v8932_v40  ;;  %v1276_v39 = vld [vmem:[%s13010_s3 + $0x1e0] sm:$0xff]  ;;  %v7715_v40 = vcombine.high %v1264_v29, %v1268_v30  ;;  %v1225_v30 = vld [vmem:[%s13010_s3 + $0x48] sm:$0xff] }
  0x45   :  { %2795 = vmatpush1.bf16.msra.mxu0 %v7666_v43  ;;  %v7723_v43 = vcombine.high %v1272_v38, %v1276_v39  ;;  %v7722_v55 = vcombine.low %v1272_v38, %v1276_v39 }
  0x46   :  { %2796 = vmatprep.subr.bf16.mxu0 %v7675_v49  ;;  %v1280_v49 = vld [vmem:[%s13010_s3 + $0x200] sm:$0xff] }
  0x47   :  { %834 = vmatpush1.bf16.msra.mxu1 %v8929_v47  ;;  %v9915_v47 = vld [vmem:[%s13007_s0 + $0x64] ss:$8 sps:$4 sm:$0xff]  }
  0x48   :  { %835 = vmatprep.subr.bf16.mxu1 %v8937_v48  ;;  %v8980_v48 = vld [vmem:[%s13008_s1 + $0x148] ss:$16 sps:$4 sm:$0xff]  }
  0x49   :  { %2797 = vmatpush1.bf16.msra.mxu0 %v7674_v58  ;;  %v8991_v58 = vld [vmem:[%s13008_s1 + $0x18c] ss:$16 sps:$4 sm:$0xff]  }
  0x4a   :  { %681 = vmatmul.mubr.bf16.gmra.mrb[4].mxu0 %v9751_v50  ;;  %761 = vmatmul.mubr.bf16.gmra.mrb[4].mxu1 %v8934_v51  ;;  %v1284_v51 = vld [vmem:[%s13010_s3 + $0x220] sm:$0xff] }
  0x4b   :  { %690 = vmatprep.mubr.bf16.mxu0 %v9759_v52  ;;  %836 = vmatpush1.bf16.msra.mxu1 %v8935_v53  ;;  %v8985_v53 = vld [vmem:[%s13008_s1 + $0x16c] ss:$16 sps:$4 sm:$0xff]  }
  0x4c   :  { %837 = vmatprep.subr.bf16.mxu1 %v8943_v56  ;;  %770 = vmatprep.mubr.bf16.mxu1 %v8944_v57  ;;  %v7731_v56 = vcombine.high %v1280_v49, %v1284_v51  ;;  %v8983_v57 = vld [vmem:[%s13008_s1 + $0x168] ss:$16 sps:$4 sm:$0xff]  }
  0x4d   :  { %2798 = vmatprep.subr.bf16.mxu0 %v7683_v59  ;;  %v9945_v59 = vld [vmem:[%s13007_s0 + $0x60] ss:$8 sps:$4 sm:$0xff]  }
  0x4e   :  { %2799 = vmatpush1.bf16.msra.mxu0 %v7682_v4  ;;  %v8994_v4 = vld [vmem:[%s13008_s1 + $0x1ac] ss:$16 sps:$4 sm:$0xff]  }
  0x4f   :  { %838 = vmatpush1.bf16.msra.mxu1 %v8941_v60  ;;  %2800 = vmatprep.subr.bf16.mxu0 %v7691_v9  ;;  %v9951_v60 = vld [vmem:[%s13007_s0 + $0xe0] ss:$8 sps:$4 sm:$0xff]  }
  0x50   :  { %839 = vmatprep.subr.bf16.mxu1 %v8949_v61  ;;  %v1288_v61 = vld [vmem:[%s13010_s3 + $0x240] sm:$0xff] }
  0x52   :  { %691 = vmatmul.mubr.bf16.gmra.mrb[8].mxu0 %v9787_v62  ;;  %771 = vmatmul.mubr.bf16.gmra.mrb[8].mxu1 %v8946_v63  ;;  %v1292_v63 = vld [vmem:[%s13010_s3 + $0x260] sm:$0xff] }
  0x53   :  { %700 = vmatprep.mubr.bf16.mxu0 %v9801_v2  ;;  %840 = vmatpush1.bf16.msra.mxu1 %v8947_v3  ;;  %v7730_v3 = vcombine.low %v1280_v49, %v1284_v51  ;;  %v7739_v8 = vcombine.high %v1288_v61, %v1292_v63  ;;  %v7738_v9 = vcombine.low %v1288_v61, %v1292_v63  ;;  %v1245_v49 = vld [vmem:[%s13010_s3 + $0xe8] sm:$0xff] }
  0x54   :  { %841 = vmatprep.subr.bf16.mxu1 %v8955_v5  ;;  %780 = vmatprep.mubr.bf16.mxu1 %v8956_v6  ;;  %v9973_v5 = vld [vmem:[%s13007_s0 + $0xf4] ss:$8 sps:$4 sm:$0xff]   ;;  %v1296_v6 = vld [vmem:[%s13010_s3 + $0x280] sm:$0xff]  ;;  %v1261_v61 = vld [vmem:[%s13010_s3 + $0x168] sm:$0xff] }
  0x55   :  { %2801 = vmatpush1.bf16.msra.mxu0 %v7690_v10  ;;  %v8992_v10 = vld [vmem:[%s13008_s1 + $0x1a8] ss:$16 sps:$4 sm:$0xff]  }
  0x56   :  { %2802 = vmatprep.subr.bf16.mxu0 %v7699_v12  ;;  %v7747_v12 = vcombine.high %v1296_v6, %v1300_v7 }
  0x57   :  { %842 = vmatpush1.bf16.msra.mxu1 %v8953_v11  ;;  %v9000_v11 = vld [vmem:[%s13008_s1 + $0x1cc] ss:$16 sps:$4 sm:$0xff]  }
  0x58   :  { %843 = vmatprep.subr.bf16.mxu1 %v8961_v16  ;;  %v9999_v16 = vld [vmem:[%s13007_s0 + $0xf0] ss:$8 sps:$4 sm:$0xff]  }
  0x59   :  { %2803 = vmatpush1.bf16.msra.mxu0 %v7698_v23  ;;  %v1221_v23 = vld [vmem:[%s13010_s3 + $0x28] sm:$0xff] }
  0x5a   :  { %701 = vmatmul.mubr.bf16.gmra.mrb[12].mxu0 %v9826_v14  ;;  %781 = vmatmul.mubr.bf16.gmra.mrb[12].mxu1 %v8958_v15  ;;  %v9993_v15 = vld [vmem:[%s13007_s0 + $0x70] ss:$8 sps:$4 sm:$0xff]  }
  0x5b   :  { %710 = vmatprep.mubr.bf16.mxu0 %v9837_v17  ;;  %844 = vmatpush1.bf16.msra.mxu1 %v8959_v18  ;;  %v1304_v18 = vld [vmem:[%s13010_s3 + $0x2c0] sm:$0xff] }
  0x5c   :  { %845 = vmatprep.subr.bf16.mxu1 %v8967_v21  ;;  %790 = vmatprep.mubr.bf16.mxu1 %v8968_v22  ;;  %v9003_v21 = vld [vmem:[%s13008_s1 + $0x1ec] ss:$16 sps:$4 sm:$0xff]   ;;  %v7755_v29 = vcombine.high %v1304_v18, %v1308_v19 }
  0x5d   :  { %2804 = vmatprep.subr.bf16.mxu0 %v7707_v24  ;;  %v1217_v22 = vld [vmem:[%s13010_s3 + $0x8] sm:$0xff]  ;;  %v7746_v24 = vcombine.low %v1296_v6, %v1300_v7 }
  0x5e   :  { %2805 = vmatpush1.bf16.msra.mxu0 %v7706_v33  ;;  %v7669_v33 = vcombine.high %v1217_v22, %v1221_v23  ;;  %v7668_v39 = vcombine.low %v1217_v22, %v1221_v23  ;;  %v1273_v6 = vld [vmem:[%s13010_s3 + $0x1c8] sm:$0xff] }
  0x5f   :  { %846 = vmatpush1.bf16.msra.mxu1 %v8965_v25  ;;  %2806 = vmatprep.subr.bf16.mxu0 %v7715_v40  ;;  %v1312_v25 = vld [vmem:[%s13010_s3 + $0x300] sm:$0xff]  ;;  %v1233_v40 = vld [vmem:[%s13010_s3 + $0x88] sm:$0xff] }
  0x60   :  { %847 = vmatprep.subr.bf16.mxu1 %v8973_v26  ;;  %v1316_v26 = vld [vmem:[%s13010_s3 + $0x320] sm:$0xff] }
  0x61   :  { %v7763_v38 = vcombine.high %v1312_v25, %v1316_v26 }
  0x62   :  { %711 = vmatmul.mubr.bf16.gmra.mrb[16].mxu0 %v9865_v27  ;;  %791 = vmatmul.mubr.bf16.gmra.mrb[16].mxu1 %v8970_v28  ;;  %v9001_v28 = vld [vmem:[%s13008_s1 + $0x1e8] ss:$16 sps:$4 sm:$0xff]  }
  0x63   :  { %720 = vmatprep.mubr.bf16.mxu0 %v9879_v31  ;;  %848 = vmatpush1.bf16.msra.mxu1 %v8971_v32  ;;  %v1229_v32 = vld [vmem:[%s13010_s3 + $0x68] sm:$0xff] }
  0x64   :  { %849 = vmatprep.subr.bf16.mxu1 %v8976_v34  ;;  %800 = vmatprep.mubr.bf16.mxu1 %v8977_v36  ;;  %v7754_v34 = vcombine.low %v1304_v18, %v1308_v19  ;;  %v1320_v36 = vld [vmem:[%s13010_s3 + $0x340] sm:$0xff]  ;;  %v1285_v19 = vld [vmem:[%s13010_s3 + $0x228] sm:$0xff] }
  0x65   :  { %2807 = vmatpush1.bf16.msra.mxu0 %v7714_v41  ;;  %v1237_v41 = vld [vmem:[%s13010_s3 + $0xa8] sm:$0xff] }
  0x66   :  { %2808 = vmatprep.subr.bf16.mxu0 %v7723_v43  ;;  %v7762_v43 = vcombine.low %v1312_v25, %v1316_v26  ;;  %v7685_v51 = vcombine.high %v1233_v40, %v1237_v41  ;;  %v1293_v25 = vld [vmem:[%s13010_s3 + $0x268] sm:$0xff] }
  0x67   :  { %850 = vmatpush1.bf16.msra.mxu1 %v8974_v42  ;;  %v7677_v42 = vcombine.high %v1225_v30, %v1229_v32 }
  0x68   :  { %851 = vmatprep.subr.bf16.mxu1 %v8982_v46  ;;  %v7676_v46 = vcombine.low %v1225_v30, %v1229_v32 }
  0x69   :  { %2809 = vmatpush1.bf16.msra.mxu0 %v7722_v55  ;;  %v7684_v55 = vcombine.low %v1233_v40, %v1237_v41  ;;  %v1313_v40 = vld [vmem:[%s13010_s3 + $0x308] sm:$0xff] }
  0x6a   :  { %721 = vmatmul.mubr.bf16.gmra.mrb[20].mxu0 %v9904_v44  ;;  %801 = vmatmul.mubr.bf16.gmra.mrb[20].mxu1 %v8979_v45  ;;  %v1317_v41 = vld [vmem:[%s13010_s3 + $0x328] sm:$0xff] }
  0x6b   :  { %730 = vmatprep.mubr.bf16.mxu0 %v9915_v47  ;;  %852 = vmatpush1.bf16.msra.mxu1 %v8980_v48  ;;  %v1241_v48 = vld [vmem:[%s13010_s3 + $0xc8] sm:$0xff] }
  0x6c   :  { %853 = vmatprep.subr.bf16.mxu1 %v8985_v53  ;;  %810 = vmatprep.mubr.bf16.mxu1 %v9932_v54 }
  0x6d   :  { %2810 = vmatprep.subr.bf16.mxu0 %v7731_v56  ;;  %v7693_v56 = vcombine.high %v1241_v48, %v1245_v49 }
  0x6e   :  { %2811 = vmatpush1.bf16.msra.mxu0 %v7730_v3 }
  0x6f   :  { %854 = vmatpush1.bf16.msra.mxu1 %v8983_v57  ;;  %2812 = vmatprep.subr.bf16.mxu0 %v7739_v8  ;;  %v7692_v57 = vcombine.low %v1241_v48, %v1245_v49  ;;  %v1277_v8 = vld [vmem:[%s13010_s3 + $0x1e8] sm:$0xff]  ;;  %v7764_v49 = vcombine.low %v1313_v40, %v1317_v41 }
  0x70   :  { %855 = vmatprep.subr.bf16.mxu1 %v8991_v58  ;;  %v1257_v58 = vld [vmem:[%s13010_s3 + $0x148] sm:$0xff]  ;;  %v7725_v18 = vcombine.high %v1273_v6, %v1277_v8  ;;  %v7724_v23 = vcombine.low %v1273_v6, %v1277_v8 }
  0x71   :  { %v7709_v3 = vcombine.high %v1257_v58, %v1261_v61  ;;  %v1325_v48 = vld [vmem:[%s13010_s3 + $0x368] sm:$0xff] }
  0x72   :  { %731 = vmatmul.mubr.bf16.gmra.mrb[24].mxu0 %v9945_v59  ;;  %811 = vmatmul.mubr.bf16.gmra.mrb[24].mxu1 %v9951_v60 }
  0x73   :  { %740 = vmatprep.mubr.bf16.mxu0 %v9962_v0  ;;  %856 = vmatpush1.bf16.msra.mxu1 %v8989_v1 }
  0x74   :  { %857 = vmatprep.subr.bf16.mxu1 %v8994_v4  ;;  %820 = vmatprep.mubr.bf16.mxu1 %v9973_v5  ;;  %v7708_v4 = vcombine.low %v1257_v58, %v1261_v61  ;;  %v9501_v58 = vld [vmem:[%s13007_s0 + $0x80] ss:$8 sps:$4 sm:$0xff]   ;;  %v9502_v61 = vld [vmem:[%s13007_s0 + $0x94] ss:$8 sps:$4 sm:$0xff]  }
  0x75   :  { %2813 = vmatpush1.bf16.msra.mxu0 %v7738_v9  ;;  %v1328_v9 = vld [vmem:[%s13010_s3 + $0x380] sm:$0xff] }
  0x76   :  { %2814 = vmatprep.subr.bf16.mxu0 %v7747_v12 }
  0x77   :  { %858 = vmatpush1.bf16.msra.mxu1 %v8992_v10 }
  0x78   :  { %859 = vmatprep.subr.bf16.mxu1 %v9000_v11  ;;  %v1281_v11 = vld [vmem:[%s13010_s3 + $0x208] sm:$0xff] }
  0x79   :  { %2815 = vmatpush1.bf16.msra.mxu0 %v7746_v24  ;;  %v1289_v24 = vld [vmem:[%s13010_s3 + $0x248] sm:$0xff] }
  0x7a   :  { %741 = vmatmul.mubr.bf16.gmra.mrb[28].mxu0 %v9993_v15  ;;  %821 = vmatmul.mubr.bf16.gmra.mrb[28].mxu1 %v9999_v16  ;;  %v7741_v30 = vcombine.high %v1289_v24, %v1293_v25  ;;  %v7740_v32 = vcombine.low %v1289_v24, %v1293_v25 }
  0x7b   :  { %860 = vmatpush1.bf16.msra.mxu1 %v8998_v20  ;;  %863 = vmatprep.mubr.bf16.mxu1 %v9640_v13  ;;  %v1324_v13 = vld [vmem:[%s13010_s3 + $0x360] sm:$0xff] }
  0x7c   :  { %861 = vmatprep.subr.bf16.mxu1 %v9003_v21  ;;  %2816 = vmatprep.subr.bf16.mxu0 %v7755_v29  ;;  %v7771_v45 = vcombine.high %v1320_v36, %v1324_v13  ;;  %v7770_v53 = vcombine.low %v1320_v36, %v1324_v13  ;;  %v1336_v20 = vld [vmem:[%s13010_s3 + $0x3c0] sm:$0xff]  ;;  %v1301_v29 = vld [vmem:[%s13010_s3 + $0x2a8] sm:$0xff] }
  0x7d   :  { %2817 = vmatpush1.bf16.msra.mxu0 %v7754_v34  ;;  %v1340_v21 = vld [vmem:[%s13010_s3 + $0x3e0] sm:$0xff]  ;;  %v1309_v34 = vld [vmem:[%s13010_s3 + $0x2e8] sm:$0xff] }
  0x7e   :  { %2818 = vmatprep.subr.bf16.mxu0 %v7763_v38  ;;  %v7787_v22 = vcombine.high %v1336_v20, %v1340_v21  ;;  %v7786_v26 = vcombine.low %v1336_v20, %v1340_v21  ;;  %v10128_v13 = vld [vmem:[%s13010_s3 + $0x400] sm:$0xff] }
  0x7f   :  { %862 = vmatpush1.bf16.msra.mxu1 %v9001_v28  ;;  %v7733_v28 = vcombine.high %v1281_v11, %v1285_v19 }
  0x80   :  { %3180 = vmatprep.subr.bf16.mxu1 %v7669_v33  ;;  %v1305_v33 = vld [vmem:[%s13010_s3 + $0x2c8] sm:$0xff] }
  0x81   :  { %2819 = vmatpush1.bf16.msra.mxu0 %v7762_v43  ;;  %v7756_v43 = vcombine.low %v1305_v33, %v1309_v34 }
  0x82   :  { %864 = vmatmul.mubr.bf16.vlgmr.msra.gmra.mrb[32].mxu1 %v9709_v35  ;;  %2820 = vmatprep.subr.bf16.mxu0 %v7771_v45  ;;  %v1249_v35 = vld [vmem:[%s13010_s3 + $0x108] sm:$0xff]  ;;  %v7765_v45 = vcombine.high %v1313_v40, %v1317_v41 }
  0x83   :  { %873 = vmatprep.mubr.bf16.mxu1 %v9717_v37  ;;  %3181 = vmatpush1.bf16.msra.mxu1 %v7668_v39  ;;  %v1253_v37 = vld [vmem:[%s13010_s3 + $0x128] sm:$0xff] }
  0x84   :  { %3182 = vmatprep.subr.bf16.mxu1 %v7677_v42  ;;  %v7701_v63 = vcombine.high %v1249_v35, %v1253_v37  ;;  %v7700_v1 = vcombine.low %v1249_v35, %v1253_v37  ;;  %v7757_v42 = vcombine.high %v1305_v33, %v1309_v34  ;;  %v1337_v35 = vld [vmem:[%s13010_s3 + $0x3c8] sm:$0xff] }
  0x85   :  { %2821 = vmatpush1.bf16.msra.mxu0 %v7770_v53  ;;  %v1341_v37 = vld [vmem:[%s13010_s3 + $0x3e8] sm:$0xff] }
  0x87   :  { %3183 = vmatpush1.bf16.msra.mxu1 %v7676_v46  ;;  %v1321_v46 = vld [vmem:[%s13010_s3 + $0x348] sm:$0xff] }
  0x88   :  { %3184 = vmatprep.subr.bf16.mxu1 %v7685_v51  ;;  %v7773_v51 = vcombine.high %v1321_v46, %v1325_v48  ;;  %v7772_v53 = vcombine.low %v1321_v46, %v1325_v48 }
  0x8a   :  { %874 = vmatmul.mubr.bf16.gmra.mrb[36].mxu1 %v9751_v50  ;;  %v1265_v50 = vld [vmem:[%s13010_s3 + $0x188] sm:$0xff] }
  0x8b   :  { %883 = vmatprep.mubr.bf16.mxu1 %v9759_v52  ;;  %3185 = vmatpush1.bf16.msra.mxu1 %v7684_v55  ;;  %v1269_v52 = vld [vmem:[%s13010_s3 + $0x1a8] sm:$0xff] }
  0x8c   :  { %3186 = vmatprep.subr.bf16.mxu1 %v7693_v56  ;;  %v7717_v7 = vcombine.high %v1265_v50, %v1269_v52  ;;  %v7716_v10 = vcombine.low %v1265_v50, %v1269_v52 }
  0x8f   :  { %3187 = vmatpush1.bf16.msra.mxu1 %v7692_v57  ;;  %v7789_v57 = vcombine.high %v1337_v35, %v1341_v37 }
  0x90   :  { %3188 = vmatprep.subr.bf16.mxu1 %v7701_v63  ;;  %v9504_v63 = vld [vmem:[%s13007_s0 + $0xa4] ss:$8 sps:$4 sm:$0xff]  }
  0x92   :  { %884 = vmatmul.mubr.bf16.gmra.mrb[40].mxu1 %v9787_v62  ;;  %v1332_v62 = vld [vmem:[%s13010_s3 + $0x3a0] sm:$0xff] }
  0x93   :  { %893 = vmatprep.mubr.bf16.mxu1 %v9801_v2  ;;  %3189 = vmatpush1.bf16.msra.mxu1 %v7700_v1  ;;  %v7779_v2 = vcombine.high %v1328_v9, %v1332_v62  ;;  %v7778_v12 = vcombine.low %v1328_v9, %v1332_v62 }
  0x94   :  { %3190 = vmatprep.subr.bf16.mxu1 %v7709_v3 }
  0x95   :  { %2822 = vmatprep.subr.bf16.mxu0 %v7779_v2 }
  0x96   :  { %2823 = vmatpush1.bf16.msra.mxu0 %v7778_v12 }
  0x97   :  { %3191 = vmatpush1.bf16.msra.mxu1 %v7708_v4  ;;  %2824 = vmatprep.subr.bf16.mxu0 %v7787_v22 }
  0x98   :  { %3192 = vmatprep.subr.bf16.mxu1 %v7717_v7 }
  0x9a   :  { %894 = vmatmul.mubr.bf16.gmra.mrb[44].mxu1 %v9826_v14  ;;  %2825 = vmatpush1.bf16.msra.mxu0 %v7786_v26  ;;  %v7732_v14 = vcombine.low %v1281_v11, %v1285_v19 }
  0x9b   :  { %903 = vmatprep.mubr.bf16.mxu1 %v9837_v17  ;;  %3193 = vmatpush1.bf16.msra.mxu1 %v7716_v10  ;;  %v1297_v17 = vld [vmem:[%s13010_s3 + $0x288] sm:$0xff] }
  0x9c   :  { %3194 = vmatprep.subr.bf16.mxu1 %v7725_v18  ;;  %v7749_v36 = vcombine.high %v1297_v17, %v1301_v29  ;;  %v7748_v39 = vcombine.low %v1297_v17, %v1301_v29 }
  0x9f   :  { %3195 = vmatpush1.bf16.msra.mxu1 %v7724_v23 }
  0xa0   :  { %3196 = vmatprep.subr.bf16.mxu1 %v7733_v28 }
  0xa2   :  { %904 = vmatmul.mubr.bf16.gmra.mrb[48].mxu1 %v9865_v27  ;;  %v10133_v27 = vld [vmem:[%s13010_s3 + $0x420] sm:$0xff] }
  0xa3   :  { %913 = vmatprep.mubr.bf16.mxu1 %v9879_v31  ;;  %3197 = vmatpush1.bf16.msra.mxu1 %v7732_v14  ;;  %v7794_v31 = vcombine.low %v10128_v13, %v10133_v27  ;;  %v7795_v38 = vcombine.high %v10128_v13, %v10133_v27 }
  0xa4   :  { %3198 = vmatprep.subr.bf16.mxu1 %v7741_v30 }
  0xa5   :  { %2987 = vmatprep.subr.bf16.mxu0 %v7795_v38 }
  0xa7   :  { %3199 = vmatpush1.bf16.msra.mxu1 %v7740_v32 }
  0xa8   :  { %3200 = vmatprep.subr.bf16.mxu1 %v7749_v36 }
  0xaa   :  { %914 = vmatmul.mubr.bf16.gmra.mrb[52].mxu1 %v9904_v44  ;;  %v1329_v44 = vld [vmem:[%s13010_s3 + $0x388] sm:$0xff] }
  0xab   :  { %923 = vmatprep.mubr.bf16.mxu1 %v9915_v47  ;;  %3201 = vmatpush1.bf16.msra.mxu1 %v7748_v39  ;;  %v1333_v47 = vld [vmem:[%s13010_s3 + $0x3a8] sm:$0xff] }
  0xac   :  { %3202 = vmatprep.subr.bf16.mxu1 %v7757_v42  ;;  %v7781_v55 = vcombine.high %v1329_v44, %v1333_v47  ;;  %v7780_v56 = vcombine.low %v1329_v44, %v1333_v47 }
  0xaf   :  { %3203 = vmatpush1.bf16.msra.mxu1 %v7756_v43 }
  0xb0   :  { %3204 = vmatprep.subr.bf16.mxu1 %v7765_v45 }
  0xb2   :  { %924 = vmatmul.mubr.bf16.gmra.mrb[56].mxu1 %v9945_v59  ;;  %v9500_v59 = vld [vmem:[%s13007_s0 + $0x84] ss:$8 sps:$4 sm:$0xff]  }
  0xb3   :  { %933 = vmatprep.mubr.bf16.mxu1 %v9962_v0  ;;  %3205 = vmatpush1.bf16.msra.mxu1 %v7764_v49  ;;  %v7788_v0 = vcombine.low %v1337_v35, %v1341_v37 }
  0xb4   :  { %3206 = vmatprep.subr.bf16.mxu1 %v7773_v51 }
  0xb7   :  { %3207 = vmatpush1.bf16.msra.mxu1 %v7772_v53 }
  0xb8   :  { %3208 = vmatprep.subr.bf16.mxu1 %v7781_v55 }
  0xba   :  { %934 = vmatmul.mubr.bf16.gmra.mrb[60].mxu1 %v9993_v15  ;;  %v9503_v15 = vld [vmem:[%s13007_s0 + $0x90] ss:$8 sps:$4 sm:$0xff]  }
  0xbb   :  { %943 = vmatprep.mubr.bf16.mxu1 %v9500_v59  ;;  %3209 = vmatpush1.bf16.msra.mxu1 %v7780_v56 }
  0xbc   :  { %3210 = vmatprep.subr.bf16.mxu1 %v7789_v57 }
  0xbf   :  { %3211 = vmatpush1.bf16.msra.mxu1 %v7788_v0 }
  0xc2   :  { %944 = vmatmul.mubr.bf16.gmra.mrb[64].mxu1 %v9501_v58 }
  0xc3   :  { %953 = vmatprep.mubr.bf16.mxu1 %v9502_v61 }
  0xca   :  { %954 = vmatmul.mubr.bf16.gmra.mrb[68].mxu1 %v9503_v15 }
  0xcb   :  { %963 = vmatprep.mubr.bf16.mxu1 %v9504_v63 }
  0xcc   :  { %16 = vsyncpa [#allocation3], 0  ;;  %v9505_v1 = vld [vmem:[%s13007_s0 + $0xa0] ss:$8 sps:$4 sm:$0xff]   ;;  %v9506_v50 = vld [vmem:[%s13007_s0 + $0xb4] ss:$8 sps:$4 sm:$0xff]   ;;  %v138_v10 = vlaneseq }
  0xcd   :  { %v10192_v52 = vld [vmem:[%s13010_s3 + $0x408] sm:$0xff]  ;;  %v9507_v4 = vld [vmem:[%s13007_s0 + $0xb0] ss:$8 sps:$4 sm:$0xff]   ;;  %v9510_v62 = vld [vmem:[%s13007_s0 + $0xd4] ss:$8 sps:$4 sm:$0xff]   ;;  %vm5256_vm0 = vcmask 1041409  }
  0xce   :  { %v10197_v3 = vld [vmem:[%s13010_s3 + $0x428] sm:$0xff]  ;;  %v9511_v2 = vld [vmem:[%s13007_s0 + $0xd0] ss:$8 sps:$4 sm:$0xff]   ;;  %v10222_v11 = vshrl.u32 %v138_v10, 7  ;;  %v10230_v18 = vld [vmem:[%s13009_s2] sm:$0xf] }
  0xcf   :  { %v7796_v6 = vcombine.low %v10192_v52, %v10197_v3  ;;  %v7797_v7 = vcombine.high %v10192_v52, %v10197_v3  ;;  %v9508_v8 = vld [vmem:[%s13007_s0 + $0xc4] ss:$8 sps:$4 sm:$0xff]   ;;  %v9509_v9 = vld [vmem:[%s13007_s0 + $0xc0] ss:$8 sps:$4 sm:$0xff]   ;;  %v10254_v38 = vld [vmem:[%s13010_s3 + $0x10] sm:$0xff]  ;;  %vm7554_vm1 = vcmask 320512  }
  0xd0   :  { %13079 = vst [vmem:[#allocation5_spill] sm:$0xff] %v10222_v11  ;;  %v10225_v12 = vsub.s32 0, %v10222_v11  ;;  %v10233_v19 = vsub.s32 1, %v10222_v11  ;;  %v10259_v41 = vld [vmem:[%s13010_s3 + $0x440] sm:$0xff]  ;;  %v10264_v43 = vld [vmem:[%s13010_s3 + $0x30] sm:$0xff]  ;;  %v10272_v44 = vld [vmem:[%s13010_s3 + $0x448] sm:$0xff] }
  0xd1   :  { %3373 = vmatprep.subr.bf16.mxu1 %v7797_v7  ;;  %v1356_v48 = vld [vmem:[%s13010_s3 + $0x460] sm:$0xff]  ;;  %v10277_v47 = vld [vmem:[%s13010_s3 + $0x468] sm:$0xff] }
  0xd2   :  { %964 = vmatmul.mubr.bf16.gmra.mrb[72].mxu1 %v9505_v1  ;;  %13080 = vst [vmem:[#allocation6_spill] sm:$0xff] %v10225_v12  ;;  %13081 = vst [vmem:[#allocation7_spill] sm:$0xff] %v10233_v19  ;;  %v10290_v56 = vld [vmem:[%s13010_s3 + $0x480] sm:$0xff]  ;;  %v7803_v15 = vcombine.high %v10259_v41, %v1356_v48  ;;  %v10317_v10 = vld [vmem:[%s13010_s3 + $0x4a8] sm:$0xff]  ;;  %v7804_v13 = vcombine.low %v10272_v44, %v10277_v47 }
  0xd3   :  { %973 = vmatprep.mubr.bf16.mxu1 %v9506_v50  ;;  %v10295_v57 = vld [vmem:[%s13010_s3 + $0x4a0] sm:$0xff]  ;;  %v7805_v50 = vcombine.high %v10272_v44, %v10277_v47  ;;  %v10355_v52 = vld [vmem:[%s13010_s3 + $0x4e8] sm:$0xff] }
  0xda   :  { %974 = vmatmul.mubr.bf16.gmra.mrb[76].mxu1 %v9507_v4 }
  0xdb   :  { %983 = vmatprep.mubr.bf16.mxu1 %v9508_v8  ;;  %v7802_v8 = vcombine.low %v10259_v41, %v1356_v48 }
  0xe2   :  { %984 = vmatmul.mubr.bf16.gmra.mrb[80].mxu1 %v9509_v9 }
  0xe3   :  { %993 = vmatprep.mubr.bf16.mxu1 %v9510_v62 }
  0xea   :  { %994 = vmatmul.mubr.bf16.gmra.mrb[84].mxu1 %v9511_v2  ;;  %v10312_v2 = vld [vmem:[%s13010_s3 + $0x488] sm:$0xff] }
  0xeb   :  { %1003 = vmatprep.mubr.bf16.mxu1 %v9932_v54  ;;  %v10237_v54 = vrot.slane %v10230_v18, %v10225_v12 }
  0xf2   :  { %1004 = vmatmul.mubr.bf16.gmra.mrb[88].mxu1 %v9951_v60  ;;  %v10241_v60 = vrot.slane %v10230_v18, %v10233_v19 }
  0xf3   :  { %1013 = vmatprep.mubr.bf16.mxu1 %v9973_v5 }
  0xfa   :  { %1014 = vmatmul.mubr.bf16.gmra.mrb[92].mxu1 %v9999_v16 }
 0x115   :  { %v672_v5 = vpop.f32.mrb[0].mxu0  ;;  %v752_v16 = vpop.f32.mrb[0].mxu1 }
 0x116   :  { %v673_v20 = vadd.f32 %v672_v5, %v10237_v54  ;;  %v674_v21 = vpop.f32.mrb[1].mxu0  ;;  %v753_v22 = vadd.f32 %v752_v16, %v10237_v54  ;;  %v754_v23 = vpop.f32.mrb[1].mxu1 }
 0x117   :  { %v675_v24 = vadd.f32 %v674_v21, %v10241_v60  ;;  %v676_v25 = vpop.f32.mrb[2].mxu0  ;;  %v755_v26 = vadd.f32 %v754_v23, %v10241_v60  ;;  %v756_v28 = vpop.f32.mrb[2].mxu1 }
 0x118   :  { %v677_v14 = vadd.f32 %v676_v25, %v10237_v54  ;;  %v678_v17 = vpop.f32.mrb[3].mxu0  ;;  %v1088_v29 = vmax.f32 %v753_v22, 0.0  ;;  %v757_v30 = vadd.f32 %v756_v28, %v10237_v54  ;;  %v758_v32 = vpop.f32.mrb[3].mxu1  ;;  %v1024_v39 = vmax.f32 %v673_v20, 0.0  ;;  %v10332_v25 = vld [vmem:[%s13010_s3 + $0x4c0] sm:$0xff] }
 0x119   :  { %v679_v33 = vadd.f32 %v678_v17, %v10241_v60  ;;  %v1089_v34 = vmax.f32 %v755_v26, 0.0  ;;  %v759_v36 = vadd.f32 %v758_v32, %v10241_v60  ;;  %v1025_v45 = vmax.f32 %v675_v24, 0.0  ;;  %v10337_v26 = vld [vmem:[%s13010_s3 + $0x4e0] sm:$0xff] }
 0x11a   :  { %v1028_v40 = vmax.f32 %v677_v14, 0.0  ;;  %v1092_v42 = vmax.f32 %v757_v30, 0.0  ;;  %v7811_v20 = vcombine.high %v10290_v56, %v10295_v57 }
 0x11b   :  { %v1029_v46 = vmax.f32 %v679_v33, 0.0  ;;  %v1093_v49 = vmax.f32 %v759_v36, 0.0  ;;  %v7819_v36 = vcombine.high %v10332_v25, %v10337_v26 }
 0x11c   :  { %v10281_v53 = vpack.c.bf16 %v1028_v40, %v1024_v39  ;;  %v10283_v55 = vpack.c.bf16 %v1092_v42, %v1088_v29  ;;  %v7813_v29 = vcombine.high %v10312_v2, %v10317_v10  ;;  %v10370_v42 = vld [vmem:[%s13010_s3 + $0x500] sm:$0xff] }
 0x11d   :  { %v10285_v35 = vpack.c.bf16 %v1029_v46, %v1025_v45  ;;  %v682_v37 = vpop.f32.mrb[4].mxu0  ;;  %v10297_v59 = vpack.c.bf16 %v1093_v49, %v1089_v34  ;;  %v762_v0 = vpop.f32.mrb[4].mxu1  ;;  %v10350_v34 = vld [vmem:[%s13010_s3 + $0x4c8] sm:$0xff]  ;;  %v10375_v45 = vld [vmem:[%s13010_s3 + $0x520] sm:$0xff]  ;;  %v7812_v49 = vcombine.low %v10312_v2, %v10317_v10 }
 0x11e   :  { %v683_v58 = vadd.f32 %v682_v37, %v10237_v54  ;;  %v684_v61 = vpop.f32.mrb[5].mxu0  ;;  %v763_v63 = vadd.f32 %v762_v0, %v10237_v54  ;;  %v764_v1 = vpop.f32.mrb[5].mxu1 }
 0x11f   :  { %v685_v4 = vadd.f32 %v684_v61, %v10241_v60  ;;  %v686_v7 = vpop.f32.mrb[6].mxu0  ;;  %2826 = vmatprep.mubr.bf16.mxu0 %v10285_v35  ;;  %3212 = vmatprep.mubr.bf16.mxu1 %v10285_v35  ;;  %v765_v9 = vadd.f32 %v764_v1, %v10241_v60  ;;  %v766_v62 = vpop.f32.mrb[6].mxu1  ;;  %v7818_v61 = vcombine.low %v10332_v25, %v10337_v26  ;;  %v10394_v1 = vld [vmem:[%s13010_s3 + $0x508] sm:$0xff] }
 0x120   :  { %v687_v5 = vadd.f32 %v686_v7, %v10237_v54  ;;  %v688_v16 = vpop.f32.mrb[7].mxu0  ;;  %2827 = vmatmul.mubr.bf16.vlgmr.msra.gmra.mrb[32].mxu0 %v10281_v53  ;;  %3213 = vmatmul.mubr.bf16.vlgmr.msra.gmra.mrb[96].mxu1 %v10281_v53  ;;  %v1096_v21 = vmax.f32 %v763_v63, 0.0  ;;  %v767_v22 = vadd.f32 %v766_v62, %v10237_v54  ;;  %v768_v23 = vpop.f32.mrb[7].mxu1  ;;  %v1032_v27 = vmax.f32 %v683_v58, 0.0 }
 0x121   :  { %v689_v24 = vadd.f32 %v688_v16, %v10241_v60  ;;  %2988 = vmatpush1.bf16.msra.mxu0 %v7794_v31  ;;  %v1097_v28 = vmax.f32 %v765_v9, 0.0  ;;  %v769_v14 = vadd.f32 %v768_v23, %v10241_v60  ;;  %3374 = vmatpush1.bf16.msra.mxu1 %v7796_v6  ;;  %v1033_v30 = vmax.f32 %v685_v4, 0.0  ;;  %v10416_v16 = vld [vmem:[%s13010_s3 + $0x560] sm:$0xff] }
 0x122   :  { %v1036_v31 = vmax.f32 %v687_v5, 0.0  ;;  %2989 = vmatprep.subr.bf16.mxu0 %v7803_v15  ;;  %v1100_v17 = vmax.f32 %v767_v22, 0.0  ;;  %3375 = vmatprep.subr.bf16.mxu1 %v7805_v50  ;;  %v7810_v6 = vcombine.low %v10290_v56, %v10295_v57  ;;  %v7821_v57 = vcombine.high %v10350_v34, %v10355_v52  ;;  %v10399_v50 = vld [vmem:[%s13010_s3 + $0x528] sm:$0xff]  ;;  %v10411_v5 = vld [vmem:[%s13010_s3 + $0x540] sm:$0xff] }
 0x123   :  { %v1037_v32 = vmax.f32 %v689_v24, 0.0  ;;  %v1101_v33 = vmax.f32 %v769_v14, 0.0  ;;  %v7820_v22 = vcombine.low %v10350_v34, %v10355_v52  ;;  %v7829_v26 = vcombine.high %v10394_v1, %v10399_v50  ;;  %v10446_v52 = vld [vmem:[%s13010_s3 + $0x580] sm:$0xff] }
 0x124   :  { %v10357_v3 = vpack.c.bf16 %v1036_v31, %v1032_v27  ;;  %v10363_v39 = vpack.c.bf16 %v1100_v17, %v1096_v21  ;;  %v10426_v27 = vld [vmem:[%s13010_s3 + $0x548] sm:$0xff] }
 0x125   :  { %v10365_v40 = vpack.c.bf16 %v1037_v32, %v1033_v30  ;;  %v692_v41 = vpop.f32.mrb[8].mxu0  ;;  %2990 = vmatpush1.bf16.msra.mxu0 %v7802_v8  ;;  %v10377_v46 = vpack.c.bf16 %v1101_v33, %v1097_v28  ;;  %v772_v48 = vpop.f32.mrb[8].mxu1  ;;  %3376 = vmatpush1.bf16.msra.mxu1 %v7804_v13  ;;  %v7827_v8 = vcombine.high %v10370_v42, %v10375_v45  ;;  %v10431_v31 = vld [vmem:[%s13010_s3 + $0x568] sm:$0xff] }
 0x126   :  { %v693_v44 = vadd.f32 %v692_v41, %v10237_v54  ;;  %v694_v47 = vpop.f32.mrb[9].mxu0  ;;  %2991 = vmatprep.subr.bf16.mxu0 %v7811_v20  ;;  %v773_v37 = vadd.f32 %v772_v48, %v10237_v54  ;;  %v774_v56 = vpop.f32.mrb[9].mxu1  ;;  %3377 = vmatprep.subr.bf16.mxu1 %v7813_v29  ;;  %v7826_v29 = vcombine.low %v10370_v42, %v10375_v45 }
 0x127   :  { %v695_v0 = vadd.f32 %v694_v47, %v10241_v60  ;;  %v696_v58 = vpop.f32.mrb[10].mxu0  ;;  %2836 = vmatprep.mubr.bf16.mxu0 %v10365_v40  ;;  %3222 = vmatprep.mubr.bf16.mxu1 %v10365_v40  ;;  %v775_v15 = vadd.f32 %v774_v56, %v10241_v60  ;;  %v776_v63 = vpop.f32.mrb[10].mxu1  ;;  %v7835_v30 = vcombine.high %v10411_v5, %v10416_v16 }
 0x128   :  { %v697_v4 = vadd.f32 %v696_v58, %v10237_v54  ;;  %v698_v7 = vpop.f32.mrb[11].mxu0  ;;  %2837 = vmatmul.mubr.bf16.gmra.mrb[36].mxu0 %v10357_v3  ;;  %3223 = vmatmul.mubr.bf16.gmra.mrb[100].mxu1 %v10357_v3  ;;  %v1104_v9 = vmax.f32 %v773_v37, 0.0  ;;  %v777_v62 = vadd.f32 %v776_v63, %v10237_v54  ;;  %v778_v2 = vpop.f32.mrb[11].mxu1  ;;  %v1040_v23 = vmax.f32 %v693_v44, 0.0 }
 0x129   :  { %v699_v10 = vadd.f32 %v698_v7, %v10241_v60  ;;  %2992 = vmatpush1.bf16.msra.mxu0 %v7810_v6  ;;  %v1105_v20 = vmax.f32 %v775_v15, 0.0  ;;  %v779_v21 = vadd.f32 %v778_v2, %v10241_v60  ;;  %3378 = vmatpush1.bf16.msra.mxu1 %v7812_v49  ;;  %v1041_v28 = vmax.f32 %v695_v0, 0.0  ;;  %v10451_v6 = vld [vmem:[%s13010_s3 + $0x5a0] sm:$0xff]  ;;  %v10475_v15 = vld [vmem:[%s13010_s3 + $0x5a8] sm:$0xff] }
 0x12a   :  { %v1044_v24 = vmax.f32 %v697_v4, 0.0  ;;  %2993 = vmatprep.subr.bf16.mxu0 %v7819_v36  ;;  %v1108_v25 = vmax.f32 %v777_v62, 0.0  ;;  %3379 = vmatprep.subr.bf16.mxu1 %v7821_v57  ;;  %v7828_v42 = vcombine.low %v10394_v1, %v10399_v50  ;;  %v7837_v47 = vcombine.high %v10426_v27, %v10431_v31  ;;  %v10487_v62 = vld [vmem:[%s13010_s3 + $0x5c0] sm:$0xff] }
 0x12b   :  { %v1045_v14 = vmax.f32 %v699_v10, 0.0  ;;  %v1109_v13 = vmax.f32 %v779_v21, 0.0  ;;  %v7834_v57 = vcombine.low %v10411_v5, %v10416_v16  ;;  %v7843_v50 = vcombine.high %v10446_v52, %v10451_v6  ;;  %v10492_v2 = vld [vmem:[%s13010_s3 + $0x5e0] sm:$0xff] }
 0x12c   :  { %v10433_v17 = vpack.c.bf16 %v1044_v24, %v1040_v23  ;;  %v10439_v32 = vpack.c.bf16 %v1108_v25, %v1104_v9  ;;  %v7836_v16 = vcombine.low %v10426_v27, %v10431_v31  ;;  %v7842_v27 = vcombine.low %v10446_v52, %v10451_v6 }
 0x12d   :  { %v10441_v33 = vpack.c.bf16 %v1045_v14, %v1041_v28  ;;  %v702_v34 = vpop.f32.mrb[12].mxu0  ;;  %2994 = vmatpush1.bf16.msra.mxu0 %v7818_v61  ;;  %v10453_v36 = vpack.c.bf16 %v1109_v13, %v1105_v20  ;;  %v782_v41 = vpop.f32.mrb[12].mxu1  ;;  %3380 = vmatpush1.bf16.msra.mxu1 %v7820_v22  ;;  %v10470_v61 = vld [vmem:[%s13010_s3 + $0x588] sm:$0xff]  ;;  %v7851_v31 = vcombine.high %v10487_v62, %v10492_v2 }
 0x12e   :  { %v703_v45 = vadd.f32 %v702_v34, %v10237_v54  ;;  %v704_v48 = vpop.f32.mrb[13].mxu0  ;;  %2995 = vmatprep.subr.bf16.mxu0 %v7827_v8  ;;  %v783_v49 = vadd.f32 %v782_v41, %v10237_v54  ;;  %v784_v44 = vpop.f32.mrb[13].mxu1  ;;  %3381 = vmatprep.subr.bf16.mxu1 %v7829_v26  ;;  %v7845_v23 = vcombine.high %v10470_v61, %v10475_v15  ;;  %v10502_v28 = vld [vmem:[%s13010_s3 + $0x5c8] sm:$0xff]  ;;  %v10522_v41 = vld [vmem:[%s13010_s3 + $0x600] sm:$0xff] }
 0x12f   :  { %v705_v37 = vadd.f32 %v704_v48, %v10241_v60  ;;  %v706_v56 = vpop.f32.mrb[14].mxu0  ;;  %2846 = vmatprep.mubr.bf16.mxu0 %v10441_v33  ;;  %3232 = vmatprep.mubr.bf16.mxu1 %v10441_v33  ;;  %v785_v0 = vadd.f32 %v784_v44, %v10241_v60  ;;  %v786_v58 = vpop.f32.mrb[14].mxu1  ;;  %v10507_v14 = vld [vmem:[%s13010_s3 + $0x5e8] sm:$0xff] }
 0x130   :  { %v707_v63 = vadd.f32 %v706_v56, %v10237_v54  ;;  %v708_v1 = vpop.f32.mrb[15].mxu0  ;;  %2847 = vmatmul.mubr.bf16.gmra.mrb[40].mxu0 %v10433_v17  ;;  %3233 = vmatmul.mubr.bf16.gmra.mrb[104].mxu1 %v10433_v17  ;;  %v1112_v4 = vmax.f32 %v783_v49, 0.0  ;;  %v787_v7 = vadd.f32 %v786_v58, %v10237_v54  ;;  %v788_v8 = vpop.f32.mrb[15].mxu1  ;;  %v1048_v20 = vmax.f32 %v703_v45, 0.0 }
 0x131   :  { %v709_v9 = vadd.f32 %v708_v1, %v10241_v60  ;;  %2996 = vmatpush1.bf16.msra.mxu0 %v7826_v29  ;;  %v1113_v10 = vmax.f32 %v785_v0, 0.0  ;;  %v789_v5 = vadd.f32 %v788_v8, %v10241_v60  ;;  %3382 = vmatpush1.bf16.msra.mxu1 %v7828_v42  ;;  %v1049_v24 = vmax.f32 %v705_v37, 0.0  ;;  %v10527_v42 = vld [vmem:[%s13010_s3 + $0x620] sm:$0xff] }
 0x132   :  { %v1052_v21 = vmax.f32 %v707_v63, 0.0  ;;  %2997 = vmatprep.subr.bf16.mxu0 %v7835_v30  ;;  %v1116_v22 = vmax.f32 %v787_v7, 0.0  ;;  %3383 = vmatprep.subr.bf16.mxu1 %v7837_v47  ;;  %v7844_v45 = vcombine.low %v10470_v61, %v10475_v15  ;;  %v7853_v37 = vcombine.high %v10502_v28, %v10507_v14  ;;  %v10546_v15 = vld [vmem:[%s13010_s3 + $0x608] sm:$0xff] }
 0x133   :  { %v1053_v25 = vmax.f32 %v709_v9, 0.0  ;;  %v1117_v26 = vmax.f32 %v789_v5, 0.0  ;;  %v7850_v0 = vcombine.low %v10487_v62, %v10492_v2  ;;  %v10551_v63 = vld [vmem:[%s13010_s3 + $0x628] sm:$0xff]  ;;  %v10563_v2 = vld [vmem:[%s13010_s3 + $0x640] sm:$0xff] }
 0x134   :  { %v10509_v13 = vpack.c.bf16 %v1052_v21, %v1048_v20  ;;  %v10515_v29 = vpack.c.bf16 %v1116_v22, %v1112_v4  ;;  %v7859_v4 = vcombine.high %v10522_v41, %v10527_v42  ;;  %v7852_v20 = vcombine.low %v10502_v28, %v10507_v14  ;;  %v10583_v28 = vld [vmem:[%s13010_s3 + $0x668] sm:$0xff] }
 0x135   :  { %v10517_v30 = vpack.c.bf16 %v1053_v25, %v1049_v24  ;;  %v712_v34 = vpop.f32.mrb[16].mxu0  ;;  %2998 = vmatpush1.bf16.msra.mxu0 %v7834_v57  ;;  %v10529_v52 = vpack.c.bf16 %v1117_v26, %v1113_v10  ;;  %v792_v6 = vpop.f32.mrb[16].mxu1  ;;  %3384 = vmatpush1.bf16.msra.mxu1 %v7836_v16  ;;  %v10568_v10 = vld [vmem:[%s13010_s3 + $0x660] sm:$0xff]  ;;  %v7861_v24 = vcombine.high %v10546_v15, %v10551_v63 }
 0x136   :  { %13082 = vst [vmem:[#allocation8_spill] sm:$0xff] %v10515_v29  ;;  %v713_v48 = vadd.f32 %v712_v34, %v10237_v54  ;;  %v714_v49 = vpop.f32.mrb[17].mxu0  ;;  %2999 = vmatprep.subr.bf16.mxu0 %v7843_v50  ;;  %v793_v44 = vadd.f32 %v792_v6, %v10237_v54  ;;  %v794_v47 = vpop.f32.mrb[17].mxu1  ;;  %3385 = vmatprep.subr.bf16.mxu1 %v7845_v23  ;;  %v10578_v34 = vld [vmem:[%s13010_s3 + $0x648] sm:$0xff] }
 0x137   :  { %13083 = vst [vmem:[#allocation9_spill] sm:$0xff] %v10529_v52  ;;  %v715_v56 = vadd.f32 %v714_v49, %v10241_v60  ;;  %v716_v57 = vpop.f32.mrb[18].mxu0  ;;  %2856 = vmatprep.mubr.bf16.mxu0 %v10517_v30  ;;  %3242 = vmatprep.mubr.bf16.mxu1 %v10517_v30  ;;  %v795_v58 = vadd.f32 %v794_v47, %v10241_v60  ;;  %v796_v61 = vpop.f32.mrb[18].mxu1  ;;  %v10603_v47 = vld [vmem:[%s13010_s3 + $0x6a0] sm:$0xff] }
 0x138   :  { %v717_v1 = vadd.f32 %v716_v57, %v10237_v54  ;;  %v718_v50 = vpop.f32.mrb[19].mxu0  ;;  %2857 = vmatmul.mubr.bf16.gmra.mrb[44].mxu0 %v10509_v13  ;;  %3243 = vmatmul.mubr.bf16.gmra.mrb[108].mxu1 %v10509_v13  ;;  %v1120_v7 = vmax.f32 %v793_v44, 0.0  ;;  %v797_v8 = vadd.f32 %v796_v61, %v10237_v54  ;;  %v798_v9 = vpop.f32.mrb[19].mxu1  ;;  %v1056_v21 = vmax.f32 %v713_v48, 0.0  ;;  %v10598_v44 = vld [vmem:[%s13010_s3 + $0x680] sm:$0xff] }
 0x139   :  { %v719_v62 = vadd.f32 %v718_v50, %v10241_v60  ;;  %3000 = vmatpush1.bf16.msra.mxu0 %v7842_v27  ;;  %v1121_v5 = vmax.f32 %v795_v58, 0.0  ;;  %v799_v16 = vadd.f32 %v798_v9, %v10241_v60  ;;  %3386 = vmatpush1.bf16.msra.mxu1 %v7844_v45  ;;  %v1057_v25 = vmax.f32 %v715_v56, 0.0 }
 0x13a   :  { %v1060_v22 = vmax.f32 %v717_v1, 0.0  ;;  %3001 = vmatprep.subr.bf16.mxu0 %v7851_v31  ;;  %v1124_v23 = vmax.f32 %v797_v8, 0.0  ;;  %3387 = vmatprep.subr.bf16.mxu1 %v7853_v37  ;;  %v7858_v31 = vcombine.low %v10522_v41, %v10527_v42  ;;  %v7867_v6 = vcombine.high %v10563_v2, %v10568_v10  ;;  %v10627_v8 = vld [vmem:[%s13010_s3 + $0x6a8] sm:$0xff] }
 0x13b   :  { %v1061_v26 = vmax.f32 %v719_v62, 0.0  ;;  %v1125_v27 = vmax.f32 %v799_v16, 0.0  ;;  %v7860_v37 = vcombine.low %v10546_v15, %v10551_v63  ;;  %v7869_v61 = vcombine.high %v10578_v34, %v10583_v28 }
 0x13c   :  { %v10585_v14 = vpack.c.bf16 %v1060_v22, %v1056_v21  ;;  %v10591_v45 = vpack.c.bf16 %v1124_v23, %v1120_v7  ;;  %v7866_v15 = vcombine.low %v10563_v2, %v10568_v10  ;;  %v10622_v7 = vld [vmem:[%s13010_s3 + $0x688] sm:$0xff]  ;;  %v7875_v2 = vcombine.high %v10598_v44, %v10603_v47  ;;  %v10639_v21 = vld [vmem:[%s13010_s3 + $0x6c0] sm:$0xff] }
 0x13d   :  { %v10593_v48 = vpack.c.bf16 %v1061_v26, %v1057_v25  ;;  %v722_v49 = vpop.f32.mrb[20].mxu0  ;;  %3002 = vmatpush1.bf16.msra.mxu0 %v7850_v0  ;;  %v10605_v41 = vpack.c.bf16 %v1125_v27, %v1121_v5  ;;  %v802_v42 = vpop.f32.mrb[20].mxu1  ;;  %3388 = vmatpush1.bf16.msra.mxu1 %v7852_v20  ;;  %v10644_v22 = vld [vmem:[%s13010_s3 + $0x6e0] sm:$0xff]  ;;  %v7868_v25 = vcombine.low %v10578_v34, %v10583_v28  ;;  %v10661_v34 = vld [vmem:[%s13010_s3 + $0x6e8] sm:$0xff] }
 0x13e   :  { %13084 = vst [vmem:[#allocation10_spill] sm:$0xff] %v10591_v45  ;;  %v723_v56 = vadd.f32 %v722_v49, %v10237_v54  ;;  %v724_v57 = vpop.f32.mrb[21].mxu0  ;;  %3003 = vmatprep.subr.bf16.mxu0 %v7859_v4  ;;  %v803_v0 = vadd.f32 %v802_v42, %v10237_v54  ;;  %v804_v58 = vpop.f32.mrb[21].mxu1  ;;  %3389 = vmatprep.subr.bf16.mxu1 %v7861_v24 }
 0x13f   :  { %13085 = vst [vmem:[#allocation11_spill] sm:$0xff] %v10605_v41  ;;  %v725_v1 = vadd.f32 %v724_v57, %v10241_v60  ;;  %v726_v50 = vpop.f32.mrb[22].mxu0  ;;  %2866 = vmatprep.mubr.bf16.mxu0 %v10593_v48  ;;  %3252 = vmatprep.mubr.bf16.mxu1 %v10593_v48  ;;  %v805_v63 = vadd.f32 %v804_v58, %v10241_v60  ;;  %v806_v4 = vpop.f32.mrb[22].mxu1 }
 0x140   :  { %v727_v9 = vadd.f32 %v726_v50, %v10237_v54  ;;  %v728_v62 = vpop.f32.mrb[23].mxu0  ;;  %2867 = vmatmul.mubr.bf16.gmra.mrb[48].mxu0 %v10585_v14  ;;  %3253 = vmatmul.mubr.bf16.gmra.mrb[112].mxu1 %v10585_v14  ;;  %v1128_v10 = vmax.f32 %v803_v0, 0.0  ;;  %v807_v5 = vadd.f32 %v806_v4, %v10237_v54  ;;  %v808_v16 = vpop.f32.mrb[23].mxu1  ;;  %v1064_v26 = vmax.f32 %v723_v56, 0.0 }
 0x141   :  { %v729_v20 = vadd.f32 %v728_v62, %v10241_v60  ;;  %3004 = vmatpush1.bf16.msra.mxu0 %v7858_v31  ;;  %v1129_v23 = vmax.f32 %v805_v63, 0.0  ;;  %v809_v24 = vadd.f32 %v808_v16, %v10241_v60  ;;  %3390 = vmatpush1.bf16.msra.mxu1 %v7860_v37  ;;  %v7877_v49 = vcombine.high %v10622_v7, %v10627_v8  ;;  %v10656_v37 = vld [vmem:[%s13010_s3 + $0x6c8] sm:$0xff] }
 0x142   :  { %v1068_v27 = vmax.f32 %v727_v9, 0.0  ;;  %3005 = vmatprep.subr.bf16.mxu0 %v7867_v6  ;;  %v1132_v31 = vmax.f32 %v807_v5, 0.0  ;;  %3391 = vmatprep.subr.bf16.mxu1 %v7869_v61  ;;  %v1065_v42 = vmax.f32 %v725_v1, 0.0  ;;  %v7874_v0 = vcombine.low %v10598_v44, %v10603_v47  ;;  %v10674_v47 = vld [vmem:[%s13010_s3 + $0x700] sm:$0xff] }
 0x143   :  { %v1069_v57 = vmax.f32 %v729_v20, 0.0  ;;  %v1133_v58 = vmax.f32 %v809_v24, 0.0  ;;  %v7883_v56 = vcombine.high %v10639_v21, %v10644_v22  ;;  %v10679_v61 = vld [vmem:[%s13010_s3 + $0x720] sm:$0xff]  ;;  %v7876_v9 = vcombine.low %v10622_v7, %v10627_v8  ;;  %v10700_v24 = vld [vmem:[%s13010_s3 + $0x708] sm:$0xff] }
 0x144   :  { %v10663_v28 = vpack.c.bf16 %v1068_v27, %v1064_v26  ;;  %v10669_v44 = vpack.c.bf16 %v1132_v31, %v1128_v10  ;;  %v7885_v20 = vcombine.high %v10656_v37, %v10661_v34  ;;  %v7891_v31 = vcombine.high %v10674_v47, %v10679_v61 }
 0x145   :  { %v10681_v1 = vpack.c.bf16 %v1069_v57, %v1065_v42  ;;  %v732_v50 = vpop.f32.mrb[24].mxu0  ;;  %3006 = vmatpush1.bf16.msra.mxu0 %v7866_v15  ;;  %v10683_v63 = vpack.c.bf16 %v1133_v58, %v1129_v23  ;;  %v812_v4 = vpop.f32.mrb[24].mxu1  ;;  %3392 = vmatpush1.bf16.msra.mxu1 %v7868_v25  ;;  %v10705_v25 = vld [vmem:[%s13010_s3 + $0x728] sm:$0xff]  ;;  %v10716_v58 = vld [vmem:[%s13010_s3 + $0x740] sm:$0xff] }
 0x146   :  { %13086 = vst [vmem:[#allocation12_spill] sm:$0xff] %v10663_v28  ;;  %13087 = vst [vmem:[#allocation13_spill] sm:$0xff] %v10669_v44  ;;  %v733_v62 = vadd.f32 %v732_v50, %v10237_v54  ;;  %v734_v10 = vpop.f32.mrb[25].mxu0  ;;  %3007 = vmatprep.subr.bf16.mxu0 %v7875_v2  ;;  %v813_v5 = vadd.f32 %v812_v4, %v10237_v54  ;;  %v814_v16 = vpop.f32.mrb[25].mxu1  ;;  %3393 = vmatprep.subr.bf16.mxu1 %v7877_v49  ;;  %v10721_v50 = vld [vmem:[%s13010_s3 + $0x760] sm:$0xff] }
 0x147   :  { %13088 = vst [vmem:[#allocation14_spill] sm:$0xff] %v10683_v63  ;;  %v735_v15 = vadd.f32 %v734_v10, %v10241_v60  ;;  %v736_v23 = vpop.f32.mrb[26].mxu0  ;;  %2876 = vmatprep.mubr.bf16.mxu0 %v10681_v1  ;;  %3262 = vmatprep.mubr.bf16.mxu1 %v10681_v1  ;;  %v815_v8 = vadd.f32 %v814_v16, %v10241_v60  ;;  %v816_v2 = vpop.f32.mrb[26].mxu1 }
 0x148   :  { %v737_v26 = vadd.f32 %v736_v23, %v10237_v54  ;;  %v738_v27 = vpop.f32.mrb[27].mxu0  ;;  %2877 = vmatmul.mubr.bf16.gmra.mrb[52].mxu0 %v10663_v28  ;;  %3263 = vmatmul.mubr.bf16.gmra.mrb[116].mxu1 %v10663_v28  ;;  %v1136_v49 = vmax.f32 %v813_v5, 0.0  ;;  %v817_v42 = vadd.f32 %v816_v2, %v10237_v54  ;;  %v818_v57 = vpop.f32.mrb[27].mxu1  ;;  %v7884_v5 = vcombine.low %v10656_v37, %v10661_v34  ;;  %v10739_v37 = vld [vmem:[%s13010_s3 + $0x768] sm:$0xff] }
 0x149   :  { %v739_v4 = vadd.f32 %v738_v27, %v10241_v60  ;;  %3008 = vmatpush1.bf16.msra.mxu0 %v7874_v0  ;;  %v1137_v10 = vmax.f32 %v815_v8, 0.0  ;;  %v819_v16 = vadd.f32 %v818_v57, %v10241_v60  ;;  %3394 = vmatpush1.bf16.msra.mxu1 %v7876_v9  ;;  %v1072_v23 = vmax.f32 %v733_v62, 0.0  ;;  %v10734_v9 = vld [vmem:[%s13010_s3 + $0x748] sm:$0xff] }
 0x14a   :  { %v1076_v2 = vmax.f32 %v737_v26, 0.0  ;;  %3009 = vmatprep.subr.bf16.mxu0 %v7883_v56  ;;  %v1140_v51 = vmax.f32 %v817_v42, 0.0  ;;  %3395 = vmatprep.subr.bf16.mxu1 %v7885_v20  ;;  %v7893_v7 = vcombine.high %v10700_v24, %v10705_v25  ;;  %v1073_v6 = vmax.f32 %v735_v15, 0.0  ;;  %v10750_v20 = vld [vmem:[%s13010_s3 + $0x780] sm:$0xff] }
 0x14b   :  { %v1077_v19 = vmax.f32 %v739_v4, 0.0  ;;  %v1141_v12 = vmax.f32 %v819_v16, 0.0  ;;  %v7899_v62 = vcombine.high %v10716_v58, %v10721_v50  ;;  %v10755_v15 = vld [vmem:[%s13010_s3 + $0x7a0] sm:$0xff]  ;;  %v10758_v8 = vsub.s32 2, %v10222_v11 }
 0x14c   :  { %v10741_v34 = vpack.c.bf16 %v1076_v2, %v1072_v23  ;;  %v10743_v56 = vpack.c.bf16 %v1140_v51, %v1136_v49  ;;  %v13093_v27 = vcombine.low %v10639_v21, %v10644_v22  ;;  %v7892_v57 = vcombine.low %v10700_v24, %v10705_v25 }
 0x14d   :  { %13091 = vst [vmem:[#allocation17_spill] sm:$0xff] %v10758_v8  ;;  %v10760_v26 = vpack.c.bf16 %v1077_v19, %v1073_v6  ;;  %v742_v51 = vpop.f32.mrb[28].mxu0  ;;  %v10765_v49 = vpack.c.bf16 %v1141_v12, %v1137_v10  ;;  %v822_v42 = vpop.f32.mrb[28].mxu1  ;;  %3396 = vmatpush1.bf16.msra.mxu1 %v7884_v5  ;;  %v7901_v6 = vcombine.high %v10734_v9, %v10739_v37  ;;  %v1461_v10 = vld [vmem:[%s13010_s3 + $0x7a8] sm:$0xff] }
 0x14e   :  { %13089 = vst [vmem:[#allocation15_spill] sm:$0xff] %v10741_v34  ;;  %13090 = vst [vmem:[#allocation16_spill] sm:$0xff] %v10743_v56  ;;  %3010 = vmatpush1.bf16.msra.mxu0 %v13093_v27  ;;  %v743_v4 = vadd.f32 %v742_v51, %v10237_v54  ;;  %v744_v16 = vpop.f32.mrb[29].mxu0  ;;  %v823_v23 = vadd.f32 %v822_v42, %v10237_v54  ;;  %v824_v19 = vpop.f32.mrb[29].mxu1  ;;  %3397 = vmatprep.subr.bf16.mxu1 %v7893_v7  ;;  %v10785_v7 = vld [vmem:[%s13010_s3 + $0x788] sm:$0xff] }
 0x14f   :  { %13092 = vst [vmem:[#allocation18_spill] sm:$0xff] %v10760_v26  ;;  %13094 = vst [vmem:[#allocation19_spill] sm:$0xff] %v10765_v49  ;;  %3011 = vmatprep.subr.bf16.mxu0 %v7891_v31  ;;  %v745_v21 = vadd.f32 %v744_v16, %v10241_v60  ;;  %v746_v12 = vpop.f32.mrb[30].mxu0  ;;  %2886 = vmatprep.mubr.bf16.mxu0 %v10760_v26  ;;  %v825_v22 = vadd.f32 %v824_v19, %v10241_v60  ;;  %v826_v24 = vpop.f32.mrb[30].mxu1  ;;  %v10780_v31 = vsub.s32 3, %v10222_v11 }
 0x150   :  { %3272 = vmatprep.mubr.bf16.mxu1 %v10760_v26  ;;  %v7907_v25 = vcombine.high %v10750_v20, %v10755_v15  ;;  %v747_v5 = vadd.f32 %v746_v12, %v10237_v54  ;;  %v748_v2 = vpop.f32.mrb[31].mxu0  ;;  %2887 = vmatmul.mubr.bf16.gmra.mrb[56].mxu0 %v10741_v34  ;;  %v1144_v51 = vmax.f32 %v823_v23, 0.0  ;;  %v827_v27 = vadd.f32 %v826_v24, %v10237_v54  ;;  %v828_v42 = vpop.f32.mrb[31].mxu1 }
 0x151   :  { %13095 = vst [vmem:[#allocation20_spill] sm:$0xff] %v10780_v31  ;;  %3273 = vmatmul.mubr.bf16.gmra.mrb[120].mxu1 %v10741_v34  ;;  %v10796_v16 = vrot.slane %v10230_v18, %v10758_v8  ;;  %v749_v19 = vadd.f32 %v748_v2, %v10241_v60  ;;  %v13096_v0 = vcombine.low %v10674_v47, %v10679_v61  ;;  %v1145_v12 = vmax.f32 %v825_v22, 0.0 }
 0x152   :  { %v829_v11 = vadd.f32 %v828_v42, %v10241_v60  ;;  %3398 = vmatpush1.bf16.msra.mxu1 %v7892_v57  ;;  %v7900_v23 = vcombine.low %v10734_v9, %v10739_v37  ;;  %v1080_v34 = vmax.f32 %v743_v4, 0.0  ;;  %v1084_v54 = vmax.f32 %v747_v5, 0.0  ;;  %v1464_v60 = vld [vmem:[%s13010_s3 + $0x7c0] sm:$0xff]  ;;  %v10854_v5 = vld [vmem:[%s13010_s3 + $0x38] sm:$0xff] }
 0x153   :  { %3012 = vmatpush1.bf16.msra.mxu0 %v13096_v0  ;;  %v1148_v24 = vmax.f32 %v827_v27, 0.0  ;;  %3399 = vmatprep.subr.bf16.mxu1 %v7901_v6  ;;  %v7909_v8 = vcombine.high %v10785_v7, %v1461_v10  ;;  %v1081_v26 = vmax.f32 %v745_v21, 0.0  ;;  %v1085_v2 = vmax.f32 %v749_v19, 0.0  ;;  %v1468_v9 = vld [vmem:[%s13010_s3 + $0x7e0] sm:$0xff] }
 0x154   :  { %3013 = vmatprep.subr.bf16.mxu0 %v7899_v62  ;;  %v1149_v28 = vmax.f32 %v829_v11, 0.0  ;;  %v10808_v47 = vrot.slane %v10230_v18, %v10780_v31  ;;  %v10813_v61 = vpack.c.bf16 %v1084_v54, %v1080_v34  ;;  %v1465_v11 = vld [vmem:[%s13010_s3 + $0x7c8] sm:$0xff]  ;;  %v13098_v34 = vcombine.low %v10716_v58, %v10721_v50 }
 0x155   :  { %v10815_v0 = vpack.c.bf16 %v1148_v24, %v1144_v51  ;;  %v1469_v18 = vld [vmem:[%s13010_s3 + $0x7e8] sm:$0xff]  ;;  %v10826_v37 = vpack.c.bf16 %v1085_v2, %v1081_v26  ;;  %v865_v57 = vpop.f32.mrb[32].mxu1  ;;  %v7906_v4 = vcombine.low %v10750_v20, %v10755_v15  ;;  %v7908_v22 = vcombine.low %v10785_v7, %v1461_v10  ;;  %v10849_v10 = vld [vmem:[%s13010_s3 + $0x18] sm:$0xff] }
 0x156   :  { %v10831_v62 = vpack.c.bf16 %v1149_v28, %v1145_v12  ;;  %3400 = vmatpush1.bf16.msra.mxu1 %v7900_v23  ;;  %v866_v6 = vadd.f32 %v865_v57, %v10796_v16  ;;  %v867_v21 = vpop.f32.mrb[33].mxu1  ;;  %v7915_v50 = vcombine.high %v1464_v60, %v1468_v9  ;;  %v7917_v26 = vcombine.high %v1465_v11, %v1469_v18 }
 0x157   :  { %13097 = vst [vmem:[#allocation21_spill] sm:$0xff] %v10815_v0  ;;  %3014 = vmatpush1.bf16.msra.mxu0 %v13098_v34  ;;  %3401 = vmatprep.subr.bf16.mxu1 %v7909_v8  ;;  %v868_v58 = vadd.f32 %v867_v21, %v10808_v47  ;;  %v869_v28 = vpop.f32.mrb[34].mxu1  ;;  %v7914_v27 = vcombine.low %v1464_v60, %v1468_v9 }
 0x158   :  { %13099 = vst [vmem:[#allocation22_spill] sm:$0xff] %v10831_v62  ;;  %3015 = vmatprep.subr.bf16.mxu0 %v7907_v25  ;;  %2896 = vmatprep.mubr.bf16.mxu0 %v10826_v37  ;;  %v1026_v20 = vmax.f32 %v866_v6, 0.0  ;;  %v870_v15 = vadd.f32 %v869_v28, %v10796_v16  ;;  %v871_v25 = vpop.f32.mrb[35].mxu1  ;;  %v7916_v42 = vcombine.low %v1465_v11, %v1469_v18 }
 0x159   :  { %3282 = vmatprep.mubr.bf16.mxu1 %v10826_v37  ;;  %2897 = vmatmul.mubr.bf16.gmra.mrb[60].mxu0 %v10813_v61  ;;  %v1027_v8 = vmax.f32 %v868_v58, 0.0  ;;  %v872_v7 = vadd.f32 %v871_v25, %v10808_v47  ;;  %v7671_v23 = vcombine.high %v10254_v38, %v10264_v43  ;;  %v7673_v54 = vcombine.high %v10849_v10, %v10854_v5 }
 0x15a   :  { %3283 = vmatmul.mubr.bf16.gmra.mrb[124].mxu1 %v10813_v61  ;;  %2906 = vmatprep.mubr.bf16.mxu0 %v10297_v59  ;;  %v1030_v51 = vmax.f32 %v870_v15, 0.0 }
 0x15b   :  { %3292 = vmatprep.mubr.bf16.mxu1 %v10297_v59  ;;  %3016 = vmatpush1.bf16.msra.mxu0 %v7906_v4  ;;  %v1031_v12 = vmax.f32 %v872_v7, 0.0 }
 0x15c   :  { %3402 = vmatpush1.bf16.msra.mxu1 %v7908_v22  ;;  %3017 = vmatprep.subr.bf16.mxu0 %v7915_v50  ;;  %v10862_v24 = vpack.c.bf16 %v1030_v51, %v1026_v20 }
 0x15d   :  { %3403 = vmatprep.subr.bf16.mxu1 %v7917_v26  ;;  %v10864_v2 = vpack.c.bf16 %v1031_v12, %v1027_v8  ;;  %v875_v34 = vpop.f32.mrb[36].mxu1 }
 0x15e   :  { %13100 = vst [vmem:[#allocation23_spill] sm:$0xff] %v10862_v24  ;;  %v876_v60 = vadd.f32 %v875_v34, %v10796_v16  ;;  %v877_v9 = vpop.f32.mrb[37].mxu1 }
 0x15f   :  { %13101 = vst [vmem:[#allocation24_spill] sm:$0xff] %v10864_v2  ;;  %3018 = vmatpush1.bf16.msra.mxu0 %v7914_v27  ;;  %v878_v11 = vadd.f32 %v877_v9, %v10808_v47  ;;  %v879_v18 = vpop.f32.mrb[38].mxu1 }
 0x160   :  { %3404 = vmatpush1.bf16.msra.mxu1 %v7916_v42  ;;  %3566 = vmatprep.subr.bf16.mxu0 %v7671_v23  ;;  %v1034_v57 = vmax.f32 %v876_v60, 0.0  ;;  %v880_v4 = vadd.f32 %v879_v18, %v10796_v16  ;;  %v881_v6 = vpop.f32.mrb[39].mxu1 }
 0x161   :  { %3952 = vmatprep.subr.bf16.mxu1 %v7673_v54  ;;  %2907 = vmatmul.mubr.bf16.gmra.mrb[64].mxu0 %v10283_v55  ;;  %v1035_v21 = vmax.f32 %v878_v11, 0.0  ;;  %v882_v22 = vadd.f32 %v881_v6, %v10808_v47 }
 0x162   :  { %3293 = vmatmul.mubr.bf16.gmra.mrb[128].mxu1 %v10283_v55  ;;  %2916 = vmatprep.mubr.bf16.mxu0 %v10377_v46  ;;  %v1038_v58 = vmax.f32 %v880_v4, 0.0 }
 0x163   :  { %3302 = vmatprep.mubr.bf16.mxu1 %v10377_v46  ;;  %v1039_v28 = vmax.f32 %v882_v22, 0.0 }
 0x164   :  { %v10874_v50 = vpack.c.bf16 %v1038_v58, %v1034_v57 }
 0x165   :  { %v10876_v26 = vpack.c.bf16 %v1039_v28, %v1035_v21  ;;  %v885_v20 = vpop.f32.mrb[40].mxu1 }
 0x166   :  { %v886_v15 = vadd.f32 %v885_v20, %v10796_v16  ;;  %v887_v25 = vpop.f32.mrb[41].mxu1 }
 0x167   :  { %v888_v8 = vadd.f32 %v887_v25, %v10808_v47  ;;  %v889_v7 = vpop.f32.mrb[42].mxu1 }
 0x168   :  { %v1042_v51 = vmax.f32 %v886_v15, 0.0  ;;  %v890_v27 = vadd.f32 %v889_v7, %v10796_v16  ;;  %v891_v42 = vpop.f32.mrb[43].mxu1 }
 0x169   :  { %2917 = vmatmul.mubr.bf16.gmra.mrb[68].mxu0 %v10363_v39  ;;  %v1043_v12 = vmax.f32 %v888_v8, 0.0  ;;  %v892_v23 = vadd.f32 %v891_v42, %v10808_v47 }
 0x16a   :  { %3303 = vmatmul.mubr.bf16.gmra.mrb[132].mxu1 %v10363_v39  ;;  %2926 = vmatprep.mubr.bf16.mxu0 %v10453_v36  ;;  %v1046_v54 = vmax.f32 %v890_v27, 0.0 }
 0x16b   :  { %3312 = vmatprep.mubr.bf16.mxu1 %v10453_v36  ;;  %v1047_v34 = vmax.f32 %v892_v23, 0.0 }
 0x16c   :  { %v10886_v60 = vpack.c.bf16 %v1046_v54, %v1042_v51 }
 0x16d   :  { %v10888_v9 = vpack.c.bf16 %v1047_v34, %v1043_v12  ;;  %v895_v11 = vpop.f32.mrb[44].mxu1 }
 0x16e   :  { %13102 = vst [vmem:[#allocation25_spill] sm:$0xff] %v10886_v60  ;;  %v896_v18 = vadd.f32 %v895_v11, %v10796_v16  ;;  %v897_v57 = vpop.f32.mrb[45].mxu1 }
 0x16f   :  { %13103 = vst [vmem:[#allocation26_spill] sm:$0xff] %v10888_v9  ;;  %v898_v4 = vadd.f32 %v897_v57, %v10808_v47  ;;  %v899_v6 = vpop.f32.mrb[46].mxu1 }
 0x170   :  { %v1050_v21 = vmax.f32 %v896_v18, 0.0  ;;  %v900_v22 = vadd.f32 %v899_v6, %v10796_v16  ;;  %v901_v58 = vpop.f32.mrb[47].mxu1 }
 0x171   :  { %2927 = vmatmul.mubr.bf16.gmra.mrb[72].mxu0 %v10439_v32  ;;  %v1051_v28 = vmax.f32 %v898_v4, 0.0  ;;  %v902_v20 = vadd.f32 %v901_v58, %v10808_v47 }
 0x172   :  { %3313 = vmatmul.mubr.bf16.gmra.mrb[136].mxu1 %v10439_v32  ;;  %2936 = vmatprep.mubr.bf16.mxu0 %v10529_v52  ;;  %v1054_v15 = vmax.f32 %v900_v22, 0.0 }
 0x173   :  { %3322 = vmatprep.mubr.bf16.mxu1 %v10529_v52  ;;  %v1055_v25 = vmax.f32 %v902_v20, 0.0 }
 0x174   :  { %v10898_v8 = vpack.c.bf16 %v1054_v15, %v1050_v21 }
 0x175   :  { %v10900_v7 = vpack.c.bf16 %v1055_v25, %v1051_v28  ;;  %v905_v51 = vpop.f32.mrb[48].mxu1 }
 0x176   :  { %13104 = vst [vmem:[#allocation27_spill] sm:$0xff] %v10898_v8  ;;  %v906_v27 = vadd.f32 %v905_v51, %v10796_v16  ;;  %v907_v42 = vpop.f32.mrb[49].mxu1 }
 0x177   :  { %13105 = vst [vmem:[#allocation28_spill] sm:$0xff] %v10900_v7  ;;  %v908_v12 = vadd.f32 %v907_v42, %v10808_v47  ;;  %v909_v23 = vpop.f32.mrb[50].mxu1 }
 0x178   :  { %v1058_v54 = vmax.f32 %v906_v27, 0.0  ;;  %v910_v34 = vadd.f32 %v909_v23, %v10796_v16  ;;  %v911_v11 = vpop.f32.mrb[51].mxu1 }
 0x179   :  { %2937 = vmatmul.mubr.bf16.gmra.mrb[76].mxu0 %v10515_v29  ;;  %v1059_v18 = vmax.f32 %v908_v12, 0.0  ;;  %v912_v57 = vadd.f32 %v911_v11, %v10808_v47 }
 0x17a   :  { %3323 = vmatmul.mubr.bf16.gmra.mrb[140].mxu1 %v10515_v29  ;;  %2946 = vmatprep.mubr.bf16.mxu0 %v10605_v41  ;;  %v1062_v4 = vmax.f32 %v910_v34, 0.0 }
 0x17b   :  { %3332 = vmatprep.mubr.bf16.mxu1 %v10605_v41  ;;  %v1063_v6 = vmax.f32 %v912_v57, 0.0 }
 0x17c   :  { %v10910_v21 = vpack.c.bf16 %v1062_v4, %v1058_v54 }
 0x17d   :  { %v10912_v22 = vpack.c.bf16 %v1063_v6, %v1059_v18  ;;  %v915_v58 = vpop.f32.mrb[52].mxu1 }
 0x17e   :  { %13106 = vst [vmem:[#allocation29_spill] sm:$0xff] %v10910_v21  ;;  %v916_v28 = vadd.f32 %v915_v58, %v10796_v16  ;;  %v917_v20 = vpop.f32.mrb[53].mxu1 }
 0x17f   :  { %13107 = vst [vmem:[#allocation30_spill] sm:$0xff] %v10912_v22  ;;  %v918_v15 = vadd.f32 %v917_v20, %v10808_v47  ;;  %v919_v25 = vpop.f32.mrb[54].mxu1 }
 0x180   :  { %v1066_v51 = vmax.f32 %v916_v28, 0.0  ;;  %v920_v27 = vadd.f32 %v919_v25, %v10796_v16  ;;  %v921_v42 = vpop.f32.mrb[55].mxu1 }
 0x181   :  { %2947 = vmatmul.mubr.bf16.gmra.mrb[80].mxu0 %v10591_v45  ;;  %v1067_v12 = vmax.f32 %v918_v15, 0.0  ;;  %v922_v23 = vadd.f32 %v921_v42, %v10808_v47 }
 0x182   :  { %3333 = vmatmul.mubr.bf16.gmra.mrb[144].mxu1 %v10591_v45  ;;  %2956 = vmatprep.mubr.bf16.mxu0 %v10683_v63  ;;  %v1070_v54 = vmax.f32 %v920_v27, 0.0  ;;  %v13112_v45 = vcombine.low %v10254_v38, %v10264_v43  ;;  %v1235_v38 = vld [vmem:[%s13010_s3 + $0x98] sm:$0xff] }
 0x183   :  { %3342 = vmatprep.mubr.bf16.mxu1 %v10683_v63  ;;  %v1071_v34 = vmax.f32 %v922_v23, 0.0  ;;  %v1239_v43 = vld [vmem:[%s13010_s3 + $0xb8] sm:$0xff] }
 0x184   :  { %v10922_v11 = vpack.c.bf16 %v1070_v54, %v1066_v51 }
 0x185   :  { %v10924_v18 = vpack.c.bf16 %v1071_v34, %v1067_v12  ;;  %v925_v57 = vpop.f32.mrb[56].mxu1 }
 0x186   :  { %13108 = vst [vmem:[#allocation31_spill] sm:$0xff] %v10922_v11  ;;  %v926_v4 = vadd.f32 %v925_v57, %v10796_v16  ;;  %v927_v6 = vpop.f32.mrb[57].mxu1 }
 0x187   :  { %13109 = vst [vmem:[#allocation32_spill] sm:$0xff] %v10924_v18  ;;  %v928_v58 = vadd.f32 %v927_v6, %v10808_v47  ;;  %v929_v28 = vpop.f32.mrb[58].mxu1 }
 0x188   :  { %v1074_v20 = vmax.f32 %v926_v4, 0.0  ;;  %v930_v15 = vadd.f32 %v929_v28, %v10796_v16  ;;  %v931_v25 = vpop.f32.mrb[59].mxu1 }
 0x189   :  { %2957 = vmatmul.mubr.bf16.gmra.mrb[84].mxu0 %v10669_v44  ;;  %v1075_v51 = vmax.f32 %v928_v58, 0.0  ;;  %v932_v27 = vadd.f32 %v931_v25, %v10808_v47 }
 0x18a   :  { %3343 = vmatmul.mubr.bf16.gmra.mrb[148].mxu1 %v10669_v44  ;;  %2966 = vmatprep.mubr.bf16.mxu0 %v10765_v49  ;;  %v1078_v42 = vmax.f32 %v930_v15, 0.0 }
 0x18b   :  { %3352 = vmatprep.mubr.bf16.mxu1 %v10765_v49  ;;  %v1079_v12 = vmax.f32 %v932_v27, 0.0 }
 0x18c   :  { %v10934_v23 = vpack.c.bf16 %v1078_v42, %v1074_v20 }
 0x18d   :  { %v10936_v54 = vpack.c.bf16 %v1079_v12, %v1075_v51  ;;  %v935_v34 = vpop.f32.mrb[60].mxu1 }
 0x18e   :  { %v936_v57 = vadd.f32 %v935_v34, %v10796_v16  ;;  %v937_v4 = vpop.f32.mrb[61].mxu1 }
 0x18f   :  { %13110 = vst [vmem:[#allocation33_spill] sm:$0xff] %v10936_v54  ;;  %v938_v6 = vadd.f32 %v937_v4, %v10808_v47  ;;  %v939_v28 = vpop.f32.mrb[62].mxu1 }
 0x190   :  { %v1082_v58 = vmax.f32 %v936_v57, 0.0  ;;  %v940_v25 = vadd.f32 %v939_v28, %v10796_v16  ;;  %v941_v15 = vpop.f32.mrb[63].mxu1 }
 0x191   :  { %2967 = vmatmul.mubr.bf16.gmra.mrb[88].mxu0 %v10743_v56  ;;  %v1083_v20 = vmax.f32 %v938_v6, 0.0  ;;  %v942_v51 = vadd.f32 %v941_v15, %v10808_v47 }
 0x192   :  { %3353 = vmatmul.mubr.bf16.gmra.mrb[152].mxu1 %v10743_v56  ;;  %2976 = vmatprep.mubr.bf16.mxu0 %v10831_v62  ;;  %v1086_v27 = vmax.f32 %v940_v25, 0.0 }
 0x193   :  { %3362 = vmatprep.mubr.bf16.mxu1 %v10831_v62  ;;  %v1087_v42 = vmax.f32 %v942_v51, 0.0  ;;  %v10961_v51 = vld [vmem:[%s13010_s3 + $0x410] sm:$0xff] }
 0x194   :  { %v10946_v12 = vpack.c.bf16 %v1086_v27, %v1082_v58 }
 0x195   :  { %v10948_v34 = vpack.c.bf16 %v1087_v42, %v1083_v20  ;;  %v945_v4 = vpop.f32.mrb[64].mxu1  ;;  %v1230_v42 = vld [vmem:[%s13010_s3 + $0x70] sm:$0xff] }
 0x196   :  { %v946_v19 = vadd.f32 %v945_v4, %v10796_v16  ;;  %v947_v57 = vpop.f32.mrb[65].mxu1 }
 0x197   :  { %13111 = vst [vmem:[#allocation34_spill] sm:$0xff] %v10948_v34  ;;  %v948_v28 = vadd.f32 %v947_v57, %v10808_v47  ;;  %v949_v56 = vpop.f32.mrb[66].mxu1 }
 0x198   :  { %v1090_v6 = vmax.f32 %v946_v19, 0.0  ;;  %v950_v15 = vadd.f32 %v949_v56, %v10796_v16  ;;  %v951_v25 = vpop.f32.mrb[67].mxu1  ;;  %v10966_v19 = vld [vmem:[%s13010_s3 + $0x430] sm:$0xff] }
 0x199   :  { %2977 = vmatmul.mubr.bf16.gmra.mrb[92].mxu0 %v10815_v0  ;;  %v1091_v58 = vmax.f32 %v948_v28, 0.0  ;;  %v952_v20 = vadd.f32 %v951_v25, %v10808_v47  ;;  %v1226_v56 = vld [vmem:[%s13010_s3 + $0x50] sm:$0xff] }
 0x19a   :  { %3363 = vmatmul.mubr.bf16.gmra.mrb[156].mxu1 %v10815_v0  ;;  %3019 = vmatprep.mubr.bf16.mxu0 %v10864_v2  ;;  %v1094_v27 = vmax.f32 %v950_v15, 0.0  ;;  %v1231_v0 = vld [vmem:[%s13010_s3 + $0x78] sm:$0xff]  ;;  %v7679_v62 = vcombine.high %v1226_v56, %v1230_v42  ;;  %v7678_v41 = vcombine.low %v1226_v56, %v1230_v42 }
 0x19b   :  { %3405 = vmatprep.mubr.bf16.mxu1 %v10864_v2  ;;  %v1095_v4 = vmax.f32 %v952_v20, 0.0  ;;  %v1227_v2 = vld [vmem:[%s13010_s3 + $0x58] sm:$0xff] }
 0x19c   :  { %v10976_v28 = vpack.c.bf16 %v1094_v27, %v1090_v6  ;;  %v1234_v6 = vld [vmem:[%s13010_s3 + $0x90] sm:$0xff]  ;;  %v7681_v63 = vcombine.high %v1227_v2, %v1231_v0  ;;  %v7680_v52 = vcombine.low %v1227_v2, %v1231_v0  ;;  %v1247_v2 = vld [vmem:[%s13010_s3 + $0xf8] sm:$0xff] }
 0x19d   :  { %v10978_v15 = vpack.c.bf16 %v1095_v4, %v1091_v58  ;;  %v955_v25 = vpop.f32.mrb[68].mxu1  ;;  %v1238_v58 = vld [vmem:[%s13010_s3 + $0xb0] sm:$0xff] }
 0x19e   :  { %v956_v49 = vadd.f32 %v955_v25, %v10796_v16  ;;  %v957_v20 = vpop.f32.mrb[69].mxu1  ;;  %v7687_v31 = vcombine.high %v1234_v6, %v1238_v58  ;;  %v7686_v56 = vcombine.low %v1234_v6, %v1238_v58 }
 0x19f   :  { %v958_v27 = vadd.f32 %v957_v20, %v10808_v47  ;;  %v959_v4 = vpop.f32.mrb[70].mxu1 }
 0x1a0   :  { %v1098_v57 = vmax.f32 %v956_v49, 0.0  ;;  %v960_v44 = vadd.f32 %v959_v4, %v10796_v16  ;;  %v961_v25 = vpop.f32.mrb[71].mxu1  ;;  %v13113_v4 = vcombine.low %v10849_v10, %v10854_v5  ;;  %v1243_v5 = vld [vmem:[%s13010_s3 + $0xd8] sm:$0xff] }
 0x1a1   :  { %3020 = vmatmul.mubr.bf16.vlgmr.msra.gmra.mrb[32].mxu0 %v10862_v24  ;;  %v1099_v29 = vmax.f32 %v958_v27, 0.0  ;;  %v962_v20 = vadd.f32 %v961_v25, %v10808_v47  ;;  %v1250_v25 = vld [vmem:[%s13010_s3 + $0x110] sm:$0xff] }
 0x1a2   :  { %3406 = vmatmul.mubr.bf16.vlgmr.msra.gmra.mrb[96].mxu1 %v10862_v24  ;;  %3567 = vmatpush1.bf16.msra.mxu0 %v13112_v45  ;;  %v1102_v24 = vmax.f32 %v960_v44, 0.0  ;;  %v1242_v45 = vld [vmem:[%s13010_s3 + $0xd0] sm:$0xff] }
 0x1a3   :  { %3029 = vmatprep.mubr.bf16.mxu0 %v10876_v26  ;;  %3415 = vmatprep.mubr.bf16.mxu1 %v10876_v26  ;;  %v1103_v49 = vmax.f32 %v962_v20, 0.0  ;;  %v1246_v44 = vld [vmem:[%s13010_s3 + $0xf0] sm:$0xff] }
 0x1a4   :  { %3568 = vmatprep.subr.bf16.mxu0 %v7679_v62  ;;  %3953 = vmatpush1.bf16.msra.mxu1 %v13113_v4  ;;  %v11018_v62 = vpack.c.bf16 %v1102_v24, %v1098_v57  ;;  %v7689_v24 = vcombine.high %v1235_v38, %v1239_v43  ;;  %v7695_v57 = vcombine.high %v1242_v45, %v1246_v44 }
 0x1a5   :  { %3954 = vmatprep.subr.bf16.mxu1 %v7681_v63  ;;  %v11020_v0 = vpack.c.bf16 %v1103_v49, %v1099_v29  ;;  %v965_v10 = vpop.f32.mrb[72].mxu1  ;;  %v7688_v63 = vcombine.low %v1235_v38, %v1239_v43  ;;  %v7697_v49 = vcombine.high %v1243_v5, %v1247_v2  ;;  %v7694_v38 = vcombine.low %v1242_v45, %v1246_v44  ;;  %v1262_v45 = vld [vmem:[%s13010_s3 + $0x170] sm:$0xff] }
 0x1a6   :  { %3569 = vmatpush1.bf16.msra.mxu0 %v7678_v41  ;;  %v966_v42 = vadd.f32 %v965_v10, %v10796_v16  ;;  %v967_v27 = vpop.f32.mrb[73].mxu1 }
 0x1a7   :  { %3570 = vmatprep.subr.bf16.mxu0 %v7687_v31  ;;  %v968_v41 = vadd.f32 %v967_v27, %v10808_v47  ;;  %v969_v29 = vpop.f32.mrb[74].mxu1  ;;  %v1254_v31 = vld [vmem:[%s13010_s3 + $0x130] sm:$0xff] }
 0x1a8   :  { %3955 = vmatpush1.bf16.msra.mxu1 %v7680_v52  ;;  %v1106_v6 = vmax.f32 %v966_v42, 0.0  ;;  %v970_v58 = vadd.f32 %v969_v29, %v10796_v16  ;;  %v971_v20 = vpop.f32.mrb[75].mxu1  ;;  %v7703_v10 = vcombine.high %v1250_v25, %v1254_v31  ;;  %v7696_v42 = vcombine.low %v1243_v5, %v1247_v2  ;;  %v1251_v29 = vld [vmem:[%s13010_s3 + $0x118] sm:$0xff] }
 0x1a9   :  { %3030 = vmatmul.mubr.bf16.gmra.mrb[36].mxu0 %v10874_v50  ;;  %v1107_v52 = vmax.f32 %v968_v41, 0.0  ;;  %v972_v4 = vadd.f32 %v971_v20, %v10808_v47  ;;  %3956 = vmatprep.subr.bf16.mxu1 %v7689_v24  ;;  %v1259_v24 = vld [vmem:[%s13010_s3 + $0x158] sm:$0xff]  ;;  %v7702_v41 = vcombine.low %v1250_v25, %v1254_v31  ;;  %v1270_v25 = vld [vmem:[%s13010_s3 + $0x1b0] sm:$0xff] }
 0x1aa   :  { %3416 = vmatmul.mubr.bf16.gmra.mrb[100].mxu1 %v10874_v50  ;;  %3039 = vmatprep.mubr.bf16.mxu0 %v10888_v9  ;;  %v1110_v43 = vmax.f32 %v970_v58, 0.0 }
 0x1ab   :  { %3425 = vmatprep.mubr.bf16.mxu1 %v10888_v9  ;;  %3571 = vmatpush1.bf16.msra.mxu0 %v7686_v56  ;;  %v1111_v27 = vmax.f32 %v972_v4, 0.0  ;;  %v1255_v9 = vld [vmem:[%s13010_s3 + $0x138] sm:$0xff]  ;;  %v1258_v56 = vld [vmem:[%s13010_s3 + $0x150] sm:$0xff] }
 0x1ac   :  { %3572 = vmatprep.subr.bf16.mxu0 %v7695_v57  ;;  %3957 = vmatpush1.bf16.msra.mxu1 %v7688_v63  ;;  %v11054_v44 = vpack.c.bf16 %v1110_v43, %v1106_v6  ;;  %v1263_v57 = vld [vmem:[%s13010_s3 + $0x178] sm:$0xff]  ;;  %v7705_v20 = vcombine.high %v1251_v29, %v1255_v9  ;;  %v7711_v6 = vcombine.high %v1258_v56, %v1262_v45 }
 0x1ad   :  { %3958 = vmatprep.subr.bf16.mxu1 %v7697_v49  ;;  %v11056_v5 = vpack.c.bf16 %v1111_v27, %v1107_v52  ;;  %v975_v2 = vpop.f32.mrb[76].mxu1  ;;  %v7704_v4 = vcombine.low %v1251_v29, %v1255_v9  ;;  %v7713_v27 = vcombine.high %v1259_v24, %v1263_v57  ;;  %v7710_v29 = vcombine.low %v1258_v56, %v1262_v45  ;;  %v1278_v56 = vld [vmem:[%s13010_s3 + $0x1f0] sm:$0xff] }
 0x1ae   :  { %v976_v63 = vadd.f32 %v975_v2, %v10796_v16  ;;  %v977_v58 = vpop.f32.mrb[77].mxu1 }
 0x1af   :  { %3573 = vmatpush1.bf16.msra.mxu0 %v7694_v38  ;;  %v978_v49 = vadd.f32 %v977_v58, %v10808_v47  ;;  %v979_v52 = vpop.f32.mrb[78].mxu1  ;;  %v1266_v38 = vld [vmem:[%s13010_s3 + $0x190] sm:$0xff] }
 0x1b0   :  { %3574 = vmatprep.subr.bf16.mxu0 %v7703_v10  ;;  %3959 = vmatpush1.bf16.msra.mxu1 %v7696_v42  ;;  %v1114_v31 = vmax.f32 %v976_v63, 0.0  ;;  %v980_v43 = vadd.f32 %v979_v52, %v10796_v16  ;;  %v981_v10 = vpop.f32.mrb[79].mxu1  ;;  %v7719_v58 = vcombine.high %v1266_v38, %v1270_v25  ;;  %v7712_v63 = vcombine.low %v1259_v24, %v1263_v57  ;;  %v1267_v52 = vld [vmem:[%s13010_s3 + $0x198] sm:$0xff] }
 0x1b1   :  { %3040 = vmatmul.mubr.bf16.gmra.mrb[40].mxu0 %v10886_v60  ;;  %v1115_v9 = vmax.f32 %v978_v49, 0.0  ;;  %v982_v42 = vadd.f32 %v981_v10, %v10808_v47  ;;  %3960 = vmatprep.subr.bf16.mxu1 %v7705_v20  ;;  %v1275_v20 = vld [vmem:[%s13010_s3 + $0x1d8] sm:$0xff]  ;;  %v7718_v49 = vcombine.low %v1266_v38, %v1270_v25  ;;  %v1286_v38 = vld [vmem:[%s13010_s3 + $0x230] sm:$0xff] }
 0x1b2   :  { %3426 = vmatmul.mubr.bf16.gmra.mrb[104].mxu1 %v10886_v60  ;;  %3049 = vmatprep.mubr.bf16.mxu0 %v10900_v7  ;;  %v1118_v2 = vmax.f32 %v980_v43, 0.0 }
 0x1b3   :  { %3435 = vmatprep.mubr.bf16.mxu1 %v10900_v7  ;;  %3575 = vmatpush1.bf16.msra.mxu0 %v7702_v41  ;;  %v1119_v60 = vmax.f32 %v982_v42, 0.0  ;;  %v1271_v7 = vld [vmem:[%s13010_s3 + $0x1b8] sm:$0xff]  ;;  %v1274_v41 = vld [vmem:[%s13010_s3 + $0x1d0] sm:$0xff] }
 0x1b4   :  { %3576 = vmatprep.subr.bf16.mxu0 %v7711_v6  ;;  %3961 = vmatpush1.bf16.msra.mxu1 %v7704_v4  ;;  %v11090_v45 = vpack.c.bf16 %v1118_v2, %v1114_v31  ;;  %v1279_v6 = vld [vmem:[%s13010_s3 + $0x1f8] sm:$0xff]  ;;  %v7721_v10 = vcombine.high %v1267_v52, %v1271_v7  ;;  %v7727_v31 = vcombine.high %v1274_v41, %v1278_v56  ;;  %v1282_v42 = vld [vmem:[%s13010_s3 + $0x210] sm:$0xff] }
 0x1b5   :  { %3962 = vmatprep.subr.bf16.mxu1 %v7713_v27  ;;  %v11092_v24 = vpack.c.bf16 %v1119_v60, %v1115_v9  ;;  %v985_v57 = vpop.f32.mrb[80].mxu1  ;;  %v7720_v9 = vcombine.low %v1267_v52, %v1271_v7  ;;  %v7726_v52 = vcombine.low %v1274_v41, %v1278_v56  ;;  %v1294_v41 = vld [vmem:[%s13010_s3 + $0x270] sm:$0xff] }
 0x1b6   :  { %v986_v4 = vadd.f32 %v985_v57, %v10796_v16  ;;  %v987_v43 = vpop.f32.mrb[81].mxu1 }
 0x1b7   :  { %3577 = vmatpush1.bf16.msra.mxu0 %v7710_v29  ;;  %v988_v60 = vadd.f32 %v987_v43, %v10808_v47  ;;  %v989_v27 = vpop.f32.mrb[82].mxu1  ;;  %v7735_v43 = vcombine.high %v1282_v42, %v1286_v38 }
 0x1b8   :  { %3578 = vmatprep.subr.bf16.mxu0 %v7719_v58  ;;  %3963 = vmatpush1.bf16.msra.mxu1 %v7712_v63  ;;  %v1122_v25 = vmax.f32 %v986_v4, 0.0  ;;  %v990_v29 = vadd.f32 %v989_v27, %v10796_v16  ;;  %v991_v2 = vpop.f32.mrb[83].mxu1  ;;  %v7729_v58 = vcombine.high %v1275_v20, %v1279_v6  ;;  %v7728_v4 = vcombine.low %v1275_v20, %v1279_v6  ;;  %v1283_v27 = vld [vmem:[%s13010_s3 + $0x218] sm:$0xff] }
 0x1b9   :  { %3050 = vmatmul.mubr.bf16.gmra.mrb[44].mxu0 %v10898_v8  ;;  %v1123_v7 = vmax.f32 %v988_v60, 0.0  ;;  %v992_v63 = vadd.f32 %v991_v2, %v10808_v47  ;;  %3964 = vmatprep.subr.bf16.mxu1 %v7721_v10  ;;  %v1291_v10 = vld [vmem:[%s13010_s3 + $0x258] sm:$0xff]  ;;  %v7734_v60 = vcombine.low %v1282_v42, %v1286_v38  ;;  %v1302_v42 = vld [vmem:[%s13010_s3 + $0x2b0] sm:$0xff] }
 0x1ba   :  { %3436 = vmatmul.mubr.bf16.gmra.mrb[108].mxu1 %v10898_v8  ;;  %3059 = vmatprep.mubr.bf16.mxu0 %v10912_v22  ;;  %v1126_v57 = vmax.f32 %v990_v29, 0.0 }
 0x1bb   :  { %3445 = vmatprep.mubr.bf16.mxu1 %v10912_v22  ;;  %3579 = vmatpush1.bf16.msra.mxu0 %v7718_v49  ;;  %v1127_v8 = vmax.f32 %v992_v63, 0.0  ;;  %v1287_v22 = vld [vmem:[%s13010_s3 + $0x238] sm:$0xff]  ;;  %v1290_v49 = vld [vmem:[%s13010_s3 + $0x250] sm:$0xff] }
 0x1bc   :  { %3580 = vmatprep.subr.bf16.mxu0 %v7727_v31  ;;  %3965 = vmatpush1.bf16.msra.mxu1 %v7720_v9  ;;  %v11126_v56 = vpack.c.bf16 %v1126_v57, %v1122_v25  ;;  %v1295_v31 = vld [vmem:[%s13010_s3 + $0x278] sm:$0xff]  ;;  %v7737_v2 = vcombine.high %v1283_v27, %v1287_v22  ;;  %v7743_v25 = vcombine.high %v1290_v49, %v1294_v41  ;;  %v1298_v63 = vld [vmem:[%s13010_s3 + $0x290] sm:$0xff] }
 0x1bd   :  { %3966 = vmatprep.subr.bf16.mxu1 %v7729_v58  ;;  %v11128_v20 = vpack.c.bf16 %v1127_v8, %v1123_v7  ;;  %v995_v6 = vpop.f32.mrb[84].mxu1  ;;  %v7736_v7 = vcombine.low %v1283_v27, %v1287_v22  ;;  %v7742_v27 = vcombine.low %v1290_v49, %v1294_v41  ;;  %v1310_v49 = vld [vmem:[%s13010_s3 + $0x2f0] sm:$0xff] }
 0x1be   :  { %v996_v9 = vadd.f32 %v995_v6, %v10796_v16  ;;  %v997_v29 = vpop.f32.mrb[85].mxu1 }
 0x1bf   :  { %3581 = vmatpush1.bf16.msra.mxu0 %v7726_v52  ;;  %v998_v8 = vadd.f32 %v997_v29, %v10808_v47  ;;  %v999_v58 = vpop.f32.mrb[86].mxu1  ;;  %v7751_v29 = vcombine.high %v1298_v63, %v1302_v42 }
 0x1c0   :  { %3582 = vmatprep.subr.bf16.mxu0 %v7735_v43  ;;  %3967 = vmatpush1.bf16.msra.mxu1 %v7728_v4  ;;  %v1130_v38 = vmax.f32 %v996_v9, 0.0  ;;  %v1000_v52 = vadd.f32 %v999_v58, %v10796_v16  ;;  %v1001_v57 = vpop.f32.mrb[87].mxu1  ;;  %v7745_v43 = vcombine.high %v1291_v10, %v1295_v31  ;;  %v7744_v9 = vcombine.low %v1291_v10, %v1295_v31  ;;  %v1299_v58 = vld [vmem:[%s13010_s3 + $0x298] sm:$0xff] }
 0x1c1   :  { %3060 = vmatmul.mubr.bf16.gmra.mrb[48].mxu0 %v10910_v21  ;;  %v1131_v22 = vmax.f32 %v998_v8, 0.0  ;;  %v1002_v4 = vadd.f32 %v1001_v57, %v10808_v47  ;;  %3968 = vmatprep.subr.bf16.mxu1 %v7737_v2  ;;  %v1307_v2 = vld [vmem:[%s13010_s3 + $0x2d8] sm:$0xff]  ;;  %v7750_v8 = vcombine.low %v1298_v63, %v1302_v42  ;;  %v1318_v63 = vld [vmem:[%s13010_s3 + $0x330] sm:$0xff] }
 0x1c2   :  { %3446 = vmatmul.mubr.bf16.gmra.mrb[112].mxu1 %v10910_v21  ;;  %3069 = vmatprep.mubr.bf16.mxu0 %v10924_v18  ;;  %v1134_v6 = vmax.f32 %v1000_v52, 0.0 }
 0x1c3   :  { %3455 = vmatprep.mubr.bf16.mxu1 %v10924_v18  ;;  %3583 = vmatpush1.bf16.msra.mxu0 %v7734_v60  ;;  %v1135_v21 = vmax.f32 %v1002_v4, 0.0  ;;  %v1303_v18 = vld [vmem:[%s13010_s3 + $0x2b8] sm:$0xff]  ;;  %v1306_v60 = vld [vmem:[%s13010_s3 + $0x2d0] sm:$0xff] }
 0x1c4   :  { %3584 = vmatprep.subr.bf16.mxu0 %v7743_v25  ;;  %3969 = vmatpush1.bf16.msra.mxu1 %v7736_v7  ;;  %v11162_v41 = vpack.c.bf16 %v1134_v6, %v1130_v38  ;;  %v1311_v25 = vld [vmem:[%s13010_s3 + $0x2f8] sm:$0xff]  ;;  %v7753_v57 = vcombine.high %v1299_v58, %v1303_v18  ;;  %v7759_v38 = vcombine.high %v1306_v60, %v1310_v49  ;;  %v1314_v4 = vld [vmem:[%s13010_s3 + $0x310] sm:$0xff] }
 0x1c5   :  { %3970 = vmatprep.subr.bf16.mxu1 %v7745_v43  ;;  %v11164_v10 = vpack.c.bf16 %v1135_v21, %v1131_v22  ;;  %v1005_v31 = vpop.f32.mrb[88].mxu1  ;;  %v7752_v22 = vcombine.low %v1299_v58, %v1303_v18  ;;  %v7758_v58 = vcombine.low %v1306_v60, %v1310_v49  ;;  %v1322_v60 = vld [vmem:[%s13010_s3 + $0x350] sm:$0xff] }
 0x1c6   :  { %v1006_v7 = vadd.f32 %v1005_v31, %v10796_v16  ;;  %v1007_v52 = vpop.f32.mrb[89].mxu1  ;;  %v1326_v49 = vld [vmem:[%s13010_s3 + $0x370] sm:$0xff] }
 0x1c7   :  { %3585 = vmatpush1.bf16.msra.mxu0 %v7742_v27  ;;  %v1008_v21 = vadd.f32 %v1007_v52, %v10808_v47  ;;  %v1009_v43 = vpop.f32.mrb[90].mxu1  ;;  %v7767_v52 = vcombine.high %v1314_v4, %v1318_v63 }
 0x1c8   :  { %3586 = vmatprep.subr.bf16.mxu0 %v7751_v29  ;;  %3971 = vmatpush1.bf16.msra.mxu1 %v7744_v9  ;;  %v1138_v42 = vmax.f32 %v1006_v7, 0.0  ;;  %v1010_v27 = vadd.f32 %v1009_v43, %v10796_v16  ;;  %v1011_v6 = vpop.f32.mrb[91].mxu1  ;;  %v7761_v29 = vcombine.high %v1307_v2, %v1311_v25  ;;  %v7760_v7 = vcombine.low %v1307_v2, %v1311_v25  ;;  %v1315_v43 = vld [vmem:[%s13010_s3 + $0x318] sm:$0xff] }
 0x1c9   :  { %3070 = vmatmul.mubr.bf16.gmra.mrb[52].mxu0 %v10922_v11  ;;  %v1139_v18 = vmax.f32 %v1008_v21, 0.0  ;;  %v1012_v9 = vadd.f32 %v1011_v6, %v10808_v47  ;;  %3972 = vmatprep.subr.bf16.mxu1 %v7753_v57  ;;  %v1327_v57 = vld [vmem:[%s13010_s3 + $0x378] sm:$0xff]  ;;  %v7775_v6 = vcombine.high %v1322_v60, %v1326_v49 }
 0x1ca   :  { %3456 = vmatmul.mubr.bf16.gmra.mrb[116].mxu1 %v10922_v11  ;;  %3079 = vmatprep.mubr.bf16.mxu0 %v10936_v54  ;;  %v1142_v31 = vmax.f32 %v1010_v27, 0.0 }
 0x1cb   :  { %3465 = vmatprep.mubr.bf16.mxu1 %v10936_v54  ;;  %3587 = vmatpush1.bf16.msra.mxu0 %v7750_v8  ;;  %v1143_v11 = vmax.f32 %v1012_v9, 0.0  ;;  %v1319_v54 = vld [vmem:[%s13010_s3 + $0x338] sm:$0xff] }
 0x1cc   :  { %3588 = vmatprep.subr.bf16.mxu0 %v7759_v38  ;;  %3973 = vmatpush1.bf16.msra.mxu1 %v7752_v22  ;;  %v11192_v21 = vpack.c.bf16 %v1142_v31, %v1138_v42  ;;  %v1323_v8 = vld [vmem:[%s13010_s3 + $0x358] sm:$0xff]  ;;  %v7766_v38 = vcombine.low %v1314_v4, %v1318_v63  ;;  %v7769_v27 = vcombine.high %v1315_v43, %v1319_v54  ;;  %v1330_v4 = vld [vmem:[%s13010_s3 + $0x390] sm:$0xff] }
 0x1cd   :  { %3974 = vmatprep.subr.bf16.mxu1 %v7761_v29  ;;  %v11200_v2 = vpack.c.bf16 %v1143_v11, %v1139_v18  ;;  %v1015_v25 = vpop.f32.mrb[92].mxu1  ;;  %v7768_v18 = vcombine.low %v1315_v43, %v1319_v54  ;;  %v1334_v63 = vld [vmem:[%s13010_s3 + $0x3b0] sm:$0xff]  ;;  %v7774_v43 = vcombine.low %v1322_v60, %v1326_v49 }
 0x1ce   :  { %v1016_v22 = vadd.f32 %v1015_v25, %v10796_v16  ;;  %v1017_v42 = vpop.f32.mrb[93].mxu1  ;;  %v1342_v60 = vld [vmem:[%s13010_s3 + $0x3f0] sm:$0xff] }
 0x1cf   :  { %3589 = vmatpush1.bf16.msra.mxu0 %v7758_v58  ;;  %v1018_v11 = vadd.f32 %v1017_v42, %v10808_v47  ;;  %v1019_v29 = vpop.f32.mrb[94].mxu1  ;;  %v7776_v42 = vcombine.low %v1323_v8, %v1327_v57 }
 0x1d0   :  { %3590 = vmatprep.subr.bf16.mxu0 %v7767_v52  ;;  %3975 = vmatpush1.bf16.msra.mxu1 %v7760_v7  ;;  %v1146_v9 = vmax.f32 %v1016_v22, 0.0  ;;  %v1020_v31 = vadd.f32 %v1019_v29, %v10796_v16  ;;  %v1021_v58 = vpop.f32.mrb[95].mxu1  ;;  %v7777_v52 = vcombine.high %v1323_v8, %v1327_v57  ;;  %v7783_v22 = vcombine.high %v1330_v4, %v1334_v63  ;;  %v1331_v29 = vld [vmem:[%s13010_s3 + $0x398] sm:$0xff] }
 0x1d1   :  { %3080 = vmatmul.mubr.bf16.gmra.mrb[56].mxu0 %v10934_v23  ;;  %v1147_v54 = vmax.f32 %v1018_v11, 0.0  ;;  %v1022_v7 = vadd.f32 %v1021_v58, %v10808_v47  ;;  %3976 = vmatprep.subr.bf16.mxu1 %v7769_v27  ;;  %v1338_v47 = vld [vmem:[%s13010_s3 + $0x3d0] sm:$0xff]  ;;  %v1339_v8 = vld [vmem:[%s13010_s3 + $0x3d8] sm:$0xff] }
 0x1d2   :  { %3466 = vmatmul.mubr.bf16.gmra.mrb[120].mxu1 %v10934_v23  ;;  %3089 = vmatprep.mubr.bf16.mxu0 %v10948_v34  ;;  %v1150_v16 = vmax.f32 %v1020_v31, 0.0  ;;  %v1343_v57 = vld [vmem:[%s13010_s3 + $0x3f8] sm:$0xff] }
 0x1d3   :  { %3475 = vmatprep.mubr.bf16.mxu1 %v10948_v34  ;;  %3591 = vmatpush1.bf16.msra.mxu0 %v7766_v38  ;;  %v1151_v25 = vmax.f32 %v1022_v7, 0.0  ;;  %v1335_v34 = vld [vmem:[%s13010_s3 + $0x3b8] sm:$0xff]  ;;  %v7782_v38 = vcombine.low %v1330_v4, %v1334_v63  ;;  %v7792_v63 = vcombine.low %v1339_v8, %v1343_v57  ;;  %v1354_v7 = vld [vmem:[%s13010_s3 + $0x450] sm:$0xff] }
 0x1d4   :  { %3592 = vmatprep.subr.bf16.mxu0 %v7775_v6  ;;  %3977 = vmatpush1.bf16.msra.mxu1 %v7768_v18  ;;  %v11228_v11 = vpack.c.bf16 %v1150_v16, %v1146_v9  ;;  %v7785_v27 = vcombine.high %v1331_v29, %v1335_v34  ;;  %v7791_v6 = vcombine.high %v1338_v47, %v1342_v60  ;;  %v11251_v31 = vld [vmem:[%s13010_s3 + $0x418] sm:$0xff] }
 0x1d5   :  { %3978 = vmatprep.subr.bf16.mxu1 %v7777_v52  ;;  %v11236_v49 = vpack.c.bf16 %v1151_v25, %v1147_v54  ;;  %v7784_v18 = vcombine.low %v1331_v29, %v1335_v34  ;;  %v7793_v9 = vcombine.high %v1339_v8, %v1343_v57  ;;  %v11256_v58 = vld [vmem:[%s13010_s3 + $0x438] sm:$0xff]  ;;  %v7790_v34 = vcombine.low %v1338_v47, %v1342_v60 }
 0x1d6   :  { %v7800_v4 = vcombine.low %v11251_v31, %v11256_v58  ;;  %v7799_v52 = vcombine.high %v10961_v51, %v10966_v19  ;;  %v7801_v54 = vcombine.high %v11251_v31, %v11256_v58  ;;  %v1355_v16 = vld [vmem:[%s13010_s3 + $0x458] sm:$0xff]  ;;  %v13114_v47 = vcombine.low %v10961_v51, %v10966_v19  ;;  %v1370_v51 = vld [vmem:[%s13010_s3 + $0x4d0] sm:$0xff] }
 0x1d7   :  { %3593 = vmatpush1.bf16.msra.mxu0 %v7774_v43  ;;  %v1358_v43 = vld [vmem:[%s13010_s3 + $0x470] sm:$0xff]  ;;  %v1359_v25 = vld [vmem:[%s13010_s3 + $0x478] sm:$0xff] }
 0x1d8   :  { %3594 = vmatprep.subr.bf16.mxu0 %v7783_v22  ;;  %3979 = vmatpush1.bf16.msra.mxu1 %v7776_v42  ;;  %v7807_v22 = vcombine.high %v1354_v7, %v1358_v43  ;;  %v1366_v42 = vld [vmem:[%s13010_s3 + $0x4b0] sm:$0xff]  ;;  %v7809_v29 = vcombine.high %v1355_v16, %v1359_v25  ;;  %v7806_v60 = vcombine.low %v1354_v7, %v1358_v43  ;;  %v1371_v19 = vld [vmem:[%s13010_s3 + $0x4d8] sm:$0xff] }
 0x1d9   :  { %3090 = vmatmul.mubr.bf16.gmra.mrb[60].mxu0 %v10946_v12  ;;  %3980 = vmatprep.subr.bf16.mxu1 %v7785_v27  ;;  %v7808_v57 = vcombine.low %v1355_v16, %v1359_v25  ;;  %v1375_v27 = vld [vmem:[%s13010_s3 + $0x4f8] sm:$0xff]  ;;  %v1378_v58 = vld [vmem:[%s13010_s3 + $0x510] sm:$0xff] }
 0x1da   :  { %3476 = vmatmul.mubr.bf16.gmra.mrb[124].mxu1 %v10946_v12  ;;  %3099 = vmatprep.mubr.bf16.mxu0 %v10978_v15  ;;  %v1383_v7 = vld [vmem:[%s13010_s3 + $0x538] sm:$0xff]  ;;  %v1386_v43 = vld [vmem:[%s13010_s3 + $0x550] sm:$0xff] }
 0x1db   :  { %3485 = vmatprep.mubr.bf16.mxu1 %v10978_v15  ;;  %3595 = vmatpush1.bf16.msra.mxu0 %v7782_v38  ;;  %v1363_v38 = vld [vmem:[%s13010_s3 + $0x498] sm:$0xff] }
 0x1dc   :  { %3596 = vmatprep.subr.bf16.mxu0 %v7791_v6  ;;  %3981 = vmatpush1.bf16.msra.mxu1 %v7784_v18  ;;  %v1387_v16 = vld [vmem:[%s13010_s3 + $0x558] sm:$0xff] }
 0x1dd   :  { %3982 = vmatprep.subr.bf16.mxu1 %v7793_v9  ;;  %v1391_v25 = vld [vmem:[%s13010_s3 + $0x578] sm:$0xff] }
 0x1df   :  { %3597 = vmatpush1.bf16.msra.mxu0 %v7790_v34  ;;  %v1382_v34 = vld [vmem:[%s13010_s3 + $0x530] sm:$0xff] }
 0x1e0   :  { %3983 = vmatpush1.bf16.msra.mxu1 %v7792_v63  ;;  %3759 = vmatprep.subr.bf16.mxu0 %v7799_v52  ;;  %v7831_v52 = vcombine.high %v1378_v58, %v1382_v34 }
 0x1e1   :  { %3100 = vmatmul.mubr.bf16.gmra.mrb[64].mxu0 %v10976_v28  ;;  %4145 = vmatprep.subr.bf16.mxu1 %v7801_v54  ;;  %v1379_v54 = vld [vmem:[%s13010_s3 + $0x518] sm:$0xff] }
 0x1e2   :  { %3486 = vmatmul.mubr.bf16.gmra.mrb[128].mxu1 %v10976_v28  ;;  %3109 = vmatprep.mubr.bf16.mxu0 %v11020_v0 }
 0x1e3   :  { %3495 = vmatprep.mubr.bf16.mxu1 %v11020_v0 }
 0x1e9   :  { %3110 = vmatmul.mubr.bf16.gmra.mrb[68].mxu0 %v11018_v62 }
 0x1ea   :  { %3496 = vmatmul.mubr.bf16.gmra.mrb[132].mxu1 %v11018_v62  ;;  %3119 = vmatprep.mubr.bf16.mxu0 %v11056_v5 }
 0x1eb   :  { %3505 = vmatprep.mubr.bf16.mxu1 %v11056_v5 }
 0x1f1   :  { %3120 = vmatmul.mubr.bf16.gmra.mrb[72].mxu0 %v11054_v44 }
 0x1f2   :  { %3506 = vmatmul.mubr.bf16.gmra.mrb[136].mxu1 %v11054_v44  ;;  %3129 = vmatprep.mubr.bf16.mxu0 %v11092_v24 }
 0x1f3   :  { %3515 = vmatprep.mubr.bf16.mxu1 %v11092_v24 }
 0x1f9   :  { %3130 = vmatmul.mubr.bf16.gmra.mrb[76].mxu0 %v11090_v45 }
 0x1fa   :  { %3516 = vmatmul.mubr.bf16.gmra.mrb[140].mxu1 %v11090_v45  ;;  %3139 = vmatprep.mubr.bf16.mxu0 %v11128_v20 }
 0x1fb   :  { %3525 = vmatprep.mubr.bf16.mxu1 %v11128_v20 }
 0x201   :  { %3140 = vmatmul.mubr.bf16.gmra.mrb[80].mxu0 %v11126_v56 }
 0x202   :  { %3526 = vmatmul.mubr.bf16.gmra.mrb[144].mxu1 %v11126_v56  ;;  %3149 = vmatprep.mubr.bf16.mxu0 %v11164_v10 }
 0x203   :  { %3535 = vmatprep.mubr.bf16.mxu1 %v11164_v10 }
 0x209   :  { %3150 = vmatmul.mubr.bf16.gmra.mrb[84].mxu0 %v11162_v41 }
 0x20a   :  { %3536 = vmatmul.mubr.bf16.gmra.mrb[148].mxu1 %v11162_v41  ;;  %3159 = vmatprep.mubr.bf16.mxu0 %v11200_v2 }
 0x20b   :  { %3545 = vmatprep.mubr.bf16.mxu1 %v11200_v2 }
 0x211   :  { %3160 = vmatmul.mubr.bf16.gmra.mrb[88].mxu0 %v11192_v21 }
 0x212   :  { %3546 = vmatmul.mubr.bf16.gmra.mrb[152].mxu1 %v11192_v21  ;;  %3169 = vmatprep.mubr.bf16.mxu0 %v11236_v49 }
 0x213   :  { %3555 = vmatprep.mubr.bf16.mxu1 %v11236_v49 }
 0x219   :  { %3170 = vmatmul.mubr.bf16.gmra.mrb[92].mxu0 %v11228_v11 }
 0x21a   :  { %3556 = vmatmul.mubr.bf16.gmra.mrb[156].mxu1 %v11228_v11  ;;  %3598 = vmatprep.mubr.bf16.mxu0 %v10285_v35 }
 0x21b   :  { %3984 = vmatprep.mubr.bf16.mxu1 %v10285_v35  ;;  %v1362_v35 = vld [vmem:[%s13010_s3 + $0x490] sm:$0xff] }
 0x21c   :  { %v7815_v8 = vcombine.high %v1362_v35, %v1366_v42  ;;  %v7814_v6 = vcombine.low %v1362_v35, %v1366_v42  ;;  %v7833_v35 = vcombine.high %v1379_v54, %v1383_v7 }
 0x221   :  { %3599 = vmatmul.mubr.bf16.vlgmr.msra.gmra.mrb[96].mxu0 %v10281_v53 }
 0x222   :  { %3985 = vmatmul.mubr.bf16.vlgmr.msra.gmra.mrb[160].mxu1 %v10281_v53  ;;  %3760 = vmatpush1.bf16.msra.mxu0 %v13114_v47  ;;  %v1367_v53 = vld [vmem:[%s13010_s3 + $0x4b8] sm:$0xff]  ;;  %v1394_v47 = vld [vmem:[%s13010_s3 + $0x590] sm:$0xff] }
 0x223   :  { %3608 = vmatprep.mubr.bf16.mxu0 %v10365_v40  ;;  %3994 = vmatprep.mubr.bf16.mxu1 %v10365_v40  ;;  %v1374_v40 = vld [vmem:[%s13010_s3 + $0x4f0] sm:$0xff]  ;;  %v7817_v18 = vcombine.high %v1363_v38, %v1367_v53  ;;  %v7816_v31 = vcombine.low %v1363_v38, %v1367_v53  ;;  %v1395_v53 = vld [vmem:[%s13010_s3 + $0x598] sm:$0xff] }
 0x224   :  { %3761 = vmatprep.subr.bf16.mxu0 %v7807_v22  ;;  %4146 = vmatpush1.bf16.msra.mxu1 %v7800_v4  ;;  %v7823_v9 = vcombine.high %v1370_v51, %v1374_v40  ;;  %v7825_v4 = vcombine.high %v1371_v19, %v1375_v27  ;;  %v7822_v63 = vcombine.low %v1370_v51, %v1374_v40  ;;  %v1399_v51 = vld [vmem:[%s13010_s3 + $0x5b8] sm:$0xff]  ;;  %v1402_v40 = vld [vmem:[%s13010_s3 + $0x5d0] sm:$0xff] }
 0x225   :  { %4147 = vmatprep.subr.bf16.mxu1 %v7809_v29  ;;  %v7830_v22 = vcombine.low %v1378_v58, %v1382_v34  ;;  %v7832_v29 = vcombine.low %v1379_v54, %v1383_v7  ;;  %v1410_v58 = vld [vmem:[%s13010_s3 + $0x610] sm:$0xff]  ;;  %v1415_v54 = vld [vmem:[%s13010_s3 + $0x638] sm:$0xff] }
 0x226   :  { %3762 = vmatpush1.bf16.msra.mxu0 %v7806_v60  ;;  %v1398_v60 = vld [vmem:[%s13010_s3 + $0x5b0] sm:$0xff] }
 0x227   :  { %3763 = vmatprep.subr.bf16.mxu0 %v7815_v8  ;;  %v7841_v8 = vcombine.high %v1387_v16, %v1391_v25  ;;  %v7847_v38 = vcombine.high %v1394_v47, %v1398_v60  ;;  %v1414_v34 = vld [vmem:[%s13010_s3 + $0x630] sm:$0xff] }
 0x228   :  { %4148 = vmatpush1.bf16.msra.mxu1 %v7808_v57  ;;  %v1418_v7 = vld [vmem:[%s13010_s3 + $0x650] sm:$0xff] }
 0x229   :  { %3609 = vmatmul.mubr.bf16.gmra.mrb[100].mxu0 %v10357_v3  ;;  %4149 = vmatprep.subr.bf16.mxu1 %v7817_v18  ;;  %v7849_v18 = vcombine.high %v1395_v53, %v1399_v51 }
 0x22a   :  { %3995 = vmatmul.mubr.bf16.gmra.mrb[164].mxu1 %v10357_v3  ;;  %3618 = vmatprep.mubr.bf16.mxu0 %v10441_v33  ;;  %v7824_v3 = vcombine.low %v1371_v19, %v1375_v27  ;;  %v1403_v19 = vld [vmem:[%s13010_s3 + $0x5d8] sm:$0xff] }
 0x22b   :  { %4004 = vmatprep.mubr.bf16.mxu1 %v10441_v33  ;;  %3764 = vmatpush1.bf16.msra.mxu0 %v7814_v6  ;;  %v1390_v33 = vld [vmem:[%s13010_s3 + $0x570] sm:$0xff]  ;;  %v1407_v27 = vld [vmem:[%s13010_s3 + $0x5f8] sm:$0xff]  ;;  %v7846_v6 = vcombine.low %v1394_v47, %v1398_v60 }
 0x22c   :  { %3765 = vmatprep.subr.bf16.mxu0 %v7823_v9  ;;  %4150 = vmatpush1.bf16.msra.mxu1 %v7816_v31  ;;  %v7839_v42 = vcombine.high %v1386_v43, %v1390_v33  ;;  %v7838_v57 = vcombine.low %v1386_v43, %v1390_v33  ;;  %v7848_v31 = vcombine.low %v1395_v53, %v1399_v51  ;;  %v1419_v43 = vld [vmem:[%s13010_s3 + $0x658] sm:$0xff] }
 0x22d   :  { %4151 = vmatprep.subr.bf16.mxu1 %v7825_v4  ;;  %v7857_v4 = vcombine.high %v1403_v19, %v1407_v27  ;;  %v1423_v33 = vld [vmem:[%s13010_s3 + $0x678] sm:$0xff] }
 0x22e   :  { %v7873_v47 = vcombine.high %v1419_v43, %v1423_v33  ;;  %v1435_v53 = vld [vmem:[%s13010_s3 + $0x6d8] sm:$0xff] }
 0x22f   :  { %3766 = vmatpush1.bf16.msra.mxu0 %v7822_v63  ;;  %v1439_v51 = vld [vmem:[%s13010_s3 + $0x6f8] sm:$0xff] }
 0x230   :  { %3767 = vmatprep.subr.bf16.mxu0 %v7831_v52  ;;  %4152 = vmatpush1.bf16.msra.mxu1 %v7824_v3  ;;  %v7863_v52 = vcombine.high %v1410_v58, %v1414_v34  ;;  %v1411_v3 = vld [vmem:[%s13010_s3 + $0x618] sm:$0xff] }
 0x231   :  { %3619 = vmatmul.mubr.bf16.gmra.mrb[104].mxu0 %v10433_v17  ;;  %4153 = vmatprep.subr.bf16.mxu1 %v7833_v35  ;;  %v7864_v35 = vcombine.low %v1411_v3, %v1415_v54 }
 0x232   :  { %4005 = vmatmul.mubr.bf16.gmra.mrb[168].mxu1 %v10433_v17  ;;  %3628 = vmatprep.mubr.bf16.mxu0 %v10517_v30  ;;  %v7840_v17 = vcombine.low %v1387_v16, %v1391_v25  ;;  %v7862_v16 = vcombine.low %v1410_v58, %v1414_v34  ;;  %v7865_v25 = vcombine.high %v1411_v3, %v1415_v54  ;;  %v13116_v58 = vld [vmem:[#allocation18_spill] sm:$0xff] }
 0x233   :  { %4014 = vmatprep.mubr.bf16.mxu1 %v10517_v30  ;;  %3768 = vmatpush1.bf16.msra.mxu0 %v7830_v22  ;;  %v1406_v30 = vld [vmem:[%s13010_s3 + $0x5f0] sm:$0xff] }
 0x234   :  { %3769 = vmatprep.subr.bf16.mxu0 %v7839_v42  ;;  %4154 = vmatpush1.bf16.msra.mxu1 %v7832_v29  ;;  %v7855_v9 = vcombine.high %v1402_v40, %v1406_v30  ;;  %v7854_v63 = vcombine.low %v1402_v40, %v1406_v30  ;;  %v1426_v42 = vld [vmem:[%s13010_s3 + $0x690] sm:$0xff] }
 0x235   :  { %4155 = vmatprep.subr.bf16.mxu1 %v7841_v8  ;;  %v1430_v29 = vld [vmem:[%s13010_s3 + $0x6b0] sm:$0xff] }
 0x236   :  { %v7879_v8 = vcombine.high %v1426_v42, %v1430_v29  ;;  %v7878_v40 = vcombine.low %v1426_v42, %v1430_v29  ;;  %v1450_v3 = vld [vmem:[%s13010_s3 + $0x750] sm:$0xff] }
 0x237   :  { %3770 = vmatpush1.bf16.msra.mxu0 %v7838_v57  ;;  %v1427_v57 = vld [vmem:[%s13010_s3 + $0x698] sm:$0xff]  ;;  %v1454_v54 = vld [vmem:[%s13010_s3 + $0x770] sm:$0xff] }
 0x238   :  { %3771 = vmatprep.subr.bf16.mxu0 %v7847_v38  ;;  %4156 = vmatpush1.bf16.msra.mxu1 %v7840_v17  ;;  %v1431_v38 = vld [vmem:[%s13010_s3 + $0x6b8] sm:$0xff]  ;;  %v1434_v17 = vld [vmem:[%s13010_s3 + $0x6d0] sm:$0xff] }
 0x239   :  { %3629 = vmatmul.mubr.bf16.gmra.mrb[108].mxu0 %v10509_v13  ;;  %4157 = vmatprep.subr.bf16.mxu1 %v7849_v18  ;;  %v7881_v30 = vcombine.high %v1427_v57, %v1431_v38  ;;  %v1442_v18 = vld [vmem:[%s13010_s3 + $0x710] sm:$0xff] }
 0x23a   :  { %4015 = vmatmul.mubr.bf16.gmra.mrb[172].mxu1 %v10509_v13  ;;  %3638 = vmatprep.mubr.bf16.mxu0 %v10593_v48  ;;  %v7856_v13 = vcombine.low %v1403_v19, %v1407_v27  ;;  %v7880_v27 = vcombine.low %v1427_v57, %v1431_v38  ;;  %v1462_v42 = vld [vmem:[%s13010_s3 + $0x7b0] sm:$0xff]  ;;  %v1463_v57 = vld [vmem:[%s13010_s3 + $0x7b8] sm:$0xff] }
 0x23b   :  { %4024 = vmatprep.mubr.bf16.mxu1 %v10593_v48  ;;  %3772 = vmatpush1.bf16.msra.mxu0 %v7846_v6  ;;  %v1422_v48 = vld [vmem:[%s13010_s3 + $0x670] sm:$0xff]  ;;  %v13115_v6 = vld [vmem:[#allocation12_spill] sm:$0xff] }
 0x23c   :  { %3773 = vmatprep.subr.bf16.mxu0 %v7855_v9  ;;  %4158 = vmatpush1.bf16.msra.mxu1 %v7848_v31  ;;  %v7871_v22 = vcombine.high %v1418_v7, %v1422_v48  ;;  %v7870_v60 = vcombine.low %v1418_v7, %v1422_v48  ;;  %v1446_v9 = vld [vmem:[%s13010_s3 + $0x730] sm:$0xff]  ;;  %v7889_v31 = vcombine.high %v1435_v53, %v1439_v51  ;;  %v1451_v7 = vld [vmem:[%s13010_s3 + $0x758] sm:$0xff] }
 0x23d   :  { %4159 = vmatprep.subr.bf16.mxu1 %v7857_v4  ;;  %v7895_v4 = vcombine.high %v1442_v18, %v1446_v9  ;;  %v1455_v48 = vld [vmem:[%s13010_s3 + $0x778] sm:$0xff]  ;;  %v1470_v38 = vld [vmem:[%s13010_s3 + $0x7f0] sm:$0xff] }
 0x23e   :  { %v7905_v29 = vcombine.high %v1451_v7, %v1455_v48 }
 0x23f   :  { %3774 = vmatpush1.bf16.msra.mxu0 %v7854_v63  ;;  %v7888_v63 = vcombine.low %v1435_v53, %v1439_v51 }
 0x240   :  { %3775 = vmatprep.subr.bf16.mxu0 %v7863_v52  ;;  %4160 = vmatpush1.bf16.msra.mxu1 %v7856_v13  ;;  %v1443_v52 = vld [vmem:[%s13010_s3 + $0x718] sm:$0xff] }
 0x241   :  { %3639 = vmatmul.mubr.bf16.gmra.mrb[112].mxu0 %v10585_v14  ;;  %4161 = vmatprep.subr.bf16.mxu1 %v7865_v25  ;;  %v1447_v13 = vld [vmem:[%s13010_s3 + $0x738] sm:$0xff] }
 0x242   :  { %4025 = vmatmul.mubr.bf16.gmra.mrb[176].mxu1 %v10585_v14  ;;  %3648 = vmatprep.mubr.bf16.mxu0 %v10681_v1  ;;  %v7872_v14 = vcombine.low %v1419_v43, %v1423_v33  ;;  %v7894_v43 = vcombine.low %v1442_v18, %v1446_v9  ;;  %v7897_v33 = vcombine.high %v1443_v52, %v1447_v13  ;;  %v13119_v9 = vld [vmem:[#allocation17_spill] sm:$0xff] }
 0x243   :  { %4034 = vmatprep.mubr.bf16.mxu1 %v10681_v1  ;;  %3776 = vmatpush1.bf16.msra.mxu0 %v7862_v16  ;;  %v1438_v1 = vld [vmem:[%s13010_s3 + $0x6f0] sm:$0xff]  ;;  %v7903_v16 = vcombine.high %v1450_v3, %v1454_v54  ;;  %v7896_v25 = vcombine.low %v1443_v52, %v1447_v13 }
 0x244   :  { %3777 = vmatprep.subr.bf16.mxu0 %v7871_v22  ;;  %4162 = vmatpush1.bf16.msra.mxu1 %v7864_v35  ;;  %v7887_v19 = vcombine.high %v1434_v17, %v1438_v1  ;;  %v7886_v34 = vcombine.low %v1434_v17, %v1438_v1  ;;  %v13117_v22 = vld [vmem:[#allocation15_spill] sm:$0xff] }
 0x245   :  { %4163 = vmatprep.subr.bf16.mxu1 %v7873_v47  ;;  %v1458_v35 = vld [vmem:[%s13010_s3 + $0x790] sm:$0xff]  ;;  %v7902_v47 = vcombine.low %v1450_v3, %v1454_v54  ;;  %v1467_v17 = vld [vmem:[%s13010_s3 + $0x7d8] sm:$0xff] }
 0x246   :  { %v1471_v1 = vld [vmem:[%s13010_s3 + $0x7f8] sm:$0xff]  ;;  %v7910_v53 = vcombine.low %v1458_v35, %v1462_v42 }
 0x247   :  { %3778 = vmatpush1.bf16.msra.mxu0 %v7870_v60  ;;  %v7911_v60 = vcombine.high %v1458_v35, %v1462_v42 }
 0x248   :  { %3779 = vmatprep.subr.bf16.mxu0 %v7879_v8  ;;  %4164 = vmatpush1.bf16.msra.mxu1 %v7872_v14  ;;  %v7904_v8 = vcombine.low %v1451_v7, %v1455_v48  ;;  %v1459_v14 = vld [vmem:[%s13010_s3 + $0x798] sm:$0xff] }
 0x249   :  { %3649 = vmatmul.mubr.bf16.gmra.mrb[116].mxu0 %v13115_v6  ;;  %4165 = vmatprep.subr.bf16.mxu1 %v7881_v30  ;;  %v7913_v51 = vcombine.high %v1459_v14, %v1463_v57  ;;  %v7912_v30 = vcombine.low %v1459_v14, %v1463_v57  ;;  %v13123_v57 = vld [vmem:[#allocation8_spill] sm:$0xff] }
 0x24a   :  { %4035 = vmatmul.mubr.bf16.gmra.mrb[180].mxu1 %v13115_v6  ;;  %3658 = vmatprep.mubr.bf16.mxu0 %v13116_v58  ;;  %v7920_v6 = vcombine.low %v1467_v17, %v1471_v1 }
 0x24b   :  { %4044 = vmatprep.mubr.bf16.mxu1 %v13116_v58  ;;  %3780 = vmatpush1.bf16.msra.mxu0 %v7878_v40  ;;  %v13120_v58 = vld [vmem:[#allocation9_spill] sm:$0xff] }
 0x24c   :  { %3781 = vmatprep.subr.bf16.mxu0 %v7887_v19  ;;  %4166 = vmatpush1.bf16.msra.mxu1 %v7880_v27  ;;  %v7921_v19 = vcombine.high %v1467_v17, %v1471_v1 }
 0x24d   :  { %4167 = vmatprep.subr.bf16.mxu1 %v7889_v31 }
 0x24f   :  { %3782 = vmatpush1.bf16.msra.mxu0 %v7886_v34  ;;  %v13122_v34 = vld [vmem:[#allocation20_spill] sm:$0xff] }
 0x250   :  { %3783 = vmatprep.subr.bf16.mxu0 %v7895_v4  ;;  %4168 = vmatpush1.bf16.msra.mxu1 %v7888_v63 }
 0x251   :  { %3659 = vmatmul.mubr.bf16.gmra.mrb[120].mxu0 %v13117_v22  ;;  %4169 = vmatprep.subr.bf16.mxu1 %v7897_v33 }
 0x252   :  { %4045 = vmatmul.mubr.bf16.gmra.mrb[184].mxu1 %v13117_v22  ;;  %3668 = vmatprep.mubr.bf16.mxu0 %v10826_v37 }
 0x253   :  { %4054 = vmatprep.mubr.bf16.mxu1 %v10826_v37  ;;  %3784 = vmatpush1.bf16.msra.mxu0 %v7894_v43  ;;  %v1466_v37 = vld [vmem:[%s13010_s3 + $0x7d0] sm:$0xff] }
 0x254   :  { %3785 = vmatprep.subr.bf16.mxu0 %v7903_v16  ;;  %4170 = vmatpush1.bf16.msra.mxu1 %v7896_v25  ;;  %v7919_v40 = vcombine.high %v1466_v37, %v1470_v38  ;;  %v7918_v27 = vcombine.low %v1466_v37, %v1470_v38 }
 0x255   :  { %4171 = vmatprep.subr.bf16.mxu1 %v7905_v29 }
 0x257   :  { %3786 = vmatpush1.bf16.msra.mxu0 %v7902_v47 }
 0x258   :  { %3787 = vmatprep.subr.bf16.mxu0 %v7911_v60  ;;  %4172 = vmatpush1.bf16.msra.mxu1 %v7904_v8 }
 0x259   :  { %3669 = vmatmul.mubr.bf16.gmra.mrb[124].mxu0 %v10813_v61  ;;  %4173 = vmatprep.subr.bf16.mxu1 %v7913_v51 }
 0x25a   :  { %4055 = vmatmul.mubr.bf16.gmra.mrb[188].mxu1 %v10813_v61  ;;  %3678 = vmatprep.mubr.bf16.mxu0 %v10297_v59  ;;  %v9009_v61 = vld [vmem:[%s13012_s5 + $0xc] ss:$16 sps:$4 sm:$0xff]  }
 0x25b   :  { %4064 = vmatprep.mubr.bf16.mxu1 %v10297_v59  ;;  %3788 = vmatpush1.bf16.msra.mxu0 %v7910_v53  ;;  %v9006_v59 = vld [vmem:[%s13012_s5 + $0x4] ss:$16 sps:$4 sm:$0xff]  }
 0x25c   :  { %3789 = vmatprep.subr.bf16.mxu0 %v7919_v40  ;;  %4174 = vmatpush1.bf16.msra.mxu1 %v7912_v30  ;;  %v13124_v53 = vld [vmem:[#allocation11_spill] sm:$0xff] }
 0x25d   :  { %4175 = vmatprep.subr.bf16.mxu1 %v7921_v19 }
 0x25f   :  { %3790 = vmatpush1.bf16.msra.mxu0 %v7918_v27 }
 0x260   :  { %4176 = vmatpush1.bf16.msra.mxu1 %v7920_v6  ;;  %6561 = vmatprep.subr.bf16.mxu0 %v9006_v59 }
 0x261   :  { %3679 = vmatmul.mubr.bf16.gmra.mrb[128].mxu0 %v10283_v55  ;;  %6725 = vmatprep.subr.bf16.mxu1 %v9009_v61 }
 0x262   :  { %4065 = vmatmul.mubr.bf16.gmra.mrb[192].mxu1 %v10283_v55  ;;  %3688 = vmatprep.mubr.bf16.mxu0 %v10377_v46  ;;  %v1472_v55 = vld [vmem:[%s13011_s4] sm:$0xff] }
 0x263   :  { %4074 = vmatprep.mubr.bf16.mxu1 %v10377_v46  ;;  %v13118_v46 = vld [vmem:[#allocation6_spill] sm:$0xff]  ;;  %v11534_v31 = vrot.slane %v1472_v55, %v13119_v9  ;;  %v11542_v4 = vrot.slane %v1472_v55, %v13122_v34 }
 0x264   :  { %v11531_v18 = vrot.slane %v1472_v55, %v13118_v46 }
 0x269   :  { %3689 = vmatmul.mubr.bf16.gmra.mrb[132].mxu0 %v10363_v39 }
 0x26a   :  { %4075 = vmatmul.mubr.bf16.gmra.mrb[196].mxu1 %v10363_v39  ;;  %3698 = vmatprep.mubr.bf16.mxu0 %v10453_v36  ;;  %v13121_v39 = vld [vmem:[#allocation7_spill] sm:$0xff] }
 0x26b   :  { %4084 = vmatprep.mubr.bf16.mxu1 %v10453_v36  ;;  %v11539_v36 = vrot.slane %v1472_v55, %v13121_v39 }
 0x271   :  { %3699 = vmatmul.mubr.bf16.gmra.mrb[136].mxu0 %v10439_v32 }
 0x272   :  { %4085 = vmatmul.mubr.bf16.gmra.mrb[200].mxu1 %v10439_v32  ;;  %3708 = vmatprep.mubr.bf16.mxu0 %v13120_v58 }
 0x273   :  { %4094 = vmatprep.mubr.bf16.mxu1 %v13120_v58 }
 0x274   :  { %v3021_v63 = vpop.f32.mrb[32].mxu0 }
 0x275   :  { %v3407_v52 = vpop.f32.mrb[96].mxu1  ;;  %v8313_v32 = vadd.f32 %v3021_v63, %v11531_v18  ;;  %v3023_v3 = vpop.f32.mrb[33].mxu0 }
 0x276   :  { %v8377_v13 = vadd.f32 %v3407_v52, %v11534_v31  ;;  %v3409_v54 = vpop.f32.mrb[97].mxu1  ;;  %v8314_v7 = vadd.f32 %v3023_v3, %v11539_v36  ;;  %v3025_v43 = vpop.f32.mrb[34].mxu0 }
 0x277   :  { %v8378_v48 = vadd.f32 %v3409_v54, %v11542_v4  ;;  %v3411_v33 = vpop.f32.mrb[98].mxu1  ;;  %v8315_v16 = vadd.f32 %v3025_v43, %v11531_v18  ;;  %v3027_v22 = vpop.f32.mrb[35].mxu0  ;;  %v4338_v47 = vmax.f32 %v8313_v32, 0.0 }
 0x278   :  { %v8379_v25 = vadd.f32 %v3411_v33, %v11534_v31  ;;  %v3413_v35 = vpop.f32.mrb[99].mxu1  ;;  %v8316_v42 = vadd.f32 %v3027_v22, %v11539_v36  ;;  %v4340_v60 = vmax.f32 %v8377_v13, 0.0  ;;  %v4339_v37 = vmax.f32 %v8314_v7, 0.0 }
 0x279   :  { %v8380_v29 = vadd.f32 %v3413_v35, %v11542_v4  ;;  %v4346_v8 = vmax.f32 %v8315_v16, 0.0  ;;  %3709 = vmatmul.mubr.bf16.gmra.mrb[140].mxu0 %v13123_v57  ;;  %v4341_v38 = vmax.f32 %v8378_v48, 0.0 }
 0x27a   :  { %v4348_v14 = vmax.f32 %v8379_v25, 0.0  ;;  %4095 = vmatmul.mubr.bf16.gmra.mrb[204].mxu1 %v13123_v57  ;;  %v4347_v17 = vmax.f32 %v8316_v42, 0.0  ;;  %3718 = vmatprep.mubr.bf16.mxu0 %v13124_v53 }
 0x27b   :  { %v4349_v1 = vmax.f32 %v8380_v29, 0.0  ;;  %4104 = vmatprep.mubr.bf16.mxu1 %v13124_v53  ;;  %v4594_v51 = vmax.f32 %v4338_v47, %v4346_v8  ;;  %v13125_v8 = vld [vmem:[#allocation10_spill] sm:$0xff] }
 0x27c   :  { %v4636_v40 = vmax.f32 %v4340_v60, %v4348_v14  ;;  %v4615_v30 = vmax.f32 %v4339_v37, %v4347_v17  ;;  %v3031_v27 = vpop.f32.mrb[36].mxu0  ;;  %v13126_v17 = vld [vmem:[#allocation14_spill] sm:$0xff] }
 0x27d   :  { %v4657_v19 = vmax.f32 %v4341_v38, %v4349_v1  ;;  %v3417_v6 = vpop.f32.mrb[100].mxu1  ;;  %v8317_v59 = vadd.f32 %v3031_v27, %v11531_v18  ;;  %v3033_v55 = vpop.f32.mrb[37].mxu0 }
 0x27e   :  { %v8381_v61 = vadd.f32 %v3417_v6, %v11534_v31  ;;  %v3419_v58 = vpop.f32.mrb[101].mxu1  ;;  %v8318_v63 = vadd.f32 %v3033_v55, %v11539_v36  ;;  %v3035_v32 = vpop.f32.mrb[38].mxu0 }
 0x27f   :  { %v8382_v52 = vadd.f32 %v3419_v58, %v11542_v4  ;;  %v3421_v13 = vpop.f32.mrb[102].mxu1  ;;  %v4354_v3 = vmax.f32 %v8317_v59, 0.0  ;;  %v8319_v7 = vadd.f32 %v3035_v32, %v11531_v18  ;;  %v3037_v43 = vpop.f32.mrb[39].mxu0 }
 0x280   :  { %v4356_v54 = vmax.f32 %v8381_v61, 0.0  ;;  %v8383_v48 = vadd.f32 %v3421_v13, %v11534_v31  ;;  %v3423_v33 = vpop.f32.mrb[103].mxu1  ;;  %v4355_v16 = vmax.f32 %v8318_v63, 0.0  ;;  %v8320_v22 = vadd.f32 %v3037_v43, %v11539_v36 }
 0x281   :  { %v4357_v25 = vmax.f32 %v8382_v52, 0.0  ;;  %v8384_v35 = vadd.f32 %v3423_v33, %v11542_v4  ;;  %v4595_v42 = vmax.f32 %v4594_v51, %v4354_v3  ;;  %v4362_v47 = vmax.f32 %v8319_v7, 0.0  ;;  %3719 = vmatmul.mubr.bf16.gmra.mrb[144].mxu0 %v13125_v8 }
 0x282   :  { %v4637_v29 = vmax.f32 %v4636_v40, %v4356_v54  ;;  %v4364_v60 = vmax.f32 %v8383_v48, 0.0  ;;  %4105 = vmatmul.mubr.bf16.gmra.mrb[208].mxu1 %v13125_v8  ;;  %v4616_v14 = vmax.f32 %v4615_v30, %v4355_v16  ;;  %v4363_v37 = vmax.f32 %v8320_v22, 0.0  ;;  %3728 = vmatprep.mubr.bf16.mxu0 %v13126_v17 }
 0x283   :  { %v4658_v57 = vmax.f32 %v4657_v19, %v4357_v25  ;;  %v4365_v38 = vmax.f32 %v8384_v35, 0.0  ;;  %4114 = vmatprep.mubr.bf16.mxu1 %v13126_v17  ;;  %v4596_v1 = vmax.f32 %v4595_v42, %v4362_v47  ;;  %v13127_v47 = vld [vmem:[#allocation13_spill] sm:$0xff] }
 0x284   :  { %v4638_v53 = vmax.f32 %v4637_v29, %v4364_v60  ;;  %v4617_v27 = vmax.f32 %v4616_v14, %v4363_v37  ;;  %v3041_v51 = vpop.f32.mrb[40].mxu0  ;;  %v13128_v37 = vld [vmem:[#allocation19_spill] sm:$0xff] }
 0x285   :  { %v4659_v6 = vmax.f32 %v4658_v57, %v4365_v38  ;;  %v3427_v40 = vpop.f32.mrb[104].mxu1  ;;  %v8321_v59 = vadd.f32 %v3041_v51, %v11531_v18  ;;  %v3043_v55 = vpop.f32.mrb[41].mxu0 }
 0x286   :  { %v8385_v61 = vadd.f32 %v3427_v40, %v11534_v31  ;;  %v3429_v58 = vpop.f32.mrb[105].mxu1  ;;  %v8322_v30 = vadd.f32 %v3043_v55, %v11539_v36  ;;  %v3045_v63 = vpop.f32.mrb[42].mxu0 }
 0x287   :  { %v8386_v19 = vadd.f32 %v3429_v58, %v11542_v4  ;;  %v3431_v52 = vpop.f32.mrb[106].mxu1  ;;  %v4370_v32 = vmax.f32 %v8321_v59, 0.0  ;;  %v8323_v3 = vadd.f32 %v3045_v63, %v11531_v18  ;;  %v3047_v7 = vpop.f32.mrb[43].mxu0 }
 0x288   :  { %v4372_v13 = vmax.f32 %v8385_v61, 0.0  ;;  %v8387_v54 = vadd.f32 %v3431_v52, %v11534_v31  ;;  %v3433_v48 = vpop.f32.mrb[107].mxu1  ;;  %v4371_v43 = vmax.f32 %v8322_v30, 0.0  ;;  %v8324_v16 = vadd.f32 %v3047_v7, %v11539_v36 }
 0x289   :  { %v4373_v33 = vmax.f32 %v8386_v19, 0.0  ;;  %v8388_v25 = vadd.f32 %v3433_v48, %v11542_v4  ;;  %v4597_v22 = vmax.f32 %v4596_v1, %v4370_v32  ;;  %v4378_v42 = vmax.f32 %v8323_v3, 0.0  ;;  %3729 = vmatmul.mubr.bf16.gmra.mrb[148].mxu0 %v13127_v47 }
 0x28a   :  { %v4639_v35 = vmax.f32 %v4638_v53, %v4372_v13  ;;  %v4380_v29 = vmax.f32 %v8387_v54, 0.0  ;;  %4115 = vmatmul.mubr.bf16.gmra.mrb[212].mxu1 %v13127_v47  ;;  %v4618_v60 = vmax.f32 %v4617_v27, %v4371_v43  ;;  %v4379_v14 = vmax.f32 %v8324_v16, 0.0  ;;  %3738 = vmatprep.mubr.bf16.mxu0 %v13128_v37 }
 0x28b   :  { %v4660_v8 = vmax.f32 %v4659_v6, %v4373_v33  ;;  %v4381_v57 = vmax.f32 %v8388_v25, 0.0  ;;  %4124 = vmatprep.mubr.bf16.mxu1 %v13128_v37  ;;  %v4598_v38 = vmax.f32 %v4597_v22, %v4378_v42  ;;  %v13129_v42 = vld [vmem:[#allocation16_spill] sm:$0xff] }
 0x28c   :  { %v4640_v17 = vmax.f32 %v4639_v35, %v4380_v29  ;;  %v4619_v51 = vmax.f32 %v4618_v60, %v4379_v14  ;;  %v3051_v1 = vpop.f32.mrb[44].mxu0  ;;  %v13130_v14 = vld [vmem:[#allocation22_spill] sm:$0xff] }
 0x28d   :  { %v4661_v40 = vmax.f32 %v4660_v8, %v4381_v57  ;;  %v3437_v53 = vpop.f32.mrb[108].mxu1  ;;  %v8325_v59 = vadd.f32 %v3051_v1, %v11531_v18  ;;  %v3053_v55 = vpop.f32.mrb[45].mxu0 }
 0x28e   :  { %v8389_v61 = vadd.f32 %v3437_v53, %v11534_v31  ;;  %v3439_v58 = vpop.f32.mrb[109].mxu1  ;;  %v8326_v27 = vadd.f32 %v3053_v55, %v11539_v36  ;;  %v3055_v30 = vpop.f32.mrb[46].mxu0 }
 0x28f   :  { %v8390_v6 = vadd.f32 %v3439_v58, %v11542_v4  ;;  %v3441_v19 = vpop.f32.mrb[110].mxu1  ;;  %v4386_v63 = vmax.f32 %v8325_v59, 0.0  ;;  %v8327_v32 = vadd.f32 %v3055_v30, %v11531_v18  ;;  %v3057_v3 = vpop.f32.mrb[47].mxu0 }
 0x290   :  { %v4388_v52 = vmax.f32 %v8389_v61, 0.0  ;;  %v8391_v13 = vadd.f32 %v3441_v19, %v11534_v31  ;;  %v3443_v54 = vpop.f32.mrb[111].mxu1  ;;  %v4387_v7 = vmax.f32 %v8326_v27, 0.0  ;;  %v8328_v43 = vadd.f32 %v3057_v3, %v11539_v36 }
 0x291   :  { %v4389_v48 = vmax.f32 %v8390_v6, 0.0  ;;  %v8392_v33 = vadd.f32 %v3443_v54, %v11542_v4  ;;  %v4599_v16 = vmax.f32 %v4598_v38, %v4386_v63  ;;  %v4394_v22 = vmax.f32 %v8327_v32, 0.0  ;;  %3739 = vmatmul.mubr.bf16.gmra.mrb[152].mxu0 %v13129_v42 }
 0x292   :  { %v4641_v25 = vmax.f32 %v4640_v17, %v4388_v52  ;;  %v4396_v35 = vmax.f32 %v8391_v13, 0.0  ;;  %4125 = vmatmul.mubr.bf16.gmra.mrb[216].mxu1 %v13129_v42  ;;  %v4620_v29 = vmax.f32 %v4619_v51, %v4387_v7  ;;  %v4395_v60 = vmax.f32 %v8328_v43, 0.0  ;;  %3748 = vmatprep.mubr.bf16.mxu0 %v13130_v14 }
 0x293   :  { %v4662_v47 = vmax.f32 %v4661_v40, %v4389_v48  ;;  %v4397_v8 = vmax.f32 %v8392_v33, 0.0  ;;  %4134 = vmatprep.mubr.bf16.mxu1 %v13130_v14  ;;  %v4600_v57 = vmax.f32 %v4599_v16, %v4394_v22  ;;  %v13131_v22 = vld [vmem:[#allocation21_spill] sm:$0xff] }
 0x294   :  { %v4642_v37 = vmax.f32 %v4641_v25, %v4396_v35  ;;  %v4621_v1 = vmax.f32 %v4620_v29, %v4395_v60  ;;  %v3061_v38 = vpop.f32.mrb[48].mxu0  ;;  %v13132_v60 = vld [vmem:[#allocation24_spill] sm:$0xff] }
 0x295   :  { %v4663_v53 = vmax.f32 %v4662_v47, %v4397_v8  ;;  %v3447_v17 = vpop.f32.mrb[112].mxu1  ;;  %v8329_v59 = vadd.f32 %v3061_v38, %v11531_v18  ;;  %v3063_v55 = vpop.f32.mrb[49].mxu0 }
 0x296   :  { %v8393_v61 = vadd.f32 %v3447_v17, %v11534_v31  ;;  %v3449_v58 = vpop.f32.mrb[113].mxu1  ;;  %v8330_v51 = vadd.f32 %v3063_v55, %v11539_v36  ;;  %v3065_v27 = vpop.f32.mrb[50].mxu0 }
 0x297   :  { %v8394_v40 = vadd.f32 %v3449_v58, %v11542_v4  ;;  %v3451_v6 = vpop.f32.mrb[114].mxu1  ;;  %v4402_v30 = vmax.f32 %v8329_v59, 0.0  ;;  %v8331_v63 = vadd.f32 %v3065_v27, %v11531_v18  ;;  %v3067_v32 = vpop.f32.mrb[51].mxu0  ;;  %v9004_v27 = vld [vmem:[%s13012_s5] ss:$16 sps:$4 sm:$0xff]  }
 0x298   :  { %v4404_v19 = vmax.f32 %v8393_v61, 0.0  ;;  %v8395_v52 = vadd.f32 %v3451_v6, %v11534_v31  ;;  %v3453_v13 = vpop.f32.mrb[115].mxu1  ;;  %v4403_v3 = vmax.f32 %v8330_v51, 0.0  ;;  %v8332_v7 = vadd.f32 %v3067_v32, %v11539_v36 }
 0x299   :  { %v4405_v54 = vmax.f32 %v8394_v40, 0.0  ;;  %v8396_v48 = vadd.f32 %v3453_v13, %v11542_v4  ;;  %v4601_v43 = vmax.f32 %v4600_v57, %v4402_v30  ;;  %v4410_v16 = vmax.f32 %v8331_v63, 0.0  ;;  %3749 = vmatmul.mubr.bf16.gmra.mrb[156].mxu0 %v13131_v22  ;;  %v9007_v13 = vld [vmem:[%s13012_s5 + $0x8] ss:$16 sps:$4 sm:$0xff]  }
 0x29a   :  { %v4643_v33 = vmax.f32 %v4642_v37, %v4404_v19  ;;  %v4412_v25 = vmax.f32 %v8395_v52, 0.0  ;;  %4135 = vmatmul.mubr.bf16.gmra.mrb[220].mxu1 %v13131_v22  ;;  %v4622_v35 = vmax.f32 %v4621_v1, %v4403_v3  ;;  %v4411_v29 = vmax.f32 %v8332_v7, 0.0  ;;  %3791 = vmatprep.mubr.bf16.mxu0 %v13132_v60 }
 0x29b   :  { %v4664_v42 = vmax.f32 %v4663_v53, %v4405_v54  ;;  %v4413_v47 = vmax.f32 %v8396_v48, 0.0  ;;  %4177 = vmatprep.mubr.bf16.mxu1 %v13132_v60  ;;  %v4602_v8 = vmax.f32 %v4601_v43, %v4410_v16  ;;  %v9012_v43 = vld [vmem:[%s13012_s5 + $0x24] ss:$16 sps:$4 sm:$0xff]  }
 0x29c   :  { %v4644_v14 = vmax.f32 %v4643_v33, %v4412_v25  ;;  %v4623_v38 = vmax.f32 %v4622_v35, %v4411_v29  ;;  %v3071_v57 = vpop.f32.mrb[52].mxu0  ;;  %v9015_v33 = vld [vmem:[%s13012_s5 + $0x2c] ss:$16 sps:$4 sm:$0xff]  }
 0x29d   :  { %v4665_v17 = vmax.f32 %v4664_v42, %v4413_v47  ;;  %v3457_v37 = vpop.f32.mrb[116].mxu1  ;;  %v8333_v59 = vadd.f32 %v3071_v57, %v11531_v18  ;;  %v3073_v55 = vpop.f32.mrb[53].mxu0  ;;  %v13133_v42 = vld [vmem:[#allocation23_spill] sm:$0xff] }
 0x29e   :  { %v8397_v61 = vadd.f32 %v3457_v37, %v11534_v31  ;;  %v3459_v58 = vpop.f32.mrb[117].mxu1  ;;  %v8334_v1 = vadd.f32 %v3073_v55, %v11539_v36  ;;  %v3075_v51 = vpop.f32.mrb[54].mxu0 }
 0x29f   :  { %v8398_v53 = vadd.f32 %v3459_v58, %v11542_v4  ;;  %v3461_v40 = vpop.f32.mrb[118].mxu1  ;;  %v4418_v6 = vmax.f32 %v8333_v59, 0.0  ;;  %v8335_v19 = vadd.f32 %v3075_v51, %v11531_v18  ;;  %v3077_v52 = vpop.f32.mrb[55].mxu0  ;;  %v9021_v58 = vld [vmem:[%s13012_s5 + $0x4c] ss:$16 sps:$4 sm:$0xff]  }
 0x2a0   :  { %v4420_v30 = vmax.f32 %v8397_v61, 0.0  ;;  %v8399_v63 = vadd.f32 %v3461_v40, %v11534_v31  ;;  %v3463_v32 = vpop.f32.mrb[119].mxu1  ;;  %v4419_v3 = vmax.f32 %v8334_v1, 0.0  ;;  %v8336_v7 = vadd.f32 %v3077_v52, %v11539_v36 }
 0x2a1   :  { %v4421_v54 = vmax.f32 %v8398_v53, 0.0  ;;  %v8400_v48 = vadd.f32 %v3463_v32, %v11542_v4  ;;  %v4603_v16 = vmax.f32 %v4602_v8, %v4418_v6  ;;  %v4426_v22 = vmax.f32 %v8335_v19, 0.0  ;;  %3792 = vmatmul.mubr.bf16.vlgmr.msra.gmra.mrb[96].mxu0 %v13133_v42  ;;  %v9010_v8 = vld [vmem:[%s13012_s5 + $0x20] ss:$16 sps:$4 sm:$0xff]  }
 0x2a2   :  { %v4645_v25 = vmax.f32 %v4644_v14, %v4420_v30  ;;  %v4428_v35 = vmax.f32 %v8399_v63, 0.0  ;;  %4178 = vmatmul.mubr.bf16.vlgmr.msra.gmra.mrb[160].mxu1 %v13133_v42  ;;  %v4624_v29 = vmax.f32 %v4623_v38, %v4419_v3  ;;  %v4427_v60 = vmax.f32 %v8336_v7, 0.0  ;;  %3801 = vmatprep.mubr.bf16.mxu0 %v10876_v26  ;;  %v9013_v14 = vld [vmem:[%s13012_s5 + $0x28] ss:$16 sps:$4 sm:$0xff]   ;;  %v9016_v63 = vld [vmem:[%s13012_s5 + $0x40] ss:$16 sps:$4 sm:$0xff]  }
 0x2a3   :  { %v4666_v47 = vmax.f32 %v4665_v17, %v4421_v54  ;;  %v4429_v57 = vmax.f32 %v8400_v48, 0.0  ;;  %4187 = vmatprep.mubr.bf16.mxu1 %v10876_v26  ;;  %v4604_v37 = vmax.f32 %v4603_v16, %v4426_v22  ;;  %6562 = vmatpush1.bf16.msra.mxu0 %v9004_v27  ;;  %v9018_v26 = vld [vmem:[%s13012_s5 + $0x44] ss:$16 sps:$4 sm:$0xff]   ;;  %v9019_v48 = vld [vmem:[%s13012_s5 + $0x48] ss:$16 sps:$4 sm:$0xff]  }
 0x2a4   :  { %v4646_v59 = vmax.f32 %v4645_v25, %v4428_v35  ;;  %6726 = vmatpush1.bf16.msra.mxu1 %v9007_v13  ;;  %v4625_v38 = vmax.f32 %v4624_v29, %v4427_v60  ;;  %v3081_v61 = vpop.f32.mrb[56].mxu0  ;;  %6563 = vmatprep.subr.bf16.mxu0 %v9012_v43  ;;  %v9024_v22 = vld [vmem:[%s13012_s5 + $0x64] ss:$16 sps:$4 sm:$0xff]   ;;  %v9027_v35 = vld [vmem:[%s13012_s5 + $0x6c] ss:$16 sps:$4 sm:$0xff]  }
 0x2a5   :  { %v4667_v17 = vmax.f32 %v4666_v47, %v4429_v57  ;;  %v3467_v55 = vpop.f32.mrb[120].mxu1  ;;  %6727 = vmatprep.subr.bf16.mxu1 %v9015_v33  ;;  %v8337_v1 = vadd.f32 %v3081_v61, %v11531_v18  ;;  %v3083_v51 = vpop.f32.mrb[57].mxu0 }
 0x2a6   :  { %v8401_v53 = vadd.f32 %v3467_v55, %v11534_v31  ;;  %v3469_v40 = vpop.f32.mrb[121].mxu1  ;;  %v8338_v27 = vadd.f32 %v3083_v51, %v11539_v36  ;;  %v3085_v30 = vpop.f32.mrb[58].mxu0  ;;  %v13134_v55 = vld [vmem:[#allocation26_spill] sm:$0xff] }
 0x2a7   :  { %v8402_v6 = vadd.f32 %v3469_v40, %v11542_v4  ;;  %v3471_v19 = vpop.f32.mrb[122].mxu1  ;;  %v4434_v52 = vmax.f32 %v8337_v1, 0.0  ;;  %v8339_v13 = vadd.f32 %v3085_v30, %v11531_v18  ;;  %v3087_v54 = vpop.f32.mrb[59].mxu0  ;;  %6564 = vmatpush1.bf16.msra.mxu0 %v9010_v8  ;;  %v9033_v51 = vld [vmem:[%s13012_s5 + $0x8c] ss:$16 sps:$4 sm:$0xff]  }
 0x2a8   :  { %v4436_v32 = vmax.f32 %v8401_v53, 0.0  ;;  %v8403_v3 = vadd.f32 %v3471_v19, %v11534_v31  ;;  %v3473_v7 = vpop.f32.mrb[123].mxu1  ;;  %6728 = vmatpush1.bf16.msra.mxu1 %v9013_v14  ;;  %v4435_v43 = vmax.f32 %v8338_v27, 0.0  ;;  %v8340_v16 = vadd.f32 %v3087_v54, %v11539_v36  ;;  %6565 = vmatprep.subr.bf16.mxu0 %v9018_v26  ;;  %v9030_v53 = vld [vmem:[%s13012_s5 + $0x84] ss:$16 sps:$4 sm:$0xff]  }
 0x2a9   :  { %v4437_v33 = vmax.f32 %v8402_v6, 0.0  ;;  %v8404_v25 = vadd.f32 %v3473_v7, %v11542_v4  ;;  %6729 = vmatprep.subr.bf16.mxu1 %v9021_v58  ;;  %v4605_v42 = vmax.f32 %v4604_v37, %v4434_v52  ;;  %v4442_v47 = vmax.f32 %v8339_v13, 0.0  ;;  %3802 = vmatmul.mubr.bf16.gmra.mrb[100].mxu0 %v10874_v50  ;;  %v9022_v37 = vld [vmem:[%s13012_s5 + $0x60] ss:$16 sps:$4 sm:$0xff]  }
 0x2aa   :  { %v4647_v29 = vmax.f32 %v4646_v59, %v4436_v32  ;;  %v4444_v60 = vmax.f32 %v8403_v3, 0.0  ;;  %4188 = vmatmul.mubr.bf16.gmra.mrb[164].mxu1 %v10874_v50  ;;  %v4626_v57 = vmax.f32 %v4625_v38, %v4435_v43  ;;  %v4443_v14 = vmax.f32 %v8340_v16, 0.0  ;;  %3811 = vmatprep.mubr.bf16.mxu0 %v13134_v55  ;;  %v9025_v50 = vld [vmem:[%s13012_s5 + $0x68] ss:$16 sps:$4 sm:$0xff]   ;;  %v9028_v13 = vld [vmem:[%s13012_s5 + $0x80] ss:$16 sps:$4 sm:$0xff]  }
 0x2ab   :  { %v4668_v8 = vmax.f32 %v4667_v17, %v4437_v33  ;;  %v4445_v61 = vmax.f32 %v8404_v25, 0.0  ;;  %4197 = vmatprep.mubr.bf16.mxu1 %v13134_v55  ;;  %v4606_v26 = vmax.f32 %v4605_v42, %v4442_v47  ;;  %6566 = vmatpush1.bf16.msra.mxu0 %v9016_v63  ;;  %v9031_v16 = vld [vmem:[%s13012_s5 + $0x88] ss:$16 sps:$4 sm:$0xff]   ;;  %v9039_v47 = vld [vmem:[%s13012_s5 + $0xac] ss:$16 sps:$4 sm:$0xff]  }
 0x2ac   :  { %v4648_v58 = vmax.f32 %v4647_v29, %v4444_v60  ;;  %6730 = vmatpush1.bf16.msra.mxu1 %v9019_v48  ;;  %v4627_v59 = vmax.f32 %v4626_v57, %v4443_v14  ;;  %v3091_v17 = vpop.f32.mrb[60].mxu0  ;;  %6567 = vmatprep.subr.bf16.mxu0 %v9024_v22  ;;  %v9036_v29 = vld [vmem:[%s13012_s5 + $0xa4] ss:$16 sps:$4 sm:$0xff]  }
 0x2ad   :  { %v4669_v38 = vmax.f32 %v4668_v8, %v4445_v61  ;;  %v3477_v1 = vpop.f32.mrb[124].mxu1  ;;  %6731 = vmatprep.subr.bf16.mxu1 %v9027_v35  ;;  %v8341_v40 = vadd.f32 %v3091_v17, %v11531_v18  ;;  %v3093_v6 = vpop.f32.mrb[61].mxu0  ;;  %v13135_v61 = vld [vmem:[#allocation25_spill] sm:$0xff] }
 0x2ae   :  { %v8405_v27 = vadd.f32 %v3477_v1, %v11534_v31  ;;  %v3479_v30 = vpop.f32.mrb[125].mxu1  ;;  %v8342_v19 = vadd.f32 %v3093_v6, %v11539_v36  ;;  %v3095_v52 = vpop.f32.mrb[62].mxu0  ;;  %v13136_v1 = vld [vmem:[#allocation28_spill] sm:$0xff]  ;;  %v9042_v6 = vld [vmem:[%s13012_s5 + $0xc4] ss:$16 sps:$4 sm:$0xff]  }
 0x2af   :  { %v8406_v63 = vadd.f32 %v3479_v30, %v11542_v4  ;;  %v3481_v32 = vpop.f32.mrb[126].mxu1  ;;  %v4450_v3 = vmax.f32 %v8341_v40, 0.0  ;;  %v8343_v7 = vadd.f32 %v3095_v52, %v11531_v18  ;;  %v3097_v43 = vpop.f32.mrb[63].mxu0  ;;  %6568 = vmatpush1.bf16.msra.mxu0 %v9022_v37  ;;  %v9045_v30 = vld [vmem:[%s13012_s5 + $0xcc] ss:$16 sps:$4 sm:$0xff]  }
 0x2b0   :  { %v4452_v54 = vmax.f32 %v8405_v27, 0.0  ;;  %v8407_v48 = vadd.f32 %v3481_v32, %v11534_v31  ;;  %v3483_v33 = vpop.f32.mrb[127].mxu1  ;;  %6732 = vmatpush1.bf16.msra.mxu1 %v9025_v50  ;;  %v4451_v25 = vmax.f32 %v8342_v19, 0.0  ;;  %v8344_v35 = vadd.f32 %v3097_v43, %v11539_v36  ;;  %6569 = vmatprep.subr.bf16.mxu0 %v9030_v53  ;;  %v9043_v43 = vld [vmem:[%s13012_s5 + $0xc8] ss:$16 sps:$4 sm:$0xff]  }
 0x2b1   :  { %v4453_v22 = vmax.f32 %v8406_v63, 0.0  ;;  %v8408_v42 = vadd.f32 %v3483_v33, %v11542_v4  ;;  %6733 = vmatprep.subr.bf16.mxu1 %v9033_v51  ;;  %v4607_v60 = vmax.f32 %v4606_v26, %v4450_v3  ;;  %v4458_v8 = vmax.f32 %v8343_v7, 0.0  ;;  %3812 = vmatmul.mubr.bf16.gmra.mrb[104].mxu0 %v13135_v61  ;;  %v9034_v26 = vld [vmem:[%s13012_s5 + $0xa0] ss:$16 sps:$4 sm:$0xff]  }
 0x2b2   :  { %v4649_v57 = vmax.f32 %v4648_v58, %v4452_v54  ;;  %v4460_v14 = vmax.f32 %v8407_v48, 0.0  ;;  %4198 = vmatmul.mubr.bf16.gmra.mrb[168].mxu1 %v13135_v61  ;;  %v4628_v55 = vmax.f32 %v4627_v59, %v4451_v25  ;;  %v4459_v50 = vmax.f32 %v8344_v35, 0.0  ;;  %3821 = vmatprep.mubr.bf16.mxu0 %v13136_v1  ;;  %v9037_v58 = vld [vmem:[%s13012_s5 + $0xa8] ss:$16 sps:$4 sm:$0xff]   ;;  %v9040_v48 = vld [vmem:[%s13012_s5 + $0xc0] ss:$16 sps:$4 sm:$0xff]  }
 0x2b3   :  { %v4670_v37 = vmax.f32 %v4669_v38, %v4453_v22  ;;  %v4461_v17 = vmax.f32 %v8408_v42, 0.0  ;;  %4207 = vmatprep.mubr.bf16.mxu1 %v13136_v1  ;;  %v11700_v53 = vmax.f32 %v4607_v60, %v4458_v8  ;;  %6570 = vmatpush1.bf16.msra.mxu0 %v9028_v13  ;;  %v9048_v25 = vld [vmem:[%s13012_s5 + $0xe4] ss:$16 sps:$4 sm:$0xff]   ;;  %v9051_v22 = vld [vmem:[%s13012_s5 + $0xec] ss:$16 sps:$4 sm:$0xff]  }
 0x2b4   :  { %v11702_v51 = vmax.f32 %v4649_v57, %v4460_v14  ;;  %6734 = vmatpush1.bf16.msra.mxu1 %v9031_v16  ;;  %v11710_v59 = vmax.f32 %v4628_v55, %v4459_v50  ;;  %v3101_v40 = vpop.f32.mrb[64].mxu0  ;;  %6571 = vmatprep.subr.bf16.mxu0 %v9036_v29  ;;  %v13137_v29 = vld [vmem:[#allocation27_spill] sm:$0xff]  ;;  %v13138_v57 = vld [vmem:[#allocation30_spill] sm:$0xff] }
 0x2b5   :  { %v11712_v38 = vmax.f32 %v4670_v37, %v4461_v17  ;;  %v3487_v27 = vpop.f32.mrb[128].mxu1  ;;  %6735 = vmatprep.subr.bf16.mxu1 %v9039_v47  ;;  %v3103_v19 = vpop.f32.mrb[65].mxu0  ;;  %v8345_v13 = vadd.f32 %v3101_v40, %v11531_v18  ;;  %v9046_v8 = vld [vmem:[%s13012_s5 + $0xe0] ss:$16 sps:$4 sm:$0xff]   ;;  %v9049_v50 = vld [vmem:[%s13012_s5 + $0xe8] ss:$16 sps:$4 sm:$0xff]  }
 0x2b6   :  { %v3489_v63 = vpop.f32.mrb[129].mxu1  ;;  %v3105_v52 = vpop.f32.mrb[66].mxu0  ;;  %v8409_v3 = vadd.f32 %v3487_v27, %v11534_v31  ;;  %v8346_v33 = vadd.f32 %v3103_v19, %v11539_v36 }
 0x2b7   :  { %v3491_v32 = vpop.f32.mrb[130].mxu1  ;;  %v3107_v54 = vpop.f32.mrb[67].mxu0  ;;  %6572 = vmatpush1.bf16.msra.mxu0 %v9034_v26  ;;  %v8410_v16 = vadd.f32 %v3489_v63, %v11542_v4  ;;  %v8347_v35 = vadd.f32 %v3105_v52, %v11531_v18  ;;  %v4466_v14 = vmax.f32 %v8345_v13, 0.0 }
 0x2b8   :  { %v3493_v7 = vpop.f32.mrb[131].mxu1  ;;  %6736 = vmatpush1.bf16.msra.mxu1 %v9037_v58  ;;  %6573 = vmatprep.subr.bf16.mxu0 %v9042_v6  ;;  %v8411_v42 = vadd.f32 %v3491_v32, %v11534_v31  ;;  %v8348_v47 = vadd.f32 %v3107_v54, %v11539_v36  ;;  %v4468_v61 = vmax.f32 %v8409_v3, 0.0  ;;  %v4467_v17 = vmax.f32 %v8346_v33, 0.0  ;;  %v9054_v33 = vld [vmem:[%s13012_s5 + $0x104] ss:$16 sps:$4 sm:$0xff]  }
 0x2b9   :  { %6737 = vmatprep.subr.bf16.mxu1 %v9045_v30  ;;  %3822 = vmatmul.mubr.bf16.gmra.mrb[108].mxu0 %v13137_v29  ;;  %v8412_v60 = vadd.f32 %v3493_v7, %v11542_v4  ;;  %v4474_v55 = vmax.f32 %v8347_v35, 0.0  ;;  %v4469_v1 = vmax.f32 %v8410_v16, 0.0  ;;  %v9057_v16 = vld [vmem:[%s13012_s5 + $0x10c] ss:$16 sps:$4 sm:$0xff]   ;;  %v9052_v35 = vld [vmem:[%s13012_s5 + $0x100] ss:$16 sps:$4 sm:$0xff]  }
 0x2ba   :  { %4208 = vmatmul.mubr.bf16.gmra.mrb[172].mxu1 %v13137_v29  ;;  %3831 = vmatprep.mubr.bf16.mxu0 %v13138_v57  ;;  %v4476_v37 = vmax.f32 %v8411_v42, 0.0  ;;  %v4475_v26 = vmax.f32 %v8348_v47, 0.0  ;;  %v9055_v42 = vld [vmem:[%s13012_s5 + $0x108] ss:$16 sps:$4 sm:$0xff]  }
 0x2bb   :  { %4217 = vmatprep.mubr.bf16.mxu1 %v13138_v57  ;;  %6574 = vmatpush1.bf16.msra.mxu0 %v9040_v48  ;;  %v4477_v58 = vmax.f32 %v8412_v60, 0.0  ;;  %v4762_v6 = vmax.f32 %v4466_v14, %v4474_v55  ;;  %v13139_v60 = vld [vmem:[#allocation29_spill] sm:$0xff] }
 0x2bc   :  { %6738 = vmatpush1.bf16.msra.mxu1 %v9043_v43  ;;  %v3111_v40 = vpop.f32.mrb[68].mxu0  ;;  %6575 = vmatprep.subr.bf16.mxu0 %v9048_v25  ;;  %v4804_v30 = vmax.f32 %v4468_v61, %v4476_v37  ;;  %v4783_v52 = vmax.f32 %v4467_v17, %v4475_v26  ;;  %v9060_v57 = vld [vmem:[%s13012_s5 + $0x124] ss:$16 sps:$4 sm:$0xff]   ;;  %v13140_v37 = vld [vmem:[#allocation32_spill] sm:$0xff] }
 0x2bd   :  { %v3497_v27 = vpop.f32.mrb[132].mxu1  ;;  %6739 = vmatprep.subr.bf16.mxu1 %v9051_v22  ;;  %v3113_v19 = vpop.f32.mrb[69].mxu0  ;;  %v4825_v32 = vmax.f32 %v4469_v1, %v4477_v58  ;;  %v8349_v54 = vadd.f32 %v3111_v40, %v11531_v18  ;;  %v9058_v26 = vld [vmem:[%s13012_s5 + $0x120] ss:$16 sps:$4 sm:$0xff]  }
 0x2be   :  { %v3499_v63 = vpop.f32.mrb[133].mxu1  ;;  %v3115_v13 = vpop.f32.mrb[70].mxu0  ;;  %v8413_v7 = vadd.f32 %v3497_v27, %v11534_v31  ;;  %v8350_v25 = vadd.f32 %v3113_v19, %v11539_v36 }
 0x2bf   :  { %v3501_v3 = vpop.f32.mrb[134].mxu1  ;;  %v3117_v48 = vpop.f32.mrb[71].mxu0  ;;  %6576 = vmatpush1.bf16.msra.mxu0 %v9046_v8  ;;  %v8414_v22 = vadd.f32 %v3499_v63, %v11542_v4  ;;  %v4482_v29 = vmax.f32 %v8349_v54, 0.0  ;;  %v8351_v61 = vadd.f32 %v3115_v13, %v11531_v18 }
 0x2c0   :  { %v3503_v43 = vpop.f32.mrb[135].mxu1  ;;  %6740 = vmatpush1.bf16.msra.mxu1 %v9049_v50  ;;  %v4484_v47 = vmax.f32 %v8413_v7, 0.0  ;;  %v4483_v8 = vmax.f32 %v8350_v25, 0.0  ;;  %v8415_v55 = vadd.f32 %v3501_v3, %v11534_v31  ;;  %v9063_v50 = vld [vmem:[%s13012_s5 + $0x12c] ss:$16 sps:$4 sm:$0xff]   ;;  %6577 = vmatprep.subr.bf16.mxu0 %v9054_v33 }
 0x2c1   :  { %3832 = vmatmul.mubr.bf16.gmra.mrb[112].mxu0 %v13139_v60  ;;  %v4485_v14 = vmax.f32 %v8414_v22, 0.0  ;;  %v4763_v17 = vmax.f32 %v4762_v6, %v4482_v29  ;;  %6741 = vmatprep.subr.bf16.mxu1 %v9057_v16  ;;  %v4490_v27 = vmax.f32 %v8351_v61, 0.0  ;;  %v9061_v3 = vld [vmem:[%s13012_s5 + $0x128] ss:$16 sps:$4 sm:$0xff]   ;;  %v8352_v6 = vadd.f32 %v3117_v48, %v11539_v36  ;;  %v9066_v48 = vld [vmem:[%s13012_s5 + $0x144] ss:$16 sps:$4 sm:$0xff]  }
 0x2c2   :  { %4218 = vmatmul.mubr.bf16.gmra.mrb[176].mxu1 %v13139_v60  ;;  %3841 = vmatprep.mubr.bf16.mxu0 %v13140_v37  ;;  %v4805_v1 = vmax.f32 %v4804_v30, %v4484_v47  ;;  %v4784_v58 = vmax.f32 %v4783_v52, %v4483_v8  ;;  %v4492_v19 = vmax.f32 %v8415_v55, 0.0  ;;  %v8416_v30 = vadd.f32 %v3503_v43, %v11542_v4 }
 0x2c3   :  { %4227 = vmatprep.mubr.bf16.mxu1 %v13140_v37  ;;  %v4826_v40 = vmax.f32 %v4825_v32, %v4485_v14  ;;  %6578 = vmatpush1.bf16.msra.mxu0 %v9052_v35  ;;  %v4764_v33 = vmax.f32 %v4763_v17, %v4490_v27  ;;  %v4491_v43 = vmax.f32 %v8352_v6, 0.0  ;;  %v9069_v17 = vld [vmem:[%s13012_s5 + $0x14c] ss:$16 sps:$4 sm:$0xff]   ;;  %v9067_v6 = vld [vmem:[%s13012_s5 + $0x148] ss:$16 sps:$4 sm:$0xff]  }
 0x2c4   :  { %v3121_v63 = vpop.f32.mrb[72].mxu0  ;;  %6742 = vmatpush1.bf16.msra.mxu1 %v9055_v42  ;;  %6579 = vmatprep.subr.bf16.mxu0 %v9060_v57  ;;  %v4806_v16 = vmax.f32 %v4805_v1, %v4492_v19  ;;  %v4493_v29 = vmax.f32 %v8416_v30, 0.0 }
 0x2c5   :  { %v3507_v13 = vpop.f32.mrb[136].mxu1  ;;  %v8353_v54 = vadd.f32 %v3121_v63, %v11531_v18  ;;  %v3123_v52 = vpop.f32.mrb[73].mxu0  ;;  %6743 = vmatprep.subr.bf16.mxu1 %v9063_v50  ;;  %v9064_v50 = vld [vmem:[%s13012_s5 + $0x140] ss:$16 sps:$4 sm:$0xff]   ;;  %v4785_v1 = vmax.f32 %v4784_v58, %v4491_v43 }
 0x2c6   :  { %v8417_v7 = vadd.f32 %v3507_v13, %v11534_v31  ;;  %v3509_v32 = vpop.f32.mrb[137].mxu1  ;;  %v8354_v25 = vadd.f32 %v3123_v52, %v11539_v36  ;;  %v3125_v35 = vpop.f32.mrb[74].mxu0  ;;  %v4827_v27 = vmax.f32 %v4826_v40, %v4493_v29  ;;  %v13141_v13 = vld [vmem:[#allocation31_spill] sm:$0xff]  ;;  %v13142_v58 = vld [vmem:[#allocation33_spill] sm:$0xff]  ;;  %v9075_v40 = vld [vmem:[%s13012_s5 + $0x16c] ss:$16 sps:$4 sm:$0xff]  }
 0x2c7   :  { %v8418_v22 = vadd.f32 %v3509_v32, %v11542_v4  ;;  %v3511_v42 = vpop.f32.mrb[138].mxu1  ;;  %v4498_v47 = vmax.f32 %v8353_v54, 0.0  ;;  %v3127_v8 = vpop.f32.mrb[75].mxu0  ;;  %v8355_v55 = vadd.f32 %v3125_v35, %v11531_v18  ;;  %6580 = vmatpush1.bf16.msra.mxu0 %v9058_v26  ;;  %v9072_v26 = vld [vmem:[%s13012_s5 + $0x164] ss:$16 sps:$4 sm:$0xff]  }
 0x2c8   :  { %v4500_v60 = vmax.f32 %v8417_v7, 0.0  ;;  %v3513_v14 = vpop.f32.mrb[139].mxu1  ;;  %v4499_v57 = vmax.f32 %v8354_v25, 0.0  ;;  %v8419_v37 = vadd.f32 %v3511_v42, %v11534_v31  ;;  %6744 = vmatpush1.bf16.msra.mxu1 %v9061_v3  ;;  %v8356_v54 = vadd.f32 %v3127_v8, %v11539_v36  ;;  %6581 = vmatprep.subr.bf16.mxu0 %v9066_v48  ;;  %v9070_v43 = vld [vmem:[%s13012_s5 + $0x160] ss:$16 sps:$4 sm:$0xff]  }
 0x2c9   :  { %v4501_v61 = vmax.f32 %v8418_v22, 0.0  ;;  %v4765_v19 = vmax.f32 %v4764_v33, %v4498_v47  ;;  %3842 = vmatmul.mubr.bf16.gmra.mrb[116].mxu0 %v13141_v13  ;;  %v4506_v3 = vmax.f32 %v8355_v55, 0.0  ;;  %v8420_v7 = vadd.f32 %v3513_v14, %v11542_v4  ;;  %6745 = vmatprep.subr.bf16.mxu1 %v9069_v17  ;;  %v9073_v48 = vld [vmem:[%s13012_s5 + $0x168] ss:$16 sps:$4 sm:$0xff]  }
 0x2ca   :  { %v4807_v63 = vmax.f32 %v4806_v16, %v4500_v60  ;;  %v4508_v30 = vmax.f32 %v8419_v37, 0.0  ;;  %4228 = vmatmul.mubr.bf16.gmra.mrb[180].mxu1 %v13141_v13  ;;  %3851 = vmatprep.mubr.bf16.mxu0 %v13142_v58  ;;  %v4786_v52 = vmax.f32 %v4785_v1, %v4499_v57  ;;  %v4507_v25 = vmax.f32 %v8356_v54, 0.0 }
 0x2cb   :  { %v4828_v32 = vmax.f32 %v4827_v27, %v4501_v61  ;;  %4237 = vmatprep.mubr.bf16.mxu1 %v13142_v58  ;;  %v4766_v33 = vmax.f32 %v4765_v19, %v4506_v3  ;;  %v4509_v22 = vmax.f32 %v8420_v7, 0.0  ;;  %6582 = vmatpush1.bf16.msra.mxu0 %v9064_v50  ;;  %v9076_v7 = vld [vmem:[%s13012_s5 + $0x180] ss:$16 sps:$4 sm:$0xff]   ;;  %v9081_v58 = vld [vmem:[%s13012_s5 + $0x18c] ss:$16 sps:$4 sm:$0xff]  }
 0x2cc   :  { %v4808_v16 = vmax.f32 %v4807_v63, %v4508_v30  ;;  %v3131_v35 = vpop.f32.mrb[76].mxu0  ;;  %6746 = vmatpush1.bf16.msra.mxu1 %v9067_v6  ;;  %6583 = vmatprep.subr.bf16.mxu0 %v9072_v26  ;;  %v4787_v14 = vmax.f32 %v4786_v52, %v4507_v25  ;;  %v9078_v6 = vld [vmem:[%s13012_s5 + $0x184] ss:$16 sps:$4 sm:$0xff]  }
 0x2cd   :  { %v3517_v42 = vpop.f32.mrb[140].mxu1  ;;  %v8357_v29 = vadd.f32 %v3131_v35, %v11531_v18  ;;  %v3133_v60 = vpop.f32.mrb[77].mxu0  ;;  %v4829_v57 = vmax.f32 %v4828_v32, %v4509_v22  ;;  %6747 = vmatprep.subr.bf16.mxu1 %v9075_v40  ;;  %v9079_v22 = vld [vmem:[%s13012_s5 + $0x188] ss:$16 sps:$4 sm:$0xff]   ;;  %v9084_v35 = vld [vmem:[%s13012_s5 + $0x1a4] ss:$16 sps:$4 sm:$0xff]  }
 0x2ce   :  { %v8421_v47 = vadd.f32 %v3517_v42, %v11534_v31  ;;  %v3519_v8 = vpop.f32.mrb[141].mxu1  ;;  %v8358_v61 = vadd.f32 %v3133_v60, %v11539_v36  ;;  %v3135_v37 = vpop.f32.mrb[78].mxu0 }
 0x2cf   :  { %v8422_v55 = vadd.f32 %v3519_v8, %v11542_v4  ;;  %v3521_v50 = vpop.f32.mrb[142].mxu1  ;;  %v4514_v17 = vmax.f32 %v8357_v29, 0.0  ;;  %v8359_v27 = vadd.f32 %v3135_v37, %v11531_v18  ;;  %v3137_v63 = vpop.f32.mrb[79].mxu0  ;;  %6584 = vmatpush1.bf16.msra.mxu0 %v9070_v43 }
 0x2d0   :  { %v4516_v1 = vmax.f32 %v8421_v47, 0.0  ;;  %v8423_v19 = vadd.f32 %v3521_v50, %v11534_v31  ;;  %v3523_v13 = vpop.f32.mrb[143].mxu1  ;;  %v4515_v26 = vmax.f32 %v8358_v61, 0.0  ;;  %v8360_v30 = vadd.f32 %v3137_v63, %v11539_v36  ;;  %6748 = vmatpush1.bf16.msra.mxu1 %v9073_v48  ;;  %6585 = vmatprep.subr.bf16.mxu0 %v9078_v6 }
 0x2d1   :  { %v4517_v3 = vmax.f32 %v8422_v55, 0.0  ;;  %v8424_v54 = vadd.f32 %v3523_v13, %v11542_v4  ;;  %v4767_v40 = vmax.f32 %v4766_v33, %v4514_v17  ;;  %v4522_v32 = vmax.f32 %v8359_v27, 0.0  ;;  %3852 = vmatmul.mubr.bf16.gmra.mrb[120].mxu0 %v10934_v23  ;;  %v13143_v33 = vld [vmem:[#allocation34_spill] sm:$0xff]  ;;  %6749 = vmatprep.subr.bf16.mxu1 %v9081_v58  ;;  %v9090_v58 = vld [vmem:[%s13012_s5 + $0x1c4] ss:$16 sps:$4 sm:$0xff]  }
 0x2d2   :  { %v4809_v52 = vmax.f32 %v4808_v16, %v4516_v1  ;;  %v4524_v25 = vmax.f32 %v8423_v19, 0.0  ;;  %v4788_v42 = vmax.f32 %v4787_v14, %v4515_v26  ;;  %v4523_v29 = vmax.f32 %v8360_v30, 0.0  ;;  %4238 = vmatmul.mubr.bf16.gmra.mrb[184].mxu1 %v10934_v23  ;;  %3861 = vmatprep.mubr.bf16.mxu0 %v13143_v33  ;;  %v9087_v16 = vld [vmem:[%s13012_s5 + $0x1ac] ss:$16 sps:$4 sm:$0xff]   ;;  %v9082_v23 = vld [vmem:[%s13012_s5 + $0x1a0] ss:$16 sps:$4 sm:$0xff]  }
 0x2d3   :  { %v4830_v43 = vmax.f32 %v4829_v57, %v4517_v3  ;;  %v4525_v47 = vmax.f32 %v8424_v54, 0.0  ;;  %v4768_v60 = vmax.f32 %v4767_v40, %v4522_v32  ;;  %4247 = vmatprep.mubr.bf16.mxu1 %v13143_v33  ;;  %6586 = vmatpush1.bf16.msra.mxu0 %v9076_v7  ;;  %v9085_v1 = vld [vmem:[%s13012_s5 + $0x1a8] ss:$16 sps:$4 sm:$0xff]  }
 0x2d4   :  { %v4810_v8 = vmax.f32 %v4809_v52, %v4524_v25  ;;  %v4789_v48 = vmax.f32 %v4788_v42, %v4523_v29  ;;  %v3141_v55 = vpop.f32.mrb[80].mxu0  ;;  %6750 = vmatpush1.bf16.msra.mxu1 %v9079_v22  ;;  %6587 = vmatprep.subr.bf16.mxu0 %v9084_v35  ;;  %v9088_v22 = vld [vmem:[%s13012_s5 + $0x1c0] ss:$16 sps:$4 sm:$0xff]   ;;  %v9093_v35 = vld [vmem:[%s13012_s5 + $0x1cc] ss:$16 sps:$4 sm:$0xff]  }
 0x2d5   :  { %v4831_v61 = vmax.f32 %v4830_v43, %v4525_v47  ;;  %v3527_v14 = vpop.f32.mrb[144].mxu1  ;;  %v8361_v57 = vadd.f32 %v3141_v55, %v11531_v18  ;;  %v3143_v50 = vpop.f32.mrb[81].mxu0  ;;  %6751 = vmatprep.subr.bf16.mxu1 %v9087_v16  ;;  %v9091_v33 = vld [vmem:[%s13012_s5 + $0x1c8] ss:$16 sps:$4 sm:$0xff]   ;;  %v9096_v16 = vld [vmem:[%s13012_s5 + $0x1e4] ss:$16 sps:$4 sm:$0xff]  }
 0x2d6   :  { %v8425_v37 = vadd.f32 %v3527_v14, %v11534_v31  ;;  %v3529_v17 = vpop.f32.mrb[145].mxu1  ;;  %v8362_v27 = vadd.f32 %v3143_v50, %v11539_v36  ;;  %v3145_v63 = vpop.f32.mrb[82].mxu0 }
 0x2d7   :  { %v8426_v19 = vadd.f32 %v3529_v17, %v11542_v4  ;;  %v3531_v13 = vpop.f32.mrb[146].mxu1  ;;  %v4530_v6 = vmax.f32 %v8361_v57, 0.0  ;;  %v8363_v3 = vadd.f32 %v3145_v63, %v11531_v18  ;;  %v3147_v54 = vpop.f32.mrb[83].mxu0  ;;  %6588 = vmatpush1.bf16.msra.mxu0 %v9082_v23 }
 0x2d8   :  { %v4532_v26 = vmax.f32 %v8425_v37, 0.0  ;;  %v8427_v30 = vadd.f32 %v3531_v13, %v11534_v31  ;;  %v3533_v7 = vpop.f32.mrb[147].mxu1  ;;  %v4531_v40 = vmax.f32 %v8362_v27, 0.0  ;;  %v8364_v32 = vadd.f32 %v3147_v54, %v11539_v36  ;;  %6752 = vmatpush1.bf16.msra.mxu1 %v9085_v1  ;;  %6589 = vmatprep.subr.bf16.mxu0 %v9090_v58 }
 0x2d9   :  { %v4533_v52 = vmax.f32 %v8426_v19, 0.0  ;;  %v8428_v25 = vadd.f32 %v3533_v7, %v11542_v4  ;;  %v4769_v42 = vmax.f32 %v4768_v60, %v4530_v6  ;;  %v4538_v29 = vmax.f32 %v8363_v3, 0.0  ;;  %3862 = vmatmul.mubr.bf16.gmra.mrb[124].mxu0 %v10946_v12  ;;  %v9099_v60 = vld [vmem:[%s13012_s5 + $0x1ec] ss:$16 sps:$4 sm:$0xff]   ;;  %6753 = vmatprep.subr.bf16.mxu1 %v9093_v35  ;;  %v9097_v6 = vld [vmem:[%s13012_s5 + $0x1e8] ss:$16 sps:$4 sm:$0xff]  }
 0x2da   :  { %v4811_v43 = vmax.f32 %v4810_v8, %v4532_v26  ;;  %v4540_v47 = vmax.f32 %v8427_v30, 0.0  ;;  %v4790_v55 = vmax.f32 %v4789_v48, %v4531_v40  ;;  %v4539_v23 = vmax.f32 %v8364_v32, 0.0  ;;  %4248 = vmatmul.mubr.bf16.gmra.mrb[188].mxu1 %v10946_v12  ;;  %3871 = vmatprep.mubr.bf16.mxu0 %v10978_v15  ;;  %v9094_v12 = vld [vmem:[%s13012_s5 + $0x1e0] ss:$16 sps:$4 sm:$0xff]  }
 0x2db   :  { %v4832_v14 = vmax.f32 %v4831_v61, %v4533_v52  ;;  %v4541_v57 = vmax.f32 %v8428_v25, 0.0  ;;  %v4770_v8 = vmax.f32 %v4769_v42, %v4538_v29  ;;  %4257 = vmatprep.mubr.bf16.mxu1 %v10978_v15  ;;  %6590 = vmatpush1.bf16.msra.mxu0 %v9088_v22  ;;  %v4609_v61 = vrot.slane %v11700_v53, 4  ;;  %v9102_v42 = vld [vmem:[%s13012_s5 + $0x204] ss:$16 sps:$4 sm:$0xff]  }
 0x2dc   :  { %v4812_v37 = vmax.f32 %v4811_v43, %v4540_v47  ;;  %v4791_v50 = vmax.f32 %v4790_v55, %v4539_v23  ;;  %v3151_v1 = vpop.f32.mrb[84].mxu0  ;;  %v4651_v27 = vrot.slane %v11702_v51, 4  ;;  %6754 = vmatpush1.bf16.msra.mxu1 %v9091_v33  ;;  %6591 = vmatprep.subr.bf16.mxu0 %v9096_v16  ;;  %v4630_v26 = vrot.slane %v11710_v59, 4  ;;  %v9105_v16 = vld [vmem:[%s13012_s5 + $0x20c] ss:$16 sps:$4 sm:$0xff]  }
 0x2dd   :  { %v4833_v17 = vmax.f32 %v4832_v14, %v4541_v57  ;;  %v3537_v48 = vpop.f32.mrb[148].mxu1  ;;  %v8365_v19 = vadd.f32 %v3151_v1, %v11531_v18  ;;  %v3153_v15 = vpop.f32.mrb[85].mxu0  ;;  %v4672_v3 = vrot.slane %v11712_v38, 4  ;;  %6755 = vmatprep.subr.bf16.mxu1 %v9099_v60 }
 0x2de   :  { %v8429_v63 = vadd.f32 %v3537_v48, %v11534_v31  ;;  %v3539_v13 = vpop.f32.mrb[149].mxu1  ;;  %v8366_v30 = vadd.f32 %v3153_v15, %v11539_v36  ;;  %v3155_v7 = vpop.f32.mrb[86].mxu0 }
 0x2df   :  { %v8430_v54 = vadd.f32 %v3539_v13, %v11542_v4  ;;  %v3541_v58 = vpop.f32.mrb[150].mxu1  ;;  %v4546_v40 = vmax.f32 %v8365_v19, 0.0  ;;  %v8367_v32 = vadd.f32 %v3155_v7, %v11531_v18  ;;  %v3157_v22 = vpop.f32.mrb[87].mxu0  ;;  %6592 = vmatpush1.bf16.msra.mxu0 %v9094_v12  ;;  %v11928_v7 = vmax.f32 %v11712_v38, %v4672_v3 }
 0x2e0   :  { %v4548_v52 = vmax.f32 %v8429_v63, 0.0  ;;  %v8431_v25 = vadd.f32 %v3541_v58, %v11534_v31  ;;  %v3543_v35 = vpop.f32.mrb[151].mxu1  ;;  %v4547_v43 = vmax.f32 %v8366_v30, 0.0  ;;  %v8368_v47 = vadd.f32 %v3157_v22, %v11539_v36  ;;  %6756 = vmatpush1.bf16.msra.mxu1 %v9097_v6  ;;  %6602 = vmatprep.subr.bf16.mxu0 %v9102_v42 }
 0x2e1   :  { %v4549_v29 = vmax.f32 %v8430_v54, 0.0  ;;  %v8432_v33 = vadd.f32 %v3543_v35, %v11542_v4  ;;  %v4771_v55 = vmax.f32 %v4770_v8, %v4546_v40  ;;  %v4554_v23 = vmax.f32 %v8367_v32, 0.0  ;;  %3872 = vmatmul.mubr.bf16.gmra.mrb[128].mxu0 %v10976_v28  ;;  %6766 = vmatprep.subr.bf16.mxu1 %v9105_v16 }
 0x2e2   :  { %v4813_v14 = vmax.f32 %v4812_v37, %v4548_v52  ;;  %v4556_v57 = vmax.f32 %v8431_v25, 0.0  ;;  %v4792_v60 = vmax.f32 %v4791_v50, %v4547_v43  ;;  %v4555_v48 = vmax.f32 %v8368_v47, 0.0  ;;  %4258 = vmatmul.mubr.bf16.gmra.mrb[192].mxu1 %v10976_v28  ;;  %3881 = vmatprep.mubr.bf16.mxu0 %v11020_v0 }
 0x2e3   :  { %v4834_v1 = vmax.f32 %v4833_v17, %v4549_v29  ;;  %v4557_v19 = vmax.f32 %v8432_v33, 0.0  ;;  %v4772_v12 = vmax.f32 %v4771_v55, %v4554_v23  ;;  %4267 = vmatprep.mubr.bf16.mxu1 %v11020_v0  ;;  %v11917_v6 = vmax.f32 %v11700_v53, %v4609_v61 }
 0x2e4   :  { %v4814_v63 = vmax.f32 %v4813_v14, %v4556_v57  ;;  %v4793_v8 = vmax.f32 %v4792_v60, %v4555_v48  ;;  %v3161_v15 = vpop.f32.mrb[88].mxu0  ;;  %v11920_v50 = vmax.f32 %v11702_v51, %v4651_v27  ;;  %v11925_v0 = vmax.f32 %v11710_v59, %v4630_v26 }
 0x2e5   :  { %v4835_v37 = vmax.f32 %v4834_v1, %v4557_v19  ;;  %v3547_v13 = vpop.f32.mrb[152].mxu1  ;;  %v8369_v28 = vadd.f32 %v3161_v15, %v11531_v18  ;;  %v3163_v30 = vpop.f32.mrb[89].mxu0  ;;  %v4611_v19 = vrot.slane %v11917_v6, 2 }
 0x2e6   :  { %v8433_v17 = vadd.f32 %v3547_v13, %v11534_v31  ;;  %v3549_v54 = vpop.f32.mrb[153].mxu1  ;;  %v8370_v58 = vadd.f32 %v3163_v30, %v11539_v36  ;;  %v3165_v61 = vpop.f32.mrb[90].mxu0  ;;  %v4632_v15 = vrot.slane %v11925_v0, 2  ;;  %v4674_v13 = vrot.slane %v11928_v7, 2 }
 0x2e7   :  { %v8434_v53 = vadd.f32 %v3549_v54, %v11542_v4  ;;  %v3551_v40 = vpop.f32.mrb[154].mxu1  ;;  %v4562_v51 = vmax.f32 %v8369_v28, 0.0  ;;  %v8371_v52 = vadd.f32 %v3165_v61, %v11531_v18  ;;  %v3167_v25 = vpop.f32.mrb[91].mxu0 }
 0x2e8   :  { %v4564_v27 = vmax.f32 %v8433_v17, 0.0  ;;  %v8435_v32 = vadd.f32 %v3551_v40, %v11534_v31  ;;  %v3553_v22 = vpop.f32.mrb[155].mxu1  ;;  %v4563_v35 = vmax.f32 %v8370_v58, 0.0  ;;  %v8372_v26 = vadd.f32 %v3167_v25, %v11539_v36 }
 0x2e9   :  { %v4565_v59 = vmax.f32 %v8434_v53, 0.0  ;;  %v8436_v38 = vadd.f32 %v3553_v22, %v11542_v4  ;;  %v4773_v3 = vmax.f32 %v4772_v12, %v4562_v51  ;;  %v4570_v43 = vmax.f32 %v8371_v52, 0.0  ;;  %3882 = vmatmul.mubr.bf16.gmra.mrb[132].mxu0 %v11018_v62 }
 0x2ea   :  { %v4815_v42 = vmax.f32 %v4814_v63, %v4564_v27  ;;  %v4572_v29 = vmax.f32 %v8435_v32, 0.0  ;;  %v4794_v47 = vmax.f32 %v4793_v8, %v4563_v35  ;;  %v4571_v16 = vmax.f32 %v8372_v26, 0.0  ;;  %4268 = vmatmul.mubr.bf16.gmra.mrb[196].mxu1 %v11018_v62  ;;  %3891 = vmatprep.mubr.bf16.mxu0 %v11056_v5 }
 0x2eb   :  { %v4836_v33 = vmax.f32 %v4835_v37, %v4565_v59  ;;  %v4573_v55 = vmax.f32 %v8436_v38, 0.0  ;;  %v4774_v14 = vmax.f32 %v4773_v3, %v4570_v43  ;;  %4277 = vmatprep.mubr.bf16.mxu1 %v11056_v5  ;;  %v4653_v12 = vrot.slane %v11920_v50, 2 }
 0x2ec   :  { %v4816_v23 = vmax.f32 %v4815_v42, %v4572_v29  ;;  %v4795_v57 = vmax.f32 %v4794_v47, %v4571_v16  ;;  %v3171_v1 = vpop.f32.mrb[92].mxu0  ;;  %v4633_v29 = vmax.f32 %v11925_v0, %v4632_v15  ;;  %v4675_v47 = vmax.f32 %v11928_v7, %v4674_v13 }
 0x2ed   :  { %v4837_v60 = vmax.f32 %v4836_v33, %v4573_v55  ;;  %v3557_v48 = vpop.f32.mrb[156].mxu1  ;;  %v8373_v63 = vadd.f32 %v3171_v1, %v11531_v18  ;;  %v3173_v37 = vpop.f32.mrb[93].mxu0 }
 0x2ee   :  { %v8437_v8 = vadd.f32 %v3557_v48, %v11534_v31  ;;  %v3559_v62 = vpop.f32.mrb[157].mxu1  ;;  %v8374_v5 = vadd.f32 %v3173_v37, %v11539_v36  ;;  %v3175_v17 = vpop.f32.mrb[94].mxu0  ;;  %v4634_v48 = vrot.slane %v4633_v29, 1 }
 0x2ef   :  { %v8438_v28 = vadd.f32 %v3559_v62, %v11542_v4  ;;  %v3561_v30 = vpop.f32.mrb[158].mxu1  ;;  %v4578_v54 = vmax.f32 %v8373_v63, 0.0  ;;  %v8375_v53 = vadd.f32 %v3175_v17, %v11531_v18  ;;  %v3177_v40 = vpop.f32.mrb[95].mxu0 }
 0x2f0   :  { %v4580_v58 = vmax.f32 %v8437_v8, 0.0  ;;  %v8439_v61 = vadd.f32 %v3561_v30, %v11534_v31  ;;  %v3563_v51 = vpop.f32.mrb[159].mxu1  ;;  %v4579_v27 = vmax.f32 %v8374_v5, 0.0  ;;  %v8376_v32 = vadd.f32 %v3177_v40, %v11539_v36 }
 0x2f1   :  { %v4581_v52 = vmax.f32 %v8438_v28, 0.0  ;;  %v8440_v25 = vadd.f32 %v3563_v51, %v11542_v4  ;;  %v4775_v22 = vmax.f32 %v4774_v14, %v4578_v54  ;;  %v4586_v59 = vmax.f32 %v8375_v53, 0.0  ;;  %3892 = vmatmul.mubr.bf16.gmra.mrb[136].mxu0 %v11054_v44 }
 0x2f2   :  { %v4817_v35 = vmax.f32 %v4816_v23, %v4580_v58  ;;  %v4588_v26 = vmax.f32 %v8439_v61, 0.0  ;;  %v4796_v38 = vmax.f32 %v4795_v57, %v4579_v27  ;;  %v4587_v42 = vmax.f32 %v8376_v32, 0.0  ;;  %4278 = vmatmul.mubr.bf16.gmra.mrb[200].mxu1 %v11054_v44  ;;  %3901 = vmatprep.mubr.bf16.mxu0 %v11092_v24 }
 0x2f3   :  { %v4838_v3 = vmax.f32 %v4837_v60, %v4581_v52  ;;  %v4589_v18 = vmax.f32 %v8440_v25, 0.0  ;;  %v4612_v31 = vmax.f32 %v11917_v6, %v4611_v19  ;;  %v4654_v36 = vmax.f32 %v11920_v50, %v4653_v12  ;;  %4287 = vmatprep.mubr.bf16.mxu1 %v11092_v24 }
 0x2f4   :  { %v4776_v43 = vmax.f32 %v4775_v22, %v4586_v59  ;;  %v4818_v4 = vmax.f32 %v4817_v35, %v4588_v26  ;;  %v4797_v33 = vmax.f32 %v4796_v38, %v4587_v42  ;;  %v4676_v50 = vrot.slane %v4675_v47, 1 }
 0x2f5   :  { %v4839_v16 = vmax.f32 %v4838_v3, %v4589_v18  ;;  %v4613_v57 = vrot.slane %v4612_v31, 1  ;;  %v4655_v60 = vrot.slane %v4654_v36, 1  ;;  %v4635_v13 = vmax.f32 %v4633_v29, %v4634_v48  ;;  %v9121_v48 = vld [vmem:[%s13012_s5 + $0x268] ss:$16 sps:$4 sm:$0xff]  }
 0x2f6   :  { %v4777_v55 = vrot.slane %v4776_v43, 4  ;;  %v4819_v14 = vrot.slane %v4818_v4, 4  ;;  %v4798_v23 = vrot.slane %v4797_v33, 4  ;;  %v4677_v5 = vmax.f32 %v4675_v47, %v4676_v50  ;;  %v9126_v50 = vld [vmem:[%s13012_s5 + $0x284] ss:$16 sps:$4 sm:$0xff]  }
 0x2f7   :  { %v4840_v44 = vrot.slane %v4839_v16, 4  ;;  %v4614_v8 = vmax.f32 %v4612_v31, %v4613_v57  ;;  %v4656_v37 = vmax.f32 %v4654_v36, %v4655_v60  ;;  %v4931_v32 = vpack.c.bf16 %v4635_v13, %v4635_v13  ;;  %v9115_v57 = vld [vmem:[%s13012_s5 + $0x248] ss:$16 sps:$4 sm:$0xff]   ;;  %v9120_v60 = vld [vmem:[%s13012_s5 + $0x264] ss:$16 sps:$4 sm:$0xff]  }
 0x2f8   :  { %v4778_v1 = vmax.f32 %v4776_v43, %v4777_v55  ;;  %v4820_v6 = vmax.f32 %v4818_v4, %v4819_v14  ;;  %v4799_v19 = vmax.f32 %v4797_v33, %v4798_v23  ;;  %v4933_v25 = vpack.c.bf16 %v4677_v5, %v4677_v5  ;;  %v9109_v55 = vld [vmem:[%s13012_s5 + $0x228] ss:$16 sps:$4 sm:$0xff]   ;;  %v9114_v14 = vld [vmem:[%s13012_s5 + $0x244] ss:$16 sps:$4 sm:$0xff]   ;;  %v9117_v23 = vld [vmem:[%s13012_s5 + $0x24c] ss:$16 sps:$4 sm:$0xff]  }
 0x2f9   :  { %v4841_v12 = vmax.f32 %v4839_v16, %v4840_v44  ;;  %3902 = vmatmul.mubr.bf16.gmra.mrb[140].mxu0 %v11090_v45  ;;  %v4930_v61 = vpack.c.bf16 %v4614_v8, %v4614_v8  ;;  %v4932_v40 = vpack.c.bf16 %v4656_v37, %v4656_v37  ;;  %v5241_v18 = vunpack.c.l.b16 %v4931_v32  ;;  %v9106_v16 = vld [vmem:[%s13012_s5 + $0x220] ss:$16 sps:$4 sm:$0xff]   ;;  %v9133_v8 = vld [vmem:[%s13012_s5 + $0x2a8] ss:$16 sps:$4 sm:$0xff]   ;;  %v9138_v37 = vld [vmem:[%s13012_s5 + $0x2c4] ss:$16 sps:$4 sm:$0xff]  }
 0x2fa   :  { %v4779_v63 = vrot.slane %v4778_v1, 2  ;;  %v4821_v24 = vrot.slane %v4820_v6, 2  ;;  %v4800_v0 = vrot.slane %v4799_v19, 2  ;;  %4288 = vmatmul.mubr.bf16.gmra.mrb[204].mxu1 %v11090_v45  ;;  %3911 = vmatprep.mubr.bf16.mxu0 %v11128_v20  ;;  %v5243_v36 = vunpack.c.l.b16 %v4933_v25  ;;  %v9112_v44 = vld [vmem:[%s13012_s5 + $0x240] ss:$16 sps:$4 sm:$0xff]  }
 0x2fb   :  { %v4842_v7 = vrot.slane %v4841_v12, 2  ;;  %4297 = vmatprep.mubr.bf16.mxu1 %v11128_v20  ;;  %v5240_v26 = vunpack.c.l.b16 %v4930_v61  ;;  %v5242_v38 = vunpack.c.l.b16 %v4932_v40  ;;  %v9139_v13 = vld [vmem:[%s13012_s5 + $0x2c8] ss:$16 sps:$4 sm:$0xff]   ;;  %v9144_v5 = vld [vmem:[%s13012_s5 + $0x2e4] ss:$16 sps:$4 sm:$0xff]  }
 0x2fc   :  { %v4780_v62 = vmax.f32 %v4778_v1, %v4779_v63  ;;  %v4822_v15 = vmax.f32 %v4820_v6, %v4821_v24  ;;  %v4801_v28 = vmax.f32 %v4799_v19, %v4800_v0  ;;  %v9123_v1 = vld [vmem:[%s13012_s5 + $0x26c] ss:$16 sps:$4 sm:$0xff]   ;;  %v9118_v6 = vld [vmem:[%s13012_s5 + $0x260] ss:$16 sps:$4 sm:$0xff]   ;;  %v9127_v63 = vld [vmem:[%s13012_s5 + $0x288] ss:$16 sps:$4 sm:$0xff]  }
 0x2fd   :  { %v4843_v17 = vmax.f32 %v4841_v12, %v4842_v7  ;;  %v9129_v19 = vld [vmem:[%s13012_s5 + $0x28c] ss:$16 sps:$4 sm:$0xff]   ;;  %v9124_v12 = vld [vmem:[%s13012_s5 + $0x280] ss:$16 sps:$4 sm:$0xff]   ;;  %v9132_v24 = vld [vmem:[%s13012_s5 + $0x2a4] ss:$16 sps:$4 sm:$0xff]  }
 0x2fe   :  { %v4781_v30 = vrot.slane %v4780_v62, 1  ;;  %v4823_v54 = vrot.slane %v4822_v15, 1  ;;  %v4802_v58 = vrot.slane %v4801_v28, 1  ;;  %v9135_v0 = vld [vmem:[%s13012_s5 + $0x2ac] ss:$16 sps:$4 sm:$0xff]  }
 0x2ff   :  { %v4844_v53 = vrot.slane %v4843_v17, 1  ;;  %v9130_v7 = vld [vmem:[%s13012_s5 + $0x2a0] ss:$16 sps:$4 sm:$0xff]   ;;  %v9151_v61 = vld [vmem:[%s13012_s5 + $0x308] ss:$16 sps:$4 sm:$0xff]  }
 0x300   :  { %v4782_v51 = vmax.f32 %v4780_v62, %v4781_v30  ;;  %v4824_v45 = vmax.f32 %v4822_v15, %v4823_v54  ;;  %v4803_v27 = vmax.f32 %v4801_v28, %v4802_v58  ;;  %v9141_v62 = vld [vmem:[%s13012_s5 + $0x2cc] ss:$16 sps:$4 sm:$0xff]   ;;  %v9136_v15 = vld [vmem:[%s13012_s5 + $0x2c0] ss:$16 sps:$4 sm:$0xff]   ;;  %v9145_v30 = vld [vmem:[%s13012_s5 + $0x2e8] ss:$16 sps:$4 sm:$0xff]  }
 0x301   :  { %v4845_v52 = vmax.f32 %v4843_v17, %v4844_v53  ;;  %3912 = vmatmul.mubr.bf16.gmra.mrb[144].mxu0 %v11126_v56  ;;  %v9147_v28 = vld [vmem:[%s13012_s5 + $0x2ec] ss:$16 sps:$4 sm:$0xff]   ;;  %v9142_v17 = vld [vmem:[%s13012_s5 + $0x2e0] ss:$16 sps:$4 sm:$0xff]   ;;  %v9150_v54 = vld [vmem:[%s13012_s5 + $0x304] ss:$16 sps:$4 sm:$0xff]  }
 0x302   :  { %v4938_v22 = vpack.c.bf16 %v4782_v51, %v4782_v51  ;;  %v4940_v35 = vpack.c.bf16 %v4824_v45, %v4824_v45  ;;  %4298 = vmatmul.mubr.bf16.gmra.mrb[208].mxu1 %v11126_v56  ;;  %3921 = vmatprep.mubr.bf16.mxu0 %v11164_v10  ;;  %v4939_v20 = vpack.c.bf16 %v4803_v27, %v4803_v27  ;;  %v9153_v58 = vld [vmem:[%s13012_s5 + $0x30c] ss:$16 sps:$4 sm:$0xff]   ;;  %v9148_v53 = vld [vmem:[%s13012_s5 + $0x300] ss:$16 sps:$4 sm:$0xff]   ;;  %v9156_v40 = vld [vmem:[%s13012_s5 + $0x324] ss:$16 sps:$4 sm:$0xff]  }
 0x303   :  { %v4941_v59 = vpack.c.bf16 %v4845_v52, %v4845_v52  ;;  %4307 = vmatprep.mubr.bf16.mxu1 %v11164_v10  ;;  %v9159_v51 = vld [vmem:[%s13012_s5 + $0x32c] ss:$16 sps:$4 sm:$0xff]   ;;  %v9154_v45 = vld [vmem:[%s13012_s5 + $0x320] ss:$16 sps:$4 sm:$0xff]   ;;  %v9157_v27 = vld [vmem:[%s13012_s5 + $0x328] ss:$16 sps:$4 sm:$0xff]  }
 0x304   :  { %v5248_v3 = vunpack.c.l.b16 %v4938_v22  ;;  %v5250_v42 = vunpack.c.l.b16 %v4940_v35  ;;  %v5249_v31 = vunpack.c.l.b16 %v4939_v20  ;;  %v9162_v52 = vld [vmem:[%s13012_s5 + $0x344] ss:$16 sps:$4 sm:$0xff]   ;;  %v9165_v32 = vld [vmem:[%s13012_s5 + $0x34c] ss:$16 sps:$4 sm:$0xff]   ;;  %v9160_v25 = vld [vmem:[%s13012_s5 + $0x340] ss:$16 sps:$4 sm:$0xff]  }
 0x305   :  { %v5251_v43 = vunpack.c.l.b16 %v4941_v59  ;;  %v9163_v22 = vld [vmem:[%s13012_s5 + $0x348] ss:$16 sps:$4 sm:$0xff]   ;;  %v9168_v35 = vld [vmem:[%s13012_s5 + $0x364] ss:$16 sps:$4 sm:$0xff]   ;;  %v9171_v20 = vld [vmem:[%s13012_s5 + $0x36c] ss:$16 sps:$4 sm:$0xff]  }
 0x306   :  { %v5257_v4 = vsel %vm5256_vm0, %v5248_v3, %v5240_v26  ;;  %v11970_v29 = vsel %vm5256_vm0, %v5250_v42, %v5242_v38  ;;  %v5258_v56 = vsel %vm5256_vm0, %v5249_v31, %v5241_v18  ;;  %v9166_v59 = vld [vmem:[%s13012_s5 + $0x360] ss:$16 sps:$4 sm:$0xff]   ;;  %v9169_v26 = vld [vmem:[%s13012_s5 + $0x368] ss:$16 sps:$4 sm:$0xff]   ;;  %v9174_v38 = vld [vmem:[%s13012_s5 + $0x384] ss:$16 sps:$4 sm:$0xff]  }
 0x307   :  { %v5260_v47 = vsel %vm5256_vm0, %v5251_v43, %v5243_v36  ;;  %v5266_v10 = vpack.c.b16 %v5258_v56, %v5258_v56  ;;  %v9177_v3 = vld [vmem:[%s13012_s5 + $0x38c] ss:$16 sps:$4 sm:$0xff]   ;;  %v9172_v42 = vld [vmem:[%s13012_s5 + $0x380] ss:$16 sps:$4 sm:$0xff]   ;;  %v9175_v18 = vld [vmem:[%s13012_s5 + $0x388] ss:$16 sps:$4 sm:$0xff]  }
 0x308   :  { %v5268_v33 = vpack.c.b16 %v5260_v47, %v5260_v47  ;;  %v9180_v31 = vld [vmem:[%s13012_s5 + $0x3a4] ss:$16 sps:$4 sm:$0xff]   ;;  %v9183_v36 = vld [vmem:[%s13012_s5 + $0x3ac] ss:$16 sps:$4 sm:$0xff]   ;;  %v9178_v43 = vld [vmem:[%s13012_s5 + $0x3a0] ss:$16 sps:$4 sm:$0xff]  }
 0x309   :  { %3922 = vmatmul.mubr.bf16.gmra.mrb[148].mxu0 %v11162_v41  ;;  %v9186_v56 = vld [vmem:[%s13012_s5 + $0x3c4] ss:$16 sps:$4 sm:$0xff]   ;;  %v9189_v47 = vld [vmem:[%s13012_s5 + $0x3cc] ss:$16 sps:$4 sm:$0xff]  }
 0x30a   :  { %4308 = vmatmul.mubr.bf16.gmra.mrb[212].mxu1 %v11162_v41  ;;  %3931 = vmatprep.mubr.bf16.mxu0 %v11200_v2  ;;  %v9100_v41 = vld [vmem:[%s13012_s5 + $0x200] ss:$16 sps:$4 sm:$0xff]  }
 0x30b   :  { %4317 = vmatprep.mubr.bf16.mxu1 %v11200_v2  ;;  %v9103_v2 = vld [vmem:[%s13012_s5 + $0x208] ss:$16 sps:$4 sm:$0xff]  }
 0x311   :  { %3932 = vmatmul.mubr.bf16.gmra.mrb[152].mxu0 %v11192_v21 }
 0x312   :  { %4318 = vmatmul.mubr.bf16.gmra.mrb[216].mxu1 %v11192_v21  ;;  %3941 = vmatprep.mubr.bf16.mxu0 %v11236_v49  ;;  %v5265_v21 = vpack.c.b16 %v5257_v4, %v5257_v4  ;;  %v9181_v4 = vld [vmem:[%s13012_s5 + $0x3a8] ss:$16 sps:$4 sm:$0xff]  }
 0x313   :  { %4327 = vmatprep.mubr.bf16.mxu1 %v11236_v49  ;;  %v9108_v49 = vld [vmem:[%s13012_s5 + $0x224] ss:$16 sps:$4 sm:$0xff]  }
 0x319   :  { %3942 = vmatmul.mubr.bf16.gmra.mrb[156].mxu0 %v11228_v11 }
 0x31a   :  { %4328 = vmatmul.mubr.bf16.gmra.mrb[220].mxu1 %v11228_v11  ;;  %6593 = vmatprep.mubr.bf16.mxu0 %v5266_v10  ;;  %v9111_v11 = vld [vmem:[%s13012_s5 + $0x22c] ss:$16 sps:$4 sm:$0xff]  }
 0x31b   :  { %6757 = vmatprep.mubr.bf16.mxu1 %v5266_v10  ;;  %v9184_v10 = vld [vmem:[%s13012_s5 + $0x3c0] ss:$16 sps:$4 sm:$0xff]  }
 0x321   :  { %6594 = vmatmul.mubr.bf16.vlgmr.msra.gmra.mrb[160].mxu0 %v5265_v21 }
 0x322   :  { %6603 = vmatpush1.bf16.msra.mxu0 %v9100_v41  ;;  %6758 = vmatmul.mubr.bf16.vlgmr.msra.gmra.mrb[224].mxu1 %v5265_v21  ;;  %v9187_v41 = vld [vmem:[%s13012_s5 + $0x3c8] ss:$16 sps:$4 sm:$0xff]   ;;  %v9195_v21 = vld [vmem:[%s13012_s5 + $0x3ec] ss:$16 sps:$4 sm:$0xff]  }
 0x323   :  { %6767 = vmatpush1.bf16.msra.mxu1 %v9103_v2  ;;  %6634 = vmatprep.mubr.bf16.mxu0 %v5268_v33  ;;  %v9192_v2 = vld [vmem:[%s13012_s5 + $0x3e4] ss:$16 sps:$4 sm:$0xff]  }
 0x324   :  { %6798 = vmatprep.mubr.bf16.mxu1 %v5268_v33  ;;  %6604 = vmatprep.subr.bf16.mxu0 %v9108_v49  ;;  %v9190_v49 = vld [vmem:[%s13012_s5 + $0x3e0] ss:$16 sps:$4 sm:$0xff]   ;;  %v9193_v33 = vld [vmem:[%s13012_s5 + $0x3e8] ss:$16 sps:$4 sm:$0xff]  }
 0x325   :  { %6768 = vmatprep.subr.bf16.mxu1 %v9111_v11  ;;  %v9198_v11 = vld [vmem:[%s13012_s5 + $0x404] ss:$16 sps:$4 sm:$0xff]  }
 0x326   :  { %6605 = vmatpush1.bf16.msra.mxu0 %v9106_v16  ;;  %v9201_v16 = vld [vmem:[%s13012_s5 + $0x40c] ss:$16 sps:$4 sm:$0xff]  }
 0x327   :  { %6769 = vmatpush1.bf16.msra.mxu1 %v9109_v55  ;;  %6606 = vmatprep.subr.bf16.mxu0 %v9114_v14  ;;  %v9196_v55 = vld [vmem:[%s13012_s5 + $0x400] ss:$16 sps:$4 sm:$0xff]   ;;  %v5267_v14 = vpack.c.b16 %v11970_v29, %v11970_v29 }
 0x328   :  { %6770 = vmatprep.subr.bf16.mxu1 %v9117_v23  ;;  %v9199_v23 = vld [vmem:[%s13012_s5 + $0x408] ss:$16 sps:$4 sm:$0xff]   ;;  %v9202_v29 = vld [vmem:[%s13012_s5 + $0x420] ss:$16 sps:$4 sm:$0xff]  }
 0x32a   :  { %6607 = vmatpush1.bf16.msra.mxu0 %v9112_v44  ;;  %v9204_v44 = vld [vmem:[%s13012_s5 + $0x424] ss:$16 sps:$4 sm:$0xff]  }
 0x32b   :  { %6771 = vmatpush1.bf16.msra.mxu1 %v9115_v57  ;;  %6608 = vmatprep.subr.bf16.mxu0 %v9120_v60  ;;  %v9207_v57 = vld [vmem:[%s13012_s5 + $0x42c] ss:$16 sps:$4 sm:$0xff]   ;;  %v9205_v60 = vld [vmem:[%s13012_s5 + $0x428] ss:$16 sps:$4 sm:$0xff]  }
 0x32c   :  { %6772 = vmatprep.subr.bf16.mxu1 %v9123_v1  ;;  %v9210_v1 = vld [vmem:[%s13012_s5 + $0x444] ss:$16 sps:$4 sm:$0xff]  }
 0x32e   :  { %6609 = vmatpush1.bf16.msra.mxu0 %v9118_v6  ;;  %v9213_v6 = vld [vmem:[%s13012_s5 + $0x44c] ss:$16 sps:$4 sm:$0xff]  }
 0x32f   :  { %6773 = vmatpush1.bf16.msra.mxu1 %v9121_v48  ;;  %6610 = vmatprep.subr.bf16.mxu0 %v9126_v50  ;;  %v9208_v48 = vld [vmem:[%s13012_s5 + $0x440] ss:$16 sps:$4 sm:$0xff]   ;;  %v9211_v50 = vld [vmem:[%s13012_s5 + $0x448] ss:$16 sps:$4 sm:$0xff]  }
 0x330   :  { %6774 = vmatprep.subr.bf16.mxu1 %v9129_v19  ;;  %v9216_v19 = vld [vmem:[%s13012_s5 + $0x464] ss:$16 sps:$4 sm:$0xff]  }
 0x332   :  { %6611 = vmatpush1.bf16.msra.mxu0 %v9124_v12  ;;  %v9219_v12 = vld [vmem:[%s13012_s5 + $0x46c] ss:$16 sps:$4 sm:$0xff]  }
 0x333   :  { %6775 = vmatpush1.bf16.msra.mxu1 %v9127_v63  ;;  %6612 = vmatprep.subr.bf16.mxu0 %v9132_v24  ;;  %v9214_v63 = vld [vmem:[%s13012_s5 + $0x460] ss:$16 sps:$4 sm:$0xff]   ;;  %v9217_v24 = vld [vmem:[%s13012_s5 + $0x468] ss:$16 sps:$4 sm:$0xff]  }
 0x334   :  { %6776 = vmatprep.subr.bf16.mxu1 %v9135_v0  ;;  %v9222_v0 = vld [vmem:[%s13012_s5 + $0x484] ss:$16 sps:$4 sm:$0xff]  }
 0x336   :  { %6613 = vmatpush1.bf16.msra.mxu0 %v9130_v7  ;;  %v9225_v7 = vld [vmem:[%s13012_s5 + $0x48c] ss:$16 sps:$4 sm:$0xff]  }
 0x337   :  { %6777 = vmatpush1.bf16.msra.mxu1 %v9133_v8  ;;  %6614 = vmatprep.subr.bf16.mxu0 %v9138_v37  ;;  %v13144_v8 = vld [vmem:[#allocation5_spill] sm:$0xff] }
 0x338   :  { %6778 = vmatprep.subr.bf16.mxu1 %v9141_v62  ;;  %v1492_v37 = vsub.s32 4, %v13144_v8  ;;  %v1500_v62 = vsub.s32 6, %v13144_v8 }
 0x33a   :  { %6615 = vmatpush1.bf16.msra.mxu0 %v9136_v15  ;;  %v1496_v15 = vsub.s32 5, %v13144_v8 }
 0x33b   :  { %6779 = vmatpush1.bf16.msra.mxu1 %v9139_v13  ;;  %6616 = vmatprep.subr.bf16.mxu0 %v9144_v5  ;;  %v1504_v13 = vsub.s32 7, %v13144_v8  ;;  %v9220_v5 = vld [vmem:[%s13012_s5 + $0x480] ss:$16 sps:$4 sm:$0xff]  }
 0x33c   :  { %6780 = vmatprep.subr.bf16.mxu1 %v9147_v28  ;;  %v9223_v28 = vld [vmem:[%s13012_s5 + $0x488] ss:$16 sps:$4 sm:$0xff]  }
 0x33e   :  { %6617 = vmatpush1.bf16.msra.mxu0 %v9142_v17  ;;  %v9228_v17 = vld [vmem:[%s13012_s5 + $0x4a4] ss:$16 sps:$4 sm:$0xff]  }
 0x33f   :  { %6781 = vmatpush1.bf16.msra.mxu1 %v9145_v30  ;;  %6618 = vmatprep.subr.bf16.mxu0 %v9150_v54  ;;  %v9231_v30 = vld [vmem:[%s13012_s5 + $0x4ac] ss:$16 sps:$4 sm:$0xff]   ;;  %v9512_v54 = vld [vmem:[%s13011_s4] sm:$0xff] }
 0x340   :  { %6782 = vmatprep.subr.bf16.mxu1 %v9153_v58  ;;  %v12245_v58 = vrot.slane %v9512_v54, %v1492_v37 }
 0x342   :  { %6619 = vmatpush1.bf16.msra.mxu0 %v9148_v53  ;;  %v12247_v53 = vrot.slane %v9512_v54, %v1500_v62 }
 0x343   :  { %6783 = vmatpush1.bf16.msra.mxu1 %v9151_v61  ;;  %6620 = vmatprep.subr.bf16.mxu0 %v9156_v40  ;;  %v12249_v61 = vrot.slane %v9512_v54, %v1496_v15  ;;  %v12251_v40 = vrot.slane %v9512_v54, %v1504_v13  ;;  %v9244_v13 = vld [vmem:[%s13012_s5 + $0x500] ss:$16 sps:$4 sm:$0xff]  }
 0x344   :  { %6784 = vmatprep.subr.bf16.mxu1 %v9159_v51  ;;  %v9226_v51 = vld [vmem:[%s13012_s5 + $0x4a0] ss:$16 sps:$4 sm:$0xff]  }
 0x346   :  { %6621 = vmatpush1.bf16.msra.mxu0 %v9154_v45  ;;  %v9229_v45 = vld [vmem:[%s13012_s5 + $0x4a8] ss:$16 sps:$4 sm:$0xff]  }
 0x347   :  { %6785 = vmatpush1.bf16.msra.mxu1 %v9157_v27  ;;  %6622 = vmatprep.subr.bf16.mxu0 %v9162_v52  ;;  %v9234_v27 = vld [vmem:[%s13012_s5 + $0x4c4] ss:$16 sps:$4 sm:$0xff]  }
 0x348   :  { %6786 = vmatprep.subr.bf16.mxu1 %v9165_v32 }
 0x34a   :  { %6623 = vmatpush1.bf16.msra.mxu0 %v9160_v25  ;;  %v9237_v25 = vld [vmem:[%s13012_s5 + $0x4cc] ss:$16 sps:$4 sm:$0xff]  }
 0x34b   :  { %6787 = vmatpush1.bf16.msra.mxu1 %v9163_v22  ;;  %6624 = vmatprep.subr.bf16.mxu0 %v9168_v35 }
 0x34c   :  { %6788 = vmatprep.subr.bf16.mxu1 %v9171_v20 }
 0x34e   :  { %6625 = vmatpush1.bf16.msra.mxu0 %v9166_v59 }
 0x34f   :  { %6789 = vmatpush1.bf16.msra.mxu1 %v9169_v26  ;;  %6626 = vmatprep.subr.bf16.mxu0 %v9174_v38 }
 0x350   :  { %6790 = vmatprep.subr.bf16.mxu1 %v9177_v3 }
 0x352   :  { %6627 = vmatpush1.bf16.msra.mxu0 %v9172_v42 }
 0x353   :  { %6791 = vmatpush1.bf16.msra.mxu1 %v9175_v18  ;;  %6628 = vmatprep.subr.bf16.mxu0 %v9180_v31  ;;  %v9232_v18 = vld [vmem:[%s13012_s5 + $0x4c0] ss:$16 sps:$4 sm:$0xff]  }
 0x354   :  { %6792 = vmatprep.subr.bf16.mxu1 %v9183_v36 }
 0x356   :  { %6629 = vmatpush1.bf16.msra.mxu0 %v9178_v43 }
 0x357   :  { %6793 = vmatpush1.bf16.msra.mxu1 %v9181_v4  ;;  %6630 = vmatprep.subr.bf16.mxu0 %v9186_v56  ;;  %v9235_v56 = vld [vmem:[%s13012_s5 + $0x4c8] ss:$16 sps:$4 sm:$0xff]  }
 0x358   :  { %6794 = vmatprep.subr.bf16.mxu1 %v9189_v47  ;;  %v9240_v47 = vld [vmem:[%s13012_s5 + $0x4e4] ss:$16 sps:$4 sm:$0xff]  }
 0x35a   :  { %6631 = vmatpush1.bf16.msra.mxu0 %v9184_v10 }
 0x35b   :  { %6795 = vmatpush1.bf16.msra.mxu1 %v9187_v41  ;;  %6632 = vmatprep.subr.bf16.mxu0 %v9192_v2  ;;  %v9243_v2 = vld [vmem:[%s13012_s5 + $0x4ec] ss:$16 sps:$4 sm:$0xff]  }
 0x35c   :  { %6796 = vmatprep.subr.bf16.mxu1 %v9195_v21 }
 0x35e   :  { %6633 = vmatpush1.bf16.msra.mxu0 %v9190_v49 }
 0x35f   :  { %6797 = vmatpush1.bf16.msra.mxu1 %v9193_v33  ;;  %6643 = vmatprep.subr.bf16.mxu0 %v9198_v11 }
 0x360   :  { %6807 = vmatprep.subr.bf16.mxu1 %v9201_v16 }
 0x361   :  { %6635 = vmatmul.mubr.bf16.vlgmr.msra.gmra.mrb[160].mxu0 %v5267_v14 }
 0x362   :  { %6799 = vmatmul.mubr.bf16.vlgmr.msra.gmra.mrb[224].mxu1 %v5267_v14  ;;  %6644 = vmatpush1.bf16.msra.mxu0 %v9196_v55 }
 0x363   :  { %6808 = vmatpush1.bf16.msra.mxu1 %v9199_v23  ;;  %6645 = vmatprep.subr.bf16.mxu0 %v9204_v44  ;;  %v9238_v44 = vld [vmem:[%s13012_s5 + $0x4e0] ss:$16 sps:$4 sm:$0xff]  }
 0x364   :  { %6809 = vmatprep.subr.bf16.mxu1 %v9207_v57 }
 0x366   :  { %6646 = vmatpush1.bf16.msra.mxu0 %v9202_v29 }
 0x367   :  { %6810 = vmatpush1.bf16.msra.mxu1 %v9205_v60  ;;  %6647 = vmatprep.subr.bf16.mxu0 %v9210_v1  ;;  %v9241_v60 = vld [vmem:[%s13012_s5 + $0x4e8] ss:$16 sps:$4 sm:$0xff]   ;;  %v9246_v1 = vld [vmem:[%s13012_s5 + $0x504] ss:$16 sps:$4 sm:$0xff]  }
 0x368   :  { %6811 = vmatprep.subr.bf16.mxu1 %v9213_v6 }
 0x36a   :  { %6648 = vmatpush1.bf16.msra.mxu0 %v9208_v48 }
 0x36b   :  { %6812 = vmatpush1.bf16.msra.mxu1 %v9211_v50  ;;  %6649 = vmatprep.subr.bf16.mxu0 %v9216_v19 }
 0x36c   :  { %6813 = vmatprep.subr.bf16.mxu1 %v9219_v12  ;;  %v9249_v12 = vld [vmem:[%s13012_s5 + $0x50c] ss:$16 sps:$4 sm:$0xff]  }
 0x36e   :  { %6650 = vmatpush1.bf16.msra.mxu0 %v9214_v63 }
 0x36f   :  { %6814 = vmatpush1.bf16.msra.mxu1 %v9217_v24  ;;  %6651 = vmatprep.subr.bf16.mxu0 %v9222_v0 }
 0x370   :  { %6815 = vmatprep.subr.bf16.mxu1 %v9225_v7 }
 0x372   :  { %6652 = vmatpush1.bf16.msra.mxu0 %v9220_v5  ;;  %v9247_v5 = vld [vmem:[%s13012_s5 + $0x508] ss:$16 sps:$4 sm:$0xff]  }
 0x373   :  { %6816 = vmatpush1.bf16.msra.mxu1 %v9223_v28  ;;  %6653 = vmatprep.subr.bf16.mxu0 %v9228_v17 }
 0x374   :  { %v3793_v52 = vpop.f32.mrb[96].mxu0  ;;  %6817 = vmatprep.subr.bf16.mxu1 %v9231_v30 }
 0x375   :  { %v4179_v32 = vpop.f32.mrb[160].mxu1  ;;  %v8441_v22 = vadd.f32 %v3793_v52, %v12245_v58  ;;  %v3795_v20 = vpop.f32.mrb[97].mxu0 }
 0x376   :  { %v8505_v35 = vadd.f32 %v4179_v32, %v12247_v53  ;;  %v4181_v59 = vpop.f32.mrb[161].mxu1  ;;  %v8442_v26 = vadd.f32 %v3795_v20, %v12249_v61  ;;  %v3797_v3 = vpop.f32.mrb[98].mxu0  ;;  %6654 = vmatpush1.bf16.msra.mxu0 %v9226_v51 }
 0x377   :  { %v8506_v38 = vadd.f32 %v4181_v59, %v12251_v40  ;;  %v4183_v42 = vpop.f32.mrb[162].mxu1  ;;  %v8443_v31 = vadd.f32 %v3797_v3, %v12245_v58  ;;  %v3799_v43 = vpop.f32.mrb[99].mxu0  ;;  %6818 = vmatpush1.bf16.msra.mxu1 %v9229_v45  ;;  %6655 = vmatprep.subr.bf16.mxu0 %v9234_v27  ;;  %v4342_v21 = vmax.f32 %v8441_v22, 0.0  ;;  %v9252_v27 = vld [vmem:[%s13012_s5 + $0x524] ss:$16 sps:$4 sm:$0xff]  }
 0x378   :  { %v8507_v36 = vadd.f32 %v4183_v42, %v12247_v53  ;;  %v4185_v4 = vpop.f32.mrb[163].mxu1  ;;  %v8444_v10 = vadd.f32 %v3799_v43, %v12249_v61  ;;  %6819 = vmatprep.subr.bf16.mxu1 %v9237_v25  ;;  %v4344_v49 = vmax.f32 %v8505_v35, 0.0  ;;  %v4343_v16 = vmax.f32 %v8442_v26, 0.0  ;;  %v9255_v35 = vld [vmem:[%s13012_s5 + $0x52c] ss:$16 sps:$4 sm:$0xff]  }
 0x379   :  { %v8508_v41 = vadd.f32 %v4185_v4, %v12251_v40  ;;  %v4350_v33 = vmax.f32 %v8443_v31, 0.0  ;;  %v4345_v55 = vmax.f32 %v8506_v38, 0.0 }
 0x37a   :  { %v4352_v11 = vmax.f32 %v8507_v36, 0.0  ;;  %v4351_v14 = vmax.f32 %v8444_v10, 0.0  ;;  %6656 = vmatpush1.bf16.msra.mxu0 %v9232_v18  ;;  %v9250_v36 = vld [vmem:[%s13012_s5 + $0x520] ss:$16 sps:$4 sm:$0xff]  }
 0x37b   :  { %v4353_v23 = vmax.f32 %v8508_v41, 0.0  ;;  %v4678_v57 = vmax.f32 %v4342_v21, %v4350_v33  ;;  %6820 = vmatpush1.bf16.msra.mxu1 %v9235_v56  ;;  %6657 = vmatprep.subr.bf16.mxu0 %v9240_v47  ;;  %v9253_v56 = vld [vmem:[%s13012_s5 + $0x528] ss:$16 sps:$4 sm:$0xff]   ;;  %v9258_v47 = vld [vmem:[%s13012_s5 + $0x544] ss:$16 sps:$4 sm:$0xff]  }
 0x37c   :  { %v4720_v29 = vmax.f32 %v4344_v49, %v4352_v11  ;;  %v4699_v6 = vmax.f32 %v4343_v16, %v4351_v14  ;;  %v3803_v50 = vpop.f32.mrb[100].mxu0  ;;  %6821 = vmatprep.subr.bf16.mxu1 %v9243_v2  ;;  %v9261_v49 = vld [vmem:[%s13012_s5 + $0x54c] ss:$16 sps:$4 sm:$0xff]  }
 0x37d   :  { %v4741_v48 = vmax.f32 %v4345_v55, %v4353_v23  ;;  %v4189_v19 = vpop.f32.mrb[164].mxu1  ;;  %v8445_v63 = vadd.f32 %v3803_v50, %v12245_v58  ;;  %v3805_v0 = vpop.f32.mrb[101].mxu0 }
 0x37e   :  { %v8509_v24 = vadd.f32 %v4189_v19, %v12247_v53  ;;  %v4191_v7 = vpop.f32.mrb[165].mxu1  ;;  %v8446_v8 = vadd.f32 %v3805_v0, %v12249_v61  ;;  %v3807_v62 = vpop.f32.mrb[102].mxu0  ;;  %6658 = vmatpush1.bf16.msra.mxu0 %v9238_v44 }
 0x37f   :  { %v8510_v37 = vadd.f32 %v4191_v7, %v12251_v40  ;;  %v4193_v15 = vpop.f32.mrb[166].mxu1  ;;  %v4358_v28 = vmax.f32 %v8445_v63, 0.0  ;;  %v8447_v30 = vadd.f32 %v3807_v62, %v12245_v58  ;;  %v3809_v51 = vpop.f32.mrb[103].mxu0  ;;  %6822 = vmatpush1.bf16.msra.mxu1 %v9241_v60  ;;  %6659 = vmatprep.subr.bf16.mxu0 %v9246_v1  ;;  %v9259_v60 = vld [vmem:[%s13012_s5 + $0x548] ss:$16 sps:$4 sm:$0xff]  }
 0x380   :  { %v4360_v17 = vmax.f32 %v8509_v24, 0.0  ;;  %v8511_v54 = vadd.f32 %v4193_v15, %v12247_v53  ;;  %v4195_v45 = vpop.f32.mrb[167].mxu1  ;;  %v4359_v52 = vmax.f32 %v8446_v8, 0.0  ;;  %v8448_v25 = vadd.f32 %v3809_v51, %v12249_v61  ;;  %6823 = vmatprep.subr.bf16.mxu1 %v9249_v12  ;;  %v9264_v63 = vld [vmem:[%s13012_s5 + $0x564] ss:$16 sps:$4 sm:$0xff]  }
 0x381   :  { %v4361_v32 = vmax.f32 %v8510_v37, 0.0  ;;  %v8512_v22 = vadd.f32 %v4195_v45, %v12251_v40  ;;  %v4679_v20 = vmax.f32 %v4678_v57, %v4358_v28  ;;  %v4366_v26 = vmax.f32 %v8447_v30, 0.0  ;;  %v9267_v37 = vld [vmem:[%s13012_s5 + $0x56c] ss:$16 sps:$4 sm:$0xff]   ;;  %v9262_v51 = vld [vmem:[%s13012_s5 + $0x560] ss:$16 sps:$4 sm:$0xff]  }
 0x382   :  { %v4721_v59 = vmax.f32 %v4720_v29, %v4360_v17  ;;  %v4368_v38 = vmax.f32 %v8511_v54, 0.0  ;;  %v4700_v3 = vmax.f32 %v4699_v6, %v4359_v52  ;;  %v4367_v18 = vmax.f32 %v8448_v25, 0.0  ;;  %6660 = vmatpush1.bf16.msra.mxu0 %v9244_v13  ;;  %v9256_v29 = vld [vmem:[%s13012_s5 + $0x540] ss:$16 sps:$4 sm:$0xff]   ;;  %v9265_v52 = vld [vmem:[%s13012_s5 + $0x568] ss:$16 sps:$4 sm:$0xff]  }
 0x383   :  { %v4742_v42 = vmax.f32 %v4741_v48, %v4361_v32  ;;  %v4369_v31 = vmax.f32 %v8512_v22, 0.0  ;;  %v4680_v43 = vmax.f32 %v4679_v20, %v4366_v26  ;;  %6824 = vmatpush1.bf16.msra.mxu1 %v9247_v5  ;;  %6661 = vmatprep.subr.bf16.mxu0 %v9252_v27  ;;  %v9270_v32 = vld [vmem:[%s13012_s5 + $0x584] ss:$16 sps:$4 sm:$0xff]  }
 0x384   :  { %v4722_v4 = vmax.f32 %v4721_v59, %v4368_v38  ;;  %v4701_v10 = vmax.f32 %v4700_v3, %v4367_v18  ;;  %v3813_v2 = vpop.f32.mrb[104].mxu0  ;;  %6825 = vmatprep.subr.bf16.mxu1 %v9255_v35  ;;  %v9273_v59 = vld [vmem:[%s13012_s5 + $0x58c] ss:$16 sps:$4 sm:$0xff]  }
 0x385   :  { %v4743_v41 = vmax.f32 %v4742_v42, %v4369_v31  ;;  %v4199_v21 = vpop.f32.mrb[168].mxu1  ;;  %v8449_v33 = vadd.f32 %v3813_v2, %v12245_v58  ;;  %v3815_v16 = vpop.f32.mrb[105].mxu0 }
 0x386   :  { %v8513_v11 = vadd.f32 %v4199_v21, %v12247_v53  ;;  %v4201_v55 = vpop.f32.mrb[169].mxu1  ;;  %v8450_v14 = vadd.f32 %v3815_v16, %v12249_v61  ;;  %v3817_v44 = vpop.f32.mrb[106].mxu0  ;;  %6662 = vmatpush1.bf16.msra.mxu0 %v9250_v36 }
 0x387   :  { %v8514_v23 = vadd.f32 %v4201_v55, %v12251_v40  ;;  %v4203_v57 = vpop.f32.mrb[170].mxu1  ;;  %v4374_v1 = vmax.f32 %v8449_v33, 0.0  ;;  %v8451_v48 = vadd.f32 %v3817_v44, %v12245_v58  ;;  %v3819_v19 = vpop.f32.mrb[107].mxu0  ;;  %6826 = vmatpush1.bf16.msra.mxu1 %v9253_v56  ;;  %6663 = vmatprep.subr.bf16.mxu0 %v9258_v47  ;;  %v9271_v56 = vld [vmem:[%s13012_s5 + $0x588] ss:$16 sps:$4 sm:$0xff]  }
 0x388   :  { %v4376_v6 = vmax.f32 %v8513_v11, 0.0  ;;  %v8515_v50 = vadd.f32 %v4203_v57, %v12247_v53  ;;  %v4205_v12 = vpop.f32.mrb[171].mxu1  ;;  %v4375_v24 = vmax.f32 %v8450_v14, 0.0  ;;  %v8452_v7 = vadd.f32 %v3819_v19, %v12249_v61  ;;  %6827 = vmatprep.subr.bf16.mxu1 %v9261_v49  ;;  %v9276_v33 = vld [vmem:[%s13012_s5 + $0x5a4] ss:$16 sps:$4 sm:$0xff]  }
 0x389   :  { %v4377_v0 = vmax.f32 %v8514_v23, 0.0  ;;  %v8516_v8 = vadd.f32 %v4205_v12, %v12251_v40  ;;  %v4681_v62 = vmax.f32 %v4680_v43, %v4374_v1  ;;  %v4382_v13 = vmax.f32 %v8451_v48, 0.0  ;;  %v9279_v23 = vld [vmem:[%s13012_s5 + $0x5ac] ss:$16 sps:$4 sm:$0xff]   ;;  %v9274_v19 = vld [vmem:[%s13012_s5 + $0x5a0] ss:$16 sps:$4 sm:$0xff]  }
 0x38a   :  { %v4723_v15 = vmax.f32 %v4722_v4, %v4376_v6  ;;  %v4384_v5 = vmax.f32 %v8515_v50, 0.0  ;;  %v4702_v28 = vmax.f32 %v4701_v10, %v4375_v24  ;;  %v4383_v30 = vmax.f32 %v8452_v7, 0.0  ;;  %6664 = vmatpush1.bf16.msra.mxu0 %v9256_v29  ;;  %v9268_v4 = vld [vmem:[%s13012_s5 + $0x580] ss:$16 sps:$4 sm:$0xff]   ;;  %v9277_v24 = vld [vmem:[%s13012_s5 + $0x5a8] ss:$16 sps:$4 sm:$0xff]  }
 0x38b   :  { %v4744_v17 = vmax.f32 %v4743_v41, %v4377_v0  ;;  %v4385_v54 = vmax.f32 %v8516_v8, 0.0  ;;  %v4682_v45 = vmax.f32 %v4681_v62, %v4382_v13  ;;  %6828 = vmatpush1.bf16.msra.mxu1 %v9259_v60  ;;  %6665 = vmatprep.subr.bf16.mxu0 %v9264_v63  ;;  %v9282_v0 = vld [vmem:[%s13012_s5 + $0x5c4] ss:$16 sps:$4 sm:$0xff]  }
 0x38c   :  { %v4724_v27 = vmax.f32 %v4723_v15, %v4384_v5  ;;  %v4703_v25 = vmax.f32 %v4702_v28, %v4383_v30  ;;  %v3823_v35 = vpop.f32.mrb[108].mxu0  ;;  %6829 = vmatprep.subr.bf16.mxu1 %v9267_v37  ;;  %v9285_v15 = vld [vmem:[%s13012_s5 + $0x5cc] ss:$16 sps:$4 sm:$0xff]  }
 0x38d   :  { %v4745_v22 = vmax.f32 %v4744_v17, %v4385_v54  ;;  %v4209_v20 = vpop.f32.mrb[172].mxu1  ;;  %v8453_v26 = vadd.f32 %v3823_v35, %v12245_v58  ;;  %v3825_v3 = vpop.f32.mrb[109].mxu0 }
 0x38e   :  { %v8517_v38 = vadd.f32 %v4209_v20, %v12247_v53  ;;  %v4211_v42 = vpop.f32.mrb[173].mxu1  ;;  %v8454_v18 = vadd.f32 %v3825_v3, %v12249_v61  ;;  %v3827_v36 = vpop.f32.mrb[110].mxu0  ;;  %6666 = vmatpush1.bf16.msra.mxu0 %v9262_v51 }
 0x38f   :  { %v8518_v31 = vadd.f32 %v4211_v42, %v12251_v40  ;;  %v4213_v43 = vpop.f32.mrb[174].mxu1  ;;  %v4390_v47 = vmax.f32 %v8453_v26, 0.0  ;;  %v8455_v41 = vadd.f32 %v3827_v36, %v12245_v58  ;;  %v3829_v21 = vpop.f32.mrb[111].mxu0  ;;  %6830 = vmatpush1.bf16.msra.mxu1 %v9265_v52  ;;  %6667 = vmatprep.subr.bf16.mxu0 %v9270_v32  ;;  %v9283_v52 = vld [vmem:[%s13012_s5 + $0x5c8] ss:$16 sps:$4 sm:$0xff]  }
 0x390   :  { %v4392_v10 = vmax.f32 %v8517_v38, 0.0  ;;  %v8519_v2 = vadd.f32 %v4213_v43, %v12247_v53  ;;  %v4215_v49 = vpop.f32.mrb[175].mxu1  ;;  %v4391_v11 = vmax.f32 %v8454_v18, 0.0  ;;  %v8456_v55 = vadd.f32 %v3829_v21, %v12249_v61  ;;  %6831 = vmatprep.subr.bf16.mxu1 %v9273_v59  ;;  %v9288_v26 = vld [vmem:[%s13012_s5 + $0x5e4] ss:$16 sps:$4 sm:$0xff]  }
 0x391   :  { %v4393_v16 = vmax.f32 %v8518_v31, 0.0  ;;  %v8520_v14 = vadd.f32 %v4215_v49, %v12251_v40  ;;  %v4683_v44 = vmax.f32 %v4682_v45, %v4390_v47  ;;  %v4398_v29 = vmax.f32 %v8455_v41, 0.0  ;;  %v9291_v31 = vld [vmem:[%s13012_s5 + $0x5ec] ss:$16 sps:$4 sm:$0xff]   ;;  %v9286_v21 = vld [vmem:[%s13012_s5 + $0x5e0] ss:$16 sps:$4 sm:$0xff]  }
 0x392   :  { %v4725_v57 = vmax.f32 %v4724_v27, %v4392_v10  ;;  %v4400_v60 = vmax.f32 %v8519_v2, 0.0  ;;  %v4704_v1 = vmax.f32 %v4703_v25, %v4391_v11  ;;  %v4399_v48 = vmax.f32 %v8456_v55, 0.0  ;;  %6668 = vmatpush1.bf16.msra.mxu0 %v9268_v4  ;;  %v9280_v27 = vld [vmem:[%s13012_s5 + $0x5c0] ss:$16 sps:$4 sm:$0xff]   ;;  %v9289_v11 = vld [vmem:[%s13012_s5 + $0x5e8] ss:$16 sps:$4 sm:$0xff]  }
 0x393   :  { %v4746_v6 = vmax.f32 %v4745_v22, %v4393_v16  ;;  %v4401_v50 = vmax.f32 %v8520_v14, 0.0  ;;  %v4684_v12 = vmax.f32 %v4683_v44, %v4398_v29  ;;  %6832 = vmatpush1.bf16.msra.mxu1 %v9271_v56  ;;  %6669 = vmatprep.subr.bf16.mxu0 %v9276_v33  ;;  %v9294_v16 = vld [vmem:[%s13012_s5 + $0x604] ss:$16 sps:$4 sm:$0xff]   ;;  %v9297_v44 = vld [vmem:[%s13012_s5 + $0x60c] ss:$16 sps:$4 sm:$0xff]  }
 0x394   :  { %v4726_v63 = vmax.f32 %v4725_v57, %v4400_v60  ;;  %v4705_v7 = vmax.f32 %v4704_v1, %v4399_v48  ;;  %v3833_v37 = vpop.f32.mrb[112].mxu0  ;;  %6833 = vmatprep.subr.bf16.mxu1 %v9279_v23 }
 0x395   :  { %v4747_v8 = vmax.f32 %v4746_v6, %v4401_v50  ;;  %v4219_v62 = vpop.f32.mrb[176].mxu1  ;;  %v8457_v13 = vadd.f32 %v3833_v37, %v12245_v58  ;;  %v3835_v28 = vpop.f32.mrb[113].mxu0 }
 0x396   :  { %v8521_v5 = vadd.f32 %v4219_v62, %v12247_v53  ;;  %v4221_v17 = vpop.f32.mrb[177].mxu1  ;;  %v8458_v30 = vadd.f32 %v3835_v28, %v12249_v61  ;;  %v3837_v51 = vpop.f32.mrb[114].mxu0  ;;  %6670 = vmatpush1.bf16.msra.mxu0 %v9274_v19 }
 0x397   :  { %v8522_v54 = vadd.f32 %v4221_v17, %v12251_v40  ;;  %v4223_v45 = vpop.f32.mrb[178].mxu1  ;;  %v4406_v32 = vmax.f32 %v8457_v13, 0.0  ;;  %v8459_v22 = vadd.f32 %v3837_v51, %v12245_v58  ;;  %v3839_v20 = vpop.f32.mrb[115].mxu0  ;;  %6834 = vmatpush1.bf16.msra.mxu1 %v9277_v24  ;;  %6671 = vmatprep.subr.bf16.mxu0 %v9282_v0 }
 0x398   :  { %v4408_v25 = vmax.f32 %v8521_v5, 0.0  ;;  %v8523_v35 = vadd.f32 %v4223_v45, %v12247_v53  ;;  %v4225_v59 = vpop.f32.mrb[179].mxu1  ;;  %v4407_v38 = vmax.f32 %v8458_v30, 0.0  ;;  %v8460_v42 = vadd.f32 %v3839_v20, %v12249_v61  ;;  %6835 = vmatprep.subr.bf16.mxu1 %v9285_v15 }
 0x399   :  { %v4409_v3 = vmax.f32 %v8522_v54, 0.0  ;;  %v8524_v18 = vadd.f32 %v4225_v59, %v12251_v40  ;;  %v4685_v36 = vmax.f32 %v4684_v12, %v4406_v32  ;;  %v4414_v4 = vmax.f32 %v8459_v22, 0.0 }
 0x39a   :  { %v4727_v43 = vmax.f32 %v4726_v63, %v4408_v25  ;;  %v4416_v56 = vmax.f32 %v8523_v35, 0.0  ;;  %v4706_v47 = vmax.f32 %v4705_v7, %v4407_v38  ;;  %v4415_v41 = vmax.f32 %v8460_v42, 0.0  ;;  %6672 = vmatpush1.bf16.msra.mxu0 %v9280_v27 }
 0x39b   :  { %v4748_v10 = vmax.f32 %v4747_v8, %v4409_v3  ;;  %v4417_v2 = vmax.f32 %v8524_v18, 0.0  ;;  %v4686_v49 = vmax.f32 %v4685_v36, %v4414_v4  ;;  %6836 = vmatpush1.bf16.msra.mxu1 %v9283_v52  ;;  %6673 = vmatprep.subr.bf16.mxu0 %v9288_v26 }
 0x39c   :  { %v4728_v33 = vmax.f32 %v4727_v43, %v4416_v56  ;;  %v4707_v55 = vmax.f32 %v4706_v47, %v4415_v41  ;;  %v3843_v23 = vpop.f32.mrb[116].mxu0  ;;  %6837 = vmatprep.subr.bf16.mxu1 %v9291_v31 }
 0x39d   :  { %v4749_v14 = vmax.f32 %v4748_v10, %v4417_v2  ;;  %v8461_v57 = vadd.f32 %v3843_v23, %v12245_v58  ;;  %v4229_v29 = vpop.f32.mrb[180].mxu1  ;;  %v3845_v60 = vpop.f32.mrb[117].mxu0 }
 0x39e   :  { %v8525_v1 = vadd.f32 %v4229_v29, %v12247_v53  ;;  %v8462_v6 = vadd.f32 %v3845_v60, %v12249_v61  ;;  %v4231_v48 = vpop.f32.mrb[181].mxu1  ;;  %v3847_v50 = vpop.f32.mrb[118].mxu0  ;;  %6674 = vmatpush1.bf16.msra.mxu0 %v9286_v21 }
 0x39f   :  { %v4422_v19 = vmax.f32 %v8461_v57, 0.0  ;;  %v8526_v12 = vadd.f32 %v4231_v48, %v12251_v40  ;;  %v8463_v63 = vadd.f32 %v3847_v50, %v12245_v58  ;;  %v4233_v24 = vpop.f32.mrb[182].mxu1  ;;  %v3849_v0 = vpop.f32.mrb[119].mxu0  ;;  %6838 = vmatpush1.bf16.msra.mxu1 %v9289_v11  ;;  %6684 = vmatprep.subr.bf16.mxu0 %v9294_v16 }
 0x3a0   :  { %v4424_v7 = vmax.f32 %v8525_v1, 0.0  ;;  %v4423_v8 = vmax.f32 %v8462_v6, 0.0  ;;  %v8527_v37 = vadd.f32 %v4233_v24, %v12247_v53  ;;  %v8464_v62 = vadd.f32 %v3849_v0, %v12249_v61  ;;  %v4235_v15 = vpop.f32.mrb[183].mxu1  ;;  %6848 = vmatprep.subr.bf16.mxu1 %v9297_v44 }
 0x3a1   :  { %v4687_v13 = vmax.f32 %v4686_v49, %v4422_v19  ;;  %v4425_v5 = vmax.f32 %v8526_v12, 0.0  ;;  %v4430_v28 = vmax.f32 %v8463_v63, 0.0  ;;  %v8528_v17 = vadd.f32 %v4235_v15, %v12251_v40 }
 0x3a2   :  { %v4729_v30 = vmax.f32 %v4728_v33, %v4424_v7  ;;  %v4708_v54 = vmax.f32 %v4707_v55, %v4423_v8  ;;  %v4432_v51 = vmax.f32 %v8527_v37, 0.0  ;;  %v4431_v45 = vmax.f32 %v8464_v62, 0.0 }
 0x3a3   :  { %v4750_v27 = vmax.f32 %v4749_v14, %v4425_v5  ;;  %v4688_v52 = vmax.f32 %v4687_v13, %v4430_v28  ;;  %v4433_v32 = vmax.f32 %v8528_v17, 0.0 }
 0x3a4   :  { %v4730_v25 = vmax.f32 %v4729_v30, %v4432_v51  ;;  %v4709_v22 = vmax.f32 %v4708_v54, %v4431_v45  ;;  %v3853_v35 = vpop.f32.mrb[120].mxu0 }
 0x3a5   :  { %v4751_v20 = vmax.f32 %v4750_v27, %v4433_v32  ;;  %v8465_v59 = vadd.f32 %v3853_v35, %v12245_v58  ;;  %v4239_v26 = vpop.f32.mrb[184].mxu1  ;;  %v3855_v38 = vpop.f32.mrb[121].mxu0 }
 0x3a6   :  { %v8529_v3 = vadd.f32 %v4239_v26, %v12247_v53  ;;  %v8466_v42 = vadd.f32 %v3855_v38, %v12249_v61  ;;  %v4241_v18 = vpop.f32.mrb[185].mxu1  ;;  %v3857_v31 = vpop.f32.mrb[122].mxu0 }
 0x3a7   :  { %v4438_v36 = vmax.f32 %v8465_v59, 0.0  ;;  %v8530_v43 = vadd.f32 %v4241_v18, %v12251_v40  ;;  %v8467_v4 = vadd.f32 %v3857_v31, %v12245_v58  ;;  %v4243_v56 = vpop.f32.mrb[186].mxu1  ;;  %v3859_v47 = vpop.f32.mrb[123].mxu0 }
 0x3a8   :  { %v4440_v10 = vmax.f32 %v8529_v3, 0.0  ;;  %v4439_v41 = vmax.f32 %v8466_v42, 0.0  ;;  %v8531_v2 = vadd.f32 %v4243_v56, %v12247_v53  ;;  %v8468_v21 = vadd.f32 %v3859_v47, %v12249_v61  ;;  %v4245_v49 = vpop.f32.mrb[187].mxu1 }
 0x3a9   :  { %v4689_v33 = vmax.f32 %v4688_v52, %v4438_v36  ;;  %v4441_v11 = vmax.f32 %v8530_v43, 0.0  ;;  %v4446_v16 = vmax.f32 %v8467_v4, 0.0  ;;  %v8532_v55 = vadd.f32 %v4245_v49, %v12251_v40 }
 0x3aa   :  { %v4731_v14 = vmax.f32 %v4730_v25, %v4440_v10  ;;  %v4710_v23 = vmax.f32 %v4709_v22, %v4439_v41  ;;  %v4448_v44 = vmax.f32 %v8531_v2, 0.0  ;;  %v4447_v57 = vmax.f32 %v8468_v21, 0.0 }
 0x3ab   :  { %v4752_v29 = vmax.f32 %v4751_v20, %v4441_v11  ;;  %v4690_v60 = vmax.f32 %v4689_v33, %v4446_v16  ;;  %v4449_v1 = vmax.f32 %v8532_v55, 0.0 }
 0x3ac   :  { %v4732_v6 = vmax.f32 %v4731_v14, %v4448_v44  ;;  %v4711_v48 = vmax.f32 %v4710_v23, %v4447_v57  ;;  %v3863_v50 = vpop.f32.mrb[124].mxu0 }
 0x3ad   :  { %v4753_v19 = vmax.f32 %v4752_v29, %v4449_v1  ;;  %v8469_v12 = vadd.f32 %v3863_v50, %v12245_v58  ;;  %v4249_v63 = vpop.f32.mrb[188].mxu1  ;;  %v3865_v24 = vpop.f32.mrb[125].mxu0 }
 0x3ae   :  { %v8533_v0 = vadd.f32 %v4249_v63, %v12247_v53  ;;  %v8470_v7 = vadd.f32 %v3865_v24, %v12249_v61  ;;  %v4251_v8 = vpop.f32.mrb[189].mxu1  ;;  %v3867_v37 = vpop.f32.mrb[126].mxu0 }
 0x3af   :  { %v4454_v62 = vmax.f32 %v8469_v12, 0.0  ;;  %v8534_v15 = vadd.f32 %v4251_v8, %v12251_v40  ;;  %v8471_v13 = vadd.f32 %v3867_v37, %v12245_v58  ;;  %v4253_v5 = vpop.f32.mrb[190].mxu1  ;;  %v3869_v28 = vpop.f32.mrb[127].mxu0 }
 0x3b0   :  { %v4456_v17 = vmax.f32 %v8533_v0, 0.0  ;;  %v4455_v30 = vmax.f32 %v8470_v7, 0.0  ;;  %v8535_v54 = vadd.f32 %v4253_v5, %v12247_v53  ;;  %v8472_v51 = vadd.f32 %v3869_v28, %v12249_v61  ;;  %v4255_v45 = vpop.f32.mrb[191].mxu1 }
 0x3b1   :  { %v4691_v27 = vmax.f32 %v4690_v60, %v4454_v62  ;;  %v4457_v52 = vmax.f32 %v8534_v15, 0.0  ;;  %v4462_v32 = vmax.f32 %v8471_v13, 0.0  ;;  %v8536_v25 = vadd.f32 %v4255_v45, %v12251_v40 }
 0x3b2   :  { %v4733_v22 = vmax.f32 %v4732_v6, %v4456_v17  ;;  %v4712_v35 = vmax.f32 %v4711_v48, %v4455_v30  ;;  %v4464_v20 = vmax.f32 %v8535_v54, 0.0  ;;  %v4463_v59 = vmax.f32 %v8472_v51, 0.0 }
 0x3b3   :  { %v4754_v26 = vmax.f32 %v4753_v19, %v4457_v52  ;;  %v12449_v38 = vmax.f32 %v4691_v27, %v4462_v32  ;;  %v4465_v3 = vmax.f32 %v8536_v25, 0.0 }
 0x3b4   :  { %v12451_v42 = vmax.f32 %v4733_v22, %v4464_v20  ;;  %v12453_v18 = vmax.f32 %v4712_v35, %v4463_v59  ;;  %v3873_v31 = vpop.f32.mrb[128].mxu0 }
 0x3b5   :  { %v12455_v36 = vmax.f32 %v4754_v26, %v4465_v3  ;;  %v4259_v43 = vpop.f32.mrb[192].mxu1  ;;  %v3875_v4 = vpop.f32.mrb[129].mxu0  ;;  %v8473_v10 = vadd.f32 %v3873_v31, %v12245_v58 }
 0x3b6   :  { %v4261_v56 = vpop.f32.mrb[193].mxu1  ;;  %v3877_v47 = vpop.f32.mrb[130].mxu0  ;;  %v8537_v21 = vadd.f32 %v4259_v43, %v12247_v53  ;;  %v8474_v49 = vadd.f32 %v3875_v4, %v12249_v61 }
 0x3b7   :  { %v4263_v41 = vpop.f32.mrb[194].mxu1  ;;  %v3879_v2 = vpop.f32.mrb[131].mxu0  ;;  %v8538_v11 = vadd.f32 %v4261_v56, %v12251_v40  ;;  %v8475_v16 = vadd.f32 %v3877_v47, %v12245_v58  ;;  %v4470_v23 = vmax.f32 %v8473_v10, 0.0 }
 0x3b8   :  { %v4265_v33 = vpop.f32.mrb[195].mxu1  ;;  %v8539_v55 = vadd.f32 %v4263_v41, %v12247_v53  ;;  %v8476_v14 = vadd.f32 %v3879_v2, %v12249_v61  ;;  %v4472_v29 = vmax.f32 %v8537_v21, 0.0  ;;  %v4471_v60 = vmax.f32 %v8474_v49, 0.0 }
 0x3b9   :  { %v4478_v44 = vmax.f32 %v8475_v16, 0.0  ;;  %v8540_v57 = vadd.f32 %v4265_v33, %v12251_v40  ;;  %v4473_v50 = vmax.f32 %v8538_v11, 0.0 }
 0x3ba   :  { %v4480_v1 = vmax.f32 %v8539_v55, 0.0  ;;  %v4479_v6 = vmax.f32 %v8476_v14, 0.0 }
 0x3bb   :  { %v4846_v19 = vmax.f32 %v4470_v23, %v4478_v44  ;;  %v4481_v12 = vmax.f32 %v8540_v57, 0.0 }
 0x3bc   :  { %v3883_v48 = vpop.f32.mrb[132].mxu0  ;;  %v4888_v0 = vmax.f32 %v4472_v29, %v4480_v1  ;;  %v4867_v7 = vmax.f32 %v4471_v60, %v4479_v6 }
 0x3bd   :  { %v4269_v63 = vpop.f32.mrb[196].mxu1  ;;  %v3885_v24 = vpop.f32.mrb[133].mxu0  ;;  %v4909_v62 = vmax.f32 %v4473_v50, %v4481_v12  ;;  %v8477_v15 = vadd.f32 %v3883_v48, %v12245_v58 }
 0x3be   :  { %v4271_v8 = vpop.f32.mrb[197].mxu1  ;;  %v3887_v37 = vpop.f32.mrb[134].mxu0  ;;  %v8541_v28 = vadd.f32 %v4269_v63, %v12247_v53  ;;  %v8478_v17 = vadd.f32 %v3885_v24, %v12249_v61 }
 0x3bf   :  { %v4273_v13 = vpop.f32.mrb[198].mxu1  ;;  %v3889_v5 = vpop.f32.mrb[135].mxu0  ;;  %v4486_v54 = vmax.f32 %v8477_v15, 0.0  ;;  %v8542_v51 = vadd.f32 %v4271_v8, %v12251_v40  ;;  %v8479_v52 = vadd.f32 %v3887_v37, %v12245_v58 }
 0x3c0   :  { %v4275_v30 = vpop.f32.mrb[199].mxu1  ;;  %v4488_v45 = vmax.f32 %v8541_v28, 0.0  ;;  %v4487_v27 = vmax.f32 %v8478_v17, 0.0  ;;  %v8543_v22 = vadd.f32 %v4273_v13, %v12247_v53  ;;  %v8480_v43 = vadd.f32 %v3889_v5, %v12249_v61 }
 0x3c1   :  { %v4847_v32 = vmax.f32 %v4846_v19, %v4486_v54  ;;  %v4489_v25 = vmax.f32 %v8542_v51, 0.0  ;;  %v4494_v59 = vmax.f32 %v8479_v52, 0.0  ;;  %v8544_v4 = vadd.f32 %v4275_v30, %v12251_v40 }
 0x3c2   :  { %v4889_v35 = vmax.f32 %v4888_v0, %v4488_v45  ;;  %v4868_v20 = vmax.f32 %v4867_v7, %v4487_v27  ;;  %v4496_v31 = vmax.f32 %v8543_v22, 0.0  ;;  %v4495_v16 = vmax.f32 %v8480_v43, 0.0 }
 0x3c3   :  { %v4910_v3 = vmax.f32 %v4909_v62, %v4489_v25  ;;  %v4848_v10 = vmax.f32 %v4847_v32, %v4494_v59  ;;  %v4497_v55 = vmax.f32 %v8544_v4, 0.0 }
 0x3c4   :  { %v3893_v26 = vpop.f32.mrb[136].mxu0  ;;  %v4890_v11 = vmax.f32 %v4889_v35, %v4496_v31  ;;  %v4869_v48 = vmax.f32 %v4868_v20, %v4495_v16 }
 0x3c5   :  { %v4279_v56 = vpop.f32.mrb[200].mxu1  ;;  %v3895_v47 = vpop.f32.mrb[137].mxu0  ;;  %v8481_v41 = vadd.f32 %v3893_v26, %v12245_v58  ;;  %v4911_v50 = vmax.f32 %v4910_v3, %v4497_v55 }
 0x3c6   :  { %v8545_v2 = vadd.f32 %v4279_v56, %v12247_v53  ;;  %v8482_v21 = vadd.f32 %v3895_v47, %v12249_v61  ;;  %v4281_v49 = vpop.f32.mrb[201].mxu1  ;;  %v3897_v33 = vpop.f32.mrb[138].mxu0 }
 0x3c7   :  { %v8546_v14 = vadd.f32 %v4281_v49, %v12251_v40  ;;  %v4283_v23 = vpop.f32.mrb[202].mxu1  ;;  %v3899_v44 = vpop.f32.mrb[139].mxu0  ;;  %v4502_v57 = vmax.f32 %v8481_v41, 0.0  ;;  %v8483_v1 = vadd.f32 %v3897_v33, %v12245_v58 }
 0x3c8   :  { %v4504_v29 = vmax.f32 %v8545_v2, 0.0  ;;  %v4503_v60 = vmax.f32 %v8482_v21, 0.0  ;;  %v4285_v6 = vpop.f32.mrb[203].mxu1  ;;  %v8547_v12 = vadd.f32 %v4283_v23, %v12247_v53  ;;  %v8484_v7 = vadd.f32 %v3899_v44, %v12249_v61 }
 0x3c9   :  { %v4505_v19 = vmax.f32 %v8546_v14, 0.0  ;;  %v4849_v63 = vmax.f32 %v4848_v10, %v4502_v57  ;;  %v4510_v0 = vmax.f32 %v8483_v1, 0.0  ;;  %v8548_v15 = vadd.f32 %v4285_v6, %v12251_v40 }
 0x3ca   :  { %v4891_v24 = vmax.f32 %v4890_v11, %v4504_v29  ;;  %v4870_v8 = vmax.f32 %v4869_v48, %v4503_v60  ;;  %v4512_v62 = vmax.f32 %v8547_v12, 0.0  ;;  %v4511_v5 = vmax.f32 %v8484_v7, 0.0 }
 0x3cb   :  { %v4912_v37 = vmax.f32 %v4911_v50, %v4505_v19  ;;  %v4850_v13 = vmax.f32 %v4849_v63, %v4510_v0  ;;  %v4513_v30 = vmax.f32 %v8548_v15, 0.0 }
 0x3cc   :  { %v3903_v28 = vpop.f32.mrb[140].mxu0  ;;  %v4892_v17 = vmax.f32 %v4891_v24, %v4512_v62  ;;  %v4871_v27 = vmax.f32 %v4870_v8, %v4511_v5 }
 0x3cd   :  { %v8485_v54 = vadd.f32 %v3903_v28, %v12245_v58  ;;  %v4289_v51 = vpop.f32.mrb[204].mxu1  ;;  %v3905_v45 = vpop.f32.mrb[141].mxu0  ;;  %v4913_v35 = vmax.f32 %v4912_v37, %v4513_v30 }
 0x3ce   :  { %v8549_v52 = vadd.f32 %v4289_v51, %v12247_v53  ;;  %v8486_v32 = vadd.f32 %v3905_v45, %v12249_v61  ;;  %v4291_v25 = vpop.f32.mrb[205].mxu1  ;;  %v3907_v22 = vpop.f32.mrb[142].mxu0 }
 0x3cf   :  { %v4518_v20 = vmax.f32 %v8485_v54, 0.0  ;;  %v8550_v59 = vadd.f32 %v4291_v25, %v12251_v40  ;;  %v8487_v26 = vadd.f32 %v3907_v22, %v12245_v58  ;;  %v4293_v3 = vpop.f32.mrb[206].mxu1  ;;  %v3909_v31 = vpop.f32.mrb[143].mxu0 }
 0x3d0   :  { %v4520_v43 = vmax.f32 %v8549_v52, 0.0  ;;  %v4519_v4 = vmax.f32 %v8486_v32, 0.0  ;;  %v8551_v56 = vadd.f32 %v4293_v3, %v12247_v53  ;;  %v8488_v47 = vadd.f32 %v3909_v31, %v12249_v61  ;;  %v4295_v10 = vpop.f32.mrb[207].mxu1 }
 0x3d1   :  { %v4851_v41 = vmax.f32 %v4850_v13, %v4518_v20  ;;  %v4521_v2 = vmax.f32 %v8550_v59, 0.0  ;;  %v4526_v21 = vmax.f32 %v8487_v26, 0.0  ;;  %v8552_v49 = vadd.f32 %v4295_v10, %v12251_v40 }
 0x3d2   :  { %v4893_v33 = vmax.f32 %v4892_v17, %v4520_v43  ;;  %v4872_v11 = vmax.f32 %v4871_v27, %v4519_v4  ;;  %v4528_v16 = vmax.f32 %v8551_v56, 0.0  ;;  %v4527_v55 = vmax.f32 %v8488_v47, 0.0 }
 0x3d3   :  { %v4914_v14 = vmax.f32 %v4913_v35, %v4521_v2  ;;  %v4852_v23 = vmax.f32 %v4851_v41, %v4526_v21  ;;  %v4529_v44 = vmax.f32 %v8552_v49, 0.0  ;;  %v4693_v47 = vrot.slane %v12449_v38, 4 }
 0x3d4   :  { %v4894_v57 = vmax.f32 %v4893_v33, %v4528_v16  ;;  %v4873_v29 = vmax.f32 %v4872_v11, %v4527_v55  ;;  %v3913_v60 = vpop.f32.mrb[144].mxu0  ;;  %v4735_v49 = vrot.slane %v12451_v42, 4 }
 0x3d5   :  { %v4915_v1 = vmax.f32 %v4914_v14, %v4529_v44  ;;  %v8489_v6 = vadd.f32 %v3913_v60, %v12245_v58  ;;  %v4299_v48 = vpop.f32.mrb[208].mxu1  ;;  %v3915_v50 = vpop.f32.mrb[145].mxu0 }
 0x3d6   :  { %v8553_v19 = vadd.f32 %v4299_v48, %v12247_v53  ;;  %v8490_v12 = vadd.f32 %v3915_v50, %v12249_v61  ;;  %v4301_v63 = vpop.f32.mrb[209].mxu1  ;;  %v3917_v24 = vpop.f32.mrb[146].mxu0 }
 0x3d7   :  { %v4534_v0 = vmax.f32 %v8489_v6, 0.0  ;;  %v8554_v7 = vadd.f32 %v4301_v63, %v12251_v40  ;;  %v8491_v8 = vadd.f32 %v3917_v24, %v12245_v58  ;;  %v4303_v37 = vpop.f32.mrb[210].mxu1  ;;  %v3919_v62 = vpop.f32.mrb[147].mxu0 }
 0x3d8   :  { %v4536_v15 = vmax.f32 %v8553_v19, 0.0  ;;  %v4535_v13 = vmax.f32 %v8490_v12, 0.0  ;;  %v8555_v5 = vadd.f32 %v4303_v37, %v12247_v53  ;;  %v8492_v28 = vadd.f32 %v3919_v62, %v12249_v61  ;;  %v4305_v17 = vpop.f32.mrb[211].mxu1 }
 0x3d9   :  { %v4853_v30 = vmax.f32 %v4852_v23, %v4534_v0  ;;  %v4537_v54 = vmax.f32 %v8554_v7, 0.0  ;;  %v4542_v51 = vmax.f32 %v8491_v8, 0.0  ;;  %v8556_v45 = vadd.f32 %v4305_v17, %v12251_v40 }
 0x3da   :  { %v4895_v27 = vmax.f32 %v4894_v57, %v4536_v15  ;;  %v4874_v52 = vmax.f32 %v4873_v29, %v4535_v13  ;;  %v4544_v32 = vmax.f32 %v8555_v5, 0.0  ;;  %v4543_v25 = vmax.f32 %v8492_v28, 0.0 }
 0x3db   :  { %v4916_v22 = vmax.f32 %v4915_v1, %v4537_v54  ;;  %v4854_v35 = vmax.f32 %v4853_v30, %v4542_v51  ;;  %v4545_v20 = vmax.f32 %v8556_v45, 0.0  ;;  %v4714_v0 = vrot.slane %v12453_v18, 4 }
 0x3dc   :  { %v4896_v59 = vmax.f32 %v4895_v27, %v4544_v32  ;;  %v4875_v26 = vmax.f32 %v4874_v52, %v4543_v25  ;;  %v3923_v3 = vpop.f32.mrb[148].mxu0  ;;  %v12509_v5 = vmax.f32 %v12449_v38, %v4693_v47  ;;  %v12513_v51 = vmax.f32 %v12451_v42, %v4735_v49 }
 0x3dd   :  { %v4917_v31 = vmax.f32 %v4916_v22, %v4545_v20  ;;  %v8493_v43 = vadd.f32 %v3923_v3, %v12245_v58  ;;  %v4309_v4 = vpop.f32.mrb[212].mxu1  ;;  %v3925_v56 = vpop.f32.mrb[149].mxu0  ;;  %v4756_v45 = vrot.slane %v12455_v36, 4  ;;  %v4715_v22 = vmax.f32 %v12453_v18, %v4714_v0 }
 0x3de   :  { %v8557_v10 = vadd.f32 %v4309_v4, %v12247_v53  ;;  %v8494_v41 = vadd.f32 %v3925_v56, %v12249_v61  ;;  %v4311_v2 = vpop.f32.mrb[213].mxu1  ;;  %v3927_v21 = vpop.f32.mrb[150].mxu0 }
 0x3df   :  { %v4550_v33 = vmax.f32 %v8493_v43, 0.0  ;;  %v8558_v11 = vadd.f32 %v4311_v2, %v12251_v40  ;;  %v8495_v16 = vadd.f32 %v3927_v21, %v12245_v58  ;;  %v4313_v55 = vpop.f32.mrb[214].mxu1  ;;  %v3929_v14 = vpop.f32.mrb[151].mxu0 }
 0x3e0   :  { %v4552_v23 = vmax.f32 %v8557_v10, 0.0  ;;  %v4551_v44 = vmax.f32 %v8494_v41, 0.0  ;;  %v8559_v57 = vadd.f32 %v4313_v55, %v12247_v53  ;;  %v8496_v29 = vadd.f32 %v3929_v14, %v12249_v61  ;;  %v4315_v60 = vpop.f32.mrb[215].mxu1 }
 0x3e1   :  { %v4855_v1 = vmax.f32 %v4854_v35, %v4550_v33  ;;  %v4553_v6 = vmax.f32 %v8558_v11, 0.0  ;;  %v4558_v48 = vmax.f32 %v8495_v16, 0.0  ;;  %v8560_v50 = vadd.f32 %v4315_v60, %v12251_v40 }
 0x3e2   :  { %v4897_v19 = vmax.f32 %v4896_v59, %v4552_v23  ;;  %v4876_v12 = vmax.f32 %v4875_v26, %v4551_v44  ;;  %v4560_v63 = vmax.f32 %v8559_v57, 0.0  ;;  %v4559_v24 = vmax.f32 %v8496_v29, 0.0 }
 0x3e3   :  { %v4918_v7 = vmax.f32 %v4917_v31, %v4553_v6  ;;  %v4856_v8 = vmax.f32 %v4855_v1, %v4558_v48  ;;  %v4561_v37 = vmax.f32 %v8560_v50, 0.0  ;;  %v4757_v33 = vmax.f32 %v12455_v36, %v4756_v45 }
 0x3e4   :  { %v4898_v62 = vmax.f32 %v4897_v19, %v4560_v63  ;;  %v4877_v15 = vmax.f32 %v4876_v12, %v4559_v24  ;;  %v3933_v13 = vpop.f32.mrb[152].mxu0  ;;  %v4695_v57 = vrot.slane %v12509_v5, 2  ;;  %v4737_v48 = vrot.slane %v12513_v51, 2 }
 0x3e5   :  { %v4919_v28 = vmax.f32 %v4918_v7, %v4561_v37  ;;  %v8497_v17 = vadd.f32 %v3933_v13, %v12245_v58  ;;  %v4319_v30 = vpop.f32.mrb[216].mxu1  ;;  %v3935_v54 = vpop.f32.mrb[153].mxu0  ;;  %v4716_v50 = vrot.slane %v4715_v22, 2  ;;  %v4758_v24 = vrot.slane %v4757_v33, 2 }
 0x3e6   :  { %v8561_v27 = vadd.f32 %v4319_v30, %v12247_v53  ;;  %v8498_v52 = vadd.f32 %v3935_v54, %v12249_v61  ;;  %v4321_v32 = vpop.f32.mrb[217].mxu1  ;;  %v3937_v25 = vpop.f32.mrb[154].mxu0 }
 0x3e7   :  { %v4566_v38 = vmax.f32 %v8497_v17, 0.0  ;;  %v8562_v35 = vadd.f32 %v4321_v32, %v12251_v40  ;;  %v8499_v20 = vadd.f32 %v3937_v25, %v12245_v58  ;;  %v4323_v59 = vpop.f32.mrb[218].mxu1  ;;  %v3939_v26 = vpop.f32.mrb[155].mxu0 }
 0x3e8   :  { %v4568_v3 = vmax.f32 %v8561_v27, 0.0  ;;  %v4567_v42 = vmax.f32 %v8498_v52, 0.0  ;;  %v8563_v31 = vadd.f32 %v4323_v59, %v12247_v53  ;;  %v8500_v43 = vadd.f32 %v3939_v26, %v12249_v61  ;;  %v4325_v4 = vpop.f32.mrb[219].mxu1 }
 0x3e9   :  { %v4857_v56 = vmax.f32 %v4856_v8, %v4566_v38  ;;  %v4569_v47 = vmax.f32 %v8562_v35, 0.0  ;;  %v4574_v10 = vmax.f32 %v8499_v20, 0.0  ;;  %v8564_v41 = vadd.f32 %v4325_v4, %v12251_v40 }
 0x3ea   :  { %v4899_v18 = vmax.f32 %v4898_v62, %v4568_v3  ;;  %v4878_v2 = vmax.f32 %v4877_v15, %v4567_v42  ;;  %v4576_v21 = vmax.f32 %v8563_v31, 0.0  ;;  %v4575_v49 = vmax.f32 %v8500_v43, 0.0 }
 0x3eb   :  { %v4920_v11 = vmax.f32 %v4919_v28, %v4569_v47  ;;  %v4858_v16 = vmax.f32 %v4857_v56, %v4574_v10  ;;  %v4577_v55 = vmax.f32 %v8564_v41, 0.0  ;;  %v4738_v3 = vmax.f32 %v12513_v51, %v4737_v48 }
 0x3ec   :  { %v4900_v14 = vmax.f32 %v4899_v18, %v4576_v21  ;;  %v4879_v23 = vmax.f32 %v4878_v2, %v4575_v49  ;;  %v3943_v44 = vpop.f32.mrb[156].mxu0  ;;  %v4759_v31 = vmax.f32 %v4757_v33, %v4758_v24 }
 0x3ed   :  { %v4921_v29 = vmax.f32 %v4920_v11, %v4577_v55  ;;  %v8501_v60 = vadd.f32 %v3943_v44, %v12245_v58  ;;  %v4329_v1 = vpop.f32.mrb[220].mxu1  ;;  %v3945_v6 = vpop.f32.mrb[157].mxu0  ;;  %v4739_v18 = vrot.slane %v4738_v3, 1 }
 0x3ee   :  { %v8565_v19 = vadd.f32 %v4329_v1, %v12247_v53  ;;  %v8502_v36 = vadd.f32 %v3945_v6, %v12249_v61  ;;  %v4331_v12 = vpop.f32.mrb[221].mxu1  ;;  %v3947_v63 = vpop.f32.mrb[158].mxu0  ;;  %v4760_v49 = vrot.slane %v4759_v31, 1 }
 0x3ef   :  { %v4582_v0 = vmax.f32 %v8501_v60, 0.0  ;;  %v8566_v7 = vadd.f32 %v4331_v12, %v12251_v40  ;;  %v8503_v8 = vadd.f32 %v3947_v63, %v12245_v58  ;;  %v4333_v37 = vpop.f32.mrb[222].mxu1  ;;  %v3949_v62 = vpop.f32.mrb[159].mxu0  ;;  %v4696_v58 = vmax.f32 %v12509_v5, %v4695_v57 }
 0x3f0   :  { %v4584_v15 = vmax.f32 %v8565_v19, 0.0  ;;  %v4583_v13 = vmax.f32 %v8502_v36, 0.0  ;;  %v8567_v28 = vadd.f32 %v4333_v37, %v12247_v53  ;;  %v8504_v17 = vadd.f32 %v3949_v62, %v12249_v61  ;;  %v4335_v30 = vpop.f32.mrb[223].mxu1 }
 0x3f1   :  { %v4859_v54 = vmax.f32 %v4858_v16, %v4582_v0  ;;  %v4585_v45 = vmax.f32 %v8566_v7, 0.0  ;;  %v4590_v27 = vmax.f32 %v8503_v8, 0.0  ;;  %v8568_v52 = vadd.f32 %v4335_v30, %v12251_v40 }
 0x3f2   :  { %v4901_v32 = vmax.f32 %v4900_v14, %v4584_v15  ;;  %v4880_v25 = vmax.f32 %v4879_v23, %v4583_v13  ;;  %v4592_v38 = vmax.f32 %v8567_v28, 0.0  ;;  %v4591_v35 = vmax.f32 %v8504_v17, 0.0 }
 0x3f3   :  { %v4922_v20 = vmax.f32 %v4921_v29, %v4585_v45  ;;  %v4860_v59 = vmax.f32 %v4859_v54, %v4590_v27  ;;  %v4593_v26 = vmax.f32 %v8568_v52, 0.0  ;;  %v4717_v53 = vmax.f32 %v4715_v22, %v4716_v50 }
 0x3f4   :  { %v4902_v42 = vmax.f32 %v4901_v32, %v4592_v38  ;;  %v4881_v61 = vmax.f32 %v4880_v25, %v4591_v35  ;;  %v4697_v40 = vrot.slane %v4696_v58, 1  ;;  %v4740_v33 = vmax.f32 %v4738_v3, %v4739_v18  ;;  %v9315_v18 = vld [vmem:[%s13012_s5 + $0x66c] ss:$16 sps:$4 sm:$0xff]  }
 0x3f5   :  { %v4861_v43 = vrot.slane %v4860_v59, 4  ;;  %v4923_v4 = vmax.f32 %v4922_v20, %v4593_v26  ;;  %v4718_v2 = vrot.slane %v4717_v53, 1  ;;  %v4761_v60 = vmax.f32 %v4759_v31, %v4760_v49  ;;  %v9295_v26 = vld [vmem:[%s13012_s5 + $0x608] ss:$16 sps:$4 sm:$0xff]   ;;  %v9321_v49 = vld [vmem:[%s13012_s5 + $0x68c] ss:$16 sps:$4 sm:$0xff]  }
 0x3f6   :  { %v4903_v56 = vrot.slane %v4902_v42, 4  ;;  %v4882_v47 = vrot.slane %v4881_v61, 4  ;;  %v4698_v22 = vmax.f32 %v4696_v58, %v4697_v40  ;;  %v4936_v63 = vpack.c.bf16 %v4740_v33, %v4740_v33  ;;  %v9304_v40 = vld [vmem:[%s13012_s5 + $0x640] ss:$16 sps:$4 sm:$0xff]   ;;  %v9333_v33 = vld [vmem:[%s13012_s5 + $0x6cc] ss:$16 sps:$4 sm:$0xff]  }
 0x3f7   :  { %v4862_v10 = vmax.f32 %v4860_v59, %v4861_v43  ;;  %v4924_v41 = vrot.slane %v4923_v4, 4  ;;  %v4719_v44 = vmax.f32 %v4717_v53, %v4718_v2  ;;  %v4937_v62 = vpack.c.bf16 %v4761_v60, %v4761_v60  ;;  %v9292_v59 = vld [vmem:[%s13012_s5 + $0x600] ss:$16 sps:$4 sm:$0xff]   ;;  %v9339_v60 = vld [vmem:[%s13012_s5 + $0x6ec] ss:$16 sps:$4 sm:$0xff]  }
 0x3f8   :  { %v4904_v21 = vmax.f32 %v4902_v42, %v4903_v56  ;;  %v4883_v5 = vmax.f32 %v4881_v61, %v4882_v47  ;;  %v4934_v19 = vpack.c.bf16 %v4698_v22, %v4698_v22  ;;  %v5246_v54 = vunpack.c.l.b16 %v4936_v63  ;;  %v9300_v42 = vld [vmem:[%s13012_s5 + $0x624] ss:$16 sps:$4 sm:$0xff]   ;;  %v9303_v61 = vld [vmem:[%s13012_s5 + $0x62c] ss:$16 sps:$4 sm:$0xff]   ;;  %v9298_v43 = vld [vmem:[%s13012_s5 + $0x620] ss:$16 sps:$4 sm:$0xff]  }
 0x3f9   :  { %v4863_v11 = vrot.slane %v4862_v10, 2  ;;  %v4925_v16 = vmax.f32 %v4923_v4, %v4924_v41  ;;  %v4935_v7 = vpack.c.bf16 %v4719_v44, %v4719_v44  ;;  %v5247_v25 = vunpack.c.l.b16 %v4937_v62  ;;  %v9301_v4 = vld [vmem:[%s13012_s5 + $0x628] ss:$16 sps:$4 sm:$0xff]   ;;  %v9306_v56 = vld [vmem:[%s13012_s5 + $0x644] ss:$16 sps:$4 sm:$0xff]  }
 0x3fa   :  { %v4905_v55 = vrot.slane %v4904_v21, 2  ;;  %v4884_v51 = vrot.slane %v4883_v5, 2  ;;  %v5244_v28 = vunpack.c.l.b16 %v4934_v19  ;;  %v9309_v47 = vld [vmem:[%s13012_s5 + $0x64c] ss:$16 sps:$4 sm:$0xff]   ;;  %v9312_v41 = vld [vmem:[%s13012_s5 + $0x664] ss:$16 sps:$4 sm:$0xff]  }
 0x3fb   :  { %v4864_v14 = vmax.f32 %v4862_v10, %v4863_v11  ;;  %v4926_v23 = vrot.slane %v4925_v16, 2  ;;  %v5245_v27 = vunpack.c.l.b16 %v4935_v7  ;;  %v9307_v10 = vld [vmem:[%s13012_s5 + $0x648] ss:$16 sps:$4 sm:$0xff]   ;;  %v9310_v2 = vld [vmem:[%s13012_s5 + $0x660] ss:$16 sps:$4 sm:$0xff]  }
 0x3fc   :  { %v4906_v57 = vmax.f32 %v4904_v21, %v4905_v55  ;;  %v4885_v29 = vmax.f32 %v4883_v5, %v4884_v51  ;;  %v9313_v21 = vld [vmem:[%s13012_s5 + $0x668] ss:$16 sps:$4 sm:$0xff]   ;;  %v9318_v5 = vld [vmem:[%s13012_s5 + $0x684] ss:$16 sps:$4 sm:$0xff]   ;;  %v9316_v11 = vld [vmem:[%s13012_s5 + $0x680] ss:$16 sps:$4 sm:$0xff]  }
 0x3fd   :  { %v4865_v1 = vrot.slane %v4864_v14, 1  ;;  %v4927_v6 = vmax.f32 %v4925_v16, %v4926_v23  ;;  %v9319_v16 = vld [vmem:[%s13012_s5 + $0x688] ss:$16 sps:$4 sm:$0xff]   ;;  %v9324_v55 = vld [vmem:[%s13012_s5 + $0x6a4] ss:$16 sps:$4 sm:$0xff]  }
 0x3fe   :  { %v4907_v48 = vrot.slane %v4906_v57, 1  ;;  %v4886_v50 = vrot.slane %v4885_v29, 1  ;;  %v9327_v51 = vld [vmem:[%s13012_s5 + $0x6ac] ss:$16 sps:$4 sm:$0xff]   ;;  %v9322_v22 = vld [vmem:[%s13012_s5 + $0x6a0] ss:$16 sps:$4 sm:$0xff]  }
 0x3ff   :  { %v4866_v36 = vmax.f32 %v4864_v14, %v4865_v1  ;;  %v4928_v12 = vrot.slane %v4927_v6, 1  ;;  %v9325_v14 = vld [vmem:[%s13012_s5 + $0x6a8] ss:$16 sps:$4 sm:$0xff]   ;;  %v9330_v23 = vld [vmem:[%s13012_s5 + $0x6c4] ss:$16 sps:$4 sm:$0xff]  }
 0x400   :  { %v4908_v24 = vmax.f32 %v4906_v57, %v4907_v48  ;;  %v4887_v0 = vmax.f32 %v4885_v29, %v4886_v50  ;;  %v9328_v44 = vld [vmem:[%s13012_s5 + $0x6c0] ss:$16 sps:$4 sm:$0xff]   ;;  %v9331_v57 = vld [vmem:[%s13012_s5 + $0x6c8] ss:$16 sps:$4 sm:$0xff]   ;;  %v9336_v29 = vld [vmem:[%s13012_s5 + $0x6e4] ss:$16 sps:$4 sm:$0xff]  }
 0x401   :  { %v4942_v8 = vpack.c.bf16 %v4866_v36, %v4866_v36  ;;  %v4929_v37 = vmax.f32 %v4927_v6, %v4928_v12  ;;  %v9334_v1 = vld [vmem:[%s13012_s5 + $0x6e0] ss:$16 sps:$4 sm:$0xff]   ;;  %v9337_v6 = vld [vmem:[%s13012_s5 + $0x6e8] ss:$16 sps:$4 sm:$0xff]   ;;  %v9342_v48 = vld [vmem:[%s13012_s5 + $0x704] ss:$16 sps:$4 sm:$0xff]  }
 0x402   :  { %v4944_v15 = vpack.c.bf16 %v4908_v24, %v4908_v24  ;;  %v4943_v13 = vpack.c.bf16 %v4887_v0, %v4887_v0  ;;  %v9345_v50 = vld [vmem:[%s13012_s5 + $0x70c] ss:$16 sps:$4 sm:$0xff]   ;;  %v9340_v19 = vld [vmem:[%s13012_s5 + $0x700] ss:$16 sps:$4 sm:$0xff]   ;;  %v9343_v36 = vld [vmem:[%s13012_s5 + $0x708] ss:$16 sps:$4 sm:$0xff]  }
 0x403   :  { %v5252_v17 = vunpack.c.l.b16 %v4942_v8  ;;  %v4945_v30 = vpack.c.bf16 %v4929_v37, %v4929_v37  ;;  %v9348_v12 = vld [vmem:[%s13012_s5 + $0x724] ss:$16 sps:$4 sm:$0xff]   ;;  %v9351_v63 = vld [vmem:[%s13012_s5 + $0x72c] ss:$16 sps:$4 sm:$0xff]   ;;  %v9346_v24 = vld [vmem:[%s13012_s5 + $0x720] ss:$16 sps:$4 sm:$0xff]  }
 0x404   :  { %v5254_v45 = vunpack.c.l.b16 %v4944_v15  ;;  %v5253_v52 = vunpack.c.l.b16 %v4943_v13  ;;  %v9349_v0 = vld [vmem:[%s13012_s5 + $0x728] ss:$16 sps:$4 sm:$0xff]   ;;  %v9354_v7 = vld [vmem:[%s13012_s5 + $0x744] ss:$16 sps:$4 sm:$0xff]   ;;  %v9357_v8 = vld [vmem:[%s13012_s5 + $0x74c] ss:$16 sps:$4 sm:$0xff]  }
 0x405   :  { %v5261_v32 = vsel %vm5256_vm0, %v5252_v17, %v5244_v28  ;;  %v5255_v38 = vunpack.c.l.b16 %v4945_v30  ;;  %v9352_v37 = vld [vmem:[%s13012_s5 + $0x740] ss:$16 sps:$4 sm:$0xff]   ;;  %v9355_v62 = vld [vmem:[%s13012_s5 + $0x748] ss:$16 sps:$4 sm:$0xff]   ;;  %v9360_v15 = vld [vmem:[%s13012_s5 + $0x764] ss:$16 sps:$4 sm:$0xff]  }
 0x406   :  { %v5262_v35 = vsel %vm5256_vm0, %v5253_v52, %v5245_v27  ;;  %v12540_v58 = vsel %vm5256_vm0, %v5254_v45, %v5246_v54  ;;  %v5269_v53 = vpack.c.b16 %v5261_v32, %v5261_v32  ;;  %v9363_v13 = vld [vmem:[%s13012_s5 + $0x76c] ss:$16 sps:$4 sm:$0xff]   ;;  %v9358_v28 = vld [vmem:[%s13012_s5 + $0x760] ss:$16 sps:$4 sm:$0xff]   ;;  %v9361_v17 = vld [vmem:[%s13012_s5 + $0x768] ss:$16 sps:$4 sm:$0xff]  }
 0x407   :  { %v5270_v20 = vpack.c.b16 %v5262_v35, %v5262_v35  ;;  %v5264_v3 = vsel %vm5256_vm0, %v5255_v38, %v5247_v25  ;;  %v9366_v30 = vld [vmem:[%s13012_s5 + $0x784] ss:$16 sps:$4 sm:$0xff]   ;;  %v9369_v54 = vld [vmem:[%s13012_s5 + $0x78c] ss:$16 sps:$4 sm:$0xff]   ;;  %v9364_v45 = vld [vmem:[%s13012_s5 + $0x780] ss:$16 sps:$4 sm:$0xff]  }
 0x408   :  { %v5272_v31 = vpack.c.b16 %v5264_v3, %v5264_v3  ;;  %v9367_v27 = vld [vmem:[%s13012_s5 + $0x788] ss:$16 sps:$4 sm:$0xff]   ;;  %v9372_v52 = vld [vmem:[%s13012_s5 + $0x7a4] ss:$16 sps:$4 sm:$0xff]   ;;  %v9375_v32 = vld [vmem:[%s13012_s5 + $0x7ac] ss:$16 sps:$4 sm:$0xff]  }
 0x409   :  { %6675 = vmatprep.mubr.bf16.mxu0 %v5270_v20  ;;  %6839 = vmatprep.mubr.bf16.mxu1 %v5270_v20  ;;  %v9370_v25 = vld [vmem:[%s13012_s5 + $0x7a0] ss:$16 sps:$4 sm:$0xff]   ;;  %v9373_v38 = vld [vmem:[%s13012_s5 + $0x7a8] ss:$16 sps:$4 sm:$0xff]   ;;  %v9378_v35 = vld [vmem:[%s13012_s5 + $0x7c4] ss:$16 sps:$4 sm:$0xff]  }
 0x40a   :  { %6676 = vmatmul.mubr.bf16.vlgmr.msra.gmra.mrb[160].mxu0 %v5269_v53  ;;  %6840 = vmatmul.mubr.bf16.vlgmr.msra.gmra.mrb[224].mxu1 %v5269_v53  ;;  %v9381_v20 = vld [vmem:[%s13012_s5 + $0x7cc] ss:$16 sps:$4 sm:$0xff]   ;;  %v9384_v3 = vld [vmem:[%s13012_s5 + $0x7e4] ss:$16 sps:$4 sm:$0xff]  }
 0x40b   :  { %6685 = vmatpush1.bf16.msra.mxu0 %v9292_v59  ;;  %6849 = vmatpush1.bf16.msra.mxu1 %v9295_v26  ;;  %v9376_v59 = vld [vmem:[%s13012_s5 + $0x7c0] ss:$16 sps:$4 sm:$0xff]   ;;  %v9379_v26 = vld [vmem:[%s13012_s5 + $0x7c8] ss:$16 sps:$4 sm:$0xff]   ;;  %v9387_v53 = vld [vmem:[%s13012_s5 + $0x7ec] ss:$16 sps:$4 sm:$0xff]  }
 0x40c   :  { %6716 = vmatprep.mubr.bf16.mxu0 %v5272_v31  ;;  %6880 = vmatprep.mubr.bf16.mxu1 %v5272_v31  ;;  %v9390_v31 = vld [vmem:[%s13014_s7 + $0x4] ss:$8 sps:$4 sm:$0xff]  }
 0x40d   :  { %6686 = vmatprep.subr.bf16.mxu0 %v9300_v42  ;;  %6850 = vmatprep.subr.bf16.mxu1 %v9303_v61  ;;  %v9382_v42 = vld [vmem:[%s13012_s5 + $0x7e0] ss:$16 sps:$4 sm:$0xff]   ;;  %v9385_v61 = vld [vmem:[%s13012_s5 + $0x7e8] ss:$16 sps:$4 sm:$0xff]  }
 0x40f   :  { %6687 = vmatpush1.bf16.msra.mxu0 %v9298_v43  ;;  %6851 = vmatpush1.bf16.msra.mxu1 %v9301_v4  ;;  %v9388_v43 = vld [vmem:[%s13014_s7] ss:$8 sps:$4 sm:$0xff]   ;;  %v5271_v4 = vpack.c.b16 %v12540_v58, %v12540_v58 }
 0x410   :  { %6688 = vmatprep.subr.bf16.mxu0 %v9306_v56  ;;  %6852 = vmatprep.subr.bf16.mxu1 %v9309_v47  ;;  %v9393_v56 = vld [vmem:[%s13014_s7 + $0x14] ss:$8 sps:$4 sm:$0xff]   ;;  %v9391_v47 = vld [vmem:[%s13014_s7 + $0x10] ss:$8 sps:$4 sm:$0xff]   ;;  %v9394_v58 = vld [vmem:[%s13014_s7 + $0x20] ss:$8 sps:$4 sm:$0xff]  }
 0x413   :  { %6689 = vmatpush1.bf16.msra.mxu0 %v9304_v40  ;;  %6853 = vmatpush1.bf16.msra.mxu1 %v9307_v10  ;;  %v9396_v40 = vld [vmem:[%s13014_s7 + $0x24] ss:$8 sps:$4 sm:$0xff]   ;;  %v9399_v10 = vld [vmem:[%s13014_s7 + $0x34] ss:$8 sps:$4 sm:$0xff]  }
 0x414   :  { %6690 = vmatprep.subr.bf16.mxu0 %v9312_v41  ;;  %6854 = vmatprep.subr.bf16.mxu1 %v9315_v18  ;;  %v9397_v41 = vld [vmem:[%s13014_s7 + $0x30] ss:$8 sps:$4 sm:$0xff]   ;;  %v9402_v18 = vld [vmem:[%s13014_s7 + $0x44] ss:$8 sps:$4 sm:$0xff]  }
 0x417   :  { %6691 = vmatpush1.bf16.msra.mxu0 %v9310_v2  ;;  %6855 = vmatpush1.bf16.msra.mxu1 %v9313_v21  ;;  %v9400_v2 = vld [vmem:[%s13014_s7 + $0x40] ss:$8 sps:$4 sm:$0xff]   ;;  %v9405_v21 = vld [vmem:[%s13014_s7 + $0x54] ss:$8 sps:$4 sm:$0xff]  }
 0x418   :  { %6692 = vmatprep.subr.bf16.mxu0 %v9318_v5  ;;  %6856 = vmatprep.subr.bf16.mxu1 %v9321_v49  ;;  %v9403_v5 = vld [vmem:[%s13014_s7 + $0x50] ss:$8 sps:$4 sm:$0xff]   ;;  %v9408_v49 = vld [vmem:[%s13014_s7 + $0x64] ss:$8 sps:$4 sm:$0xff]  }
 0x41b   :  { %6693 = vmatpush1.bf16.msra.mxu0 %v9316_v11  ;;  %6857 = vmatpush1.bf16.msra.mxu1 %v9319_v16  ;;  %v9406_v11 = vld [vmem:[%s13014_s7 + $0x60] ss:$8 sps:$4 sm:$0xff]   ;;  %v9411_v16 = vld [vmem:[%s13014_s7 + $0x74] ss:$8 sps:$4 sm:$0xff]  }
 0x41c   :  { %6694 = vmatprep.subr.bf16.mxu0 %v9324_v55  ;;  %6858 = vmatprep.subr.bf16.mxu1 %v9327_v51  ;;  %v9409_v55 = vld [vmem:[%s13014_s7 + $0x70] ss:$8 sps:$4 sm:$0xff]   ;;  %v9414_v51 = vld [vmem:[%s13014_s7 + $0x84] ss:$8 sps:$4 sm:$0xff]  }
 0x41f   :  { %6695 = vmatpush1.bf16.msra.mxu0 %v9322_v22  ;;  %6859 = vmatpush1.bf16.msra.mxu1 %v9325_v14  ;;  %v9412_v22 = vld [vmem:[%s13014_s7 + $0x80] ss:$8 sps:$4 sm:$0xff]   ;;  %v9417_v14 = vld [vmem:[%s13014_s7 + $0x94] ss:$8 sps:$4 sm:$0xff]  }
 0x420   :  { %6696 = vmatprep.subr.bf16.mxu0 %v9330_v23  ;;  %6860 = vmatprep.subr.bf16.mxu1 %v9333_v33  ;;  %v9415_v23 = vld [vmem:[%s13014_s7 + $0x90] ss:$8 sps:$4 sm:$0xff]   ;;  %v9420_v33 = vld [vmem:[%s13014_s7 + $0xa4] ss:$8 sps:$4 sm:$0xff]  }
 0x423   :  { %6697 = vmatpush1.bf16.msra.mxu0 %v9328_v44  ;;  %6861 = vmatpush1.bf16.msra.mxu1 %v9331_v57  ;;  %v9418_v44 = vld [vmem:[%s13014_s7 + $0xa0] ss:$8 sps:$4 sm:$0xff]   ;;  %v9423_v57 = vld [vmem:[%s13014_s7 + $0xb4] ss:$8 sps:$4 sm:$0xff]  }
 0x424   :  { %6698 = vmatprep.subr.bf16.mxu0 %v9336_v29  ;;  %6862 = vmatprep.subr.bf16.mxu1 %v9339_v60  ;;  %v9421_v29 = vld [vmem:[%s13014_s7 + $0xb0] ss:$8 sps:$4 sm:$0xff]   ;;  %v9426_v60 = vld [vmem:[%s13014_s7 + $0xc4] ss:$8 sps:$4 sm:$0xff]  }
 0x427   :  { %6699 = vmatpush1.bf16.msra.mxu0 %v9334_v1  ;;  %6863 = vmatpush1.bf16.msra.mxu1 %v9337_v6  ;;  %v9424_v1 = vld [vmem:[%s13014_s7 + $0xc0] ss:$8 sps:$4 sm:$0xff]   ;;  %v9429_v6 = vld [vmem:[%s13014_s7 + $0xd4] ss:$8 sps:$4 sm:$0xff]  }
 0x428   :  { %6700 = vmatprep.subr.bf16.mxu0 %v9342_v48  ;;  %6864 = vmatprep.subr.bf16.mxu1 %v9345_v50  ;;  %v9427_v48 = vld [vmem:[%s13014_s7 + $0xd0] ss:$8 sps:$4 sm:$0xff]   ;;  %v9430_v50 = vld [vmem:[%s13014_s7 + $0xe0] ss:$8 sps:$4 sm:$0xff]  }
 0x42b   :  { %6701 = vmatpush1.bf16.msra.mxu0 %v9340_v19  ;;  %6865 = vmatpush1.bf16.msra.mxu1 %v9343_v36  ;;  %v9432_v19 = vld [vmem:[%s13014_s7 + $0xe4] ss:$8 sps:$4 sm:$0xff]   ;;  %v9435_v36 = vld [vmem:[%s13014_s7 + $0xf4] ss:$8 sps:$4 sm:$0xff]  }
 0x42c   :  { %6702 = vmatprep.subr.bf16.mxu0 %v9348_v12  ;;  %6866 = vmatprep.subr.bf16.mxu1 %v9351_v63  ;;  %v9433_v12 = vld [vmem:[%s13014_s7 + $0xf0] ss:$8 sps:$4 sm:$0xff]   ;;  %v9438_v63 = vld [vmem:[%s13014_s7 + $0x104] ss:$8 sps:$4 sm:$0xff]  }
 0x42f   :  { %6703 = vmatpush1.bf16.msra.mxu0 %v9346_v24  ;;  %6867 = vmatpush1.bf16.msra.mxu1 %v9349_v0  ;;  %v9484_v24 = vld [vmem:[%s13016_s9 + $0x40] sm:$0xff]  }
 0x430   :  { %6704 = vmatprep.subr.bf16.mxu0 %v9354_v7  ;;  %6868 = vmatprep.subr.bf16.mxu1 %v9357_v8  ;;  %v9485_v0 = vld [vmem:[%s13016_s9] sm:$0xff]   ;;  %v9486_v7 = vld [vmem:[%s13016_s9 + $0x48] sm:$0xff]  }
 0x431   :  { %v9487_v8 = vld [vmem:[%s13016_s9 + $0x8] sm:$0xff]  }
 0x433   :  { %6705 = vmatpush1.bf16.msra.mxu0 %v9352_v37  ;;  %6869 = vmatpush1.bf16.msra.mxu1 %v9355_v62  ;;  %v9488_v37 = vld [vmem:[%s13016_s9 + $0x50] sm:$0xff]  }
 0x434   :  { %6706 = vmatprep.subr.bf16.mxu0 %v9360_v15  ;;  %6870 = vmatprep.subr.bf16.mxu1 %v9363_v13  ;;  %v9489_v62 = vld [vmem:[%s13016_s9 + $0x10] sm:$0xff]   ;;  %v9490_v15 = vld [vmem:[%s13016_s9 + $0x58] sm:$0xff]  }
 0x435   :  { %v9491_v13 = vld [vmem:[%s13016_s9 + $0x18] sm:$0xff]  }
 0x437   :  { %6707 = vmatpush1.bf16.msra.mxu0 %v9358_v28  ;;  %6871 = vmatpush1.bf16.msra.mxu1 %v9361_v17  ;;  %v9492_v28 = vld [vmem:[%s13016_s9 + $0x60] sm:$0xff]  }
 0x438   :  { %6708 = vmatprep.subr.bf16.mxu0 %v9366_v30  ;;  %6872 = vmatprep.subr.bf16.mxu1 %v9369_v54  ;;  %v9493_v17 = vld [vmem:[%s13016_s9 + $0x20] sm:$0xff]   ;;  %v9494_v30 = vld [vmem:[%s13016_s9 + $0x68] sm:$0xff]  }
 0x439   :  { %v9495_v54 = vld [vmem:[%s13016_s9 + $0x28] sm:$0xff]  }
 0x43b   :  { %6709 = vmatpush1.bf16.msra.mxu0 %v9364_v45  ;;  %6873 = vmatpush1.bf16.msra.mxu1 %v9367_v27  ;;  %v12869_v45 = vld [vmem:[%s13013_s6] sm:$0xf] }
 0x43c   :  { %6710 = vmatprep.subr.bf16.mxu0 %v9372_v52  ;;  %6874 = vmatprep.subr.bf16.mxu1 %v9375_v32  ;;  %v5207_v27 = vrot.slane %v12869_v45, %v13118_v46  ;;  %v5211_v52 = vrot.slane %v12869_v45, %v13121_v39  ;;  %v5219_v32 = vrot.slane %v12869_v45, %v13122_v34  ;;  %v9436_v34 = vld [vmem:[%s13014_s7 + $0x100] ss:$8 sps:$4 sm:$0xff]  }
 0x43f   :  { %6711 = vmatpush1.bf16.msra.mxu0 %v9370_v25  ;;  %6875 = vmatpush1.bf16.msra.mxu1 %v9373_v38 }
 0x440   :  { %6712 = vmatprep.subr.bf16.mxu0 %v9378_v35  ;;  %6876 = vmatprep.subr.bf16.mxu1 %v9381_v20 }
 0x443   :  { %6713 = vmatpush1.bf16.msra.mxu0 %v9376_v59  ;;  %6877 = vmatpush1.bf16.msra.mxu1 %v9379_v26 }
 0x444   :  { %6714 = vmatprep.subr.bf16.mxu0 %v9384_v3  ;;  %6878 = vmatprep.subr.bf16.mxu1 %v9387_v53 }
 0x447   :  { %6715 = vmatpush1.bf16.msra.mxu0 %v9382_v42  ;;  %6879 = vmatpush1.bf16.msra.mxu1 %v9385_v61 }
 0x448   :  { %7293 = vmatprep.subr.bf16.mxu0 %v9390_v31  ;;  %8259 = vmatprep.subr.bf16.mxu1 %v9484_v24  ;;  %v9480_v24 = vld [vmem:[%s13014_s7 + $0x1e4] ss:$8 sps:$4 sm:$0xff]  }
 0x44a   :  { %6717 = vmatmul.mubr.bf16.vlgmr.msra.gmra.mrb[160].mxu0 %v5271_v4  ;;  %6881 = vmatmul.mubr.bf16.vlgmr.msra.gmra.mrb[224].mxu1 %v5271_v4 }
 0x44b   :  { %7294 = vmatpush1.bf16.msra.mxu0 %v9388_v43  ;;  %8260 = vmatpush3.bf16.msra.mxu1 %v9485_v0  ;;  %v9478_v0 = vld [vmem:[%s13014_s7 + $0x1e0] ss:$8 sps:$4 sm:$0xff]  }
 0x44c   :  { %7295 = vmatprep.subr.bf16.mxu0 %v9393_v56  ;;  %8261 = vmatprep.subr.bf16.mxu1 %v9486_v7 }
 0x44f   :  { %7296 = vmatpush1.bf16.msra.mxu0 %v9391_v47  ;;  %8262 = vmatpush3.bf16.msra.mxu1 %v9487_v8  ;;  %v9483_v8 = vld [vmem:[%s13014_s7 + $0x1f4] ss:$8 sps:$4 sm:$0xff]  }
 0x450   :  { %7297 = vmatprep.subr.bf16.mxu0 %v9396_v40  ;;  %8263 = vmatprep.subr.bf16.mxu1 %v9488_v37 }
 0x453   :  { %7298 = vmatpush1.bf16.msra.mxu0 %v9394_v58  ;;  %8264 = vmatpush3.bf16.msra.mxu1 %v9489_v62  ;;  %v9441_v58 = vld [vmem:[%s13014_s7 + $0x114] ss:$8 sps:$4 sm:$0xff]  }
 0x454   :  { %7299 = vmatprep.subr.bf16.mxu0 %v9399_v10  ;;  %8265 = vmatprep.subr.bf16.mxu1 %v9490_v15  ;;  %v9496_v15 = vld [vmem:[%s13016_s9 + $0x70] sm:$0xff]  }
 0x457   :  { %7300 = vmatpush1.bf16.msra.mxu0 %v9397_v41  ;;  %8266 = vmatpush3.bf16.msra.mxu1 %v9491_v13  ;;  %v9439_v41 = vld [vmem:[%s13014_s7 + $0x110] ss:$8 sps:$4 sm:$0xff]  }
 0x458   :  { %7301 = vmatprep.subr.bf16.mxu0 %v9402_v18  ;;  %8267 = vmatprep.subr.bf16.mxu1 %v9492_v28  ;;  %v9444_v18 = vld [vmem:[%s13014_s7 + $0x124] ss:$8 sps:$4 sm:$0xff]   ;;  %v9497_v13 = vld [vmem:[%s13016_s9 + $0x30] sm:$0xff]   ;;  %v9498_v28 = vld [vmem:[%s13016_s9 + $0x78] sm:$0xff]  }
 0x45b   :  { %7302 = vmatpush1.bf16.msra.mxu0 %v9400_v2  ;;  %8268 = vmatpush3.bf16.msra.mxu1 %v9493_v17  ;;  %v9442_v2 = vld [vmem:[%s13014_s7 + $0x120] ss:$8 sps:$4 sm:$0xff]   ;;  %v9499_v17 = vld [vmem:[%s13016_s9 + $0x38] sm:$0xff]  }
 0x45c   :  { %7303 = vmatprep.subr.bf16.mxu0 %v9405_v21  ;;  %8269 = vmatprep.subr.bf16.mxu1 %v9494_v30  ;;  %v9447_v21 = vld [vmem:[%s13014_s7 + $0x134] ss:$8 sps:$4 sm:$0xff]   ;;  %v6961_v30 = vld [vmem:[%s13015_s8] sm:$0x3]  ;;  %s9537_s8 = smov [#allocation2]  }
 0x45d   :  { %s7562_s13 = sshll.u32 %s9537_s8, 4  ;;  %s7563_s13 = int_to_ptr.vmem [resolvable:$true] %s7562_s13 }
 0x45e   :  { %s9513_s14 = scalar_lea.vmem %s7563_s13, 32  ;;  %p9518_p1 = scmp.lt.s32.totalorder %s7563_s13, %s7563_s13 }
 0x45f   :  { %7304 = vmatpush1.bf16.msra.mxu0 %v9403_v5  ;;  %8270 = vmatpush3.bf16.msra.mxu1 %v9495_v54  ;;  %v9445_v5 = vld [vmem:[%s13014_s7 + $0x130] ss:$8 sps:$4 sm:$0xff]   ;;  %v6966_v54 = vrot.slane %v6961_v30, %v13118_v46  ;;  %p9514_p0 = scmp.ne.s32.totalorder %s7563_s13, %s9513_s14  ;;  %p9519_p2 = scmp.lt.s32.totalorder %s9513_s14, %s9513_s14 }
 0x460   :  { %7305 = vmatprep.subr.bf16.mxu0 %v9408_v49  ;;  %v9450_v49 = vld [vmem:[%s13014_s7 + $0x144] ss:$8 sps:$4 sm:$0xff]   ;;  %8271 = vmatprep.subr.bf16.mxu1 %v9496_v15 }
 0x461   :  { %p9520_p3 = por %p9519_p2, %p9518_p1 }
 0x463   :  { %7306 = vmatpush1.bf16.msra.mxu0 %v9406_v11  ;;  %v9448_v11 = vld [vmem:[%s13014_s7 + $0x140] ss:$8 sps:$4 sm:$0xff]   ;;  %8272 = vmatpush3.bf16.msra.mxu1 %v9497_v13  ;;  %p9521_p4 = pnand %p9520_p3, %p9514_p0 }
 0x464   :  { %7307 = vmatprep.subr.bf16.mxu0 %v9411_v16  ;;  %v9453_v16 = vld [vmem:[%s13014_s7 + $0x154] ss:$8 sps:$4 sm:$0xff]   ;;  %8273 = vmatprep.subr.bf16.mxu1 %v9498_v28 }
 0x467   :  { %7308 = vmatpush1.bf16.msra.mxu0 %v9409_v55  ;;  %v9451_v55 = vld [vmem:[%s13014_s7 + $0x150] ss:$8 sps:$4 sm:$0xff]   ;;  %8274 = vmatpush3.bf16.msra.mxu1 %v9499_v17 }
 0x468   :  { %7309 = vmatprep.subr.bf16.mxu0 %v9414_v51  ;;  %v9456_v51 = vld [vmem:[%s13014_s7 + $0x164] ss:$8 sps:$4 sm:$0xff]  }
 0x46b   :  { %7310 = vmatpush1.bf16.msra.mxu0 %v9412_v22  ;;  %v9454_v22 = vld [vmem:[%s13014_s7 + $0x160] ss:$8 sps:$4 sm:$0xff]  }
 0x46c   :  { %7311 = vmatprep.subr.bf16.mxu0 %v9417_v14  ;;  %v9459_v14 = vld [vmem:[%s13014_s7 + $0x174] ss:$8 sps:$4 sm:$0xff]  }
 0x46f   :  { %7312 = vmatpush1.bf16.msra.mxu0 %v9415_v23  ;;  %v9457_v23 = vld [vmem:[%s13014_s7 + $0x170] ss:$8 sps:$4 sm:$0xff]  }
 0x470   :  { %7313 = vmatprep.subr.bf16.mxu0 %v9420_v33  ;;  %v9462_v33 = vld [vmem:[%s13014_s7 + $0x184] ss:$8 sps:$4 sm:$0xff]  }
 0x473   :  { %7314 = vmatpush1.bf16.msra.mxu0 %v9418_v44  ;;  %v9460_v44 = vld [vmem:[%s13014_s7 + $0x180] ss:$8 sps:$4 sm:$0xff]  }
 0x474   :  { %7315 = vmatprep.subr.bf16.mxu0 %v9423_v57  ;;  %v9465_v57 = vld [vmem:[%s13014_s7 + $0x194] ss:$8 sps:$4 sm:$0xff]  }
 0x477   :  { %7316 = vmatpush1.bf16.msra.mxu0 %v9421_v29  ;;  %v9463_v29 = vld [vmem:[%s13014_s7 + $0x190] ss:$8 sps:$4 sm:$0xff]  }
 0x478   :  { %7317 = vmatprep.subr.bf16.mxu0 %v9426_v60  ;;  %v9468_v60 = vld [vmem:[%s13014_s7 + $0x1a4] ss:$8 sps:$4 sm:$0xff]  }
 0x47b   :  { %7318 = vmatpush1.bf16.msra.mxu0 %v9424_v1  ;;  %v9466_v1 = vld [vmem:[%s13014_s7 + $0x1a0] ss:$8 sps:$4 sm:$0xff]  }
 0x47c   :  { %7319 = vmatprep.subr.bf16.mxu0 %v9429_v6  ;;  %v9471_v6 = vld [vmem:[%s13014_s7 + $0x1b4] ss:$8 sps:$4 sm:$0xff]  }
 0x47f   :  { %7320 = vmatpush1.bf16.msra.mxu0 %v9427_v48  ;;  %v9469_v48 = vld [vmem:[%s13014_s7 + $0x1b0] ss:$8 sps:$4 sm:$0xff]  }
 0x480   :  { %7321 = vmatprep.subr.bf16.mxu0 %v9432_v19  ;;  %v9472_v19 = vld [vmem:[%s13014_s7 + $0x1c0] ss:$8 sps:$4 sm:$0xff]  }
 0x483   :  { %7322 = vmatpush1.bf16.msra.mxu0 %v9430_v50  ;;  %v9474_v50 = vld [vmem:[%s13014_s7 + $0x1c4] ss:$8 sps:$4 sm:$0xff]  }
 0x484   :  { %7323 = vmatprep.subr.bf16.mxu0 %v9435_v36  ;;  %v9477_v36 = vld [vmem:[%s13014_s7 + $0x1d4] ss:$8 sps:$4 sm:$0xff]  }
 0x487   :  { %7324 = vmatpush1.bf16.msra.mxu0 %v9433_v12  ;;  %v9475_v12 = vld [vmem:[%s13014_s7 + $0x1d0] ss:$8 sps:$4 sm:$0xff]  }
 0x488   :  { %7334 = vmatprep.subr.bf16.mxu0 %v9438_v63  ;;  %v5215_v63 = vrot.slane %v12869_v45, %v13119_v9  ;;  %v9481_v9 = vld [vmem:[%s13014_s7 + $0x1f0] ss:$8 sps:$4 sm:$0xff]   ;;  %v6970_v45 = vrot.slane %v6961_v30, %v13121_v39 }
 0x51d   :  { %v6718_v25 = vpop.f32.mrb[160].mxu0  ;;  %v12877_v38 = vpop.f32.mrb[224].mxu1 }
 0x51e   :  { %v8569_v35 = vadd.f32 %v6718_v25, %v5207_v27  ;;  %v6720_v20 = vpop.f32.mrb[161].mxu0  ;;  %v6884_v59 = vpop.f32.mrb[225].mxu1  ;;  %v8571_v7 = vadd.f32 %v12877_v38, %v5215_v63 }
 0x51f   :  { %v8570_v26 = vadd.f32 %v6720_v20, %v5211_v52  ;;  %v8572_v3 = vadd.f32 %v6884_v59, %v5219_v32  ;;  %v6722_v53 = vpop.f32.mrb[162].mxu0  ;;  %v6886_v42 = vpop.f32.mrb[226].mxu1 }
 0x520   :  { %v6889_v61 = vmax.f32 %v8569_v35, 0.0  ;;  %v6723_v31 = vpop.f32.mrb[163].mxu0  ;;  %v6887_v43 = vpop.f32.mrb[227].mxu1  ;;  %v6891_v37 = vmax.f32 %v8571_v7, 0.0  ;;  %v8242_v42 = vld [vmem:[%s13017_s10] ss:$0 sm:$0xff] }
 0x521   :  { %v6890_v4 = vmax.f32 %v8570_v26, 0.0  ;;  %v6892_v56 = vmax.f32 %v8572_v3, 0.0 }
 0x522   :  { %v6893_v40 = vpack.c.bf16 %v6889_v61, %v6889_v61  ;;  %v6895_v62 = vpack.c.bf16 %v6891_v37, %v6891_v37 }
 0x523   :  { %v6894_v47 = vpack.c.bf16 %v6890_v4, %v6890_v4  ;;  %v6896_v10 = vpack.c.bf16 %v6892_v56, %v6892_v56 }
 0x525   :  { %7325 = vmatprep.mubr.bf16.mxu0 %v6894_v47 }
 0x526   :  { %7326 = vmatmul.mubr.bf16.vlgmr.msra.gmra.mrb[164].mxu0 %v6893_v40 }
 0x527   :  { %7335 = vmatpush1.bf16.msra.mxu0 %v9436_v34  ;;  %7366 = vmatprep.mubr.bf16.mxu0 %v6896_v10 }
 0x528   :  { %7336 = vmatprep.subr.bf16.mxu0 %v9441_v58 }
 0x52b   :  { %7337 = vmatpush1.bf16.msra.mxu0 %v9439_v41 }
 0x52c   :  { %7338 = vmatprep.subr.bf16.mxu0 %v9444_v18 }
 0x52f   :  { %7339 = vmatpush1.bf16.msra.mxu0 %v9442_v2 }
 0x530   :  { %7340 = vmatprep.subr.bf16.mxu0 %v9447_v21 }
 0x533   :  { %7341 = vmatpush1.bf16.msra.mxu0 %v9445_v5 }
 0x534   :  { %7342 = vmatprep.subr.bf16.mxu0 %v9450_v49 }
 0x537   :  { %7343 = vmatpush1.bf16.msra.mxu0 %v9448_v11 }
 0x538   :  { %7344 = vmatprep.subr.bf16.mxu0 %v9453_v16 }
 0x53b   :  { %7345 = vmatpush1.bf16.msra.mxu0 %v9451_v55 }
 0x53c   :  { %7346 = vmatprep.subr.bf16.mxu0 %v9456_v51 }
 0x53f   :  { %7347 = vmatpush1.bf16.msra.mxu0 %v9454_v22 }
 0x540   :  { %7348 = vmatprep.subr.bf16.mxu0 %v9459_v14 }
 0x543   :  { %7349 = vmatpush1.bf16.msra.mxu0 %v9457_v23 }
 0x544   :  { %7350 = vmatprep.subr.bf16.mxu0 %v9462_v33 }
 0x547   :  { %7351 = vmatpush1.bf16.msra.mxu0 %v9460_v44 }
 0x548   :  { %7352 = vmatprep.subr.bf16.mxu0 %v9465_v57 }
 0x54b   :  { %7353 = vmatpush1.bf16.msra.mxu0 %v9463_v29 }
 0x54c   :  { %7354 = vmatprep.subr.bf16.mxu0 %v9468_v60 }
 0x54f   :  { %7355 = vmatpush1.bf16.msra.mxu0 %v9466_v1 }
 0x550   :  { %7356 = vmatprep.subr.bf16.mxu0 %v9471_v6 }
 0x553   :  { %7357 = vmatpush1.bf16.msra.mxu0 %v9469_v48 }
 0x554   :  { %7358 = vmatprep.subr.bf16.mxu0 %v9474_v50 }
 0x557   :  { %7359 = vmatpush1.bf16.msra.mxu0 %v9472_v19 }
 0x558   :  { %7360 = vmatprep.subr.bf16.mxu0 %v9477_v36 }
 0x55b   :  { %7361 = vmatpush1.bf16.msra.mxu0 %v9475_v12 }
 0x55c   :  { %7362 = vmatprep.subr.bf16.mxu0 %v9480_v24 }
 0x55f   :  { %7363 = vmatpush1.bf16.msra.mxu0 %v9478_v0 }
 0x560   :  { %7364 = vmatprep.subr.bf16.mxu0 %v9483_v8 }
 0x563   :  { %7365 = vmatpush1.bf16.msra.mxu0 %v9481_v9 }
 0x566   :  { %7367 = vmatmul.mubr.bf16.vlgmr.msra.gmra.mrb[164].mxu0 %v6895_v62 }
 0x639   :  { %v7368_v27 = vpop.f32.mrb[164].mxu0 }
 0x63a   :  { %v8573_v52 = vadd.f32 %v7368_v27, %v6966_v54  ;;  %v7370_v32 = vpop.f32.mrb[165].mxu0 }
 0x63b   :  { %v8574_v25 = vadd.f32 %v7370_v32, %v6970_v45  ;;  %v7372_v38 = vpop.f32.mrb[166].mxu0 }
 0x63c   :  { %v7375_v35 = vmax.f32 %v8573_v52, 0.0  ;;  %v7373_v20 = vpop.f32.mrb[167].mxu0 }
 0x63d   :  { %v7376_v59 = vmax.f32 %v8574_v25, 0.0 }
 0x63e   :  { %v7377_v3 = vpack.c.bf16 %v7375_v35, %v7375_v35 }
 0x63f   :  { %v7378_v26 = vpack.c.bf16 %v7376_v59, %v7376_v59 }
 0x641   :  { %7546 = vmatprep.mubr.bf16.mxu1 %v7378_v26 }
 0x642   :  { %7547 = vmatmul.mubr.bf16.vlgmr.msra.gmra.mrb[228].mxu1 %v7377_v3 }
 0x715   :  { %v8275_v53 = vpop.f32.mrb[228].mxu1 }
 0x716   :  { %v8276_v46 = vpop.f32.mrb[229].mxu1 }
 0x717   :  { %v8277_v39 = vadd.f32 %v8276_v46, %v8275_v53  ;;  %v8278_v61 = vpop.f32.mrb[230].mxu1 }
 0x718   :  { %v8279_v31 = vpop.f32.mrb[231].mxu1 }
 0x719   :  { %v7549_v43 = vadd.f32 %v8277_v39, %v8242_v42 }
 0x71b   :  { %7555 = vst.msk [vmem:[#allocation2] sm:$0x3] %vm7554_vm1, %v7549_v43 }
 0x71c   :  { %9524 = shalt.err (!%p9521_p4)
}
 0x71d   :  { %s9525_s10 = scalar_lea.hbm %s13018_s11, 32 }
 0x71e   :  { %p9526_p5 = scmp.ne.s32.totalorder %s13018_s11, %s9525_s10  ;;  %p9529_p6 = scmp.lt.u32.totalorder %s9525_s10, %s13018_s11 }
 0x720   :  { %p9531_p7 = pnand %p9529_p6, %p9526_p5 }
 0x722   :  { %9534 = shalt.err (!%p9531_p7)
}
 0x723   :  { %7565 = dma.vmem_to_hbm [thread:$0]  %s7563_s13, 32, %s13018_s11, [#allocation3]  }
 0x724   :  { %9535 = dma.done.wait [#allocation3], 32  }
 0x725   :  { %9536 = vsyncadd [#allocation3], 4294967264 }
 0x726   :  { %7569 = vsyncpa [#allocation3], 1 }

</bundles_post_ra>
